<compile_context>
chip_gen: v7x
topology: tpu7x:2x2x1
jax: 0.10.0
libtpu: 0.0.40
codegen_flags: <defaults>
</compile_context>

<pallas_src>
import functools
import math

import jax
import jax.numpy as jnp
import numpy as np
from jax.experimental import pallas as pl
from jax.experimental.pallas import tpu as pltpu

BN_EPS = 1e-5
ACT_DTYPE = jnp.bfloat16
ROW_CAP = 2048          # target matmul rows (th * wo) per grid step


def _pick_vmem_limit():
    """Per-generation scoped-VMEM limit (~3/4 of physical, capped at 100 MiB)."""
    cap = 64 * 1024 * 1024
    try:
        info = pltpu.get_tpu_info()
        for name in ("vmem_capacity_bytes", "vmem_bytes", "vmem_size_bytes"):
            v = getattr(info, name, None)
            if v:
                cap = int(v)
                break
    except Exception:
        pass
    return int(max(32 * 1024 * 1024, min(cap * 3 // 4, 100 * 1024 * 1024)))


VMEM_LIMIT = _pick_vmem_limit()


# ----------------------------- Pallas kernels ------------------------------ #

def _stem_kernel(x_ref, w1_ref, b1_ref, wp_ref, bp_ref,
                 bot_ref, res_ref, y1_ref, pa_ref, pb_ref, *, th):
    """Fused MaxPool2d(2,2) + project(1x1 conv + BN) + tree1.conv1(3x3,s2)+BN+ReLU.

    x_ref is a (1, Ho, 2, Wo, 2*Cin) space-to-depth *view* of the input (a free
    reshape, no HBM transpose).  The two H-phase planes are copied once per batch
    element into two left/top zero-padded bf16 scratches; the stride-2 conv is a
    stride-1 2x2 conv over that S2D image, done as a single K=16*Cin matmul.
    """
    t = pl.program_id(1)
    ho, wo = x_ref.shape[1], x_ref.shape[3]
    cin = x_ref.shape[4] // 2
    cout = y1_ref.shape[3]

    # Build the padded S2D image once per batch element (row-tile axis is the
    # sequential "arbitrary" axis, so the scratch persists across tiles).
    # Only the padding strips are zeroed; the interior is fully overwritten.
    @pl.when(t == 0)
    def _():
        for p_ref, py in ((pa_ref, 0), (pb_ref, 1)):
            p_ref[0:1, :, :] = jnp.zeros((1, wo + 1, 2 * cin), p_ref.dtype)
            p_ref[:, 0:1, :] = jnp.zeros((ho + 1, 1, 2 * cin), p_ref.dtype)
            p_ref[1:1 + ho, 1:1 + wo, :] = x_ref[0, :, py, :, :]

    r0 = pl.multiple_of(t * th, th)
    # 8 pieces; channel order within a tap = (py, px, ci), matching _s2d_weight.
    taps = []
    for ty in range(2):
        for tx in range(2):
            taps.append(pa_ref[pl.ds(r0 + ty, th), pl.ds(tx, wo), :])
            taps.append(pb_ref[pl.ds(r0 + ty, th), pl.ds(tx, wo), :])

    # ---- MaxPool2d(2,2): max over the four S2D phases of the unpadded tile
    #      (tap (1,1)); done directly in bf16 -- max is exact. ----
    a11, b11 = taps[6], taps[7]
    bot = jnp.maximum(jnp.maximum(a11[..., :cin], a11[..., cin:]),
                      jnp.maximum(b11[..., :cin], b11[..., cin:]))
    bot_ref[0] = bot

    # ---- project = Conv1x1 + BN (no ReLU) on the pooled tile. ----
    pr = jnp.dot(bot.reshape(th * wo, cin), wp_ref[...],
                 preferred_element_type=jnp.float32) + bp_ref[...]
    res_ref[0] = pr.reshape(th, wo, cout).astype(res_ref.dtype)

    # ---- tree1.conv1: one K = 2*2*4*Cin matmul (im2col only in VMEM/vregs). ----
    slab = jnp.concatenate(taps, axis=-1)                      # (th, wo, 16*cin) bf16
    acc = jnp.dot(slab.reshape(th * wo, 16 * cin), w1_ref[...],
                  preferred_element_type=jnp.float32) + b1_ref[...]
    y1_ref[0] = jnp.maximum(acc, 0.0).reshape(th, wo, cout).astype(y1_ref.dtype)


def _conv3x3_kernel(*refs, th, has_res):
    """3x3 stride-1 pad-1 conv + folded BN [+ residual] + ReLU as one K=9*Cin dot."""
    if has_res:
        x_ref, w_ref, b_ref, res_ref, o_ref, pad_ref = refs
    else:
        x_ref, w_ref, b_ref, o_ref, pad_ref = refs
        res_ref = None
    t = pl.program_id(1)
    h, wid, cin = x_ref.shape[1], x_ref.shape[2], x_ref.shape[3]
    cout = o_ref.shape[3]

    @pl.when(t == 0)
    def _():
        zr = jnp.zeros((1, wid + 2, cin), pad_ref.dtype)
        zc = jnp.zeros((h + 2, 1, cin), pad_ref.dtype)
        pad_ref[0:1, :, :] = zr
        pad_ref[h + 1:h + 2, :, :] = zr
        pad_ref[:, 0:1, :] = zc
        pad_ref[:, wid + 1:wid + 2, :] = zc
        pad_ref[1:1 + h, 1:1 + wid, :] = x_ref[0]

    r0 = pl.multiple_of(t * th, th)
    taps = [pad_ref[pl.ds(r0 + dy, th), pl.ds(dx, wid), :]
            for dy in range(3) for dx in range(3)]
    slab = jnp.concatenate(taps, axis=-1)                      # (th, wid, 9*cin) bf16
    acc = jnp.dot(slab.reshape(th * wid, 9 * cin), w_ref[...],
                  preferred_element_type=jnp.float32) + b_ref[...]
    if has_res:
        acc = acc + res_ref[0].reshape(th * wid, cout).astype(jnp.float32)
    acc = jnp.maximum(acc, 0.0)
    o_ref[0] = acc.reshape(th, wid, cout).astype(o_ref.dtype)


def _conv_root_kernel(y_ref, w2_ref, b2_ref, x1_ref, bot_ref, wr_ref, br_ref,
                      o_ref, pad_ref, *, th):
    """tree2.conv2 (+BN +residual(x1) +ReLU) fused with root 1x1 conv + BN + ReLU.

    x2 is produced and consumed inside VMEM; the (2*Cout+Cin)-channel root concat
    never touches HBM.
    """
    t = pl.program_id(1)
    h, wid, cmid = y_ref.shape[1], y_ref.shape[2], y_ref.shape[3]
    cout = o_ref.shape[3]

    @pl.when(t == 0)
    def _():
        zr = jnp.zeros((1, wid + 2, cmid), pad_ref.dtype)
        zc = jnp.zeros((h + 2, 1, cmid), pad_ref.dtype)
        pad_ref[0:1, :, :] = zr
        pad_ref[h + 1:h + 2, :, :] = zr
        pad_ref[:, 0:1, :] = zc
        pad_ref[:, wid + 1:wid + 2, :] = zc
        pad_ref[1:1 + h, 1:1 + wid, :] = y_ref[0]

    r0 = pl.multiple_of(t * th, th)
    taps = [pad_ref[pl.ds(r0 + dy, th), pl.ds(dx, wid), :]
            for dy in range(3) for dx in range(3)]
    slab = jnp.concatenate(taps, axis=-1)                      # (th, wid, 9*cmid) bf16
    x1 = x1_ref[0]                                             # (th, wid, cout) bf16
    acc = jnp.dot(slab.reshape(th * wid, 9 * cmid), w2_ref[...],
                  preferred_element_type=jnp.float32) + b2_ref[...]
    acc = acc + x1.reshape(th * wid, cout).astype(jnp.float32)
    x2 = jnp.maximum(acc, 0.0).astype(ACT_DTYPE).reshape(th, wid, cout)

    # root: 1x1 conv over concat(x2, x1, bottom) + BN + ReLU (root_residual=False).
    rin = jnp.concatenate([x2, x1, bot_ref[0]], axis=-1)       # (th, wid, 2*cout+cin)
    racc = jnp.dot(rin.reshape(th * wid, rin.shape[-1]), wr_ref[...],
                   preferred_element_type=jnp.float32) + br_ref[...]
    o_ref[0] = jnp.maximum(racc, 0.0).reshape(th, wid, cout).astype(o_ref.dtype)


# ------------------------------ wrappers ----------------------------------- #

def _row_tile(ho, wo):
    """Largest divisor of ho with ~ROW_CAP matmul rows (th*wo) per grid step."""
    th = max(1, min(ho, ROW_CAP // max(wo, 1)))
    while ho % th:
        th -= 1
    return th


def _mosaic_params(sem):
    return pltpu.CompilerParams(dimension_semantics=sem,
                                vmem_limit_bytes=VMEM_LIMIT)


def stem(x, w1, b1, wp, bp):
    """One pass over x: bottom = MaxPool2d(2,2); residual = project(bottom);
    y1 = relu(bn(conv3x3_s2(x)))."""
    n, h, w, cin = x.shape
    ho, wo = h // 2, w // 2
    cout = wp.shape[-1]
    x5 = x.reshape(n, ho, 2, wo, 2 * cin)      # free S2D view -- no HBM transpose
    th = _row_tile(ho, wo)
    grid = (n, ho // th)
    return pl.pallas_call(
        functools.partial(_stem_kernel, th=th),
        out_shape=(jax.ShapeDtypeStruct((n, ho, wo, cin), ACT_DTYPE),    # bottom
                   jax.ShapeDtypeStruct((n, ho, wo, cout), ACT_DTYPE),   # residual
                   jax.ShapeDtypeStruct((n, ho, wo, cout), ACT_DTYPE)),  # y1
        grid_spec=pltpu.PrefetchScalarGridSpec(
            num_scalar_prefetch=0,
            grid=grid,
            in_specs=[pl.BlockSpec((1, ho, 2, wo, 2 * cin), lambda i, t: (i, 0, 0, 0, 0)),
                      pl.BlockSpec((16 * cin, cout), lambda i, t: (0, 0)),
                      pl.BlockSpec((1, cout), lambda i, t: (0, 0)),
                      pl.BlockSpec((cin, cout), lambda i, t: (0, 0)),
                      pl.BlockSpec((1, cout), lambda i, t: (0, 0))],
            out_specs=(pl.BlockSpec((1, th, wo, cin), lambda i, t: (i, t, 0, 0)),
                       pl.BlockSpec((1, th, wo, cout), lambda i, t: (i, t, 0, 0)),
                       pl.BlockSpec((1, th, wo, cout), lambda i, t: (i, t, 0, 0))),
            scratch_shapes=[pltpu.VMEM((ho + 1, wo + 1, 2 * cin), ACT_DTYPE),
                            pltpu.VMEM((ho + 1, wo + 1, 2 * cin), ACT_DTYPE)]),
        compiler_params=_mosaic_params(("parallel", "arbitrary")),
    )(x5, w1, b1, wp, bp)


def conv3x3_bn(x, w_folded, bias, residual=None):
    """3x3 stride-1 pad-1 conv + folded BN [+ residual] + ReLU."""
    n, h, w, cin = x.shape
    cout = w_folded.shape[-1]
    th = _row_tile(h, w)
    grid = (n, h // th)
    wmat = w_folded.reshape(9 * cin, cout)
    in_specs = [pl.BlockSpec((1, h, w, cin), lambda i, t: (i, 0, 0, 0)),
                pl.BlockSpec((9 * cin, cout), lambda i, t: (0, 0)),
                pl.BlockSpec((1, cout), lambda i, t: (0, 0))]
    args = [x, wmat, bias]
    if residual is not None:
        in_specs.append(pl.BlockSpec((1, th, w, cout), lambda i, t: (i, t, 0, 0)))
        args.append(residual)
    return pl.pallas_call(
        functools.partial(_conv3x3_kernel, th=th, has_res=residual is not None),
        out_shape=jax.ShapeDtypeStruct((n, h, w, cout), ACT_DTYPE),
        grid_spec=pltpu.PrefetchScalarGridSpec(
            num_scalar_prefetch=0,
            grid=grid,
            in_specs=in_specs,
            out_specs=pl.BlockSpec((1, th, w, cout), lambda i, t: (i, t, 0, 0)),
            scratch_shapes=[pltpu.VMEM((h + 2, w + 2, cin), ACT_DTYPE)]),
        compiler_params=_mosaic_params(("parallel", "arbitrary")),
    )(*args)


def conv_root(y, w2_folded, b2, x1, bottom, w_root, b_root):
    """tree2.conv2 + BN + residual(x1) + ReLU fused with root 1x1 conv + BN + ReLU."""
    n, h, w, cmid = y.shape
    cout = x1.shape[-1]
    cin = bottom.shape[-1]
    th = _row_tile(h, w)
    grid = (n, h // th)
    return pl.pallas_call(
        functools.partial(_conv_root_kernel, th=th),
        out_shape=jax.ShapeDtypeStruct((n, h, w, cout), ACT_DTYPE),
        grid_spec=pltpu.PrefetchScalarGridSpec(
            num_scalar_prefetch=0,
            grid=grid,
            in_specs=[pl.BlockSpec((1, h, w, cmid), lambda i, t: (i, 0, 0, 0)),
                      pl.BlockSpec((9 * cmid, cout), lambda i, t: (0, 0)),
                      pl.BlockSpec((1, cout), lambda i, t: (0, 0)),
                      pl.BlockSpec((1, th, w, cout), lambda i, t: (i, t, 0, 0)),
                      pl.BlockSpec((1, th, w, cin), lambda i, t: (i, t, 0, 0)),
                      pl.BlockSpec((2 * cout + cin, cout), lambda i, t: (0, 0)),
                      pl.BlockSpec((1, cout), lambda i, t: (0, 0))],
            out_specs=pl.BlockSpec((1, th, w, cout), lambda i, t: (i, t, 0, 0)),
            scratch_shapes=[pltpu.VMEM((h + 2, w + 2, cmid), ACT_DTYPE)]),
        compiler_params=_mosaic_params(("parallel", "arbitrary")),
    )(y, w2_folded.reshape(9 * cmid, cout), b2, x1, bottom, w_root, b_root)


# --------------------------- host-side helpers ------------------------------ #

def _bn_fold(w, gamma, beta):
    """Fold eval-mode BN with fresh running stats (mean=0, var=1) into the conv.
    (For trained weights, use scale=gamma/sqrt(var+eps), bias=beta-mean*scale.)"""
    scale = (gamma / jnp.sqrt(1.0 + BN_EPS)).astype(jnp.float32)
    w_f = (w.astype(jnp.float32) * scale).astype(ACT_DTYPE)
    bias = beta.reshape(1, -1).astype(jnp.float32)
    return w_f, bias


def _s2d_weight(w3):
    """Rewrite a stride-2 3x3 (pad=1) conv as a stride-1 2x2 conv over S2D
    (channel order (py*2+px)*Cin + ci)."""
    _, _, cin, cout = w3.shape
    w2 = jnp.zeros((2, 2, 4 * cin, cout), w3.dtype)
    for ty in range(2):
        for py in range(2):
            dy = 2 * ty + py - 1
            if dy < 0:
                continue
            for tx in range(2):
                for px in range(2):
                    dx = 2 * tx + px - 1
                    if dx < 0:
                        continue
                    p = py * 2 + px
                    w2 = w2.at[ty, tx, p * cin:(p + 1) * cin, :].set(w3[dy, dx])
    return w2


# --------------------------- Tree forward pass ------------------------------ #

def tree_forward_pallas(params, x_nhwc):
    x = x_nhwc.astype(ACT_DTYPE)
    n, h, w, cin = x.shape
    cout = params['proj_w'].shape[-1]

    wp, bp = _bn_fold(params['proj_w'][0, 0], params['proj_g'], params['proj_b'])
    t1 = params['tree1']
    w11, b11 = _bn_fold(_s2d_weight(t1['w1']), t1['g1'], t1['b1'])
    w11 = w11.reshape(16 * cin, cout)
    w12, b12 = _bn_fold(t1['w2'], t1['g2'], t1['b2'])
    t2 = params['tree2']
    w21, b21 = _bn_fold(t2['w1'], t2['g1'], t2['b1'])
    w22, b22 = _bn_fold(t2['w2'], t2['g2'], t2['b2'])
    wr, br = _bn_fold(params['root_w'][0, 0], params['root_g'], params['root_b'])

    # A) fused: bottom = MaxPool2d(2,2)(x); residual = project(bottom);
    #    y1 = relu(bn(tree1.conv1(x)))  (stride-2 3x3 via in-kernel S2D)
    bottom, residual, y1 = stem(x, w11, b11, wp, bp)
    # B) x1 = relu(bn(tree1.conv2(y1)) + residual)
    x1 = conv3x3_bn(y1, w12, b12, residual=residual)
    # C) y2 = relu(bn(tree2.conv1(x1)))
    y2 = conv3x3_bn(x1, w21, b21)
    # D) fused: x2 = relu(bn(tree2.conv2(y2)) + x1) stays in VMEM;
    #    out = relu(bn(root_conv1x1(concat(x2, x1, bottom))))
    return conv_root(y2, w22, b22, x1, bottom, wr, br)


# ------------------------------ Reference ----------------------------------- #

def _ref_conv_bn(x, w, gamma, beta, *, stride=1, pad=0, residual=None, relu=True):
    y = jax.lax.conv_general_dilated(
        x, w, (stride, stride), ((pad, pad), (pad, pad)),
        dimension_numbers=('NHWC', 'HWIO', 'NHWC'),
        precision=jax.lax.Precision.HIGHEST)
    y = y * (gamma / jnp.sqrt(1.0 + BN_EPS)) + beta
    if residual is not None:
        y = y + residual
    if relu:
        y = jnp.maximum(y, 0.0)
    return y


def _ref_forward(params, x):
    bottom = jax.lax.reduce_window(x, -jnp.inf, jax.lax.max,
                                   (1, 2, 2, 1), (1, 2, 2, 1), 'VALID')
    residual = _ref_conv_bn(bottom, params['proj_w'], params['proj_g'],
                            params['proj_b'], relu=False)
    t1 = params['tree1']
    y = _ref_conv_bn(x, t1['w1'], t1['g1'], t1['b1'], stride=2, pad=1)
    x1 = _ref_conv_bn(y, t1['w2'], t1['g2'], t1['b2'], stride=1, pad=1,
                      residual=residual)
    t2 = params['tree2']
    y = _ref_conv_bn(x1, t2['w1'], t2['g1'], t2['b1'], stride=1, pad=1)
    x2 = _ref_conv_bn(y, t2['w2'], t2['g2'], t2['b2'], stride=1, pad=1,
                      residual=x1)
    cat = jnp.concatenate([x2, x1, bottom], axis=-1)
    return _ref_conv_bn(cat, params['root_w'], params['root_g'], params['root_b'])


# ------------------------------ Parameters ---------------------------------- #

def init_params(key, cin, cout):
    root_dim = 2 * cout + cin   # level_root=True
    ks = jax.random.split(key, 10)

    def conv_w(k, kh, kw, ci, co):
        return jax.random.normal(k, (kh, kw, ci, co), jnp.float32) / math.sqrt(kh * kw * ci)

    def bn_p(k, c):
        k1, k2 = jax.random.split(k)
        return (1.0 + 0.1 * jax.random.normal(k1, (c,), jnp.float32),
                0.1 * jax.random.normal(k2, (c,), jnp.float32))

    p = {}
    p['proj_w'] = conv_w(ks[0], 1, 1, cin, cout)
    p['proj_g'], p['proj_b'] = bn_p(ks[1], cout)

    t1 = {}
    t1['w1'] = conv_w(ks[2], 3, 3, cin, cout)
    t1['g1'], t1['b1'] = bn_p(ks[3], cout)
    t1['w2'] = conv_w(ks[4], 3, 3, cout, cout)
    t1['g2'], t1['b2'] = bn_p(ks[5], cout)
    p['tree1'] = t1

    t2 = {}
    t2['w1'] = conv_w(ks[6], 3, 3, cout, cout)
    t2['g1'], t2['b1'] = bn_p(ks[7], cout)
    t2['w2'] = conv_w(ks[8], 3, 3, cout, cout)
    t2['g2'], t2['b2'] = bn_p(ks[9], cout)
    p['tree2'] = t2

    kr1, kr2 = jax.random.split(jax.random.fold_in(key, 99))
    p['root_w'] = conv_w(kr1, 1, 1, root_dim, cout)
    p['root_g'], p['root_b'] = bn_p(kr2, cout)
    return p


# --------------------------------- Main -------------------------------------- #

if __name__ == "__main__":
    key = jax.random.PRNGKey(0)
    kx, kp = jax.random.split(key)

    N, Cin, H, W = 2, 4, 16, 16
    Cout = 8

    x_nchw = jax.random.normal(kx, (N, Cin, H, W), jnp.float32)   # PyTorch-style input
    x = jnp.transpose(x_nchw, (0, 2, 3, 1))                       # -> NHWC for kernels

    params = init_params(kp, Cin, Cout)

    fwd = jax.jit(tree_forward_pallas)
    out = jax.block_until_ready(fwd(params, x))
    assert out.shape == (N, H // 2, W // 2, Cout)

    ref = _ref_forward(params, x)
    np.testing.assert_allclose(np.asarray(out.astype(jnp.float32)),
                               np.asarray(ref), rtol=5e-2, atol=5e-2)

    print("KERNEL_OK")
</pallas_src>

<mosaic_0001>
module attributes {stable_mosaic.version = 11 : i64} {
  func.func @_conv3x3_kernel(%arg0: i32, %arg1: i32, %arg2: memref<1x8x8x8xbf16, #tpu.memory_space<vmem>>, %arg3: memref<72x8xbf16, #tpu.memory_space<vmem>>, %arg4: memref<1x8xf32, #tpu.memory_space<vmem>>, %arg5: memref<1x8x8x8xbf16, #tpu.memory_space<vmem>>, %arg6: memref<10x10x8xbf16, #tpu.memory_space<vmem>>) attributes {dimension_semantics = [#tpu.dimension_semantics<parallel>, #tpu.dimension_semantics<arbitrary>], iteration_bounds = array<i64: 2, 1>, scalar_prefetch = 0 : i64, scratch_operands = 1 : i64, tpu.core_type = #tpu.core_type<tc>, window_params = [{transform_indices = @transform_0, window_bounds = array<i64: 1, 8, 8, 8>}, {pipeline_mode = #tpu.pipeline_mode<synchronous>, transform_indices = @transform_1, window_bounds = array<i64: 72, 8>}, {pipeline_mode = #tpu.pipeline_mode<synchronous>, transform_indices = @transform_2, window_bounds = array<i64: 1, 8>}, {transform_indices = @transform_3, window_bounds = array<i64: 1, 8, 8, 8>}]} {
    %c0_i32 = arith.constant 0 : i32
    %0 = arith.cmpi eq, %arg1, %c0_i32 : i32
    %1 = arith.extui %0 : i1 to i32
    %c0_i32_0 = arith.constant 0 : i32
    %2 = arith.cmpi ne, %1, %c0_i32_0 : i32
    scf.if %2 {
      %cst_32 = arith.constant 0.000000e+00 : bf16
      %46 = vector.broadcast %cst_32 : bf16 to vector<1x10x8xbf16>
      %cst_33 = arith.constant 0.000000e+00 : bf16
      %47 = vector.broadcast %cst_33 : bf16 to vector<10x1x8xbf16>
      %c0_34 = arith.constant 0 : index
      %c0_35 = arith.constant 0 : index
      %c0_36 = arith.constant 0 : index
      %48 = vector.load %arg6[%c0_34, %c0_35, %c0_36] : memref<10x10x8xbf16, #tpu.memory_space<vmem>>, vector<1x10x8xbf16>
      tpu.vector_store %arg6[%c0_34, %c0_35, %c0_36], %46 {strides = array<i32>} : memref<10x10x8xbf16, #tpu.memory_space<vmem>>, vector<1x10x8xbf16>,
      %c9 = arith.constant 9 : index
      %c0_37 = arith.constant 0 : index
      %c0_38 = arith.constant 0 : index
      %49 = vector.load %arg6[%c9, %c0_37, %c0_38] : memref<10x10x8xbf16, #tpu.memory_space<vmem>>, vector<1x10x8xbf16>
      tpu.vector_store %arg6[%c9, %c0_37, %c0_38], %46 {strides = array<i32>} : memref<10x10x8xbf16, #tpu.memory_space<vmem>>, vector<1x10x8xbf16>,
      %c0_39 = arith.constant 0 : index
      %c0_40 = arith.constant 0 : index
      %c0_41 = arith.constant 0 : index
      %50 = vector.load %arg6[%c0_39, %c0_40, %c0_41] : memref<10x10x8xbf16, #tpu.memory_space<vmem>>, vector<10x1x8xbf16>
      tpu.vector_store %arg6[%c0_39, %c0_40, %c0_41], %47 {strides = array<i32>} : memref<10x10x8xbf16, #tpu.memory_space<vmem>>, vector<10x1x8xbf16>,
      %c0_42 = arith.constant 0 : index
      %c9_43 = arith.constant 9 : index
      %c0_44 = arith.constant 0 : index
      %51 = vector.load %arg6[%c0_42, %c9_43, %c0_44] : memref<10x10x8xbf16, #tpu.memory_space<vmem>>, vector<10x1x8xbf16>
      tpu.vector_store %arg6[%c0_42, %c9_43, %c0_44], %47 {strides = array<i32>} : memref<10x10x8xbf16, #tpu.memory_space<vmem>>, vector<10x1x8xbf16>,
      %c0_45 = arith.constant 0 : index
      %c0_46 = arith.constant 0 : index
      %c0_47 = arith.constant 0 : index
      %c0_48 = arith.constant 0 : index
      %52 = vector.load %arg2[%c0_45, %c0_46, %c0_47, %c0_48] : memref<1x8x8x8xbf16, #tpu.memory_space<vmem>>, vector<1x8x8x8xbf16>
      %53 = vector.shape_cast %52 : vector<1x8x8x8xbf16> to vector<8x8x8xbf16>
      %c1_49 = arith.constant 1 : index
      %c1_50 = arith.constant 1 : index
      %c0_51 = arith.constant 0 : index
      %54 = vector.load %arg6[%c1_49, %c1_50, %c0_51] : memref<10x10x8xbf16, #tpu.memory_space<vmem>>, vector<8x8x8xbf16>
      tpu.vector_store %arg6[%c1_49, %c1_50, %c0_51], %53 {strides = array<i32>} : memref<10x10x8xbf16, #tpu.memory_space<vmem>>, vector<8x8x8xbf16>,
    } else {
    }
    %c8_i32 = arith.constant 8 : i32
    %3 = arith.muli %arg1, %c8_i32 : i32
    %4 = tpu.assume_multiple %3, 8 : i32
    %c0_i32_1 = arith.constant 0 : i32
    %5 = arith.addi %4, %c0_i32_1 : i32
    %6 = arith.index_cast %5 : i32 to index
    %c0 = arith.constant 0 : index
    %c0_2 = arith.constant 0 : index
    %7 = vector.load %arg6[%6, %c0, %c0_2] : memref<10x10x8xbf16, #tpu.memory_space<vmem>>, vector<8x8x8xbf16>
    %c0_i32_3 = arith.constant 0 : i32
    %8 = arith.addi %4, %c0_i32_3 : i32
    %9 = arith.index_cast %8 : i32 to index
    %c1 = arith.constant 1 : index
    %c0_4 = arith.constant 0 : index
    %10 = vector.load %arg6[%9, %c1, %c0_4] : memref<10x10x8xbf16, #tpu.memory_space<vmem>>, vector<8x8x8xbf16>
    %c0_i32_5 = arith.constant 0 : i32
    %11 = arith.addi %4, %c0_i32_5 : i32
    %12 = arith.index_cast %11 : i32 to index
    %c2 = arith.constant 2 : index
    %c0_6 = arith.constant 0 : index
    %13 = vector.load %arg6[%12, %c2, %c0_6] : memref<10x10x8xbf16, #tpu.memory_space<vmem>>, vector<8x8x8xbf16>
    %c1_i32 = arith.constant 1 : i32
    %14 = arith.addi %4, %c1_i32 : i32
    %15 = arith.index_cast %14 : i32 to index
    %c0_7 = arith.constant 0 : index
    %c0_8 = arith.constant 0 : index
    %16 = vector.load %arg6[%15, %c0_7, %c0_8] : memref<10x10x8xbf16, #tpu.memory_space<vmem>>, vector<8x8x8xbf16>
    %c1_i32_9 = arith.constant 1 : i32
    %17 = arith.addi %4, %c1_i32_9 : i32
    %18 = arith.index_cast %17 : i32 to index
    %c1_10 = arith.constant 1 : index
    %c0_11 = arith.constant 0 : index
    %19 = vector.load %arg6[%18, %c1_10, %c0_11] : memref<10x10x8xbf16, #tpu.memory_space<vmem>>, vector<8x8x8xbf16>
    %c1_i32_12 = arith.constant 1 : i32
    %20 = arith.addi %4, %c1_i32_12 : i32
    %21 = arith.index_cast %20 : i32 to index
    %c2_13 = arith.constant 2 : index
    %c0_14 = arith.constant 0 : index
    %22 = vector.load %arg6[%21, %c2_13, %c0_14] : memref<10x10x8xbf16, #tpu.memory_space<vmem>>, vector<8x8x8xbf16>
    %c2_i32 = arith.constant 2 : i32
    %23 = arith.addi %4, %c2_i32 : i32
    %24 = arith.index_cast %23 : i32 to index
    %c0_15 = arith.constant 0 : index
    %c0_16 = arith.constant 0 : index
    %25 = vector.load %arg6[%24, %c0_15, %c0_16] : memref<10x10x8xbf16, #tpu.memory_space<vmem>>, vector<8x8x8xbf16>
    %c2_i32_17 = arith.constant 2 : i32
    %26 = arith.addi %4, %c2_i32_17 : i32
    %27 = arith.index_cast %26 : i32 to index
    %c1_18 = arith.constant 1 : index
    %c0_19 = arith.constant 0 : index
    %28 = vector.load %arg6[%27, %c1_18, %c0_19] : memref<10x10x8xbf16, #tpu.memory_space<vmem>>, vector<8x8x8xbf16>
    %c2_i32_20 = arith.constant 2 : i32
    %29 = arith.addi %4, %c2_i32_20 : i32
    %30 = arith.index_cast %29 : i32 to index
    %c2_21 = arith.constant 2 : index
    %c0_22 = arith.constant 0 : index
    %31 = vector.load %arg6[%30, %c2_21, %c0_22] : memref<10x10x8xbf16, #tpu.memory_space<vmem>>, vector<8x8x8xbf16>
    %32 = tpu.concatenate %7, %10, %13, %16, %19, %22, %25, %28, %31 in 2 : vector<8x8x8xbf16>, vector<8x8x8xbf16>, vector<8x8x8xbf16>, vector<8x8x8xbf16>, vector<8x8x8xbf16>, vector<8x8x8xbf16>, vector<8x8x8xbf16>, vector<8x8x8xbf16>, vector<8x8x8xbf16> -> vector<8x8x72xbf16>
    %33 = vector.shape_cast %32 : vector<8x8x72xbf16> to vector<64x72xbf16>
    %c0_23 = arith.constant 0 : index
    %c0_24 = arith.constant 0 : index
    %34 = vector.load %arg3[%c0_23, %c0_24] : memref<72x8xbf16, #tpu.memory_space<vmem>>, vector<72x8xbf16>
    %cst = arith.constant dense<0.000000e+00> : vector<64x8xf32>
    %35 = tpu.matmul %33, %34, %cst {dimension_numbers = #tpu.dot_dimension_numbers<[1], [0], [0], [1], [0, 0, 1, 1], [], []>} : vector<64x72xbf16>, vector<72x8xbf16>, vector<64x8xf32> -> vector<64x8xf32>
    %c0_25 = arith.constant 0 : index
    %c0_26 = arith.constant 0 : index
    %36 = vector.load %arg4[%c0_25, %c0_26] : memref<1x8xf32, #tpu.memory_space<vmem>>, vector<1x8xf32>
    %37 = vector.broadcast %36 : vector<1x8xf32> to vector<64x8xf32>
    %38 = arith.addf %35, %37 : vector<64x8xf32>
    %cst_27 = arith.constant 0.000000e+00 : f32
    %39 = vector.broadcast %cst_27 : f32 to vector<64x8xf32>
    %40 = arith.maximumf %38, %39 : vector<64x8xf32>
    %41 = vector.shape_cast %40 : vector<64x8xf32> to vector<8x8x8xf32>
    %42 = arith.truncf %41 : vector<8x8x8xf32> to vector<8x8x8xbf16>
    %c0_28 = arith.constant 0 : index
    %c0_29 = arith.constant 0 : index
    %c0_30 = arith.constant 0 : index
    %c0_31 = arith.constant 0 : index
    %43 = vector.load %arg5[%c0_28, %c0_29, %c0_30, %c0_31] : memref<1x8x8x8xbf16, #tpu.memory_space<vmem>>, vector<1x8x8x8xbf16>
    %44 = vector.shape_cast %43 : vector<1x8x8x8xbf16> to vector<8x8x8xbf16>
    %45 = vector.shape_cast %42 : vector<8x8x8xbf16> to vector<1x8x8x8xbf16>
    tpu.vector_store %arg5[%c0_28, %c0_29, %c0_30, %c0_31], %45 {strides = array<i32>} : memref<1x8x8x8xbf16, #tpu.memory_space<vmem>>, vector<1x8x8x8xbf16>,
    return
  }
  func.func @transform_0(%arg0: i32, %arg1: i32) -> (i32, i32, i32, i32) {
    %c0_i32 = arith.constant 0 : i32
    %c0_i32_0 = arith.constant 0 : i32
    %c0_i32_1 = arith.constant 0 : i32
    %c0_i32_2 = arith.constant 0 : i32
    return %arg0, %c0_i32, %c0_i32_0, %c0_i32_1 : i32, i32, i32, i32
  }
  func.func @transform_1(%arg0: i32, %arg1: i32) -> (i32, i32) {
    %c0_i32 = arith.constant 0 : i32
    %c0_i32_0 = arith.constant 0 : i32
    %c0_i32_1 = arith.constant 0 : i32
    return %c0_i32, %c0_i32_0 : i32, i32
  }
  func.func @transform_2(%arg0: i32, %arg1: i32) -> (i32, i32) {
    %c0_i32 = arith.constant 0 : i32
    %c0_i32_0 = arith.constant 0 : i32
    %c0_i32_1 = arith.constant 0 : i32
    return %c0_i32, %c0_i32_0 : i32, i32
  }
  func.func @transform_3(%arg0: i32, %arg1: i32) -> (i32, i32, i32, i32) {
    %c0_i32 = arith.constant 0 : i32
    %c0_i32_0 = arith.constant 0 : i32
    %c0_i32_1 = arith.constant 0 : i32
    return %arg0, %arg1, %c0_i32, %c0_i32_0 : i32, i32, i32, i32
  }
}

module attributes {stable_mosaic.version = 11 : i64} {
  func.func @_conv3x3_kernel(%arg0: i32, %arg1: i32, %arg2: memref<1x8x8x8xbf16, #tpu.memory_space<vmem>>, %arg3: memref<72x8xbf16, #tpu.memory_space<vmem>>, %arg4: memref<1x8xf32, #tpu.memory_space<vmem>>, %arg5: memref<1x8x8x8xbf16, #tpu.memory_space<vmem>>, %arg6: memref<1x8x8x8xbf16, #tpu.memory_space<vmem>>, %arg7: memref<10x10x8xbf16, #tpu.memory_space<vmem>>) attributes {dimension_semantics = [#tpu.dimension_semantics<parallel>, #tpu.dimension_semantics<arbitrary>], iteration_bounds = array<i64: 2, 1>, scalar_prefetch = 0 : i64, scratch_operands = 1 : i64, tpu.core_type = #tpu.core_type<tc>, window_params = [{transform_indices = @transform_0, window_bounds = array<i64: 1, 8, 8, 8>}, {pipeline_mode = #tpu.pipeline_mode<synchronous>, transform_indices = @transform_1, window_bounds = array<i64: 72, 8>}, {pipeline_mode = #tpu.pipeline_mode<synchronous>, transform_indices = @transform_2, window_bounds = array<i64: 1, 8>}, {transform_indices = @transform_3, window_bounds = array<i64: 1, 8, 8, 8>}, {transform_indices = @transform_4, window_bounds = array<i64: 1, 8, 8, 8>}]} {
    %c0_i32 = arith.constant 0 : i32
    %0 = arith.cmpi eq, %arg1, %c0_i32 : i32
    %1 = arith.extui %0 : i1 to i32
    %c0_i32_0 = arith.constant 0 : i32
    %2 = arith.cmpi ne, %1, %c0_i32_0 : i32
    scf.if %2 {
      %cst_36 = arith.constant 0.000000e+00 : bf16
      %51 = vector.broadcast %cst_36 : bf16 to vector<1x10x8xbf16>
      %cst_37 = arith.constant 0.000000e+00 : bf16
      %52 = vector.broadcast %cst_37 : bf16 to vector<10x1x8xbf16>
      %c0_38 = arith.constant 0 : index
      %c0_39 = arith.constant 0 : index
      %c0_40 = arith.constant 0 : index
      %53 = vector.load %arg7[%c0_38, %c0_39, %c0_40] : memref<10x10x8xbf16, #tpu.memory_space<vmem>>, vector<1x10x8xbf16>
      tpu.vector_store %arg7[%c0_38, %c0_39, %c0_40], %51 {strides = array<i32>} : memref<10x10x8xbf16, #tpu.memory_space<vmem>>, vector<1x10x8xbf16>,
      %c9 = arith.constant 9 : index
      %c0_41 = arith.constant 0 : index
      %c0_42 = arith.constant 0 : index
      %54 = vector.load %arg7[%c9, %c0_41, %c0_42] : memref<10x10x8xbf16, #tpu.memory_space<vmem>>, vector<1x10x8xbf16>
      tpu.vector_store %arg7[%c9, %c0_41, %c0_42], %51 {strides = array<i32>} : memref<10x10x8xbf16, #tpu.memory_space<vmem>>, vector<1x10x8xbf16>,
      %c0_43 = arith.constant 0 : index
      %c0_44 = arith.constant 0 : index
      %c0_45 = arith.constant 0 : index
      %55 = vector.load %arg7[%c0_43, %c0_44, %c0_45] : memref<10x10x8xbf16, #tpu.memory_space<vmem>>, vector<10x1x8xbf16>
      tpu.vector_store %arg7[%c0_43, %c0_44, %c0_45], %52 {strides = array<i32>} : memref<10x10x8xbf16, #tpu.memory_space<vmem>>, vector<10x1x8xbf16>,
      %c0_46 = arith.constant 0 : index
      %c9_47 = arith.constant 9 : index
      %c0_48 = arith.constant 0 : index
      %56 = vector.load %arg7[%c0_46, %c9_47, %c0_48] : memref<10x10x8xbf16, #tpu.memory_space<vmem>>, vector<10x1x8xbf16>
      tpu.vector_store %arg7[%c0_46, %c9_47, %c0_48], %52 {strides = array<i32>} : memref<10x10x8xbf16, #tpu.memory_space<vmem>>, vector<10x1x8xbf16>,
      %c0_49 = arith.constant 0 : index
      %c0_50 = arith.constant 0 : index
      %c0_51 = arith.constant 0 : index
      %c0_52 = arith.constant 0 : index
      %57 = vector.load %arg2[%c0_49, %c0_50, %c0_51, %c0_52] : memref<1x8x8x8xbf16, #tpu.memory_space<vmem>>, vector<1x8x8x8xbf16>
      %58 = vector.shape_cast %57 : vector<1x8x8x8xbf16> to vector<8x8x8xbf16>
      %c1_53 = arith.constant 1 : index
      %c1_54 = arith.constant 1 : index
      %c0_55 = arith.constant 0 : index
      %59 = vector.load %arg7[%c1_53, %c1_54, %c0_55] : memref<10x10x8xbf16, #tpu.memory_space<vmem>>, vector<8x8x8xbf16>
      tpu.vector_store %arg7[%c1_53, %c1_54, %c0_55], %58 {strides = array<i32>} : memref<10x10x8xbf16, #tpu.memory_space<vmem>>, vector<8x8x8xbf16>,
    } else {
    }
    %c8_i32 = arith.constant 8 : i32
    %3 = arith.muli %arg1, %c8_i32 : i32
    %4 = tpu.assume_multiple %3, 8 : i32
    %c0_i32_1 = arith.constant 0 : i32
    %5 = arith.addi %4, %c0_i32_1 : i32
    %6 = arith.index_cast %5 : i32 to index
    %c0 = arith.constant 0 : index
    %c0_2 = arith.constant 0 : index
    %7 = vector.load %arg7[%6, %c0, %c0_2] : memref<10x10x8xbf16, #tpu.memory_space<vmem>>, vector<8x8x8xbf16>
    %c0_i32_3 = arith.constant 0 : i32
    %8 = arith.addi %4, %c0_i32_3 : i32
    %9 = arith.index_cast %8 : i32 to index
    %c1 = arith.constant 1 : index
    %c0_4 = arith.constant 0 : index
    %10 = vector.load %arg7[%9, %c1, %c0_4] : memref<10x10x8xbf16, #tpu.memory_space<vmem>>, vector<8x8x8xbf16>
    %c0_i32_5 = arith.constant 0 : i32
    %11 = arith.addi %4, %c0_i32_5 : i32
    %12 = arith.index_cast %11 : i32 to index
    %c2 = arith.constant 2 : index
    %c0_6 = arith.constant 0 : index
    %13 = vector.load %arg7[%12, %c2, %c0_6] : memref<10x10x8xbf16, #tpu.memory_space<vmem>>, vector<8x8x8xbf16>
    %c1_i32 = arith.constant 1 : i32
    %14 = arith.addi %4, %c1_i32 : i32
    %15 = arith.index_cast %14 : i32 to index
    %c0_7 = arith.constant 0 : index
    %c0_8 = arith.constant 0 : index
    %16 = vector.load %arg7[%15, %c0_7, %c0_8] : memref<10x10x8xbf16, #tpu.memory_space<vmem>>, vector<8x8x8xbf16>
    %c1_i32_9 = arith.constant 1 : i32
    %17 = arith.addi %4, %c1_i32_9 : i32
    %18 = arith.index_cast %17 : i32 to index
    %c1_10 = arith.constant 1 : index
    %c0_11 = arith.constant 0 : index
    %19 = vector.load %arg7[%18, %c1_10, %c0_11] : memref<10x10x8xbf16, #tpu.memory_space<vmem>>, vector<8x8x8xbf16>
    %c1_i32_12 = arith.constant 1 : i32
    %20 = arith.addi %4, %c1_i32_12 : i32
    %21 = arith.index_cast %20 : i32 to index
    %c2_13 = arith.constant 2 : index
    %c0_14 = arith.constant 0 : index
    %22 = vector.load %arg7[%21, %c2_13, %c0_14] : memref<10x10x8xbf16, #tpu.memory_space<vmem>>, vector<8x8x8xbf16>
    %c2_i32 = arith.constant 2 : i32
    %23 = arith.addi %4, %c2_i32 : i32
    %24 = arith.index_cast %23 : i32 to index
    %c0_15 = arith.constant 0 : index
    %c0_16 = arith.constant 0 : index
    %25 = vector.load %arg7[%24, %c0_15, %c0_16] : memref<10x10x8xbf16, #tpu.memory_space<vmem>>, vector<8x8x8xbf16>
    %c2_i32_17 = arith.constant 2 : i32
    %26 = arith.addi %4, %c2_i32_17 : i32
    %27 = arith.index_cast %26 : i32 to index
    %c1_18 = arith.constant 1 : index
    %c0_19 = arith.constant 0 : index
    %28 = vector.load %arg7[%27, %c1_18, %c0_19] : memref<10x10x8xbf16, #tpu.memory_space<vmem>>, vector<8x8x8xbf16>
    %c2_i32_20 = arith.constant 2 : i32
    %29 = arith.addi %4, %c2_i32_20 : i32
    %30 = arith.index_cast %29 : i32 to index
    %c2_21 = arith.constant 2 : index
    %c0_22 = arith.constant 0 : index
    %31 = vector.load %arg7[%30, %c2_21, %c0_22] : memref<10x10x8xbf16, #tpu.memory_space<vmem>>, vector<8x8x8xbf16>
    %32 = tpu.concatenate %7, %10, %13, %16, %19, %22, %25, %28, %31 in 2 : vector<8x8x8xbf16>, vector<8x8x8xbf16>, vector<8x8x8xbf16>, vector<8x8x8xbf16>, vector<8x8x8xbf16>, vector<8x8x8xbf16>, vector<8x8x8xbf16>, vector<8x8x8xbf16>, vector<8x8x8xbf16> -> vector<8x8x72xbf16>
    %33 = vector.shape_cast %32 : vector<8x8x72xbf16> to vector<64x72xbf16>
    %c0_23 = arith.constant 0 : index
    %c0_24 = arith.constant 0 : index
    %34 = vector.load %arg3[%c0_23, %c0_24] : memref<72x8xbf16, #tpu.memory_space<vmem>>, vector<72x8xbf16>
    %cst = arith.constant dense<0.000000e+00> : vector<64x8xf32>
    %35 = tpu.matmul %33, %34, %cst {dimension_numbers = #tpu.dot_dimension_numbers<[1], [0], [0], [1], [0, 0, 1, 1], [], []>} : vector<64x72xbf16>, vector<72x8xbf16>, vector<64x8xf32> -> vector<64x8xf32>
    %c0_25 = arith.constant 0 : index
    %c0_26 = arith.constant 0 : index
    %36 = vector.load %arg4[%c0_25, %c0_26] : memref<1x8xf32, #tpu.memory_space<vmem>>, vector<1x8xf32>
    %37 = vector.broadcast %36 : vector<1x8xf32> to vector<64x8xf32>
    %38 = arith.addf %35, %37 : vector<64x8xf32>
    %c0_27 = arith.constant 0 : index
    %c0_28 = arith.constant 0 : index
    %c0_29 = arith.constant 0 : index
    %c0_30 = arith.constant 0 : index
    %39 = vector.load %arg5[%c0_27, %c0_28, %c0_29, %c0_30] : memref<1x8x8x8xbf16, #tpu.memory_space<vmem>>, vector<1x8x8x8xbf16>
    %40 = vector.shape_cast %39 : vector<1x8x8x8xbf16> to vector<8x8x8xbf16>
    %41 = vector.shape_cast %40 : vector<8x8x8xbf16> to vector<64x8xbf16>
    %42 = arith.extf %41 : vector<64x8xbf16> to vector<64x8xf32>
    %43 = arith.addf %38, %42 : vector<64x8xf32>
    %cst_31 = arith.constant 0.000000e+00 : f32
    %44 = vector.broadcast %cst_31 : f32 to vector<64x8xf32>
    %45 = arith.maximumf %43, %44 : vector<64x8xf32>
    %46 = vector.shape_cast %45 : vector<64x8xf32> to vector<8x8x8xf32>
    %47 = arith.truncf %46 : vector<8x8x8xf32> to vector<8x8x8xbf16>
    %c0_32 = arith.constant 0 : index
    %c0_33 = arith.constant 0 : index
    %c0_34 = arith.constant 0 : index
    %c0_35 = arith.constant 0 : index
    %48 = vector.load %arg6[%c0_32, %c0_33, %c0_34, %c0_35] : memref<1x8x8x8xbf16, #tpu.memory_space<vmem>>, vector<1x8x8x8xbf16>
    %49 = vector.shape_cast %48 : vector<1x8x8x8xbf16> to vector<8x8x8xbf16>
    %50 = vector.shape_cast %47 : vector<8x8x8xbf16> to vector<1x8x8x8xbf16>
    tpu.vector_store %arg6[%c0_32, %c0_33, %c0_34, %c0_35], %50 {strides = array<i32>} : memref<1x8x8x8xbf16, #tpu.memory_space<vmem>>, vector<1x8x8x8xbf16>,
    return
  }
  func.func @transform_0(%arg0: i32, %arg1: i32) -> (i32, i32, i32, i32) {
    %c0_i32 = arith.constant 0 : i32
    %c0_i32_0 = arith.constant 0 : i32
    %c0_i32_1 = arith.constant 0 : i32
    %c0_i32_2 = arith.constant 0 : i32
    return %arg0, %c0_i32, %c0_i32_0, %c0_i32_1 : i32, i32, i32, i32
  }
  func.func @transform_1(%arg0: i32, %arg1: i32) -> (i32, i32) {
    %c0_i32 = arith.constant 0 : i32
    %c0_i32_0 = arith.constant 0 : i32
    %c0_i32_1 = arith.constant 0 : i32
    return %c0_i32, %c0_i32_0 : i32, i32
  }
  func.func @transform_2(%arg0: i32, %arg1: i32) -> (i32, i32) {
    %c0_i32 = arith.constant 0 : i32
    %c0_i32_0 = arith.constant 0 : i32
    %c0_i32_1 = arith.constant 0 : i32
    return %c0_i32, %c0_i32_0 : i32, i32
  }
  func.func @transform_3(%arg0: i32, %arg1: i32) -> (i32, i32, i32, i32) {
    %c0_i32 = arith.constant 0 : i32
    %c0_i32_0 = arith.constant 0 : i32
    %c0_i32_1 = arith.constant 0 : i32
    return %arg0, %arg1, %c0_i32, %c0_i32_0 : i32, i32, i32, i32
  }
  func.func @transform_4(%arg0: i32, %arg1: i32) -> (i32, i32, i32, i32) {
    %c0_i32 = arith.constant 0 : i32
    %c0_i32_0 = arith.constant 0 : i32
    %c0_i32_1 = arith.constant 0 : i32
    return %arg0, %arg1, %c0_i32, %c0_i32_0 : i32, i32, i32, i32
  }
}

module attributes {stable_mosaic.version = 11 : i64} {
  func.func @_stem_kernel(%arg0: i32, %arg1: i32, %arg2: memref<1x8x2x8x8xbf16, #tpu.memory_space<vmem>>, %arg3: memref<64x8xbf16, #tpu.memory_space<vmem>>, %arg4: memref<1x8xf32, #tpu.memory_space<vmem>>, %arg5: memref<4x8xbf16, #tpu.memory_space<vmem>>, %arg6: memref<1x8xf32, #tpu.memory_space<vmem>>, %arg7: memref<1x8x8x4xbf16, #tpu.memory_space<vmem>>, %arg8: memref<1x8x8x8xbf16, #tpu.memory_space<vmem>>, %arg9: memref<1x8x8x8xbf16, #tpu.memory_space<vmem>>, %arg10: memref<9x9x8xbf16, #tpu.memory_space<vmem>>, %arg11: memref<9x9x8xbf16, #tpu.memory_space<vmem>>) attributes {dimension_semantics = [#tpu.dimension_semantics<parallel>, #tpu.dimension_semantics<arbitrary>], iteration_bounds = array<i64: 2, 1>, scalar_prefetch = 0 : i64, scratch_operands = 2 : i64, tpu.core_type = #tpu.core_type<tc>, window_params = [{transform_indices = @transform_0, window_bounds = array<i64: 1, 8, 2, 8, 8>}, {pipeline_mode = #tpu.pipeline_mode<synchronous>, transform_indices = @transform_1, window_bounds = array<i64: 64, 8>}, {pipeline_mode = #tpu.pipeline_mode<synchronous>, transform_indices = @transform_2, window_bounds = array<i64: 1, 8>}, {pipeline_mode = #tpu.pipeline_mode<synchronous>, transform_indices = @transform_3, window_bounds = array<i64: 4, 8>}, {pipeline_mode = #tpu.pipeline_mode<synchronous>, transform_indices = @transform_4, window_bounds = array<i64: 1, 8>}, {transform_indices = @transform_5, window_bounds = array<i64: 1, 8, 8, 4>}, {transform_indices = @transform_6, window_bounds = array<i64: 1, 8, 8, 8>}, {transform_indices = @transform_7, window_bounds = array<i64: 1, 8, 8, 8>}]} {
    %c0_i32 = arith.constant 0 : i32
    %0 = arith.cmpi eq, %arg1, %c0_i32 : i32
    %1 = arith.extui %0 : i1 to i32
    %c0_i32_0 = arith.constant 0 : i32
    %2 = arith.cmpi ne, %1, %c0_i32_0 : i32
    scf.if %2 {
      %cst_44 = arith.constant 0.000000e+00 : bf16
      %64 = vector.broadcast %cst_44 : bf16 to vector<1x9x8xbf16>
      %c0_45 = arith.constant 0 : index
      %c0_46 = arith.constant 0 : index
      %c0_47 = arith.constant 0 : index
      %65 = vector.load %arg10[%c0_45, %c0_46, %c0_47] : memref<9x9x8xbf16, #tpu.memory_space<vmem>>, vector<1x9x8xbf16>
      tpu.vector_store %arg10[%c0_45, %c0_46, %c0_47], %64 {strides = array<i32>} : memref<9x9x8xbf16, #tpu.memory_space<vmem>>, vector<1x9x8xbf16>,
      %cst_48 = arith.constant 0.000000e+00 : bf16
      %66 = vector.broadcast %cst_48 : bf16 to vector<9x1x8xbf16>
      %c0_49 = arith.constant 0 : index
      %c0_50 = arith.constant 0 : index
      %c0_51 = arith.constant 0 : index
      %67 = vector.load %arg10[%c0_49, %c0_50, %c0_51] : memref<9x9x8xbf16, #tpu.memory_space<vmem>>, vector<9x1x8xbf16>
      tpu.vector_store %arg10[%c0_49, %c0_50, %c0_51], %66 {strides = array<i32>} : memref<9x9x8xbf16, #tpu.memory_space<vmem>>, vector<9x1x8xbf16>,
      %c0_52 = arith.constant 0 : index
      %c0_53 = arith.constant 0 : index
      %c0_54 = arith.constant 0 : index
      %c0_55 = arith.constant 0 : index
      %c0_56 = arith.constant 0 : index
      %68 = vector.load %arg2[%c0_52, %c0_53, %c0_54, %c0_55, %c0_56] : memref<1x8x2x8x8xbf16, #tpu.memory_space<vmem>>, vector<1x8x1x8x8xbf16>
      %69 = vector.shape_cast %68 : vector<1x8x1x8x8xbf16> to vector<8x8x8xbf16>
      %c1_57 = arith.constant 1 : index
      %c1_58 = arith.constant 1 : index
      %c0_59 = arith.constant 0 : index
      %70 = vector.load %arg10[%c1_57, %c1_58, %c0_59] : memref<9x9x8xbf16, #tpu.memory_space<vmem>>, vector<8x8x8xbf16>
      tpu.vector_store %arg10[%c1_57, %c1_58, %c0_59], %69 {strides = array<i32>} : memref<9x9x8xbf16, #tpu.memory_space<vmem>>, vector<8x8x8xbf16>,
      %cst_60 = arith.constant 0.000000e+00 : bf16
      %71 = vector.broadcast %cst_60 : bf16 to vector<1x9x8xbf16>
      %c0_61 = arith.constant 0 : index
      %c0_62 = arith.constant 0 : index
      %c0_63 = arith.constant 0 : index
      %72 = vector.load %arg11[%c0_61, %c0_62, %c0_63] : memref<9x9x8xbf16, #tpu.memory_space<vmem>>, vector<1x9x8xbf16>
      tpu.vector_store %arg11[%c0_61, %c0_62, %c0_63], %71 {strides = array<i32>} : memref<9x9x8xbf16, #tpu.memory_space<vmem>>, vector<1x9x8xbf16>,
      %cst_64 = arith.constant 0.000000e+00 : bf16
      %73 = vector.broadcast %cst_64 : bf16 to vector<9x1x8xbf16>
      %c0_65 = arith.constant 0 : index
      %c0_66 = arith.constant 0 : index
      %c0_67 = arith.constant 0 : index
      %74 = vector.load %arg11[%c0_65, %c0_66, %c0_67] : memref<9x9x8xbf16, #tpu.memory_space<vmem>>, vector<9x1x8xbf16>
      tpu.vector_store %arg11[%c0_65, %c0_66, %c0_67], %73 {strides = array<i32>} : memref<9x9x8xbf16, #tpu.memory_space<vmem>>, vector<9x1x8xbf16>,
      %c0_68 = arith.constant 0 : index
      %c0_69 = arith.constant 0 : index
      %c1_70 = arith.constant 1 : index
      %c0_71 = arith.constant 0 : index
      %c0_72 = arith.constant 0 : index
      %75 = vector.load %arg2[%c0_68, %c0_69, %c1_70, %c0_71, %c0_72] : memref<1x8x2x8x8xbf16, #tpu.memory_space<vmem>>, vector<1x8x1x8x8xbf16>
      %76 = vector.shape_cast %75 : vector<1x8x1x8x8xbf16> to vector<8x8x8xbf16>
      %c1_73 = arith.constant 1 : index
      %c1_74 = arith.constant 1 : index
      %c0_75 = arith.constant 0 : index
      %77 = vector.load %arg11[%c1_73, %c1_74, %c0_75] : memref<9x9x8xbf16, #tpu.memory_space<vmem>>, vector<8x8x8xbf16>
      tpu.vector_store %arg11[%c1_73, %c1_74, %c0_75], %76 {strides = array<i32>} : memref<9x9x8xbf16, #tpu.memory_space<vmem>>, vector<8x8x8xbf16>,
    } else {
    }
    %c8_i32 = arith.constant 8 : i32
    %3 = arith.muli %arg1, %c8_i32 : i32
    %4 = tpu.assume_multiple %3, 8 : i32
    %c0_i32_1 = arith.constant 0 : i32
    %5 = arith.addi %4, %c0_i32_1 : i32
    %6 = arith.index_cast %5 : i32 to index
    %c0 = arith.constant 0 : index
    %c0_2 = arith.constant 0 : index
    %7 = vector.load %arg10[%6, %c0, %c0_2] : memref<9x9x8xbf16, #tpu.memory_space<vmem>>, vector<8x8x8xbf16>
    %c0_i32_3 = arith.constant 0 : i32
    %8 = arith.addi %4, %c0_i32_3 : i32
    %9 = arith.index_cast %8 : i32 to index
    %c0_4 = arith.constant 0 : index
    %c0_5 = arith.constant 0 : index
    %10 = vector.load %arg11[%9, %c0_4, %c0_5] : memref<9x9x8xbf16, #tpu.memory_space<vmem>>, vector<8x8x8xbf16>
    %c0_i32_6 = arith.constant 0 : i32
    %11 = arith.addi %4, %c0_i32_6 : i32
    %12 = arith.index_cast %11 : i32 to index
    %c1 = arith.constant 1 : index
    %c0_7 = arith.constant 0 : index
    %13 = vector.load %arg10[%12, %c1, %c0_7] : memref<9x9x8xbf16, #tpu.memory_space<vmem>>, vector<8x8x8xbf16>
    %c0_i32_8 = arith.constant 0 : i32
    %14 = arith.addi %4, %c0_i32_8 : i32
    %15 = arith.index_cast %14 : i32 to index
    %c1_9 = arith.constant 1 : index
    %c0_10 = arith.constant 0 : index
    %16 = vector.load %arg11[%15, %c1_9, %c0_10] : memref<9x9x8xbf16, #tpu.memory_space<vmem>>, vector<8x8x8xbf16>
    %c1_i32 = arith.constant 1 : i32
    %17 = arith.addi %4, %c1_i32 : i32
    %18 = arith.index_cast %17 : i32 to index
    %c0_11 = arith.constant 0 : index
    %c0_12 = arith.constant 0 : index
    %19 = vector.load %arg10[%18, %c0_11, %c0_12] : memref<9x9x8xbf16, #tpu.memory_space<vmem>>, vector<8x8x8xbf16>
    %c1_i32_13 = arith.constant 1 : i32
    %20 = arith.addi %4, %c1_i32_13 : i32
    %21 = arith.index_cast %20 : i32 to index
    %c0_14 = arith.constant 0 : index
    %c0_15 = arith.constant 0 : index
    %22 = vector.load %arg11[%21, %c0_14, %c0_15] : memref<9x9x8xbf16, #tpu.memory_space<vmem>>, vector<8x8x8xbf16>
    %c1_i32_16 = arith.constant 1 : i32
    %23 = arith.addi %4, %c1_i32_16 : i32
    %24 = arith.index_cast %23 : i32 to index
    %c1_17 = arith.constant 1 : index
    %c0_18 = arith.constant 0 : index
    %25 = vector.load %arg10[%24, %c1_17, %c0_18] : memref<9x9x8xbf16, #tpu.memory_space<vmem>>, vector<8x8x8xbf16>
    %c1_i32_19 = arith.constant 1 : i32
    %26 = arith.addi %4, %c1_i32_19 : i32
    %27 = arith.index_cast %26 : i32 to index
    %c1_20 = arith.constant 1 : index
    %c0_21 = arith.constant 0 : index
    %28 = vector.load %arg11[%27, %c1_20, %c0_21] : memref<9x9x8xbf16, #tpu.memory_space<vmem>>, vector<8x8x8xbf16>
    %29 = vector.extract_strided_slice %25 {offsets = [0, 0, 0], sizes = [8, 8, 4], strides = [1, 1, 1]} : vector<8x8x8xbf16> to vector<8x8x4xbf16>
    %30 = vector.extract_strided_slice %25 {offsets = [0, 0, 4], sizes = [8, 8, 4], strides = [1, 1, 1]} : vector<8x8x8xbf16> to vector<8x8x4xbf16>
    %31 = arith.maximumf %29, %30 : vector<8x8x4xbf16>
    %32 = vector.extract_strided_slice %28 {offsets = [0, 0, 0], sizes = [8, 8, 4], strides = [1, 1, 1]} : vector<8x8x8xbf16> to vector<8x8x4xbf16>
    %33 = vector.extract_strided_slice %28 {offsets = [0, 0, 4], sizes = [8, 8, 4], strides = [1, 1, 1]} : vector<8x8x8xbf16> to vector<8x8x4xbf16>
    %34 = arith.maximumf %32, %33 : vector<8x8x4xbf16>
    %35 = arith.maximumf %31, %34 : vector<8x8x4xbf16>
    %c0_22 = arith.constant 0 : index
    %c0_23 = arith.constant 0 : index
    %c0_24 = arith.constant 0 : index
    %c0_25 = arith.constant 0 : index
    %36 = vector.load %arg7[%c0_22, %c0_23, %c0_24, %c0_25] : memref<1x8x8x4xbf16, #tpu.memory_space<vmem>>, vector<1x8x8x4xbf16>
    %37 = vector.shape_cast %36 : vector<1x8x8x4xbf16> to vector<8x8x4xbf16>
    %38 = vector.shape_cast %35 : vector<8x8x4xbf16> to vector<1x8x8x4xbf16>
    tpu.vector_store %arg7[%c0_22, %c0_23, %c0_24, %c0_25], %38 {strides = array<i32>} : memref<1x8x8x4xbf16, #tpu.memory_space<vmem>>, vector<1x8x8x4xbf16>,
    %39 = vector.shape_cast %35 : vector<8x8x4xbf16> to vector<64x4xbf16>
    %c0_26 = arith.constant 0 : index
    %c0_27 = arith.constant 0 : index
    %40 = vector.load %arg5[%c0_26, %c0_27] : memref<4x8xbf16, #tpu.memory_space<vmem>>, vector<4x8xbf16>
    %cst = arith.constant dense<0.000000e+00> : vector<64x8xf32>
    %41 = tpu.matmul %39, %40, %cst {dimension_numbers = #tpu.dot_dimension_numbers<[1], [0], [0], [1], [0, 0, 1, 1], [], []>} : vector<64x4xbf16>, vector<4x8xbf16>, vector<64x8xf32> -> vector<64x8xf32>
    %c0_28 = arith.constant 0 : index
    %c0_29 = arith.constant 0 : index
    %42 = vector.load %arg6[%c0_28, %c0_29] : memref<1x8xf32, #tpu.memory_space<vmem>>, vector<1x8xf32>
    %43 = vector.broadcast %42 : vector<1x8xf32> to vector<64x8xf32>
    %44 = arith.addf %41, %43 : vector<64x8xf32>
    %45 = vector.shape_cast %44 : vector<64x8xf32> to vector<8x8x8xf32>
    %46 = arith.truncf %45 : vector<8x8x8xf32> to vector<8x8x8xbf16>
    %c0_30 = arith.constant 0 : index
    %c0_31 = arith.constant 0 : index
    %c0_32 = arith.constant 0 : index
    %c0_33 = arith.constant 0 : index
    %47 = vector.load %arg8[%c0_30, %c0_31, %c0_32, %c0_33] : memref<1x8x8x8xbf16, #tpu.memory_space<vmem>>, vector<1x8x8x8xbf16>
    %48 = vector.shape_cast %47 : vector<1x8x8x8xbf16> to vector<8x8x8xbf16>
    %49 = vector.shape_cast %46 : vector<8x8x8xbf16> to vector<1x8x8x8xbf16>
    tpu.vector_store %arg8[%c0_30, %c0_31, %c0_32, %c0_33], %49 {strides = array<i32>} : memref<1x8x8x8xbf16, #tpu.memory_space<vmem>>, vector<1x8x8x8xbf16>,
    %50 = tpu.concatenate %7, %10, %13, %16, %19, %22, %25, %28 in 2 : vector<8x8x8xbf16>, vector<8x8x8xbf16>, vector<8x8x8xbf16>, vector<8x8x8xbf16>, vector<8x8x8xbf16>, vector<8x8x8xbf16>, vector<8x8x8xbf16>, vector<8x8x8xbf16> -> vector<8x8x64xbf16>
    %51 = vector.shape_cast %50 : vector<8x8x64xbf16> to vector<64x64xbf16>
    %c0_34 = arith.constant 0 : index
    %c0_35 = arith.constant 0 : index
    %52 = vector.load %arg3[%c0_34, %c0_35] : memref<64x8xbf16, #tpu.memory_space<vmem>>, vector<64x8xbf16>
    %cst_36 = arith.constant dense<0.000000e+00> : vector<64x8xf32>
    %53 = tpu.matmul %51, %52, %cst_36 {dimension_numbers = #tpu.dot_dimension_numbers<[1], [0], [0], [1], [0, 0, 1, 1], [], []>} : vector<64x64xbf16>, vector<64x8xbf16>, vector<64x8xf32> -> vector<64x8xf32>
    %c0_37 = arith.constant 0 : index
    %c0_38 = arith.constant 0 : index
    %54 = vector.load %arg4[%c0_37, %c0_38] : memref<1x8xf32, #tpu.memory_space<vmem>>, vector<1x8xf32>
    %55 = vector.broadcast %54 : vector<1x8xf32> to vector<64x8xf32>
    %56 = arith.addf %53, %55 : vector<64x8xf32>
    %cst_39 = arith.constant 0.000000e+00 : f32
    %57 = vector.broadcast %cst_39 : f32 to vector<64x8xf32>
    %58 = arith.maximumf %56, %57 : vector<64x8xf32>
    %59 = vector.shape_cast %58 : vector<64x8xf32> to vector<8x8x8xf32>
    %60 = arith.truncf %59 : vector<8x8x8xf32> to vector<8x8x8xbf16>
    %c0_40 = arith.constant 0 : index
    %c0_41 = arith.constant 0 : index
    %c0_42 = arith.constant 0 : index
    %c0_43 = arith.constant 0 : index
    %61 = vector.load %arg9[%c0_40, %c0_41, %c0_42, %c0_43] : memref<1x8x8x8xbf16, #tpu.memory_space<vmem>>, vector<1x8x8x8xbf16>
    %62 = vector.shape_cast %61 : vector<1x8x8x8xbf16> to vector<8x8x8xbf16>
    %63 = vector.shape_cast %60 : vector<8x8x8xbf16> to vector<1x8x8x8xbf16>
    tpu.vector_store %arg9[%c0_40, %c0_41, %c0_42, %c0_43], %63 {strides = array<i32>} : memref<1x8x8x8xbf16, #tpu.memory_space<vmem>>, vector<1x8x8x8xbf16>,
    return
  }
  func.func @transform_0(%arg0: i32, %arg1: i32) -> (i32, i32, i32, i32, i32) {
    %c0_i32 = arith.constant 0 : i32
    %c0_i32_0 = arith.constant 0 : i32
    %c0_i32_1 = arith.constant 0 : i32
    %c0_i32_2 = arith.constant 0 : i32
    %c0_i32_3 = arith.constant 0 : i32
    return %arg0, %c0_i32, %c0_i32_0, %c0_i32_1, %c0_i32_2 : i32, i32, i32, i32, i32
  }
  func.func @transform_1(%arg0: i32, %arg1: i32) -> (i32, i32) {
    %c0_i32 = arith.constant 0 : i32
    %c0_i32_0 = arith.constant 0 : i32
    %c0_i32_1 = arith.constant 0 : i32
    return %c0_i32, %c0_i32_0 : i32, i32
  }
  func.func @transform_2(%arg0: i32, %arg1: i32) -> (i32, i32) {
    %c0_i32 = arith.constant 0 : i32
    %c0_i32_0 = arith.constant 0 : i32
    %c0_i32_1 = arith.constant 0 : i32
    return %c0_i32, %c0_i32_0 : i32, i32
  }
  func.func @transform_3(%arg0: i32, %arg1: i32) -> (i32, i32) {
    %c0_i32 = arith.constant 0 : i32
    %c0_i32_0 = arith.constant 0 : i32
    %c0_i32_1 = arith.constant 0 : i32
    return %c0_i32, %c0_i32_0 : i32, i32
  }
  func.func @transform_4(%arg0: i32, %arg1: i32) -> (i32, i32) {
    %c0_i32 = arith.constant 0 : i32
    %c0_i32_0 = arith.constant 0 : i32
    %c0_i32_1 = arith.constant 0 : i32
    return %c0_i32, %c0_i32_0 : i32, i32
  }
  func.func @transform_5(%arg0: i32, %arg1: i32) -> (i32, i32, i32, i32) {
    %c0_i32 = arith.constant 0 : i32
    %c0_i32_0 = arith.constant 0 : i32
    %c0_i32_1 = arith.constant 0 : i32
    return %arg0, %arg1, %c0_i32, %c0_i32_0 : i32, i32, i32, i32
  }
  func.func @transform_6(%arg0: i32, %arg1: i32) -> (i32, i32, i32, i32) {
    %c0_i32 = arith.constant 0 : i32
    %c0_i32_0 = arith.constant 0 : i32
    %c0_i32_1 = arith.constant 0 : i32
    return %arg0, %arg1, %c0_i32, %c0_i32_0 : i32, i32, i32, i32
  }
  func.func @transform_7(%arg0: i32, %arg1: i32) -> (i32, i32, i32, i32) {
    %c0_i32 = arith.constant 0 : i32
    %c0_i32_0 = arith.constant 0 : i32
    %c0_i32_1 = arith.constant 0 : i32
    return %arg0, %arg1, %c0_i32, %c0_i32_0 : i32, i32, i32, i32
  }
}

module attributes {stable_mosaic.version = 11 : i64} {
  func.func @_conv_root_kernel(%arg0: i32, %arg1: i32, %arg2: memref<1x8x8x8xbf16, #tpu.memory_space<vmem>>, %arg3: memref<72x8xbf16, #tpu.memory_space<vmem>>, %arg4: memref<1x8xf32, #tpu.memory_space<vmem>>, %arg5: memref<1x8x8x8xbf16, #tpu.memory_space<vmem>>, %arg6: memref<1x8x8x4xbf16, #tpu.memory_space<vmem>>, %arg7: memref<20x8xbf16, #tpu.memory_space<vmem>>, %arg8: memref<1x8xf32, #tpu.memory_space<vmem>>, %arg9: memref<1x8x8x8xbf16, #tpu.memory_space<vmem>>, %arg10: memref<10x10x8xbf16, #tpu.memory_space<vmem>>) attributes {dimension_semantics = [#tpu.dimension_semantics<parallel>, #tpu.dimension_semantics<arbitrary>], iteration_bounds = array<i64: 2, 1>, scalar_prefetch = 0 : i64, scratch_operands = 1 : i64, tpu.core_type = #tpu.core_type<tc>, window_params = [{transform_indices = @transform_0, window_bounds = array<i64: 1, 8, 8, 8>}, {pipeline_mode = #tpu.pipeline_mode<synchronous>, transform_indices = @transform_1, window_bounds = array<i64: 72, 8>}, {pipeline_mode = #tpu.pipeline_mode<synchronous>, transform_indices = @transform_2, window_bounds = array<i64: 1, 8>}, {transform_indices = @transform_3, window_bounds = array<i64: 1, 8, 8, 8>}, {transform_indices = @transform_4, window_bounds = array<i64: 1, 8, 8, 4>}, {pipeline_mode = #tpu.pipeline_mode<synchronous>, transform_indices = @transform_5, window_bounds = array<i64: 20, 8>}, {pipeline_mode = #tpu.pipeline_mode<synchronous>, transform_indices = @transform_6, window_bounds = array<i64: 1, 8>}, {transform_indices = @transform_7, window_bounds = array<i64: 1, 8, 8, 8>}]} {
    %c0_i32 = arith.constant 0 : i32
    %0 = arith.cmpi eq, %arg1, %c0_i32 : i32
    %1 = arith.extui %0 : i1 to i32
    %c0_i32_0 = arith.constant 0 : i32
    %2 = arith.cmpi ne, %1, %c0_i32_0 : i32
    scf.if %2 {
      %cst_46 = arith.constant 0.000000e+00 : bf16
      %64 = vector.broadcast %cst_46 : bf16 to vector<1x10x8xbf16>
      %cst_47 = arith.constant 0.000000e+00 : bf16
      %65 = vector.broadcast %cst_47 : bf16 to vector<10x1x8xbf16>
      %c0_48 = arith.constant 0 : index
      %c0_49 = arith.constant 0 : index
      %c0_50 = arith.constant 0 : index
      %66 = vector.load %arg10[%c0_48, %c0_49, %c0_50] : memref<10x10x8xbf16, #tpu.memory_space<vmem>>, vector<1x10x8xbf16>
      tpu.vector_store %arg10[%c0_48, %c0_49, %c0_50], %64 {strides = array<i32>} : memref<10x10x8xbf16, #tpu.memory_space<vmem>>, vector<1x10x8xbf16>,
      %c9 = arith.constant 9 : index
      %c0_51 = arith.constant 0 : index
      %c0_52 = arith.constant 0 : index
      %67 = vector.load %arg10[%c9, %c0_51, %c0_52] : memref<10x10x8xbf16, #tpu.memory_space<vmem>>, vector<1x10x8xbf16>
      tpu.vector_store %arg10[%c9, %c0_51, %c0_52], %64 {strides = array<i32>} : memref<10x10x8xbf16, #tpu.memory_space<vmem>>, vector<1x10x8xbf16>,
      %c0_53 = arith.constant 0 : index
      %c0_54 = arith.constant 0 : index
      %c0_55 = arith.constant 0 : index
      %68 = vector.load %arg10[%c0_53, %c0_54, %c0_55] : memref<10x10x8xbf16, #tpu.memory_space<vmem>>, vector<10x1x8xbf16>
      tpu.vector_store %arg10[%c0_53, %c0_54, %c0_55], %65 {strides = array<i32>} : memref<10x10x8xbf16, #tpu.memory_space<vmem>>, vector<10x1x8xbf16>,
      %c0_56 = arith.constant 0 : index
      %c9_57 = arith.constant 9 : index
      %c0_58 = arith.constant 0 : index
      %69 = vector.load %arg10[%c0_56, %c9_57, %c0_58] : memref<10x10x8xbf16, #tpu.memory_space<vmem>>, vector<10x1x8xbf16>
      tpu.vector_store %arg10[%c0_56, %c9_57, %c0_58], %65 {strides = array<i32>} : memref<10x10x8xbf16, #tpu.memory_space<vmem>>, vector<10x1x8xbf16>,
      %c0_59 = arith.constant 0 : index
      %c0_60 = arith.constant 0 : index
      %c0_61 = arith.constant 0 : index
      %c0_62 = arith.constant 0 : index
      %70 = vector.load %arg2[%c0_59, %c0_60, %c0_61, %c0_62] : memref<1x8x8x8xbf16, #tpu.memory_space<vmem>>, vector<1x8x8x8xbf16>
      %71 = vector.shape_cast %70 : vector<1x8x8x8xbf16> to vector<8x8x8xbf16>
      %c1_63 = arith.constant 1 : index
      %c1_64 = arith.constant 1 : index
      %c0_65 = arith.constant 0 : index
      %72 = vector.load %arg10[%c1_63, %c1_64, %c0_65] : memref<10x10x8xbf16, #tpu.memory_space<vmem>>, vector<8x8x8xbf16>
      tpu.vector_store %arg10[%c1_63, %c1_64, %c0_65], %71 {strides = array<i32>} : memref<10x10x8xbf16, #tpu.memory_space<vmem>>, vector<8x8x8xbf16>,
    } else {
    }
    %c8_i32 = arith.constant 8 : i32
    %3 = arith.muli %arg1, %c8_i32 : i32
    %4 = tpu.assume_multiple %3, 8 : i32
    %c0_i32_1 = arith.constant 0 : i32
    %5 = arith.addi %4, %c0_i32_1 : i32
    %6 = arith.index_cast %5 : i32 to index
    %c0 = arith.constant 0 : index
    %c0_2 = arith.constant 0 : index
    %7 = vector.load %arg10[%6, %c0, %c0_2] : memref<10x10x8xbf16, #tpu.memory_space<vmem>>, vector<8x8x8xbf16>
    %c0_i32_3 = arith.constant 0 : i32
    %8 = arith.addi %4, %c0_i32_3 : i32
    %9 = arith.index_cast %8 : i32 to index
    %c1 = arith.constant 1 : index
    %c0_4 = arith.constant 0 : index
    %10 = vector.load %arg10[%9, %c1, %c0_4] : memref<10x10x8xbf16, #tpu.memory_space<vmem>>, vector<8x8x8xbf16>
    %c0_i32_5 = arith.constant 0 : i32
    %11 = arith.addi %4, %c0_i32_5 : i32
    %12 = arith.index_cast %11 : i32 to index
    %c2 = arith.constant 2 : index
    %c0_6 = arith.constant 0 : index
    %13 = vector.load %arg10[%12, %c2, %c0_6] : memref<10x10x8xbf16, #tpu.memory_space<vmem>>, vector<8x8x8xbf16>
    %c1_i32 = arith.constant 1 : i32
    %14 = arith.addi %4, %c1_i32 : i32
    %15 = arith.index_cast %14 : i32 to index
    %c0_7 = arith.constant 0 : index
    %c0_8 = arith.constant 0 : index
    %16 = vector.load %arg10[%15, %c0_7, %c0_8] : memref<10x10x8xbf16, #tpu.memory_space<vmem>>, vector<8x8x8xbf16>
    %c1_i32_9 = arith.constant 1 : i32
    %17 = arith.addi %4, %c1_i32_9 : i32
    %18 = arith.index_cast %17 : i32 to index
    %c1_10 = arith.constant 1 : index
    %c0_11 = arith.constant 0 : index
    %19 = vector.load %arg10[%18, %c1_10, %c0_11] : memref<10x10x8xbf16, #tpu.memory_space<vmem>>, vector<8x8x8xbf16>
    %c1_i32_12 = arith.constant 1 : i32
    %20 = arith.addi %4, %c1_i32_12 : i32
    %21 = arith.index_cast %20 : i32 to index
    %c2_13 = arith.constant 2 : index
    %c0_14 = arith.constant 0 : index
    %22 = vector.load %arg10[%21, %c2_13, %c0_14] : memref<10x10x8xbf16, #tpu.memory_space<vmem>>, vector<8x8x8xbf16>
    %c2_i32 = arith.constant 2 : i32
    %23 = arith.addi %4, %c2_i32 : i32
    %24 = arith.index_cast %23 : i32 to index
    %c0_15 = arith.constant 0 : index
    %c0_16 = arith.constant 0 : index
    %25 = vector.load %arg10[%24, %c0_15, %c0_16] : memref<10x10x8xbf16, #tpu.memory_space<vmem>>, vector<8x8x8xbf16>
    %c2_i32_17 = arith.constant 2 : i32
    %26 = arith.addi %4, %c2_i32_17 : i32
    %27 = arith.index_cast %26 : i32 to index
    %c1_18 = arith.constant 1 : index
    %c0_19 = arith.constant 0 : index
    %28 = vector.load %arg10[%27, %c1_18, %c0_19] : memref<10x10x8xbf16, #tpu.memory_space<vmem>>, vector<8x8x8xbf16>
    %c2_i32_20 = arith.constant 2 : i32
    %29 = arith.addi %4, %c2_i32_20 : i32
    %30 = arith.index_cast %29 : i32 to index
    %c2_21 = arith.constant 2 : index
    %c0_22 = arith.constant 0 : index
    %31 = vector.load %arg10[%30, %c2_21, %c0_22] : memref<10x10x8xbf16, #tpu.memory_space<vmem>>, vector<8x8x8xbf16>
    %32 = tpu.concatenate %7, %10, %13, %16, %19, %22, %25, %28, %31 in 2 : vector<8x8x8xbf16>, vector<8x8x8xbf16>, vector<8x8x8xbf16>, vector<8x8x8xbf16>, vector<8x8x8xbf16>, vector<8x8x8xbf16>, vector<8x8x8xbf16>, vector<8x8x8xbf16>, vector<8x8x8xbf16> -> vector<8x8x72xbf16>
    %c0_23 = arith.constant 0 : index
    %c0_24 = arith.constant 0 : index
    %c0_25 = arith.constant 0 : index
    %c0_26 = arith.constant 0 : index
    %33 = vector.load %arg5[%c0_23, %c0_24, %c0_25, %c0_26] : memref<1x8x8x8xbf16, #tpu.memory_space<vmem>>, vector<1x8x8x8xbf16>
    %34 = vector.shape_cast %33 : vector<1x8x8x8xbf16> to vector<8x8x8xbf16>
    %35 = vector.shape_cast %32 : vector<8x8x72xbf16> to vector<64x72xbf16>
    %c0_27 = arith.constant 0 : index
    %c0_28 = arith.constant 0 : index
    %36 = vector.load %arg3[%c0_27, %c0_28] : memref<72x8xbf16, #tpu.memory_space<vmem>>, vector<72x8xbf16>
    %cst = arith.constant dense<0.000000e+00> : vector<64x8xf32>
    %37 = tpu.matmul %35, %36, %cst {dimension_numbers = #tpu.dot_dimension_numbers<[1], [0], [0], [1], [0, 0, 1, 1], [], []>} : vector<64x72xbf16>, vector<72x8xbf16>, vector<64x8xf32> -> vector<64x8xf32>
    %c0_29 = arith.constant 0 : index
    %c0_30 = arith.constant 0 : index
    %38 = vector.load %arg4[%c0_29, %c0_30] : memref<1x8xf32, #tpu.memory_space<vmem>>, vector<1x8xf32>
    %39 = vector.broadcast %38 : vector<1x8xf32> to vector<64x8xf32>
    %40 = arith.addf %37, %39 : vector<64x8xf32>
    %41 = vector.shape_cast %34 : vector<8x8x8xbf16> to vector<64x8xbf16>
    %42 = arith.extf %41 : vector<64x8xbf16> to vector<64x8xf32>
    %43 = arith.addf %40, %42 : vector<64x8xf32>
    %cst_31 = arith.constant 0.000000e+00 : f32
    %44 = vector.broadcast %cst_31 : f32 to vector<64x8xf32>
    %45 = arith.maximumf %43, %44 : vector<64x8xf32>
    %46 = arith.truncf %45 : vector<64x8xf32> to vector<64x8xbf16>
    %47 = vector.shape_cast %46 : vector<64x8xbf16> to vector<8x8x8xbf16>
    %c0_32 = arith.constant 0 : index
    %c0_33 = arith.constant 0 : index
    %c0_34 = arith.constant 0 : index
    %c0_35 = arith.constant 0 : index
    %48 = vector.load %arg6[%c0_32, %c0_33, %c0_34, %c0_35] : memref<1x8x8x4xbf16, #tpu.memory_space<vmem>>, vector<1x8x8x4xbf16>
    %49 = vector.shape_cast %48 : vector<1x8x8x4xbf16> to vector<8x8x4xbf16>
    %50 = tpu.concatenate %47, %34, %49 in 2 : vector<8x8x8xbf16>, vector<8x8x8xbf16>, vector<8x8x4xbf16> -> vector<8x8x20xbf16>
    %51 = vector.shape_cast %50 : vector<8x8x20xbf16> to vector<64x20xbf16>
    %c0_36 = arith.constant 0 : index
    %c0_37 = arith.constant 0 : index
    %52 = vector.load %arg7[%c0_36, %c0_37] : memref<20x8xbf16, #tpu.memory_space<vmem>>, vector<20x8xbf16>
    %cst_38 = arith.constant dense<0.000000e+00> : vector<64x8xf32>
    %53 = tpu.matmul %51, %52, %cst_38 {dimension_numbers = #tpu.dot_dimension_numbers<[1], [0], [0], [1], [0, 0, 1, 1], [], []>} : vector<64x20xbf16>, vector<20x8xbf16>, vector<64x8xf32> -> vector<64x8xf32>
    %c0_39 = arith.constant 0 : index
    %c0_40 = arith.constant 0 : index
    %54 = vector.load %arg8[%c0_39, %c0_40] : memref<1x8xf32, #tpu.memory_space<vmem>>, vector<1x8xf32>
    %55 = vector.broadcast %54 : vector<1x8xf32> to vector<64x8xf32>
    %56 = arith.addf %53, %55 : vector<64x8xf32>
    %cst_41 = arith.constant 0.000000e+00 : f32
    %57 = vector.broadcast %cst_41 : f32 to vector<64x8xf32>
    %58 = arith.maximumf %56, %57 : vector<64x8xf32>
    %59 = vector.shape_cast %58 : vector<64x8xf32> to vector<8x8x8xf32>
    %60 = arith.truncf %59 : vector<8x8x8xf32> to vector<8x8x8xbf16>
    %c0_42 = arith.constant 0 : index
    %c0_43 = arith.constant 0 : index
    %c0_44 = arith.constant 0 : index
    %c0_45 = arith.constant 0 : index
    %61 = vector.load %arg9[%c0_42, %c0_43, %c0_44, %c0_45] : memref<1x8x8x8xbf16, #tpu.memory_space<vmem>>, vector<1x8x8x8xbf16>
    %62 = vector.shape_cast %61 : vector<1x8x8x8xbf16> to vector<8x8x8xbf16>
    %63 = vector.shape_cast %60 : vector<8x8x8xbf16> to vector<1x8x8x8xbf16>
    tpu.vector_store %arg9[%c0_42, %c0_43, %c0_44, %c0_45], %63 {strides = array<i32>} : memref<1x8x8x8xbf16, #tpu.memory_space<vmem>>, vector<1x8x8x8xbf16>,
    return
  }
  func.func @transform_0(%arg0: i32, %arg1: i32) -> (i32, i32, i32, i32) {
    %c0_i32 = arith.constant 0 : i32
    %c0_i32_0 = arith.constant 0 : i32
    %c0_i32_1 = arith.constant 0 : i32
    %c0_i32_2 = arith.constant 0 : i32
    return %arg0, %c0_i32, %c0_i32_0, %c0_i32_1 : i32, i32, i32, i32
  }
  func.func @transform_1(%arg0: i32, %arg1: i32) -> (i32, i32) {
    %c0_i32 = arith.constant 0 : i32
    %c0_i32_0 = arith.constant 0 : i32
    %c0_i32_1 = arith.constant 0 : i32
    return %c0_i32, %c0_i32_0 : i32, i32
  }
  func.func @transform_2(%arg0: i32, %arg1: i32) -> (i32, i32) {
    %c0_i32 = arith.constant 0 : i32
    %c0_i32_0 = arith.constant 0 : i32
    %c0_i32_1 = arith.constant 0 : i32
    return %c0_i32, %c0_i32_0 : i32, i32
  }
  func.func @transform_3(%arg0: i32, %arg1: i32) -> (i32, i32, i32, i32) {
    %c0_i32 = arith.constant 0 : i32
    %c0_i32_0 = arith.constant 0 : i32
    %c0_i32_1 = arith.constant 0 : i32
    return %arg0, %arg1, %c0_i32, %c0_i32_0 : i32, i32, i32, i32
  }
  func.func @transform_4(%arg0: i32, %arg1: i32) -> (i32, i32, i32, i32) {
    %c0_i32 = arith.constant 0 : i32
    %c0_i32_0 = arith.constant 0 : i32
    %c0_i32_1 = arith.constant 0 : i32
    return %arg0, %arg1, %c0_i32, %c0_i32_0 : i32, i32, i32, i32
  }
  func.func @transform_5(%arg0: i32, %arg1: i32) -> (i32, i32) {
    %c0_i32 = arith.constant 0 : i32
    %c0_i32_0 = arith.constant 0 : i32
    %c0_i32_1 = arith.constant 0 : i32
    return %c0_i32, %c0_i32_0 : i32, i32
  }
  func.func @transform_6(%arg0: i32, %arg1: i32) -> (i32, i32) {
    %c0_i32 = arith.constant 0 : i32
    %c0_i32_0 = arith.constant 0 : i32
    %c0_i32_1 = arith.constant 0 : i32
    return %c0_i32, %c0_i32_0 : i32, i32
  }
  func.func @transform_7(%arg0: i32, %arg1: i32) -> (i32, i32, i32, i32) {
    %c0_i32 = arith.constant 0 : i32
    %c0_i32_0 = arith.constant 0 : i32
    %c0_i32_1 = arith.constant 0 : i32
    return %arg0, %arg1, %c0_i32, %c0_i32_0 : i32, i32, i32, i32
  }
}

</mosaic_0001>

<bundles_post_ra>
// kernel: tree_forward_pallas.6
= control target key start
LH: loop header
LB: loop body
LE: loop exit
PB: predicated region body
PF: predicated region fallthrough
CT: control target
= control target key end

     0   :  { %s1759_s12 = smov 0   ;;  %s1761_s13 = smov 0   ;;  %s2188_s0 = inlined_call_operand.vmem [shape: bf16[2,8,8,8], index: 0, kind: input, shape index: {}]   ;;  %s2189_s1 = inlined_call_operand.vmem [shape: bf16[72,8], index: 1, kind: input, shape index: {}]   ;;  %s2190_s2 = inlined_call_operand.vmem [shape: f32[1,8], index: 2, kind: input, shape index: {}]   ;;  %s2191_s3 = inlined_call_operand.vmem [shape: bf16[2,8,8,8], index: 3, kind: output, shape index: {}]  }
   0x1   :  { %s1763_s14 = smov 0  }
   0x2 LB: > { %s25_s15 = sadd.s32 1, %s1724_s13  ;;  %p1431_p0 = scmp.ge.s32.totalorder %s1728_s14, 1  ;;  %s1728_s14 = sphi %s1763_s14, %s13_s14   ;;  %s1724_s13 = sphi %s1761_s13, %s2199_s13   ;;  %s1720_s12 = sphi %s1759_s12, %s2198_s12  }
   0x3   : > { %p27_p1 = scmp.ge.s32.totalorder %s25_s15, 2  ;;  %p151_p2 = scmp.lt.s32.totalorder %s1728_s14, 3 }
   0x5   : > { %s2201_s15 = smov (%p27_p1, %s25_s15), 0  ;;  %p152_p3 = pnand %p1431_p0, %p151_p2 }
   0x6   : > { %vm199_vm0 = vcmask (!%p152_p3), 60416   ;;  %vm201_vm1 = vcmask (!%p152_p3), 57344   ;;  %vm207_vm2 = vsmask.f32 (!%p152_p3), 256  ;;  %v1730_v0 = vmov (!%p152_p3), 0   ;;  %p179_p4 = scmp.lt.s32.totalorder (!%p152_p3), %s1720_s12, 1 }
   0x7   : > { %155 = sbr.rel (%p152_p3) target bundleno = 511 (0x1ff), region = 32  ;;  %200 = vst.msk [vmem:[#allocation2] sm:$0xf] (!%p152_p3), %vm199_vm0, %v1730_v0  ;;  %vm1778_vm3 = vmand (!%p152_p3), %vm201_vm1, %vm207_vm2  ;;  %vm239_vm4 = vsmask.f32 (!%p152_p3), 7938  ;;  %s1731_s20 = smov (!%p152_p3), 16  }
   0x8   : > { %202 = vst.msk [vmem:[#allocation2 + $0x4] sm:$0x1] (!%p152_p3), %vm201_vm1, %v1730_v0  ;;  %205 = vst.msk [vmem:[#allocation2 + $0x4c] sm:$0x1] (!%p152_p3), %vm201_vm1, %v1730_v0  ;;  %v212_v2 = vld [vmem:[#allocation2 + $0x8] sm:$0x1] (!%p152_p3) }
   0x9   : > { %204 = vst.msk [vmem:[#allocation2 + $0x48] sm:$0xf] (!%p152_p3), %vm199_vm0, %v1730_v0  ;;  %vm1784_vm5 = vmand (!%p152_p3), %vm201_vm1, %vm239_vm4  ;;  %v213_v4 = vsel (!%p152_p3), %vm1778_vm3, 0, %v212_v2  ;;  %v244_v5 = vld [vmem:[#allocation2 + $0xc] sm:$0x1] (!%p152_p3)  ;;  %s1732_s21 = smov (!%p152_p3), 8  }
   0xa   : > { %v221_v6 = vld [vmem:[#allocation2 + $0x20] sm:$0x1] (!%p152_p3)  ;;  %214 = vst [vmem:[#allocation2 + $0x8] sm:$0x1] (!%p152_p3), %v213_v4  ;;  %v245_v7 = vsel (!%p152_p3), %vm1784_vm5, 0, %v244_v5  ;;  %vm1824_vm6 = vmand (!%p152_p3), %vm199_vm0, %vm239_vm4  ;;  %s1733_s22 = smov (!%p152_p3), 24  }
   0xb   : > { %v222_v8 = vsel (!%p152_p3), %vm1778_vm3, 0, %v221_v6  ;;  %v253_v9 = vld [vmem:[#allocation2 + $0x24] sm:$0x1] (!%p152_p3)  ;;  %246 = vst [vmem:[#allocation2 + $0xc] sm:$0x1] (!%p152_p3), %v245_v7  ;;  %s1734_s23 = smov (!%p152_p3), 32  }
   0xc   : > { %223 = vst [vmem:[#allocation2 + $0x20] sm:$0x1] (!%p152_p3), %v222_v8  ;;  %v254_v10 = vsel (!%p152_p3), %vm1784_vm5, 0, %v253_v9  ;;  %v224_v11 = vld [vmem:[#allocation2 + $0x28] sm:$0x1] (!%p152_p3)  ;;  %s1735_s24 = smov (!%p152_p3), 40  }
   0xd   : > { %v256_v12 = vld [vmem:[#allocation2 + $0x2c] sm:$0x1] (!%p152_p3)  ;;  %255 = vst [vmem:[#allocation2 + $0x24] sm:$0x1] (!%p152_p3), %v254_v10  ;;  %v225_v13 = vsel (!%p152_p3), %vm1778_vm3, 0, %v224_v11  ;;  %s1736_s25 = smov (!%p152_p3), 48  }
   0xe   : > { %s2203_s12 = smov (!%p179_p4, %s1720_s12), 1  ;;  %v257_v14 = vsel %vm1784_vm5, 0, %v256_v12  ;;  %v215_v15 = vld [vmem:[#allocation2 + $0x10] sm:$0x1]  ;;  %226 = vst [vmem:[#allocation2 + $0x28] sm:$0x1] %v225_v13 }
   0xf   : > { %s1564_s16 = sshll.u32 %s2203_s12, 5  ;;  %258 = vst [vmem:[#allocation2 + $0x2c] sm:$0x1] %v257_v14  ;;  %v216_v16 = vsel %vm1778_vm3, 0, %v215_v15  ;;  %v247_v17 = vld [vmem:[#allocation2 + $0x14] sm:$0x1] }
  0x10   : > { %s1808_s19 = scalar_lea.vmem %s2188_s0, %s1564_s16  ;;  %217 = vst [vmem:[#allocation2 + $0x10] sm:$0x1] %v216_v16  ;;  %v241_v21 = vld [vmem:[#allocation2 + $0x4] sm:$0x1]  ;;  %v209_v22 = vld [vmem:[#allocation2] sm:$0x1] }
  0x11   : > { %v271_v18 = vld [vmem:[%s1808_s19] sm:$0xf]  ;;  %v274_v19 = vld [vmem:[%s1808_s19 + $0xc] sm:$0xf]  ;;  %v275_v20 = vld [vmem:[%s1808_s19 + $0x10] sm:$0xf] }
  0x12   : > { %v218_v23 = vld [vmem:[#allocation2 + $0x18] sm:$0x1]  ;;  %v242_v24 = vsel %vm1784_vm5, 0, %v241_v21  ;;  %v210_v25 = vsel %vm1778_vm3, 0, %v209_v22  ;;  %v280_v26 = vshrl.u32 %v271_v18, 16  ;;  %v283_v27 = vshll.u32 %v271_v18, 16 }
  0x13   : > { %v272_v28 = vld [vmem:[%s1808_s19 + $0x4] sm:$0xf]  ;;  %243 = vst [vmem:[#allocation2 + $0x4] sm:$0x1] %v242_v24  ;;  %211 = vst [vmem:[#allocation2] sm:$0x1] %v210_v25 }
  0x14   : > { %v362_v29 = vld [vmem:[#allocation2 + $0x8] sm:$0xf]  ;;  %v304_v30 = vshrl.u32 %v274_v19, 16  ;;  %v307_v31 = vshll.u32 %v274_v19, 16  ;;  %v312_v32 = vshrl.u32 %v275_v20, 16  ;;  %v315_v33 = vshll.u32 %v275_v20, 16 }
  0x15   : > { %v282_v34 = vrot.slane %v280_v26, 7  ;;  %v365_v35 = vld [vmem:[#allocation2 + $0xc] sm:$0x1]  ;;  %v380_v36 = vld [vmem:[#allocation2 + $0x20] sm:$0xf]  ;;  %v248_v37 = vsel %vm1784_vm5, 0, %v247_v17 }
  0x16   : > { %v306_v39 = vrot.slane %v304_v30, 7  ;;  %v383_v40 = vld [vmem:[#allocation2 + $0x24] sm:$0x1]  ;;  %v314_v41 = vrot.slane %v312_v32, 7  ;;  %249 = vst [vmem:[#allocation2 + $0x14] sm:$0x1] %v248_v37 }
  0x17   : > { %v288_v42 = vshrl.u32 %v272_v28, 16  ;;  %v291_v43 = vshll.u32 %v272_v28, 16  ;;  %v285_v44 = vor.u32 %v283_v27, %v282_v34  ;;  %v286_v45 = vrot.slane %v282_v34, 4  ;;  %v386_v46 = vld [vmem:[#allocation2 + $0x28] sm:$0xf]  ;;  %s1737_s28 = smov 56  }
  0x18   : > { %v389_v47 = vld [vmem:[#allocation2 + $0x2c] sm:$0x1]  ;;  %v219_v48 = vsel %vm1778_vm3, 0, %v218_v23  ;;  %v430_v49 = vld [vmem:[#allocation2] sm:$0xe]  ;;  %v309_v50 = vor.u32 %v307_v31, %v306_v39  ;;  %v310_v51 = vrot.slane %v306_v39, 4  ;;  %v317_v52 = vor.u32 %v315_v33, %v314_v41 }
  0x19   : > { %v318_v53 = vrot.slane %v314_v41, 4  ;;  %220 = vst [vmem:[#allocation2 + $0x18] sm:$0x1] %v219_v48  ;;  %v250_v54 = vld [vmem:[#allocation2 + $0x1c] sm:$0x1]  ;;  %v363_v55 = vsel %vm1824_vm6, %v285_v44, %v362_v29  ;;  %v366_v56 = vsel %vm1778_vm3, %v286_v45, %v365_v35  ;;  %v290_v57 = vrot.slane %v288_v42, 7 }
  0x1a   : > { %v251_v58 = vsel %vm1784_vm5, 0, %v250_v54  ;;  %v273_v59 = vld [vmem:[%s1808_s19 + $0x8] sm:$0xf]  ;;  %v227_v60 = vld [vmem:[#allocation2 + $0x30] sm:$0x1]  ;;  %v381_v61 = vsel %vm1824_vm6, %v309_v50, %v380_v36  ;;  %v384_v62 = vsel %vm1778_vm3, %v310_v51, %v383_v40  ;;  %v387_v63 = vsel %vm1824_vm6, %v317_v52, %v386_v46  ;;  %s1738_s10 = smov 64  }
  0x1b   : > { %364 = vst [vmem:[#allocation2 + $0x8] sm:$0xf] %v363_v55  ;;  %367 = vst [vmem:[#allocation2 + $0xc] sm:$0x1] %v366_v56  ;;  %v390_v0 = vsel %vm1778_vm3, %v318_v53, %v389_v47  ;;  %v368_v2 = vld [vmem:[#allocation2 + $0x10] sm:$0xf]  ;;  %v293_v8 = vor.u32 %v291_v43, %v290_v57 }
  0x1c   : > { %252 = vst [vmem:[#allocation2 + $0x1c] sm:$0x1] %v251_v58  ;;  %v259_v4 = vld [vmem:[#allocation2 + $0x34] sm:$0x1]  ;;  %v422_v6 = vld [vmem:[#allocation2 + $0x4] sm:$0x1] }
  0x1d   : > { %v276_v5 = vld [vmem:[%s1808_s19 + $0x14] sm:$0xf]  ;;  %v1846_v7 = vld [vmem:[#allocation2] sm:$0xf]  ;;  %382 = vst [vmem:[#allocation2 + $0x20] sm:$0xf] %v381_v61  ;;  %v1492_v11 = vcombine.low %v430_v49, %v422_v6  ;;  %v369_v17 = vsel %vm1824_vm6, %v293_v8, %v368_v2 }
  0x1e   : > { %385 = vst [vmem:[#allocation2 + $0x24] sm:$0x1] %v384_v62  ;;  %388 = vst [vmem:[#allocation2 + $0x28] sm:$0xf] %v387_v63  ;;  %v294_v9 = vrot.slane %v290_v57, 4  ;;  %v296_v10 = vshrl.u32 %v273_v59, 16  ;;  %v1484_v12 = vcombine.low %v1846_v7, %v422_v6 }
  0x1f   : > { %391 = vst [vmem:[#allocation2 + $0x2c] sm:$0x1] %v390_v0  ;;  %v299_v13 = vshll.u32 %v273_v59, 16  ;;  %v228_v14 = vsel %vm1778_vm3, 0, %v227_v60  ;;  %v230_v15 = vld [vmem:[#allocation2 + $0x38] sm:$0x1] }
  0x20   : > { %v262_v16 = vld [vmem:[#allocation2 + $0x3c] sm:$0x1]  ;;  %v371_v18 = vld [vmem:[#allocation2 + $0x14] sm:$0x1]  ;;  %v298_v19 = vrot.slane %v296_v10, 7  ;;  %v260_v20 = vsel %vm1784_vm5, 0, %v259_v4 }
  0x21   : > { %229 = vst [vmem:[#allocation2 + $0x30] sm:$0x1] %v228_v14  ;;  %v320_v21 = vshrl.u32 %v276_v5, 16  ;;  %v630_v22 = vrot.slane %v1492_v11, 1  ;;  %v537_v23 = vshll.u32 %v1484_v12, 16  ;;  %v535_v24 = vshrl.u32 %v1484_v12, 16 }
  0x22   : > { %370 = vst [vmem:[#allocation2 + $0x10] sm:$0xf] %v369_v17  ;;  %v372_v25 = vsel %vm1778_vm3, %v294_v9, %v371_v18  ;;  %261 = vst [vmem:[#allocation2 + $0x34] sm:$0x1] %v260_v20  ;;  %v301_v26 = vor.u32 %v299_v13, %v298_v19  ;;  %v374_v27 = vld [vmem:[#allocation2 + $0x18] sm:$0xf] }
  0x23   : > { %373 = vst [vmem:[#allocation2 + $0x14] sm:$0x1] %v372_v25  ;;  %v322_v28 = vrot.slane %v320_v21, 7  ;;  %v323_v29 = vshll.u32 %v276_v5, 16  ;;  %v277_v30 = vld [vmem:[%s1808_s19 + $0x18] sm:$0xf]  ;;  %638 = vrot.lane.b32.xlu0 %v630_v22, %s1731_s20 }
  0x24   : > { %v539_v31 = vrot.slane %v537_v23, 1  ;;  %v231_v32 = vsel %vm1778_vm3, 0, %v230_v15  ;;  %v263_v33 = vsel %vm1784_vm5, 0, %v262_v16  ;;  %v423_v34 = vld [vmem:[#allocation2 + $0xc] sm:$0x1]  ;;  %v302_v36 = vrot.slane %v298_v19, 4 }
  0x25   : > { %v431_v35 = vld [vmem:[#allocation2 + $0x8] sm:$0xe]  ;;  %v375_v37 = vsel %vm1824_vm6, %v301_v26, %v374_v27  ;;  %v325_v39 = vor.u32 %v323_v29, %v322_v28  ;;  %232 = vst [vmem:[#allocation2 + $0x38] sm:$0x1] %v231_v32  ;;  %264 = vst [vmem:[#allocation2 + $0x3c] sm:$0x1] %v263_v33 }
  0x26   : > { %v540_v40 = vor.u32 %v539_v31, %v535_v24  ;;  %v1493_v41 = vcombine.low %v431_v35, %v423_v34  ;;  %v426_v42 = vld [vmem:[#allocation2 + $0x24] sm:$0x1]  ;;  %v434_v43 = vld [vmem:[#allocation2 + $0x20] sm:$0xe]  ;;  %376 = vst [vmem:[#allocation2 + $0x18] sm:$0xf] %v375_v37 }
  0x27   : > { %v328_v44 = vshrl.u32 %v277_v30, 16  ;;  %v1865_v45 = vld [vmem:[#allocation2 + $0x8] sm:$0xf]  ;;  %v1496_v46 = vcombine.low %v434_v43, %v426_v42  ;;  %v427_v47 = vld [vmem:[#allocation2 + $0x2c] sm:$0x1]  ;;  %v326_v57 = vrot.slane %v322_v28, 4 }
  0x28   : > { %v435_v48 = vld [vmem:[#allocation2 + $0x28] sm:$0xe]  ;;  %590 = vrot.lane.b32.xlu0 %v540_v40, %s1732_s21  ;;  %v631_v49 = vrot.slane %v1493_v41, 1  ;;  %v377_v51 = vld [vmem:[#allocation2 + $0x1c] sm:$0x1]  ;;  %v1485_v63 = vcombine.low %v1865_v45, %v423_v34  ;;  %v331_v5 = vshll.u32 %v277_v30, 16 }
  0x29   : > { %v1497_v50 = vcombine.low %v435_v48, %v427_v47  ;;  %v392_v52 = vld [vmem:[#allocation2 + $0x30] sm:$0xf]  ;;  %v634_v53 = vrot.slane %v1496_v46, 1  ;;  %v1868_v54 = vld [vmem:[#allocation2 + $0x20] sm:$0xf]  ;;  %v378_v56 = vsel %vm1778_vm3, %v302_v36, %v377_v51  ;;  %v330_v62 = vrot.slane %v328_v44, 7 }
  0x2a   : > { %v432_v55 = vld [vmem:[#allocation2 + $0x10] sm:$0xe]  ;;  %v393_v58 = vsel %vm1824_vm6, %v325_v39, %v392_v52  ;;  %640 = vrot.lane.b32.xlu1 %v631_v49, %s1731_s20  ;;  %v424_v60 = vld [vmem:[#allocation2 + $0x14] sm:$0x1]  ;;  %379 = vst [vmem:[#allocation2 + $0x1c] sm:$0x1] %v378_v56  ;;  %v1488_v6 = vcombine.low %v1868_v54, %v426_v42 }
  0x2b   : > { %v635_v59 = vrot.slane %v1497_v50, 1  ;;  %394 = vst [vmem:[#allocation2 + $0x30] sm:$0xf] %v393_v58  ;;  %v395_v61 = vld [vmem:[#allocation2 + $0x34] sm:$0x1]  ;;  %v1494_v0 = vcombine.low %v432_v55, %v424_v60  ;;  %v334_v8 = vrot.slane %v330_v62, 4  ;;  %v333_v12 = vor.u32 %v331_v5, %v330_v62 }
  0x2c   : > { %v1876_v2 = vld [vmem:[#allocation2 + $0x10] sm:$0xf]  ;;  %v396_v4 = vsel %vm1778_vm3, %v326_v57, %v395_v61  ;;  %646 = vrot.lane.b32.xlu0 %v634_v53, %s1731_s20  ;;  %v398_v9 = vld [vmem:[#allocation2 + $0x38] sm:$0xf]  ;;  %v401_v10 = vld [vmem:[#allocation2 + $0x3c] sm:$0x1] }
  0x2d   : > { %397 = vst [vmem:[#allocation2 + $0x34] sm:$0x1] %v396_v4  ;;  %v632_v11 = vrot.slane %v1494_v0, 1  ;;  %v402_v13 = vsel %vm1778_vm3, %v334_v8, %v401_v10  ;;  %v544_v14 = vshll.u32 %v1485_v63, 16  ;;  %v1885_v15 = vld [vmem:[#allocation2 + $0x28] sm:$0xf]  ;;  %v1486_v16 = vcombine.low %v1876_v2, %v424_v60 }
  0x2e   : > { %648 = vrot.lane.b32.xlu1 %v635_v59, %s1731_s20  ;;  %v433_v17 = vld [vmem:[#allocation2 + $0x18] sm:$0xe]  ;;  %v399_v18 = vsel %vm1824_vm6, %v333_v12, %v398_v9  ;;  %403 = vst [vmem:[#allocation2 + $0x3c] sm:$0x1] %v402_v13  ;;  %v565_v19 = vshll.u32 %v1488_v6, 16  ;;  %v1489_v23 = vcombine.low %v1885_v15, %v427_v47  ;;  %v542_v26 = vshrl.u32 %v1485_v63, 16 }
  0x2f   : > { %400 = vst [vmem:[#allocation2 + $0x38] sm:$0xf] %v399_v18  ;;  %v546_v27 = vrot.slane %v544_v14, 1  ;;  %v551_v28 = vshll.u32 %v1486_v16, 16  ;;  %v233_v32 = vld [vmem:[#allocation2 + $0x40] sm:$0x1] }
  0x30   : > { %642 = vrot.lane.b32.xlu0 %v632_v11, %s1731_s20  ;;  %v1895_v33 = vld [vmem:[#allocation2 + $0x18] sm:$0xf]  ;;  %v563_v34 = vshrl.u32 %v1488_v6, 16  ;;  %v567_v35 = vrot.slane %v565_v19, 1  ;;  %v265_v36 = vld [vmem:[#allocation2 + $0x44] sm:$0x1] }
  0x31   : > { %v425_v20 = vld [vmem:[#allocation2 + $0x1c] sm:$0x1]  ;;  %v572_v40 = vshll.u32 %v1489_v23, 16  ;;  %v547_v43 = vor.u32 %v546_v27, %v542_v26  ;;  %v549_v44 = vshrl.u32 %v1486_v16, 16  ;;  %v553_v46 = vrot.slane %v551_v28, 1 }
  0x32   : > { %v1891_v21 = vld [vmem:[#allocation2 + $0x30] sm:$0xf]  ;;  %v1495_v24 = vcombine.low %v433_v17, %v425_v20  ;;  %v278_v41 = vld [vmem:[%s1808_s19 + $0x1c] sm:$0xf]  ;;  %v234_v47 = vsel %vm1778_vm3, 0, %v233_v32  ;;  %v1487_v48 = vcombine.low %v1895_v33, %v425_v20  ;;  %v266_v51 = vsel %vm1784_vm5, 0, %v265_v36 }
  0x33   : > { %v436_v22 = vld [vmem:[#allocation2 + $0x30] sm:$0xe]  ;;  %235 = vst [vmem:[#allocation2 + $0x40] sm:$0x1] %v234_v47  ;;  %267 = vst [vmem:[#allocation2 + $0x44] sm:$0x1] %v266_v51  ;;  %v568_v56 = vor.u32 %v567_v35, %v563_v34  ;;  %v554_v59 = vor.u32 %v553_v46, %v549_v44 }
  0x34   : > { %v428_v25 = vld [vmem:[#allocation2 + $0x34] sm:$0x1]  ;;  %v633_v29 = vrot.slane %v1495_v24, 1  ;;  %v336_v53 = vshrl.u32 %v278_v41, 16  ;;  %v570_v57 = vshrl.u32 %v1489_v23, 16  ;;  %v574_v58 = vrot.slane %v572_v40, 1 }
  0x35   : > { %v1490_v30 = vcombine.low %v1891_v21, %v428_v25  ;;  %v1498_v31 = vcombine.low %v436_v22, %v428_v25  ;;  %v429_v39 = vld [vmem:[#allocation2 + $0x3c] sm:$0x1]  ;;  %v339_v61 = vshll.u32 %v278_v41, 16  ;;  %v558_v63 = vshll.u32 %v1487_v48, 16  ;;  %v1436_v17 = vld [vmem:[#allocation2 + $0x8] sm:$0xf] }
  0x36   : > { %644 = vrot.lane.b32.xlu1 %v633_v29, %s1731_s20  ;;  %v437_v42 = vld [vmem:[#allocation2 + $0x38] sm:$0xe]  ;;  %v338_v60 = vrot.slane %v336_v53, 7  ;;  %v575_v8 = vor.u32 %v574_v58, %v570_v57  ;;  %v556_v9 = vshrl.u32 %v1487_v48, 16  ;;  %v1500_v23 = vcombine.low %v1436_v17, %v1436_v17  ;;  %v1918_v24 = vld [vmem:[#allocation2 + $0xc] sm:$0x1] }
  0x37   : > { %v636_v37 = vrot.slane %v1498_v31, 1  ;;  %v1499_v49 = vcombine.low %v437_v42, %v429_v39  ;;  %v579_v50 = vshll.u32 %v1490_v30, 16  ;;  %v1905_v52 = vld [vmem:[#allocation2 + $0x38] sm:$0xf]  ;;  %v577_v0 = vshrl.u32 %v1490_v30, 16 }
  0x38   : > { %v1491_v62 = vcombine.low %v1905_v52, %v429_v39  ;;  %v341_v5 = vor.u32 %v339_v61, %v338_v60  ;;  %v342_v6 = vrot.slane %v338_v60, 4  ;;  %v560_v11 = vrot.slane %v558_v63, 1  ;;  %v1440_v25 = vld [vmem:[#allocation2 + $0x28] sm:$0xf]  ;;  %v1437_v27 = vld [vmem:[#allocation2 + $0x10] sm:$0xf] }
  0x39   : > { %650 = vrot.lane.b32.xlu0 %v636_v37, %s1731_s20  ;;  %v637_v55 = vrot.slane %v1499_v49, 1  ;;  %v581_v4 = vrot.slane %v579_v50, 1  ;;  %v1508_v26 = vcombine.low %v1436_v17, %v1918_v24  ;;  %v1504_v28 = vcombine.low %v1440_v25, %v1440_v25  ;;  %v236_v29 = vld [vmem:[#allocation2 + $0x48] sm:$0x1]  ;;  %v1923_v30 = vld [vmem:[#allocation2 + $0x2c] sm:$0x1] }
  0x3a   : > { %v404_v10 = vld [vmem:[#allocation2 + $0x40] sm:$0xf]  ;;  %v586_v13 = vshll.u32 %v1491_v62, 16  ;;  %v407_v16 = vld [vmem:[#allocation2 + $0x44] sm:$0x1]  ;;  %v561_v19 = vor.u32 %v560_v11, %v556_v9  ;;  %v584_v20 = vshrl.u32 %v1491_v62, 16  ;;  %v1501_v35 = vcombine.low %v1437_v27, %v1437_v27 }
  0x3b   : > { %652 = vrot.lane.b32.xlu1 %v637_v55, %s1731_s20  ;;  %v582_v12 = vor.u32 %v581_v4, %v577_v0  ;;  %v405_v14 = vsel %vm1824_vm6, %v341_v5, %v404_v10  ;;  %v408_v18 = vsel %vm1778_vm3, %v342_v6, %v407_v16  ;;  %v1438_v31 = vld [vmem:[#allocation2 + $0x18] sm:$0xf]  ;;  %v268_v32 = vld [vmem:[#allocation2 + $0x4c] sm:$0x1]  ;;  %v1925_v34 = vld [vmem:[#allocation2 + $0x14] sm:$0x1]  ;;  %v1512_v37 = vcombine.low %v1440_v25, %v1923_v30  ;;  %s2161_s20 = scalar_lea.vmem %s2191_s3, %s1564_s16 }
  0x3c   : > { %406 = vst [vmem:[#allocation2 + $0x40] sm:$0xf] %v405_v14  ;;  %409 = vst [vmem:[#allocation2 + $0x44] sm:$0x1] %v408_v18  ;;  %v588_v22 = vrot.slane %v586_v13, 1  ;;  %v237_v36 = vsel %vm1778_vm3, 0, %v236_v29  ;;  %v1502_v41 = vcombine.low %v1438_v31, %v1438_v31  ;;  %v1509_v1 = vcombine.low %v1437_v27, %v1925_v34 }
  0x3d   : > { %592 = vrot.lane.b32.xlu0 %v547_v43, %s1732_s21  ;;  %v1441_v39 = vld [vmem:[#allocation2 + $0x30] sm:$0xf]  ;;  %v1932_v40 = vld [vmem:[#allocation2 + $0x1c] sm:$0x1]  ;;  %v721_v42 = vshll.u32 %v1508_v26, 16  ;;  %v269_v43 = vsel %vm1784_vm5, 0, %v268_v32 }
  0x3e   : > { %v589_v38 = vor.u32 %v588_v22, %v584_v20  ;;  %238 = vst [vmem:[#allocation2 + $0x48] sm:$0x1] %v237_v36  ;;  %v1442_v44 = vld [vmem:[#allocation2 + $0x38] sm:$0xf]  ;;  %270 = vst [vmem:[#allocation2 + $0x4c] sm:$0x1] %v269_v43  ;;  %v1505_v47 = vcombine.low %v1441_v39, %v1441_v39  ;;  %v1510_v48 = vcombine.low %v1438_v31, %v1932_v40 }
  0x3f   : > { %598 = vrot.lane.b32.xlu1 %v568_v56, %s1732_s21  ;;  %v1936_v46 = vld [vmem:[#allocation2 + $0x34] sm:$0x1]  ;;  %v1439_v49 = vld [vmem:[#allocation2 + $0x20] sm:$0xf]  ;;  %v1940_v50 = vld [vmem:[#allocation2 + $0x3c] sm:$0x1]  ;;  %v1506_v51 = vcombine.low %v1442_v44, %v1442_v44 }
  0x40   : > { %v719_v53 = vshrl.u32 %v1508_v26, 16  ;;  %v723_v3 = vrot.slane %v721_v42, 1  ;;  %v749_v55 = vshll.u32 %v1512_v37, 16  ;;  %v1513_v56 = vcombine.low %v1441_v39, %v1936_v46  ;;  %v1945_v57 = vld [vmem:[#allocation2 + $0x24] sm:$0x1] }
  0x41   : > { %594 = vrot.lane.b32.xlu0 %v554_v59, %s1732_s21  ;;  %v1503_v58 = vcombine.low %v1439_v49, %v1439_v49  ;;  %v1514_v59 = vcombine.low %v1442_v44, %v1940_v50  ;;  %v728_v60 = vshll.u32 %v1509_v1, 16  ;;  %v747_v62 = vshrl.u32 %v1512_v37, 16  ;;  %v1452_v26 = vld [vmem:[#allocation2 + $0x8] sm:$0xe]  ;;  %v1453_v44 = vld [vmem:[#allocation2 + $0x10] sm:$0xe] }
  0x42   : > { %v724_v61 = vor.u32 %v723_v3, %v719_v53  ;;  %v751_v63 = vrot.slane %v749_v55, 1  ;;  %v735_v0 = vshll.u32 %v1510_v48, 16  ;;  %v1511_v5 = vcombine.low %v1439_v49, %v1945_v57  ;;  %v1456_v36 = vld [vmem:[#allocation2 + $0x28] sm:$0xe]  ;;  %v1457_v49 = vld [vmem:[#allocation2 + $0x30] sm:$0xe] }
  0x43   : > { %600 = vrot.lane.b32.xlu1 %v575_v8, %s1732_s21  ;;  %v1443_v4 = vld [vmem:[#allocation2 + $0x40] sm:$0xf]  ;;  %v726_v6 = vshrl.u32 %v1509_v1, 16  ;;  %v730_v8 = vrot.slane %v728_v60, 1  ;;  %v756_v9 = vshll.u32 %v1513_v56, 16  ;;  %v733_v10 = vshrl.u32 %v1510_v48, 16 }
  0x44   : > { %v1507_v11 = vcombine.low %v1443_v4, %v1443_v4  ;;  %v737_v13 = vrot.slane %v735_v0, 1  ;;  %v763_v14 = vshll.u32 %v1514_v59, 16  ;;  %v1451_v16 = vld [vmem:[#allocation2 + $0x44] sm:$0x1]  ;;  %v754_v18 = vshrl.u32 %v1513_v56, 16 }
  0x45   : > { %602 = vrot.lane.b32.xlu0 %v582_v12, %s1732_s21  ;;  %v752_v12 = vor.u32 %v751_v63, %v747_v62  ;;  %v731_v17 = vor.u32 %v730_v8, %v726_v6  ;;  %v742_v20 = vshll.u32 %v1511_v5, 16  ;;  %v1515_v22 = vcombine.low %v1443_v4, %v1451_v16  ;;  %v1454_v1 = vld [vmem:[#allocation2 + $0x18] sm:$0xe]  ;;  %v1459_v60 = vld [vmem:[#allocation2 + $0x40] sm:$0xe] }
  0x46   : > { %v761_v25 = vshrl.u32 %v1514_v59, 16  ;;  %v1520_v37 = vcombine.low %v1456_v36, %v1923_v30  ;;  %v1518_v30 = vcombine.low %v1454_v1, %v1932_v40  ;;  %v1521_v3 = vcombine.low %v1457_v49, %v1936_v46  ;;  %v1974_v0 = vld [vmem:[#allocation2 + $0x14] sm:$0x1]  ;;  %v1461_v6 = vld [vmem:[#allocation2 + $0x18] sm:$0xf]  ;;  %v1701_v49 = vld [vmem:[%s2189_s1] sm:$0xff]  }
  0x47   : > { %596 = vrot.lane.b32.xlu1 %v561_v19, %s1732_s21  ;;  %v758_v19 = vrot.slane %v756_v9, 1  ;;  %v744_v29 = vrot.slane %v742_v20, 1  ;;  %v770_v32 = vshll.u32 %v1515_v22, 16  ;;  %v1523_v46 = vcombine.low %v1459_v60, %v1451_v16  ;;  %v1979_v8 = vld [vmem:[#allocation2 + $0x34] sm:$0x1]  ;;  %1575 = vmatprep.subr.bf16.mxu0 %v1701_v49  ;;  %v1702_v60 = vld [vmem:[%s2189_s1 + $0x8] sm:$0xff]  }
  0x48   : > { %v818_v48 = vrot.slane %v1520_v37, 1  ;;  %v816_v55 = vrot.slane %v1518_v30, 1  ;;  %v819_v59 = vrot.slane %v1521_v3, 1  ;;  %v1462_v9 = vld [vmem:[#allocation2 + $0x20] sm:$0xf]  ;;  %1593 = vmatprep.subr.bf16.mxu1 %v1701_v49  ;;  %1576 = vmatpush3.bf16.msra.mxu0 %v1701_v49  ;;  %vm1242_vm7 = vcmask 1043456  }
  0x49   : > { %678 = vrot.lane.b32.xlu0 %v1500_v23, %s1733_s22  ;;  %v738_v23 = vor.u32 %v737_v13, %v733_v10  ;;  %v759_v27 = vor.u32 %v758_v19, %v754_v18  ;;  %v772_v42 = vrot.slane %v770_v32, 1  ;;  %v821_v4 = vrot.slane %v1523_v46, 1  ;;  %v1981_v10 = vld [vmem:[#allocation2 + $0x1c] sm:$0x1]  ;;  %v1465_v13 = vld [vmem:[#allocation2 + $0x38] sm:$0xf]  ;;  %1598 = vmatpush3.bf16.msra.mxu1 %v1701_v49 }
  0x4a   : > { %v1526_v16 = vcombine.low %v1462_v9, %v1462_v9  ;;  %v1466_v18 = vld [vmem:[#allocation2 + $0x40] sm:$0xf]  ;;  %v1533_v19 = vcombine.low %v1461_v6, %v1981_v10  ;;  %v1989_v20 = vld [vmem:[#allocation2 + $0x3c] sm:$0x1]  ;;  %v1997_v32 = vld [vmem:[#allocation2 + $0x2c] sm:$0x1]  ;;  %1577 = vmatprep.subr.bf16.mxu0 %v1702_v60  ;;  %1594 = vmatprep.subr.bf16.mxu1 %v1702_v60 }
  0x4b   : > { %604 = vrot.lane.b32.xlu1 %v589_v38, %s1732_s21  ;;  %v765_v38 = vrot.slane %v763_v14, 1  ;;  %v1986_v14 = vld [vmem:[#allocation2 + $0x24] sm:$0x1]  ;;  %vm1022_vm8 = vcmask 64512   ;;  %vm1047_vm9 = vcmask 130048   ;;  %vm1064_vm10 = vcmask 195584  }
  0x4c   : > { %v912_v37 = vshll.u32 %v1533_v19, 16  ;;  %1578 = vmatpush3.bf16.msra.mxu0 %v1702_v60  ;;  %v1483_v49 = vld [vmem:[#allocation2 + $0x48] sm:$0xe]  ;;  %vm1081_vm11 = vcmask 261120   ;;  %vm1098_vm12 = vcmask 326656   ;;  %vm1115_vm13 = vcmask 392192  }
  0x4d   : > { %686 = vrot.lane.b32.xlu0 %v1504_v28, %s1733_s22  ;;  %v740_v28 = vshrl.u32 %v1511_v5, 16  ;;  %v766_v31 = vor.u32 %v765_v38, %v761_v25  ;;  %v1463_v25 = vld [vmem:[#allocation2 + $0x28] sm:$0xf]  ;;  %v1994_v38 = vld [vmem:[#allocation2 + $0x44] sm:$0x1]  ;;  %1599 = vmatpush3.bf16.msra.mxu1 %v1702_v60  ;;  %vm1132_vm14 = vcmask 457728  }
  0x4e   : > { %v1538_v36 = vcombine.low %v1466_v18, %v1994_v38  ;;  %v1535_v1 = vcombine.low %v1463_v25, %v1997_v32  ;;  %vm1149_vm15 = vcmask 523264   ;;  %vm1229_vm1 = vcmask 588800  }
  0x4f   : > { %680 = vrot.lane.b32.xlu1 %v1501_v35, %s1733_s22  ;;  %v1516_v35 = vcombine.low %v1452_v26, %v1918_v24  ;;  %v745_v39 = vor.u32 %v744_v29, %v740_v28  ;;  %v1517_v24 = vcombine.low %v1453_v44, %v1925_v34  ;;  %v1530_v26 = vcombine.low %v1466_v18, %v1466_v18  ;;  %v1467_v44 = vld [vmem:[#allocation2 + $0x48] sm:$0xf] }
  0x50   : > { %v945_v46 = vshrl.u32 %v1538_v36, 16 }
  0x51   : > { %682 = vrot.lane.b32.xlu0 %v1502_v41, %s1733_s22  ;;  %v768_v41 = vshrl.u32 %v1515_v22, 16  ;;  %v814_v43 = vrot.slane %v1516_v35, 1  ;;  %v815_v53 = vrot.slane %v1517_v24, 1  ;;  %v1529_v22 = vcombine.low %v1465_v13, %v1465_v13 }
  0x52   : > { %v1527_v35 = vcombine.low %v1463_v25, %v1463_v25  ;;  %v914_v24 = vrot.slane %v912_v37, 1  ;;  %v1478_v25 = vld [vmem:[#allocation2 + $0x20] sm:$0xe] }
  0x53   : > { %688 = vrot.lane.b32.xlu1 %v1505_v47, %s1733_s22  ;;  %v773_v47 = vor.u32 %v772_v42, %v768_v41 }
  0x55   : > { %690 = vrot.lane.b32.xlu0 %v1506_v51, %s1733_s22  ;;  %v1458_v51 = vld [vmem:[#allocation2 + $0x38] sm:$0xe] }
  0x56   : > { %v1522_v56 = vcombine.low %v1458_v51, %v1940_v50  ;;  %v1464_v50 = vld [vmem:[#allocation2 + $0x30] sm:$0xf]  ;;  %v1531_v51 = vcombine.low %v1467_v44, %v1467_v44 }
  0x57   : > { %684 = vrot.lane.b32.xlu1 %v1503_v58, %s1733_s22  ;;  %v1455_v58 = vld [vmem:[#allocation2 + $0x20] sm:$0xe] }
  0x58   : > { %v1519_v34 = vcombine.low %v1455_v58, %v1945_v57  ;;  %v820_v40 = vrot.slane %v1522_v56, 1  ;;  %v1528_v57 = vcombine.low %v1464_v50, %v1464_v50  ;;  %v2008_v56 = vld [vmem:[#allocation2 + $0x4c] sm:$0x1] }
  0x59   : > { %774 = vrot.lane.b32.xlu0 %v724_v61, %s1734_s23  ;;  %v1460_v61 = vld [vmem:[#allocation2 + $0x10] sm:$0xf] }
  0x5a   : > { %v817_v62 = vrot.slane %v1519_v34, 1  ;;  %v1524_v63 = vcombine.low %v1460_v61, %v1460_v61  ;;  %v1532_v5 = vcombine.low %v1460_v61, %v1974_v0  ;;  %v1539_v61 = vcombine.low %v1467_v44, %v2008_v56 }
  0x5b   : > { %692 = vrot.lane.b32.xlu1 %v1507_v11, %s1733_s22  ;;  %v1525_v11 = vcombine.low %v1461_v6, %v1461_v6 }
  0x5d   : > { %782 = vrot.lane.b32.xlu0 %v752_v12, %s1734_s23  ;;  %v1536_v12 = vcombine.low %v1464_v50, %v1979_v8  ;;  %v1476_v50 = vld [vmem:[#allocation2 + $0x10] sm:$0xe] }
  0x5f   : > { %776 = vrot.lane.b32.xlu1 %v731_v17, %s1734_s23  ;;  %v905_v17 = vshll.u32 %v1532_v5, 16  ;;  %v933_v29 = vshll.u32 %v1536_v12, 16  ;;  %v931_v41 = vshrl.u32 %v1536_v12, 16  ;;  %v1540_v12 = vcombine.low %v1476_v50, %v1974_v0  ;;  %v1477_v0 = vld [vmem:[#allocation2 + $0x18] sm:$0xe] }
  0x61   : > { %778 = vrot.lane.b32.xlu0 %v738_v23, %s1734_s23  ;;  %v1534_v23 = vcombine.low %v1462_v9, %v1986_v14  ;;  %v907_v28 = vrot.slane %v905_v17, 1  ;;  %v935_v42 = vrot.slane %v933_v29, 1  ;;  %v1704_v17 = vld [vmem:[%s2189_s1 + $0x18] sm:$0xff]  }
  0x63   : > { %784 = vrot.lane.b32.xlu1 %v759_v27, %s1734_s23  ;;  %v903_v27 = vshrl.u32 %v1532_v5, 16  ;;  %v917_v30 = vshrl.u32 %v1534_v23, 16  ;;  %v924_v5 = vshrl.u32 %v1535_v1, 16 }
  0x65   : > { %786 = vrot.lane.b32.xlu0 %v766_v31, %s1734_s23  ;;  %v1537_v31 = vcombine.low %v1465_v13, %v1989_v20  ;;  %v1480_v13 = vld [vmem:[#allocation2 + $0x30] sm:$0xe] }
  0x67   : > { %780 = vrot.lane.b32.xlu1 %v745_v39, %s1734_s23  ;;  %v908_v39 = vor.u32 %v907_v28, %v903_v27  ;;  %v1705_v27 = vld [vmem:[%s2189_s1 + $0x20] ss:$0 sps:$4 sm:$0xff]  }
  0x68   : > { %v1244_v37 = vsel %vm1242_vm7, %v1705_v27, 0 }
  0x69   : > { %822 = vrot.lane.b32.xlu0 %v814_v43, %s1735_s24  ;;  %v919_v43 = vshll.u32 %v1534_v23, 16  ;;  %v998_v23 = vrot.slane %v1540_v12, 1 }
  0x6b   : > { %788 = vrot.lane.b32.xlu1 %v773_v47, %s1734_s23  ;;  %v910_v47 = vshrl.u32 %v1533_v19, 16  ;;  %v921_v3 = vrot.slane %v919_v43, 1  ;;  %v952_v19 = vshrl.u32 %v1539_v61, 16 }
  0x6d   : > { %830 = vrot.lane.b32.xlu0 %v818_v48, %s1735_s24  ;;  %v940_v48 = vshll.u32 %v1537_v31, 16  ;;  %v915_v58 = vor.u32 %v914_v24, %v910_v47  ;;  %v1479_v47 = vld [vmem:[#allocation2 + $0x28] sm:$0xe] }
  0x6f   : > { %824 = vrot.lane.b32.xlu1 %v815_v53, %s1735_s24  ;;  %v936_v53 = vor.u32 %v935_v42, %v931_v41  ;;  %v942_v34 = vrot.slane %v940_v48, 1 }
  0x71   : > { %826 = vrot.lane.b32.xlu0 %v816_v55, %s1735_s24  ;;  %v947_v55 = vshll.u32 %v1538_v36, 16  ;;  %v1482_v36 = vld [vmem:[#allocation2 + $0x40] sm:$0xe] }
  0x72   : > { %v1546_v44 = vcombine.low %v1482_v36, %v1994_v38 }
  0x73   : > { %832 = vrot.lane.b32.xlu1 %v819_v59, %s1735_s24  ;;  %v938_v59 = vshrl.u32 %v1537_v31, 16  ;;  %v1542_v31 = vcombine.low %v1478_v25, %v1986_v14 }
  0x75   : > { %834 = vrot.lane.b32.xlu0 %v820_v40, %s1735_s24  ;;  %v926_v40 = vshll.u32 %v1535_v1, 16  ;;  %v1000_v43 = vrot.slane %v1542_v31, 1 }
  0x77   : > { %828 = vrot.lane.b32.xlu1 %v817_v62, %s1735_s24  ;;  %v922_v62 = vor.u32 %v921_v3, %v917_v30  ;;  %v928_v6 = vrot.slane %v926_v40, 1  ;;  %v1004_v30 = vrot.slane %v1546_v44, 1 }
  0x79   : > { %862 = vrot.lane.b32.xlu0 %v1524_v63, %s1736_s25  ;;  %v949_v63 = vrot.slane %v947_v55, 1  ;;  %v929_v18 = vor.u32 %v928_v6, %v924_v5 }
  0x7b   : > { %836 = vrot.lane.b32.xlu1 %v821_v4, %s1735_s24  ;;  %v943_v4 = vor.u32 %v942_v34, %v938_v59  ;;  %v950_v9 = vor.u32 %v949_v63, %v945_v46 }
  0x7d   : > { %870 = vrot.lane.b32.xlu0 %v1528_v57, %s1736_s25  ;;  %v1703_v57 = vld [vmem:[%s2189_s1 + $0x10] sm:$0xff]  }
  0x7e   : > { %1579 = vmatprep.subr.bf16.mxu0 %v1703_v57  ;;  %1595 = vmatprep.subr.bf16.mxu1 %v1703_v57 }
  0x7f   : > { %864 = vrot.lane.b32.xlu1 %v1525_v11, %s1736_s25  ;;  %v954_v11 = vshll.u32 %v1539_v61, 16  ;;  %1580 = vmatpush3.bf16.msra.mxu0 %v1703_v57 }
  0x80   : > { %1600 = vmatpush3.bf16.msra.mxu1 %v1703_v57  ;;  %1581 = vmatprep.subr.bf16.mxu0 %v1704_v17 }
  0x81   : > { %866 = vrot.lane.b32.xlu0 %v1526_v16, %s1736_s25  ;;  %v1544_v16 = vcombine.low %v1480_v13, %v1979_v8  ;;  %1596 = vmatprep.subr.bf16.mxu1 %v1704_v17  ;;  %v1541_v8 = vcombine.low %v1477_v0, %v1981_v10 }
  0x83   : > { %872 = vrot.lane.b32.xlu1 %v1529_v22, %s1736_s25  ;;  %v956_v22 = vrot.slane %v954_v11, 1  ;;  %1582 = vmatpush3.bf16.msra.mxu0 %v1704_v17  ;;  %v1002_v29 = vrot.slane %v1544_v16, 1 }
  0x84   : > { %1601 = vmatpush3.bf16.msra.mxu1 %v1704_v17  ;;  %1603 = vmatprep.subr.msk.bf16.mxu0 %vm1242_vm7, %v1705_v27 }
  0x85   : > { %874 = vrot.lane.b32.xlu0 %v1530_v26, %s1736_s25  ;;  %v957_v28 = vor.u32 %v956_v22, %v952_v19  ;;  %1604 = vmatprep.subr.msk.bf16.mxu1 %vm1242_vm7, %v1705_v27 }
  0x87   : > { %868 = vrot.lane.b32.xlu1 %v1527_v35, %s1736_s25  ;;  %v1481_v35 = vld [vmem:[#allocation2 + $0x38] sm:$0xe]  ;;  %1584 = vmatpush3.bf16.msra.mxu0 %v1244_v37 }
  0x88   : > { %1602 = vmatpush3.bf16.msra.mxu1 %v1244_v37  ;;  %v1545_v14 = vcombine.low %v1481_v35, %v1989_v20 }
  0x89   : > { %958 = vrot.lane.b32.xlu0 %v908_v39, %s1737_s28  ;;  %v999_v39 = vrot.slane %v1541_v8, 1 }
  0x8a   : > { %v1003_v48 = vrot.slane %v1545_v14, 1 }
  0x8b   : > { %876 = vrot.lane.b32.xlu1 %v1531_v51, %s1736_s25 }
  0x8d   : > { %966 = vrot.lane.b32.xlu0 %v936_v53, %s1737_s28  ;;  %v1547_v53 = vcombine.low %v1483_v49, %v2008_v56 }
  0x8f   : > { %960 = vrot.lane.b32.xlu1 %v915_v58, %s1737_s28  ;;  %v1005_v55 = vrot.slane %v1547_v53, 1 }
  0x91   : > { %962 = vrot.lane.b32.xlu0 %v922_v62, %s1737_s28 }
  0x93   : > { %968 = vrot.lane.b32.xlu1 %v943_v4, %s1737_s28 }
  0x95   : > { %970 = vrot.lane.b32.xlu0 %v950_v9, %s1737_s28  ;;  %v639_v26 = vpop.permute.xlu0 %638 }
  0x97   : > { %964 = vrot.lane.b32.xlu1 %v929_v18, %s1737_s28 }
  0x99   : > { %1006 = vrot.lane.b32.xlu0 %v998_v23, %s1738_s10 }
  0x9a   : > { %v591_v10 = vpop.permute.xlu0 %590 }
  0x9b   : > { %v1025_v41 = vsel %vm1022_vm8, %v1846_v7, %v591_v10  ;;  %972 = vrot.lane.b32.xlu1 %v957_v28, %s1737_s28  ;;  %v1543_v7 = vcombine.low %v1479_v47, %v1997_v32 }
  0x9c   : > { %v641_v42 = vpop.permute.xlu1 %640  ;;  %v1049_v1 = vsel %vm1047_vm9, %v1025_v41, %v639_v26 }
  0x9d   : > { %1014 = vrot.lane.b32.xlu0 %v1002_v29, %s1738_s10  ;;  %v1001_v20 = vrot.slane %v1543_v7, 1 }
  0x9e   : > { %v647_v24 = vpop.permute.xlu0 %646 }
  0x9f   : > { %1008 = vrot.lane.b32.xlu1 %v999_v39, %s1738_s10 }
  0xa0   : > { %v649_v51 = vpop.permute.xlu1 %648 }
  0xa1   : > { %1010 = vrot.lane.b32.xlu0 %v1000_v43, %s1738_s10 }
  0xa2   : > { %v643_v38 = vpop.permute.xlu0 %642 }
  0xa3   : > { %1016 = vrot.lane.b32.xlu1 %v1003_v48, %s1738_s10 }
  0xa5   : > { %1018 = vrot.lane.b32.xlu0 %v1004_v30, %s1738_s10 }
  0xa7   : > { %1012 = vrot.lane.b32.xlu1 %v1001_v20, %s1738_s10 }
  0xa8   : > { %v645_v3 = vpop.permute.xlu1 %644 }
  0xab   : > { %v651_v58 = vpop.permute.xlu0 %650  ;;  %1020 = vrot.lane.b32.xlu1 %v1005_v55, %s1738_s10 }
  0xad   : > { %v653_v59 = vpop.permute.xlu1 %652 }
  0xaf   : > { %v593_v32 = vpop.permute.xlu0 %592 }
  0xb0   : > { %v1028_v34 = vsel %vm1022_vm8, %v1865_v45, %v593_v32 }
  0xb1   : > { %v1051_v40 = vsel %vm1047_vm9, %v1028_v34, %v641_v42  ;;  %v599_v60 = vpop.permute.xlu1 %598 }
  0xb2   : > { %v1037_v62 = vsel %vm1022_vm8, %v1868_v54, %v599_v60 }
  0xb3   : > { %v595_v61 = vpop.permute.xlu0 %594  ;;  %v1057_v46 = vsel %vm1047_vm9, %v1037_v62, %v647_v24 }
  0xb4   : > { %v1031_v56 = vsel %vm1022_vm8, %v1876_v2, %v595_v61 }
  0xb5   : > { %v1053_v63 = vsel %vm1047_vm9, %v1031_v56, %v643_v38  ;;  %v601_v50 = vpop.permute.xlu1 %600 }
  0xb6   : > { %v1040_v5 = vsel %vm1022_vm8, %v1885_v15, %v601_v50 }
  0xb7   : > { %v603_v4 = vpop.permute.xlu0 %602  ;;  %v1059_v57 = vsel %vm1047_vm9, %v1040_v5, %v649_v51 }
  0xb8   : > { %v1043_v45 = vsel %vm1022_vm8, %v1891_v21, %v603_v4 }
  0xb9   : > { %v1061_v54 = vsel %vm1047_vm9, %v1043_v45, %v651_v58  ;;  %v597_v6 = vpop.permute.xlu1 %596 }
  0xba   : > { %v1034_v2 = vsel %vm1022_vm8, %v1895_v33, %v597_v6 }
  0xbb   : > { %v679_v9 = vpop.permute.xlu0 %678  ;;  %v1055_v12 = vsel %vm1047_vm9, %v1034_v2, %v645_v3 }
  0xbc   : > { %v1066_v11 = vsel %vm1064_vm10, %v1049_v1, %v679_v9 }
  0xbd   : > { %v605_v13 = vpop.permute.xlu1 %604 }
  0xbe   : > { %v1046_v15 = vsel %vm1022_vm8, %v1905_v52, %v605_v13 }
  0xbf   : > { %v687_v16 = vpop.permute.xlu0 %686  ;;  %v1063_v17 = vsel %vm1047_vm9, %v1046_v15, %v653_v59 }
  0xc0   : > { %v2072_v21 = vsel %vm1064_vm10, %v1057_v46, %v687_v16 }
  0xc1   : > { %v681_v18 = vpop.permute.xlu1 %680 }
  0xc2   : > { %v1068_v22 = vsel %vm1064_vm10, %v1051_v40, %v681_v18 }
  0xc3   : > { %v683_v19 = vpop.permute.xlu0 %682 }
  0xc4   : > { %v2077_v33 = vsel %vm1064_vm10, %v1053_v63, %v683_v19 }
  0xc5   : > { %v689_v23 = vpop.permute.xlu1 %688 }
  0xc6   : > { %v1076_v25 = vsel %vm1064_vm10, %v1059_v57, %v689_v23 }
  0xc7   : > { %v691_v0 = vpop.permute.xlu0 %690 }
  0xc8   : > { %v2081_v26 = vsel %vm1064_vm10, %v1061_v54, %v691_v0 }
  0xc9   : > { %v685_v52 = vpop.permute.xlu1 %684 }
  0xca   : > { %v2084_v27 = vsel %vm1064_vm10, %v1055_v12, %v685_v52 }
  0xcb   : > { %v775_v8 = vpop.permute.xlu0 %774 }
  0xcc   : > { %v1083_v56 = vsel %vm1081_vm11, %v1066_v11, %v775_v8 }
  0xcd   : > { %v693_v28 = vpop.permute.xlu1 %692 }
  0xce   : > { %v2087_v31 = vsel %vm1064_vm10, %v1063_v17, %v693_v28 }
  0xcf   : > { %v783_v29 = vpop.permute.xlu0 %782 }
  0xd0   : > { %v1091_v9 = vsel %vm1081_vm11, %v2072_v21, %v783_v29 }
  0xd1   : > { %v777_v35 = vpop.permute.xlu1 %776 }
  0xd2   : > { %v1085_v46 = vsel %vm1081_vm11, %v1068_v22, %v777_v35 }
  0xd3   : > { %v779_v36 = vpop.permute.xlu0 %778 }
  0xd4   : > { %v1087_v0 = vsel %vm1081_vm11, %v2077_v33, %v779_v36 }
  0xd5   : > { %v785_v10 = vpop.permute.xlu1 %784 }
  0xd6   : > { %v1093_v2 = vsel %vm1081_vm11, %v1076_v25, %v785_v10 }
  0xd7   : > { %v2089_v37 = vpop.permute.xlu0 %786 }
  0xd9   : > { %v781_v39 = vpop.permute.xlu1 %780 }
  0xda   : > { %v1089_v25 = vsel %vm1081_vm11, %v2084_v27, %v781_v39  ;;  %v1095_v27 = vsel %vm1081_vm11, %v2081_v26, %v2089_v37 }
  0xdb   : > { %v823_v41 = vpop.permute.xlu0 %822 }
  0xdc   : > { %v1100_v63 = vsel %vm1098_vm12, %v1083_v56, %v823_v41 }
  0xdd   : > { %v2091_v42 = vpop.permute.xlu1 %788 }
  0xde   : > { %v1097_v39 = vsel %vm1081_vm11, %v2087_v31, %v2091_v42 }
  0xdf   : > { %v831_v14 = vpop.permute.xlu0 %830 }
  0xe0   : > { %v1108_v13 = vsel %vm1098_vm12, %v1091_v9, %v831_v14 }
  0xe1   : > { %v825_v43 = vpop.permute.xlu1 %824 }
  0xe2   : > { %v1102_v50 = vsel %vm1098_vm12, %v1085_v46, %v825_v43 }
  0xe3   : > { %v827_v44 = vpop.permute.xlu0 %826 }
  0xe4   : > { %v1104_v28 = vsel %vm1098_vm12, %v1087_v0, %v827_v44 }
  0xe5   : > { %v833_v1 = vpop.permute.xlu1 %832 }
  0xe6   : > { %v1110_v16 = vsel %vm1098_vm12, %v1093_v2, %v833_v1 }
  0xe7   : > { %v2093_v47 = vpop.permute.xlu0 %834 }
  0xe8   : > { %v1112_v1 = vsel %vm1098_vm12, %v1095_v27, %v2093_v47 }
  0xe9   : > { %v829_v24 = vpop.permute.xlu1 %828 }
  0xea   : > { %v1106_v29 = vsel %vm1098_vm12, %v1089_v25, %v829_v24 }
  0xeb   : > { %v863_v48 = vpop.permute.xlu0 %862 }
  0xec   : > { %v1117_v5 = vsel %vm1115_vm13, %v1100_v63, %v863_v48 }
  0xed   : > { %v2095_v7 = vpop.permute.xlu1 %836 }
  0xee   : > { %v1114_v24 = vsel %vm1098_vm12, %v1097_v39, %v2095_v7 }
  0xef   : > { %v871_v30 = vpop.permute.xlu0 %870 }
  0xf0   : > { %v1125_v17 = vsel %vm1115_vm13, %v1108_v13, %v871_v30 }
  0xf1   : > { %v865_v49 = vpop.permute.xlu1 %864 }
  0xf2   : > { %v1119_v45 = vsel %vm1115_vm13, %v1102_v50, %v865_v49 }
  0xf3   : > { %v867_v51 = vpop.permute.xlu0 %866 }
  0xf4   : > { %v1121_v10 = vsel %vm1115_vm13, %v1104_v28, %v867_v51 }
  0xf5   : > { %v873_v20 = vpop.permute.xlu1 %872 }
  0xf6   : > { %v1127_v18 = vsel %vm1115_vm13, %v1110_v16, %v873_v20  ;;  %v1548_v20 = vld [vmem:[%s2190_s2] ss:$0 sm:$0xff] }
  0xf7   : > { %v2097_v38 = vpop.permute.xlu0 %874 }
  0xf8   : > { %v1129_v49 = vsel %vm1115_vm13, %v1112_v1, %v2097_v38 }
  0xf9   : > { %v869_v53 = vpop.permute.xlu1 %868 }
  0xfa   : > { %v1123_v41 = vsel %vm1115_vm13, %v1106_v29, %v869_v53 }
  0xfb   : > { %v959_v3 = vpop.permute.xlu0 %958 }
  0xfc   : > { %v1134_v57 = vsel %vm1132_vm14, %v1117_v5, %v959_v3 }
  0xfd   : > { %v877_v55 = vpop.permute.xlu1 %876 }
  0xfe   : > { %v1131_v26 = vsel %vm1115_vm13, %v1114_v24, %v877_v55 }
  0xff   : > { %v967_v58 = vpop.permute.xlu0 %966 }
 0x100   : > { %v1142_v19 = vsel %vm1132_vm14, %v1125_v17, %v967_v58 }
 0x101   : > { %v961_v59 = vpop.permute.xlu1 %960 }
 0x102   : > { %v1136_v54 = vsel %vm1132_vm14, %v1119_v45, %v961_v59 }
 0x103   : > { %v963_v32 = vpop.permute.xlu0 %962 }
 0x104   : > { %v1138_v14 = vsel %vm1132_vm14, %v1121_v10, %v963_v32 }
 0x105   : > { %v969_v34 = vpop.permute.xlu1 %968 }
 0x106   : > { %v1144_v22 = vsel %vm1132_vm14, %v1127_v18, %v969_v34 }
 0x107   : > { %v971_v40 = vpop.permute.xlu0 %970 }
 0x108   : > { %v1146_v37 = vsel %vm1132_vm14, %v1129_v49, %v971_v40 }
 0x109   : > { %v965_v60 = vpop.permute.xlu1 %964 }
 0x10a   : > { %v1140_v33 = vsel %vm1132_vm14, %v1123_v41, %v965_v60 }
 0x10b   : > { %v1007_v61 = vpop.permute.xlu0 %1006 }
 0x10c   : > { %v1151_v11 = vsel %vm1149_vm15, %v1134_v57, %v1007_v61 }
 0x10d   : > { %v973_v62 = vpop.permute.xlu1 %972 }
 0x10e   : > { %v1148_v31 = vsel %vm1132_vm14, %v1131_v26, %v973_v62 }
 0x10f   : > { %v1015_v4 = vpop.permute.xlu0 %1014 }
 0x110   : > { %v1159_v52 = vsel %vm1149_vm15, %v1142_v19, %v1015_v4 }
 0x111   : > { %v1009_v6 = vpop.permute.xlu1 %1008 }
 0x112   : > { %v1153_v12 = vsel %vm1149_vm15, %v1136_v54, %v1009_v6 }
 0x113   : > { %v1549_v15 = vcombine.low %v1151_v11, %v1153_v12  ;;  %v1011_v23 = vpop.permute.xlu0 %1010 }
 0x114   : > { %v1155_v43 = vsel %vm1149_vm15, %v1138_v14, %v1011_v23 }
 0x115   : > { %v1017_v21 = vpop.permute.xlu1 %1016  ;;  %1585 = vmatprep.mubr.msk.bf16.mxu0 %vm1229_vm1, %v1549_v15 }
 0x116   : > { %v1161_v8 = vsel %vm1149_vm15, %v1144_v22, %v1017_v21 }
 0x117   : > { %v1551_v35 = vcombine.low %v1159_v52, %v1161_v8  ;;  %v1019_v30 = vpop.permute.xlu0 %1018 }
 0x118   : > { %v1163_v47 = vsel %vm1149_vm15, %v1146_v37, %v1019_v30 }
 0x119   : > { %v1013_v36 = vpop.permute.xlu1 %1012  ;;  %1589 = vmatprep.mubr.msk.bf16.mxu1 %vm1229_vm1, %v1551_v35 }
 0x11a   : > { %v1157_v44 = vsel %vm1149_vm15, %v1140_v33, %v1013_v36 }
 0x11b   : > { %v1550_v48 = vcombine.low %v1155_v43, %v1157_v44 }
 0x11d   : > { %v1021_v42 = vpop.permute.xlu1 %1020  ;;  %1586 = vmatmul.mubr.msk.bf16.vlgmr.msra.gmra.mrb[0].mxu0 %vm1229_vm1, %v1550_v48 }
 0x11e   : > { %v1165_v51 = vsel %vm1149_vm15, %v1148_v31, %v1021_v42 }
 0x11f   : > { %v1552_v7 = vcombine.low %v1163_v47, %v1165_v51 }
 0x121   : > { %1590 = vmatmul.mubr.msk.bf16.vlgmr.msra.gmra.mrb[0].mxu1 %vm1229_vm1, %v1552_v7 }
 0x1f0   : > { %v1587_v38 = vpop.f32.mrb[0].mxu0 }
 0x1f1   : > { %v1289_v53 = vadd.f32 %v1587_v38, %v1548_v20  ;;  %v1280_v3 = vpop.f32.mrb[1].mxu0 }
 0x1f2   : > { %v1281_v55 = vadd.f32 %v1548_v20, %v1280_v3  ;;  %v1588_v58 = vpop.f32.mrb[2].mxu0 }
 0x1f3   : > { %v1313_v59 = vmax.f32 %v1289_v53, 0.0  ;;  %v1292_v32 = vadd.f32 %v1588_v58, %v1548_v20  ;;  %v1283_v34 = vpop.f32.mrb[3].mxu0 }
 0x1f4   : > { %v1311_v40 = vmax.f32 %v1281_v55, 0.0  ;;  %v1284_v60 = vadd.f32 %v1548_v20, %v1283_v34  ;;  %v1591_v61 = vpop.f32.mrb[0].mxu1 }
 0x1f5   : > { %v1321_v62 = vpack.c.bf16 %v1313_v59, %v1313_v59  ;;  %v1314_v56 = vmax.f32 %v1292_v32, 0.0  ;;  %v1305_v46 = vadd.f32 %v1591_v61, %v1548_v20  ;;  %v1296_v63 = vpop.f32.mrb[1].mxu1 }
 0x1f6   : > { %v1319_v50 = vpack.c.bf16 %v1311_v40, %v1311_v40  ;;  %v1312_v4 = vmax.f32 %v1284_v60, 0.0  ;;  %v1297_v5 = vadd.f32 %v1548_v20, %v1296_v63  ;;  %v1592_v45 = vpop.f32.mrb[2].mxu1 }
 0x1f7   : > { %1330 = vst.msk [vmem:[%s2161_s20 + $0x8] sm:$0xf] %vm199_vm0, %v1321_v62  ;;  %v1322_v57 = vpack.c.bf16 %v1314_v56, %v1314_v56  ;;  %v1317_v54 = vmax.f32 %v1305_v46, 0.0  ;;  %v1308_v6 = vadd.f32 %v1592_v45, %v1548_v20  ;;  %v1299_v9 = vpop.f32.mrb[3].mxu1 }
 0x1f8   : > { %1328 = vst.msk [vmem:[%s2161_s20] sm:$0xf] %vm199_vm0, %v1319_v50  ;;  %v1320_v2 = vpack.c.bf16 %v1312_v4, %v1312_v4  ;;  %v1315_v11 = vmax.f32 %v1297_v5, 0.0  ;;  %v1300_v12 = vadd.f32 %v1548_v20, %v1299_v9 }
 0x1f9   : > { %1331 = vst.msk [vmem:[%s2161_s20 + $0xc] sm:$0xf] %vm199_vm0, %v1322_v57  ;;  %v1325_v13 = vpack.c.bf16 %v1317_v54, %v1317_v54  ;;  %v1318_v16 = vmax.f32 %v1308_v6, 0.0 }
 0x1fa   : > { %1329 = vst.msk [vmem:[%s2161_s20 + $0x4] sm:$0xf] %vm199_vm0, %v1320_v2  ;;  %v1323_v15 = vpack.c.bf16 %v1315_v11, %v1315_v11  ;;  %v1316_v17 = vmax.f32 %v1300_v12, 0.0 }
 0x1fb   : > { %1334 = vst.msk [vmem:[%s2161_s20 + $0x18] sm:$0xf] %vm199_vm0, %v1325_v13  ;;  %v1326_v18 = vpack.c.bf16 %v1318_v16, %v1318_v16 }
 0x1fc   : > { %1332 = vst.msk [vmem:[%s2161_s20 + $0x10] sm:$0xf] %vm199_vm0, %v1323_v15  ;;  %v1324_v19 = vpack.c.bf16 %v1316_v17, %v1316_v17 }
 0x1fd   : > { %1335 = vst.msk [vmem:[%s2161_s20 + $0x1c] sm:$0xf] %vm199_vm0, %v1326_v18 }
 0x1fe   : > { %1333 = vst.msk [vmem:[%s2161_s20 + $0x14] sm:$0xf] %vm199_vm0, %v1324_v19 }
 0x1ff PF: > { %s13_s14 = sadd.s32 1, %s1728_s14   ;;  %s2198_s12 = smov %s1724_s13 }
 0x200   : > { %p10_p5 = scmp.ge.s32.totalorder %s13_s14, 4   ;;  %s2199_s13 = smov %s2201_s15 }
 0x202   :  { %12 = sbr.rel (!%p10_p5) target bundleno = 2 (0x2), region = 71 }

// kernel: tree_forward_pallas.5
= control target key start
LH: loop header
LB: loop body
LE: loop exit
PB: predicated region body
PF: predicated region fallthrough
CT: control target
= control target key end

     0   :  { %s1891_s15 = smov 0   ;;  %s1893_s16 = smov 0   ;;  %s2321_s0 = inlined_call_operand.vmem [shape: bf16[2,8,8,8], index: 0, kind: input, shape index: {}]   ;;  %s2322_s1 = inlined_call_operand.vmem [shape: bf16[72,8], index: 1, kind: input, shape index: {}]   ;;  %s2323_s2 = inlined_call_operand.vmem [shape: f32[1,8], index: 2, kind: input, shape index: {}]   ;;  %s2324_s3 = inlined_call_operand.vmem [shape: bf16[2,8,8,8], index: 3, kind: input, shape index: {}]   ;;  %s2325_s4 = inlined_call_operand.vmem [shape: bf16[2,8,8,8], index: 4, kind: output, shape index: {}]  }
   0x1   :  { %s1895_s17 = smov 0  }
   0x2 LB: > { %s26_s18 = sadd.s32 1, %s1851_s16  ;;  %p1536_p0 = scmp.ge.s32.totalorder %s1855_s17, 1  ;;  %s1855_s17 = sphi %s1895_s17, %s14_s17   ;;  %s1851_s16 = sphi %s1893_s16, %s2333_s16   ;;  %s1847_s15 = sphi %s1891_s15, %s2332_s15  }
   0x3   : > { %p28_p1 = scmp.ge.s32.totalorder %s26_s18, 2  ;;  %p193_p2 = scmp.lt.s32.totalorder %s1855_s17, 3 }
   0x5   : > { %s2335_s18 = smov (%p28_p1, %s26_s18), 0  ;;  %p194_p3 = pnand %p1536_p0, %p193_p2 }
   0x6   : > { %vm262_vm0 = vcmask (!%p194_p3), 60416   ;;  %vm264_vm1 = vcmask (!%p194_p3), 57344   ;;  %vm270_vm2 = vsmask.f32 (!%p194_p3), 256  ;;  %v1857_v0 = vmov (!%p194_p3), 0   ;;  %p232_p4 = scmp.lt.s32.totalorder (!%p194_p3), %s1847_s15, 1 }
   0x7   : > { %197 = sbr.rel (%p194_p3) target bundleno = 513 (0x201), region = 36  ;;  %263 = vst.msk [vmem:[#allocation2] sm:$0xf] (!%p194_p3), %vm262_vm0, %v1857_v0  ;;  %vm1910_vm3 = vmand (!%p194_p3), %vm264_vm1, %vm270_vm2  ;;  %vm302_vm4 = vsmask.f32 (!%p194_p3), 7938  ;;  %s1858_s23 = smov (!%p194_p3), 16  }
   0x8   : > { %265 = vst.msk [vmem:[#allocation2 + $0x4] sm:$0x1] (!%p194_p3), %vm264_vm1, %v1857_v0  ;;  %268 = vst.msk [vmem:[#allocation2 + $0x4c] sm:$0x1] (!%p194_p3), %vm264_vm1, %v1857_v0  ;;  %v275_v2 = vld [vmem:[#allocation2 + $0x8] sm:$0x1] (!%p194_p3) }
   0x9   : > { %267 = vst.msk [vmem:[#allocation2 + $0x48] sm:$0xf] (!%p194_p3), %vm262_vm0, %v1857_v0  ;;  %vm1916_vm5 = vmand (!%p194_p3), %vm264_vm1, %vm302_vm4  ;;  %v276_v4 = vsel (!%p194_p3), %vm1910_vm3, 0, %v275_v2  ;;  %v307_v5 = vld [vmem:[#allocation2 + $0xc] sm:$0x1] (!%p194_p3)  ;;  %s1859_s24 = smov (!%p194_p3), 8  }
   0xa   : > { %v284_v6 = vld [vmem:[#allocation2 + $0x20] sm:$0x1] (!%p194_p3)  ;;  %277 = vst [vmem:[#allocation2 + $0x8] sm:$0x1] (!%p194_p3), %v276_v4  ;;  %v308_v7 = vsel (!%p194_p3), %vm1916_vm5, 0, %v307_v5  ;;  %vm1954_vm6 = vmand (!%p194_p3), %vm262_vm0, %vm302_vm4  ;;  %s1860_s25 = smov (!%p194_p3), 24  }
   0xb   : > { %v285_v8 = vsel (!%p194_p3), %vm1910_vm3, 0, %v284_v6  ;;  %v316_v9 = vld [vmem:[#allocation2 + $0x24] sm:$0x1] (!%p194_p3)  ;;  %309 = vst [vmem:[#allocation2 + $0xc] sm:$0x1] (!%p194_p3), %v308_v7  ;;  %s1861_s26 = smov (!%p194_p3), 32  }
   0xc   : > { %286 = vst [vmem:[#allocation2 + $0x20] sm:$0x1] (!%p194_p3), %v285_v8  ;;  %v317_v10 = vsel (!%p194_p3), %vm1916_vm5, 0, %v316_v9  ;;  %v287_v11 = vld [vmem:[#allocation2 + $0x28] sm:$0x1] (!%p194_p3)  ;;  %s1862_s27 = smov (!%p194_p3), 40  }
   0xd   : > { %v319_v12 = vld [vmem:[#allocation2 + $0x2c] sm:$0x1] (!%p194_p3)  ;;  %318 = vst [vmem:[#allocation2 + $0x24] sm:$0x1] (!%p194_p3), %v317_v10  ;;  %v288_v13 = vsel (!%p194_p3), %vm1910_vm3, 0, %v287_v11  ;;  %s1863_s28 = smov (!%p194_p3), 48  }
   0xe   : > { %s2337_s15 = smov (!%p232_p4, %s1847_s15), 1  ;;  %v320_v14 = vsel %vm1916_vm5, 0, %v319_v12  ;;  %v278_v15 = vld [vmem:[#allocation2 + $0x10] sm:$0x1]  ;;  %289 = vst [vmem:[#allocation2 + $0x28] sm:$0x1] %v288_v13 }
   0xf   : > { %s1928_s19 = sshll.u32 %s2337_s15, 5  ;;  %321 = vst [vmem:[#allocation2 + $0x2c] sm:$0x1] %v320_v14  ;;  %v279_v16 = vsel %vm1910_vm3, 0, %v278_v15  ;;  %v310_v17 = vld [vmem:[#allocation2 + $0x14] sm:$0x1] }
  0x10   : > { %s1938_s22 = scalar_lea.vmem %s2321_s0, %s1928_s19  ;;  %280 = vst [vmem:[#allocation2 + $0x10] sm:$0x1] %v279_v16  ;;  %v304_v21 = vld [vmem:[#allocation2 + $0x4] sm:$0x1]  ;;  %v272_v22 = vld [vmem:[#allocation2] sm:$0x1]  ;;  %s245_s21 = scalar_lea.vmem %s2324_s3, %s1928_s19 }
  0x11   : > { %v334_v18 = vld [vmem:[%s1938_s22] sm:$0xf]  ;;  %v337_v19 = vld [vmem:[%s1938_s22 + $0xc] sm:$0xf]  ;;  %v338_v20 = vld [vmem:[%s1938_s22 + $0x10] sm:$0xf] }
  0x12   : > { %v281_v23 = vld [vmem:[#allocation2 + $0x18] sm:$0x1]  ;;  %v305_v24 = vsel %vm1916_vm5, 0, %v304_v21  ;;  %v273_v25 = vsel %vm1910_vm3, 0, %v272_v22  ;;  %v343_v26 = vshrl.u32 %v334_v18, 16  ;;  %v346_v27 = vshll.u32 %v334_v18, 16 }
  0x13   : > { %v335_v28 = vld [vmem:[%s1938_s22 + $0x4] sm:$0xf]  ;;  %306 = vst [vmem:[#allocation2 + $0x4] sm:$0x1] %v305_v24  ;;  %274 = vst [vmem:[#allocation2] sm:$0x1] %v273_v25 }
  0x14   : > { %v425_v29 = vld [vmem:[#allocation2 + $0x8] sm:$0xf]  ;;  %v367_v30 = vshrl.u32 %v337_v19, 16  ;;  %v370_v31 = vshll.u32 %v337_v19, 16  ;;  %v375_v32 = vshrl.u32 %v338_v20, 16  ;;  %v378_v33 = vshll.u32 %v338_v20, 16 }
  0x15   : > { %v345_v34 = vrot.slane %v343_v26, 7  ;;  %v428_v35 = vld [vmem:[#allocation2 + $0xc] sm:$0x1]  ;;  %v443_v36 = vld [vmem:[#allocation2 + $0x20] sm:$0xf]  ;;  %v311_v37 = vsel %vm1916_vm5, 0, %v310_v17 }
  0x16   : > { %v369_v39 = vrot.slane %v367_v30, 7  ;;  %v446_v40 = vld [vmem:[#allocation2 + $0x24] sm:$0x1]  ;;  %v377_v41 = vrot.slane %v375_v32, 7  ;;  %312 = vst [vmem:[#allocation2 + $0x14] sm:$0x1] %v311_v37 }
  0x17   : > { %v351_v42 = vshrl.u32 %v335_v28, 16  ;;  %v354_v43 = vshll.u32 %v335_v28, 16  ;;  %v348_v44 = vor.u32 %v346_v27, %v345_v34  ;;  %v349_v45 = vrot.slane %v345_v34, 4  ;;  %v449_v46 = vld [vmem:[#allocation2 + $0x28] sm:$0xf]  ;;  %s1864_s5 = smov 56  }
  0x18   : > { %v452_v47 = vld [vmem:[#allocation2 + $0x2c] sm:$0x1]  ;;  %v282_v48 = vsel %vm1910_vm3, 0, %v281_v23  ;;  %v493_v49 = vld [vmem:[#allocation2] sm:$0xe]  ;;  %v372_v50 = vor.u32 %v370_v31, %v369_v39  ;;  %v373_v51 = vrot.slane %v369_v39, 4  ;;  %v380_v52 = vor.u32 %v378_v33, %v377_v41 }
  0x19   : > { %v381_v53 = vrot.slane %v377_v41, 4  ;;  %283 = vst [vmem:[#allocation2 + $0x18] sm:$0x1] %v282_v48  ;;  %v313_v54 = vld [vmem:[#allocation2 + $0x1c] sm:$0x1]  ;;  %v426_v55 = vsel %vm1954_vm6, %v348_v44, %v425_v29  ;;  %v429_v56 = vsel %vm1910_vm3, %v349_v45, %v428_v35  ;;  %v353_v57 = vrot.slane %v351_v42, 7 }
  0x1a   : > { %v314_v58 = vsel %vm1916_vm5, 0, %v313_v54  ;;  %v336_v59 = vld [vmem:[%s1938_s22 + $0x8] sm:$0xf]  ;;  %v290_v60 = vld [vmem:[#allocation2 + $0x30] sm:$0x1]  ;;  %v444_v61 = vsel %vm1954_vm6, %v372_v50, %v443_v36  ;;  %v447_v62 = vsel %vm1910_vm3, %v373_v51, %v446_v40  ;;  %v450_v63 = vsel %vm1954_vm6, %v380_v52, %v449_v46  ;;  %s1865_s14 = smov 64  }
  0x1b   : > { %427 = vst [vmem:[#allocation2 + $0x8] sm:$0xf] %v426_v55  ;;  %430 = vst [vmem:[#allocation2 + $0xc] sm:$0x1] %v429_v56  ;;  %v453_v0 = vsel %vm1910_vm3, %v381_v53, %v452_v47  ;;  %v431_v2 = vld [vmem:[#allocation2 + $0x10] sm:$0xf]  ;;  %v356_v8 = vor.u32 %v354_v43, %v353_v57 }
  0x1c   : > { %315 = vst [vmem:[#allocation2 + $0x1c] sm:$0x1] %v314_v58  ;;  %v322_v4 = vld [vmem:[#allocation2 + $0x34] sm:$0x1]  ;;  %v485_v6 = vld [vmem:[#allocation2 + $0x4] sm:$0x1] }
  0x1d   : > { %v339_v5 = vld [vmem:[%s1938_s22 + $0x14] sm:$0xf]  ;;  %v1976_v7 = vld [vmem:[#allocation2] sm:$0xf]  ;;  %445 = vst [vmem:[#allocation2 + $0x20] sm:$0xf] %v444_v61  ;;  %v1599_v11 = vcombine.low %v493_v49, %v485_v6  ;;  %v432_v17 = vsel %vm1954_vm6, %v356_v8, %v431_v2 }
  0x1e   : > { %448 = vst [vmem:[#allocation2 + $0x24] sm:$0x1] %v447_v62  ;;  %451 = vst [vmem:[#allocation2 + $0x28] sm:$0xf] %v450_v63  ;;  %v357_v9 = vrot.slane %v353_v57, 4  ;;  %v359_v10 = vshrl.u32 %v336_v59, 16  ;;  %v1591_v12 = vcombine.low %v1976_v7, %v485_v6 }
  0x1f   : > { %454 = vst [vmem:[#allocation2 + $0x2c] sm:$0x1] %v453_v0  ;;  %v362_v13 = vshll.u32 %v336_v59, 16  ;;  %v291_v14 = vsel %vm1910_vm3, 0, %v290_v60  ;;  %v293_v15 = vld [vmem:[#allocation2 + $0x38] sm:$0x1] }
  0x20   : > { %v325_v16 = vld [vmem:[#allocation2 + $0x3c] sm:$0x1]  ;;  %v434_v18 = vld [vmem:[#allocation2 + $0x14] sm:$0x1]  ;;  %v361_v19 = vrot.slane %v359_v10, 7  ;;  %v323_v20 = vsel %vm1916_vm5, 0, %v322_v4 }
  0x21   : > { %292 = vst [vmem:[#allocation2 + $0x30] sm:$0x1] %v291_v14  ;;  %v383_v21 = vshrl.u32 %v339_v5, 16  ;;  %v693_v22 = vrot.slane %v1599_v11, 1  ;;  %v600_v23 = vshll.u32 %v1591_v12, 16  ;;  %v598_v24 = vshrl.u32 %v1591_v12, 16 }
  0x22   : > { %433 = vst [vmem:[#allocation2 + $0x10] sm:$0xf] %v432_v17  ;;  %v435_v25 = vsel %vm1910_vm3, %v357_v9, %v434_v18  ;;  %324 = vst [vmem:[#allocation2 + $0x34] sm:$0x1] %v323_v20  ;;  %v364_v26 = vor.u32 %v362_v13, %v361_v19  ;;  %v437_v27 = vld [vmem:[#allocation2 + $0x18] sm:$0xf] }
  0x23   : > { %436 = vst [vmem:[#allocation2 + $0x14] sm:$0x1] %v435_v25  ;;  %v385_v28 = vrot.slane %v383_v21, 7  ;;  %v386_v29 = vshll.u32 %v339_v5, 16  ;;  %v340_v30 = vld [vmem:[%s1938_s22 + $0x18] sm:$0xf]  ;;  %701 = vrot.lane.b32.xlu0 %v693_v22, %s1858_s23 }
  0x24   : > { %v602_v31 = vrot.slane %v600_v23, 1  ;;  %v294_v32 = vsel %vm1910_vm3, 0, %v293_v15  ;;  %v326_v33 = vsel %vm1916_vm5, 0, %v325_v16  ;;  %v486_v34 = vld [vmem:[#allocation2 + $0xc] sm:$0x1]  ;;  %v365_v36 = vrot.slane %v361_v19, 4 }
  0x25   : > { %v494_v35 = vld [vmem:[#allocation2 + $0x8] sm:$0xe]  ;;  %v438_v37 = vsel %vm1954_vm6, %v364_v26, %v437_v27  ;;  %v388_v39 = vor.u32 %v386_v29, %v385_v28  ;;  %295 = vst [vmem:[#allocation2 + $0x38] sm:$0x1] %v294_v32  ;;  %327 = vst [vmem:[#allocation2 + $0x3c] sm:$0x1] %v326_v33 }
  0x26   : > { %v603_v40 = vor.u32 %v602_v31, %v598_v24  ;;  %v1600_v41 = vcombine.low %v494_v35, %v486_v34  ;;  %v489_v42 = vld [vmem:[#allocation2 + $0x24] sm:$0x1]  ;;  %v497_v43 = vld [vmem:[#allocation2 + $0x20] sm:$0xe]  ;;  %439 = vst [vmem:[#allocation2 + $0x18] sm:$0xf] %v438_v37 }
  0x27   : > { %v391_v44 = vshrl.u32 %v340_v30, 16  ;;  %v1995_v45 = vld [vmem:[#allocation2 + $0x8] sm:$0xf]  ;;  %v1603_v46 = vcombine.low %v497_v43, %v489_v42  ;;  %v490_v47 = vld [vmem:[#allocation2 + $0x2c] sm:$0x1]  ;;  %v389_v57 = vrot.slane %v385_v28, 4 }
  0x28   : > { %v498_v48 = vld [vmem:[#allocation2 + $0x28] sm:$0xe]  ;;  %653 = vrot.lane.b32.xlu0 %v603_v40, %s1859_s24  ;;  %v694_v49 = vrot.slane %v1600_v41, 1  ;;  %v440_v51 = vld [vmem:[#allocation2 + $0x1c] sm:$0x1]  ;;  %v1592_v63 = vcombine.low %v1995_v45, %v486_v34  ;;  %v394_v5 = vshll.u32 %v340_v30, 16 }
  0x29   : > { %v1604_v50 = vcombine.low %v498_v48, %v490_v47  ;;  %v455_v52 = vld [vmem:[#allocation2 + $0x30] sm:$0xf]  ;;  %v697_v53 = vrot.slane %v1603_v46, 1  ;;  %v1998_v54 = vld [vmem:[#allocation2 + $0x20] sm:$0xf]  ;;  %v441_v56 = vsel %vm1910_vm3, %v365_v36, %v440_v51  ;;  %v393_v62 = vrot.slane %v391_v44, 7 }
  0x2a   : > { %v495_v55 = vld [vmem:[#allocation2 + $0x10] sm:$0xe]  ;;  %v456_v58 = vsel %vm1954_vm6, %v388_v39, %v455_v52  ;;  %703 = vrot.lane.b32.xlu1 %v694_v49, %s1858_s23  ;;  %v487_v60 = vld [vmem:[#allocation2 + $0x14] sm:$0x1]  ;;  %442 = vst [vmem:[#allocation2 + $0x1c] sm:$0x1] %v441_v56  ;;  %v1595_v6 = vcombine.low %v1998_v54, %v489_v42 }
  0x2b   : > { %v698_v59 = vrot.slane %v1604_v50, 1  ;;  %457 = vst [vmem:[#allocation2 + $0x30] sm:$0xf] %v456_v58  ;;  %v458_v61 = vld [vmem:[#allocation2 + $0x34] sm:$0x1]  ;;  %v1601_v0 = vcombine.low %v495_v55, %v487_v60  ;;  %v397_v8 = vrot.slane %v393_v62, 4  ;;  %v396_v12 = vor.u32 %v394_v5, %v393_v62 }
  0x2c   : > { %v2006_v2 = vld [vmem:[#allocation2 + $0x10] sm:$0xf]  ;;  %v459_v4 = vsel %vm1910_vm3, %v389_v57, %v458_v61  ;;  %709 = vrot.lane.b32.xlu0 %v697_v53, %s1858_s23  ;;  %v461_v9 = vld [vmem:[#allocation2 + $0x38] sm:$0xf]  ;;  %v464_v10 = vld [vmem:[#allocation2 + $0x3c] sm:$0x1] }
  0x2d   : > { %460 = vst [vmem:[#allocation2 + $0x34] sm:$0x1] %v459_v4  ;;  %v695_v11 = vrot.slane %v1601_v0, 1  ;;  %v465_v13 = vsel %vm1910_vm3, %v397_v8, %v464_v10  ;;  %v607_v14 = vshll.u32 %v1592_v63, 16  ;;  %v2015_v15 = vld [vmem:[#allocation2 + $0x28] sm:$0xf]  ;;  %v1593_v16 = vcombine.low %v2006_v2, %v487_v60 }
  0x2e   : > { %711 = vrot.lane.b32.xlu1 %v698_v59, %s1858_s23  ;;  %v496_v17 = vld [vmem:[#allocation2 + $0x18] sm:$0xe]  ;;  %v462_v18 = vsel %vm1954_vm6, %v396_v12, %v461_v9  ;;  %466 = vst [vmem:[#allocation2 + $0x3c] sm:$0x1] %v465_v13  ;;  %v628_v19 = vshll.u32 %v1595_v6, 16  ;;  %v1596_v23 = vcombine.low %v2015_v15, %v490_v47  ;;  %v605_v26 = vshrl.u32 %v1592_v63, 16 }
  0x2f   : > { %463 = vst [vmem:[#allocation2 + $0x38] sm:$0xf] %v462_v18  ;;  %v609_v27 = vrot.slane %v607_v14, 1  ;;  %v614_v28 = vshll.u32 %v1593_v16, 16  ;;  %v296_v32 = vld [vmem:[#allocation2 + $0x40] sm:$0x1] }
  0x30   : > { %705 = vrot.lane.b32.xlu0 %v695_v11, %s1858_s23  ;;  %v2025_v33 = vld [vmem:[#allocation2 + $0x18] sm:$0xf]  ;;  %v626_v34 = vshrl.u32 %v1595_v6, 16  ;;  %v630_v35 = vrot.slane %v628_v19, 1  ;;  %v328_v36 = vld [vmem:[#allocation2 + $0x44] sm:$0x1] }
  0x31   : > { %v488_v20 = vld [vmem:[#allocation2 + $0x1c] sm:$0x1]  ;;  %v635_v40 = vshll.u32 %v1596_v23, 16  ;;  %v610_v43 = vor.u32 %v609_v27, %v605_v26  ;;  %v612_v44 = vshrl.u32 %v1593_v16, 16  ;;  %v616_v46 = vrot.slane %v614_v28, 1 }
  0x32   : > { %v2021_v21 = vld [vmem:[#allocation2 + $0x30] sm:$0xf]  ;;  %v1602_v24 = vcombine.low %v496_v17, %v488_v20  ;;  %v341_v41 = vld [vmem:[%s1938_s22 + $0x1c] sm:$0xf]  ;;  %v297_v47 = vsel %vm1910_vm3, 0, %v296_v32  ;;  %v1594_v48 = vcombine.low %v2025_v33, %v488_v20  ;;  %v329_v51 = vsel %vm1916_vm5, 0, %v328_v36 }
  0x33   : > { %v499_v22 = vld [vmem:[#allocation2 + $0x30] sm:$0xe]  ;;  %298 = vst [vmem:[#allocation2 + $0x40] sm:$0x1] %v297_v47  ;;  %330 = vst [vmem:[#allocation2 + $0x44] sm:$0x1] %v329_v51  ;;  %v631_v56 = vor.u32 %v630_v35, %v626_v34  ;;  %v617_v59 = vor.u32 %v616_v46, %v612_v44 }
  0x34   : > { %v491_v25 = vld [vmem:[#allocation2 + $0x34] sm:$0x1]  ;;  %v696_v29 = vrot.slane %v1602_v24, 1  ;;  %v399_v53 = vshrl.u32 %v341_v41, 16  ;;  %v633_v57 = vshrl.u32 %v1596_v23, 16  ;;  %v637_v58 = vrot.slane %v635_v40, 1 }
  0x35   : > { %v1597_v30 = vcombine.low %v2021_v21, %v491_v25  ;;  %v1605_v31 = vcombine.low %v499_v22, %v491_v25  ;;  %v492_v39 = vld [vmem:[#allocation2 + $0x3c] sm:$0x1]  ;;  %v402_v61 = vshll.u32 %v341_v41, 16  ;;  %v621_v63 = vshll.u32 %v1594_v48, 16  ;;  %v1543_v17 = vld [vmem:[#allocation2 + $0x8] sm:$0xf] }
  0x36   : > { %707 = vrot.lane.b32.xlu1 %v696_v29, %s1858_s23  ;;  %v500_v42 = vld [vmem:[#allocation2 + $0x38] sm:$0xe]  ;;  %v401_v60 = vrot.slane %v399_v53, 7  ;;  %v638_v8 = vor.u32 %v637_v58, %v633_v57  ;;  %v619_v9 = vshrl.u32 %v1594_v48, 16  ;;  %v1607_v23 = vcombine.low %v1543_v17, %v1543_v17  ;;  %v2048_v24 = vld [vmem:[#allocation2 + $0xc] sm:$0x1] }
  0x37   : > { %v699_v37 = vrot.slane %v1605_v31, 1  ;;  %v1606_v49 = vcombine.low %v500_v42, %v492_v39  ;;  %v642_v50 = vshll.u32 %v1597_v30, 16  ;;  %v2035_v52 = vld [vmem:[#allocation2 + $0x38] sm:$0xf]  ;;  %v640_v0 = vshrl.u32 %v1597_v30, 16 }
  0x38   : > { %v1598_v62 = vcombine.low %v2035_v52, %v492_v39  ;;  %v404_v5 = vor.u32 %v402_v61, %v401_v60  ;;  %v405_v6 = vrot.slane %v401_v60, 4  ;;  %v623_v11 = vrot.slane %v621_v63, 1  ;;  %v1547_v25 = vld [vmem:[#allocation2 + $0x28] sm:$0xf]  ;;  %v1544_v27 = vld [vmem:[#allocation2 + $0x10] sm:$0xf] }
  0x39   : > { %713 = vrot.lane.b32.xlu0 %v699_v37, %s1858_s23  ;;  %v700_v55 = vrot.slane %v1606_v49, 1  ;;  %v644_v4 = vrot.slane %v642_v50, 1  ;;  %v1615_v26 = vcombine.low %v1543_v17, %v2048_v24  ;;  %v1611_v28 = vcombine.low %v1547_v25, %v1547_v25  ;;  %v299_v29 = vld [vmem:[#allocation2 + $0x48] sm:$0x1]  ;;  %v2053_v30 = vld [vmem:[#allocation2 + $0x2c] sm:$0x1] }
  0x3a   : > { %v467_v10 = vld [vmem:[#allocation2 + $0x40] sm:$0xf]  ;;  %v649_v13 = vshll.u32 %v1598_v62, 16  ;;  %v470_v16 = vld [vmem:[#allocation2 + $0x44] sm:$0x1]  ;;  %v624_v19 = vor.u32 %v623_v11, %v619_v9  ;;  %v647_v20 = vshrl.u32 %v1598_v62, 16  ;;  %v1608_v35 = vcombine.low %v1544_v27, %v1544_v27 }
  0x3b   : > { %715 = vrot.lane.b32.xlu1 %v700_v55, %s1858_s23  ;;  %v645_v12 = vor.u32 %v644_v4, %v640_v0  ;;  %v468_v14 = vsel %vm1954_vm6, %v404_v5, %v467_v10  ;;  %v471_v18 = vsel %vm1910_vm3, %v405_v6, %v470_v16  ;;  %v1545_v31 = vld [vmem:[#allocation2 + $0x18] sm:$0xf]  ;;  %v331_v32 = vld [vmem:[#allocation2 + $0x4c] sm:$0x1]  ;;  %v2055_v34 = vld [vmem:[#allocation2 + $0x14] sm:$0x1]  ;;  %v1619_v37 = vcombine.low %v1547_v25, %v2053_v30 }
  0x3c   : > { %469 = vst [vmem:[#allocation2 + $0x40] sm:$0xf] %v468_v14  ;;  %472 = vst [vmem:[#allocation2 + $0x44] sm:$0x1] %v471_v18  ;;  %v651_v22 = vrot.slane %v649_v13, 1  ;;  %v300_v36 = vsel %vm1910_vm3, 0, %v299_v29  ;;  %v1609_v41 = vcombine.low %v1545_v31, %v1545_v31  ;;  %v1616_v1 = vcombine.low %v1544_v27, %v2055_v34 }
  0x3d   : > { %655 = vrot.lane.b32.xlu0 %v610_v43, %s1859_s24  ;;  %v1548_v39 = vld [vmem:[#allocation2 + $0x30] sm:$0xf]  ;;  %v2062_v40 = vld [vmem:[#allocation2 + $0x1c] sm:$0x1]  ;;  %v784_v42 = vshll.u32 %v1615_v26, 16  ;;  %v332_v43 = vsel %vm1916_vm5, 0, %v331_v32 }
  0x3e   : > { %v652_v38 = vor.u32 %v651_v22, %v647_v20  ;;  %301 = vst [vmem:[#allocation2 + $0x48] sm:$0x1] %v300_v36  ;;  %v1549_v44 = vld [vmem:[#allocation2 + $0x38] sm:$0xf]  ;;  %333 = vst [vmem:[#allocation2 + $0x4c] sm:$0x1] %v332_v43  ;;  %v1612_v47 = vcombine.low %v1548_v39, %v1548_v39  ;;  %v1617_v48 = vcombine.low %v1545_v31, %v2062_v40 }
  0x3f   : > { %661 = vrot.lane.b32.xlu1 %v631_v56, %s1859_s24  ;;  %v2066_v46 = vld [vmem:[#allocation2 + $0x34] sm:$0x1]  ;;  %v1546_v49 = vld [vmem:[#allocation2 + $0x20] sm:$0xf]  ;;  %v2070_v50 = vld [vmem:[#allocation2 + $0x3c] sm:$0x1]  ;;  %v1613_v51 = vcombine.low %v1549_v44, %v1549_v44 }
  0x40   : > { %v782_v53 = vshrl.u32 %v1615_v26, 16  ;;  %v786_v3 = vrot.slane %v784_v42, 1  ;;  %v812_v55 = vshll.u32 %v1619_v37, 16  ;;  %v1620_v56 = vcombine.low %v1548_v39, %v2066_v46  ;;  %v2075_v57 = vld [vmem:[#allocation2 + $0x24] sm:$0x1] }
  0x41   : > { %657 = vrot.lane.b32.xlu0 %v617_v59, %s1859_s24  ;;  %v1610_v58 = vcombine.low %v1546_v49, %v1546_v49  ;;  %v1621_v59 = vcombine.low %v1549_v44, %v2070_v50  ;;  %v791_v60 = vshll.u32 %v1616_v1, 16  ;;  %v810_v62 = vshrl.u32 %v1619_v37, 16  ;;  %v1559_v26 = vld [vmem:[#allocation2 + $0x8] sm:$0xe]  ;;  %v1560_v44 = vld [vmem:[#allocation2 + $0x10] sm:$0xe] }
  0x42   : > { %v787_v61 = vor.u32 %v786_v3, %v782_v53  ;;  %v814_v63 = vrot.slane %v812_v55, 1  ;;  %v798_v0 = vshll.u32 %v1617_v48, 16  ;;  %v1618_v5 = vcombine.low %v1546_v49, %v2075_v57  ;;  %v1563_v36 = vld [vmem:[#allocation2 + $0x28] sm:$0xe]  ;;  %v1564_v49 = vld [vmem:[#allocation2 + $0x30] sm:$0xe] }
  0x43   : > { %663 = vrot.lane.b32.xlu1 %v638_v8, %s1859_s24  ;;  %v1550_v4 = vld [vmem:[#allocation2 + $0x40] sm:$0xf]  ;;  %v789_v6 = vshrl.u32 %v1616_v1, 16  ;;  %v793_v8 = vrot.slane %v791_v60, 1  ;;  %v819_v9 = vshll.u32 %v1620_v56, 16  ;;  %v796_v10 = vshrl.u32 %v1617_v48, 16 }
  0x44   : > { %v1614_v11 = vcombine.low %v1550_v4, %v1550_v4  ;;  %v800_v13 = vrot.slane %v798_v0, 1  ;;  %v826_v14 = vshll.u32 %v1621_v59, 16  ;;  %v1558_v16 = vld [vmem:[#allocation2 + $0x44] sm:$0x1]  ;;  %v817_v18 = vshrl.u32 %v1620_v56, 16 }
  0x45   : > { %665 = vrot.lane.b32.xlu0 %v645_v12, %s1859_s24  ;;  %v815_v12 = vor.u32 %v814_v63, %v810_v62  ;;  %v794_v17 = vor.u32 %v793_v8, %v789_v6  ;;  %v805_v20 = vshll.u32 %v1618_v5, 16  ;;  %v1622_v22 = vcombine.low %v1550_v4, %v1558_v16  ;;  %v1561_v1 = vld [vmem:[#allocation2 + $0x18] sm:$0xe]  ;;  %v1566_v60 = vld [vmem:[#allocation2 + $0x40] sm:$0xe] }
  0x46   : > { %v824_v25 = vshrl.u32 %v1621_v59, 16  ;;  %v1627_v37 = vcombine.low %v1563_v36, %v2053_v30  ;;  %v1625_v30 = vcombine.low %v1561_v1, %v2062_v40  ;;  %v1628_v3 = vcombine.low %v1564_v49, %v2066_v46  ;;  %v2104_v0 = vld [vmem:[#allocation2 + $0x14] sm:$0x1]  ;;  %v1568_v6 = vld [vmem:[#allocation2 + $0x18] sm:$0xf]  ;;  %v1828_v49 = vld [vmem:[%s2322_s1] sm:$0xff]  }
  0x47   : > { %659 = vrot.lane.b32.xlu1 %v624_v19, %s1859_s24  ;;  %v821_v19 = vrot.slane %v819_v9, 1  ;;  %v807_v29 = vrot.slane %v805_v20, 1  ;;  %v833_v32 = vshll.u32 %v1622_v22, 16  ;;  %v1630_v46 = vcombine.low %v1566_v60, %v1558_v16  ;;  %v2109_v8 = vld [vmem:[#allocation2 + $0x34] sm:$0x1]  ;;  %1702 = vmatprep.subr.bf16.mxu0 %v1828_v49  ;;  %v1829_v60 = vld [vmem:[%s2322_s1 + $0x8] sm:$0xff]  }
  0x48   : > { %v881_v48 = vrot.slane %v1627_v37, 1  ;;  %v879_v55 = vrot.slane %v1625_v30, 1  ;;  %v882_v59 = vrot.slane %v1628_v3, 1  ;;  %v1569_v9 = vld [vmem:[#allocation2 + $0x20] sm:$0xf]  ;;  %1720 = vmatprep.subr.bf16.mxu1 %v1828_v49  ;;  %1703 = vmatpush3.bf16.msra.mxu0 %v1828_v49  ;;  %vm1305_vm7 = vcmask 1043456  }
  0x49   : > { %741 = vrot.lane.b32.xlu0 %v1607_v23, %s1860_s25  ;;  %v801_v23 = vor.u32 %v800_v13, %v796_v10  ;;  %v822_v27 = vor.u32 %v821_v19, %v817_v18  ;;  %v835_v42 = vrot.slane %v833_v32, 1  ;;  %v884_v4 = vrot.slane %v1630_v46, 1  ;;  %v2111_v10 = vld [vmem:[#allocation2 + $0x1c] sm:$0x1]  ;;  %v1572_v13 = vld [vmem:[#allocation2 + $0x38] sm:$0xf]  ;;  %1725 = vmatpush3.bf16.msra.mxu1 %v1828_v49 }
  0x4a   : > { %v1633_v16 = vcombine.low %v1569_v9, %v1569_v9  ;;  %v1573_v18 = vld [vmem:[#allocation2 + $0x40] sm:$0xf]  ;;  %v1640_v19 = vcombine.low %v1568_v6, %v2111_v10  ;;  %v2119_v20 = vld [vmem:[#allocation2 + $0x3c] sm:$0x1]  ;;  %v2127_v32 = vld [vmem:[#allocation2 + $0x2c] sm:$0x1]  ;;  %1704 = vmatprep.subr.bf16.mxu0 %v1829_v60  ;;  %1721 = vmatprep.subr.bf16.mxu1 %v1829_v60 }
  0x4b   : > { %667 = vrot.lane.b32.xlu1 %v652_v38, %s1859_s24  ;;  %v828_v38 = vrot.slane %v826_v14, 1  ;;  %v2116_v14 = vld [vmem:[#allocation2 + $0x24] sm:$0x1]  ;;  %vm1085_vm8 = vcmask 64512   ;;  %vm1110_vm9 = vcmask 130048   ;;  %vm1127_vm10 = vcmask 195584  }
  0x4c   : > { %v975_v37 = vshll.u32 %v1640_v19, 16  ;;  %1705 = vmatpush3.bf16.msra.mxu0 %v1829_v60  ;;  %v1590_v49 = vld [vmem:[#allocation2 + $0x48] sm:$0xe]  ;;  %vm1144_vm11 = vcmask 261120   ;;  %vm1161_vm12 = vcmask 326656   ;;  %vm1178_vm13 = vcmask 392192  }
  0x4d   : > { %749 = vrot.lane.b32.xlu0 %v1611_v28, %s1860_s25  ;;  %v803_v28 = vshrl.u32 %v1618_v5, 16  ;;  %v829_v31 = vor.u32 %v828_v38, %v824_v25  ;;  %v1570_v25 = vld [vmem:[#allocation2 + $0x28] sm:$0xf]  ;;  %v2124_v38 = vld [vmem:[#allocation2 + $0x44] sm:$0x1]  ;;  %1726 = vmatpush3.bf16.msra.mxu1 %v1829_v60  ;;  %vm1195_vm14 = vcmask 457728  }
  0x4e   : > { %v1645_v36 = vcombine.low %v1573_v18, %v2124_v38  ;;  %v1642_v1 = vcombine.low %v1570_v25, %v2127_v32  ;;  %vm1212_vm15 = vcmask 523264   ;;  %vm1292_vm1 = vcmask 588800  }
  0x4f   : > { %743 = vrot.lane.b32.xlu1 %v1608_v35, %s1860_s25  ;;  %v1623_v35 = vcombine.low %v1559_v26, %v2048_v24  ;;  %v808_v39 = vor.u32 %v807_v29, %v803_v28  ;;  %v1624_v24 = vcombine.low %v1560_v44, %v2055_v34  ;;  %v1637_v26 = vcombine.low %v1573_v18, %v1573_v18  ;;  %v1574_v44 = vld [vmem:[#allocation2 + $0x48] sm:$0xf] }
  0x50   : > { %v1008_v46 = vshrl.u32 %v1645_v36, 16 }
  0x51   : > { %745 = vrot.lane.b32.xlu0 %v1609_v41, %s1860_s25  ;;  %v831_v41 = vshrl.u32 %v1622_v22, 16  ;;  %v877_v43 = vrot.slane %v1623_v35, 1  ;;  %v878_v53 = vrot.slane %v1624_v24, 1  ;;  %v1636_v22 = vcombine.low %v1572_v13, %v1572_v13 }
  0x52   : > { %v1634_v35 = vcombine.low %v1570_v25, %v1570_v25  ;;  %v977_v24 = vrot.slane %v975_v37, 1  ;;  %v1585_v25 = vld [vmem:[#allocation2 + $0x20] sm:$0xe] }
  0x53   : > { %751 = vrot.lane.b32.xlu1 %v1612_v47, %s1860_s25  ;;  %v836_v47 = vor.u32 %v835_v42, %v831_v41 }
  0x55   : > { %753 = vrot.lane.b32.xlu0 %v1613_v51, %s1860_s25  ;;  %v1565_v51 = vld [vmem:[#allocation2 + $0x38] sm:$0xe] }
  0x56   : > { %v1629_v56 = vcombine.low %v1565_v51, %v2070_v50  ;;  %v1571_v50 = vld [vmem:[#allocation2 + $0x30] sm:$0xf]  ;;  %v1638_v51 = vcombine.low %v1574_v44, %v1574_v44 }
  0x57   : > { %747 = vrot.lane.b32.xlu1 %v1610_v58, %s1860_s25  ;;  %v1562_v58 = vld [vmem:[#allocation2 + $0x20] sm:$0xe] }
  0x58   : > { %v1626_v34 = vcombine.low %v1562_v58, %v2075_v57  ;;  %v883_v40 = vrot.slane %v1629_v56, 1  ;;  %v1635_v57 = vcombine.low %v1571_v50, %v1571_v50  ;;  %v2138_v56 = vld [vmem:[#allocation2 + $0x4c] sm:$0x1] }
  0x59   : > { %837 = vrot.lane.b32.xlu0 %v787_v61, %s1861_s26  ;;  %v1567_v61 = vld [vmem:[#allocation2 + $0x10] sm:$0xf] }
  0x5a   : > { %v880_v62 = vrot.slane %v1626_v34, 1  ;;  %v1631_v63 = vcombine.low %v1567_v61, %v1567_v61  ;;  %v1639_v5 = vcombine.low %v1567_v61, %v2104_v0  ;;  %v1646_v61 = vcombine.low %v1574_v44, %v2138_v56 }
  0x5b   : > { %755 = vrot.lane.b32.xlu1 %v1614_v11, %s1860_s25  ;;  %v1632_v11 = vcombine.low %v1568_v6, %v1568_v6 }
  0x5d   : > { %845 = vrot.lane.b32.xlu0 %v815_v12, %s1861_s26  ;;  %v1643_v12 = vcombine.low %v1571_v50, %v2109_v8  ;;  %v1583_v50 = vld [vmem:[#allocation2 + $0x10] sm:$0xe] }
  0x5f   : > { %839 = vrot.lane.b32.xlu1 %v794_v17, %s1861_s26  ;;  %v968_v17 = vshll.u32 %v1639_v5, 16  ;;  %v996_v29 = vshll.u32 %v1643_v12, 16  ;;  %v994_v41 = vshrl.u32 %v1643_v12, 16  ;;  %v1647_v12 = vcombine.low %v1583_v50, %v2104_v0  ;;  %v1584_v0 = vld [vmem:[#allocation2 + $0x18] sm:$0xe] }
  0x61   : > { %841 = vrot.lane.b32.xlu0 %v801_v23, %s1861_s26  ;;  %v1641_v23 = vcombine.low %v1569_v9, %v2116_v14  ;;  %v970_v28 = vrot.slane %v968_v17, 1  ;;  %v998_v42 = vrot.slane %v996_v29, 1  ;;  %v1831_v17 = vld [vmem:[%s2322_s1 + $0x18] sm:$0xff]  }
  0x63   : > { %847 = vrot.lane.b32.xlu1 %v822_v27, %s1861_s26  ;;  %v966_v27 = vshrl.u32 %v1639_v5, 16  ;;  %v980_v30 = vshrl.u32 %v1641_v23, 16  ;;  %v987_v5 = vshrl.u32 %v1642_v1, 16 }
  0x65   : > { %849 = vrot.lane.b32.xlu0 %v829_v31, %s1861_s26  ;;  %v1644_v31 = vcombine.low %v1572_v13, %v2119_v20  ;;  %v1587_v13 = vld [vmem:[#allocation2 + $0x30] sm:$0xe] }
  0x67   : > { %843 = vrot.lane.b32.xlu1 %v808_v39, %s1861_s26  ;;  %v971_v39 = vor.u32 %v970_v28, %v966_v27  ;;  %v1832_v27 = vld [vmem:[%s2322_s1 + $0x20] ss:$0 sps:$4 sm:$0xff]  }
  0x68   : > { %v1307_v37 = vsel %vm1305_vm7, %v1832_v27, 0 }
  0x69   : > { %885 = vrot.lane.b32.xlu0 %v877_v43, %s1862_s27  ;;  %v982_v43 = vshll.u32 %v1641_v23, 16  ;;  %v1061_v23 = vrot.slane %v1647_v12, 1 }
  0x6b   : > { %851 = vrot.lane.b32.xlu1 %v836_v47, %s1861_s26  ;;  %v973_v47 = vshrl.u32 %v1640_v19, 16  ;;  %v984_v3 = vrot.slane %v982_v43, 1  ;;  %v1015_v19 = vshrl.u32 %v1646_v61, 16  ;;  %s2294_s26 = scalar_lea.vmem %s2325_s4, %s1928_s19 }
  0x6d   : > { %893 = vrot.lane.b32.xlu0 %v881_v48, %s1862_s27  ;;  %v1003_v48 = vshll.u32 %v1644_v31, 16  ;;  %v978_v58 = vor.u32 %v977_v24, %v973_v47  ;;  %v1586_v47 = vld [vmem:[#allocation2 + $0x28] sm:$0xe] }
  0x6f   : > { %887 = vrot.lane.b32.xlu1 %v878_v53, %s1862_s27  ;;  %v999_v53 = vor.u32 %v998_v42, %v994_v41  ;;  %v1005_v34 = vrot.slane %v1003_v48, 1 }
  0x71   : > { %889 = vrot.lane.b32.xlu0 %v879_v55, %s1862_s27  ;;  %v1010_v55 = vshll.u32 %v1645_v36, 16  ;;  %v1589_v36 = vld [vmem:[#allocation2 + $0x40] sm:$0xe] }
  0x72   : > { %v1653_v44 = vcombine.low %v1589_v36, %v2124_v38 }
  0x73   : > { %895 = vrot.lane.b32.xlu1 %v882_v59, %s1862_s27  ;;  %v1001_v59 = vshrl.u32 %v1644_v31, 16  ;;  %v1649_v31 = vcombine.low %v1585_v25, %v2116_v14 }
  0x75   : > { %897 = vrot.lane.b32.xlu0 %v883_v40, %s1862_s27  ;;  %v989_v40 = vshll.u32 %v1642_v1, 16  ;;  %v1063_v43 = vrot.slane %v1649_v31, 1 }
  0x77   : > { %891 = vrot.lane.b32.xlu1 %v880_v62, %s1862_s27  ;;  %v985_v62 = vor.u32 %v984_v3, %v980_v30  ;;  %v991_v6 = vrot.slane %v989_v40, 1  ;;  %v1067_v30 = vrot.slane %v1653_v44, 1 }
  0x79   : > { %925 = vrot.lane.b32.xlu0 %v1631_v63, %s1863_s28  ;;  %v1012_v63 = vrot.slane %v1010_v55, 1  ;;  %v992_v18 = vor.u32 %v991_v6, %v987_v5 }
  0x7b   : > { %899 = vrot.lane.b32.xlu1 %v884_v4, %s1862_s27  ;;  %v1006_v4 = vor.u32 %v1005_v34, %v1001_v59  ;;  %v1013_v9 = vor.u32 %v1012_v63, %v1008_v46 }
  0x7d   : > { %933 = vrot.lane.b32.xlu0 %v1635_v57, %s1863_s28  ;;  %v1830_v57 = vld [vmem:[%s2322_s1 + $0x10] sm:$0xff]  }
  0x7e   : > { %1706 = vmatprep.subr.bf16.mxu0 %v1830_v57  ;;  %1722 = vmatprep.subr.bf16.mxu1 %v1830_v57 }
  0x7f   : > { %927 = vrot.lane.b32.xlu1 %v1632_v11, %s1863_s28  ;;  %v1017_v11 = vshll.u32 %v1646_v61, 16  ;;  %1707 = vmatpush3.bf16.msra.mxu0 %v1830_v57 }
  0x80   : > { %1727 = vmatpush3.bf16.msra.mxu1 %v1830_v57  ;;  %1708 = vmatprep.subr.bf16.mxu0 %v1831_v17 }
  0x81   : > { %929 = vrot.lane.b32.xlu0 %v1633_v16, %s1863_s28  ;;  %v1651_v16 = vcombine.low %v1587_v13, %v2109_v8  ;;  %1723 = vmatprep.subr.bf16.mxu1 %v1831_v17  ;;  %v1648_v8 = vcombine.low %v1584_v0, %v2111_v10 }
  0x83   : > { %935 = vrot.lane.b32.xlu1 %v1636_v22, %s1863_s28  ;;  %v1019_v22 = vrot.slane %v1017_v11, 1  ;;  %1709 = vmatpush3.bf16.msra.mxu0 %v1831_v17  ;;  %v1065_v29 = vrot.slane %v1651_v16, 1 }
  0x84   : > { %1728 = vmatpush3.bf16.msra.mxu1 %v1831_v17  ;;  %1730 = vmatprep.subr.msk.bf16.mxu0 %vm1305_vm7, %v1832_v27 }
  0x85   : > { %937 = vrot.lane.b32.xlu0 %v1637_v26, %s1863_s28  ;;  %v1020_v28 = vor.u32 %v1019_v22, %v1015_v19  ;;  %1731 = vmatprep.subr.msk.bf16.mxu1 %vm1305_vm7, %v1832_v27 }
  0x87   : > { %931 = vrot.lane.b32.xlu1 %v1634_v35, %s1863_s28  ;;  %v1588_v35 = vld [vmem:[#allocation2 + $0x38] sm:$0xe]  ;;  %1711 = vmatpush3.bf16.msra.mxu0 %v1307_v37 }
  0x88   : > { %1729 = vmatpush3.bf16.msra.mxu1 %v1307_v37  ;;  %v1652_v14 = vcombine.low %v1588_v35, %v2119_v20 }
  0x89   : > { %1021 = vrot.lane.b32.xlu0 %v971_v39, %s1864_s5  ;;  %v1062_v39 = vrot.slane %v1648_v8, 1 }
  0x8a   : > { %v1066_v48 = vrot.slane %v1652_v14, 1 }
  0x8b   : > { %939 = vrot.lane.b32.xlu1 %v1638_v51, %s1863_s28 }
  0x8d   : > { %1029 = vrot.lane.b32.xlu0 %v999_v53, %s1864_s5  ;;  %v1654_v53 = vcombine.low %v1590_v49, %v2138_v56 }
  0x8f   : > { %1023 = vrot.lane.b32.xlu1 %v978_v58, %s1864_s5  ;;  %v1068_v55 = vrot.slane %v1654_v53, 1 }
  0x91   : > { %1025 = vrot.lane.b32.xlu0 %v985_v62, %s1864_s5 }
  0x93   : > { %1031 = vrot.lane.b32.xlu1 %v1006_v4, %s1864_s5 }
  0x95   : > { %1033 = vrot.lane.b32.xlu0 %v1013_v9, %s1864_s5  ;;  %v702_v26 = vpop.permute.xlu0 %701 }
  0x97   : > { %1027 = vrot.lane.b32.xlu1 %v992_v18, %s1864_s5 }
  0x99   : > { %1069 = vrot.lane.b32.xlu0 %v1061_v23, %s1865_s14 }
  0x9a   : > { %v654_v10 = vpop.permute.xlu0 %653 }
  0x9b   : > { %v1088_v41 = vsel %vm1085_vm8, %v1976_v7, %v654_v10  ;;  %1035 = vrot.lane.b32.xlu1 %v1020_v28, %s1864_s5  ;;  %v1650_v7 = vcombine.low %v1586_v47, %v2127_v32 }
  0x9c   : > { %v704_v42 = vpop.permute.xlu1 %703  ;;  %v1112_v1 = vsel %vm1110_vm9, %v1088_v41, %v702_v26 }
  0x9d   : > { %1077 = vrot.lane.b32.xlu0 %v1065_v29, %s1865_s14  ;;  %v1064_v20 = vrot.slane %v1650_v7, 1 }
  0x9e   : > { %v710_v24 = vpop.permute.xlu0 %709 }
  0x9f   : > { %1071 = vrot.lane.b32.xlu1 %v1062_v39, %s1865_s14 }
  0xa0   : > { %v712_v51 = vpop.permute.xlu1 %711 }
  0xa1   : > { %1073 = vrot.lane.b32.xlu0 %v1063_v43, %s1865_s14 }
  0xa2   : > { %v706_v38 = vpop.permute.xlu0 %705 }
  0xa3   : > { %1079 = vrot.lane.b32.xlu1 %v1066_v48, %s1865_s14 }
  0xa5   : > { %1081 = vrot.lane.b32.xlu0 %v1067_v30, %s1865_s14 }
  0xa7   : > { %1075 = vrot.lane.b32.xlu1 %v1064_v20, %s1865_s14 }
  0xa8   : > { %v708_v3 = vpop.permute.xlu1 %707 }
  0xab   : > { %v714_v58 = vpop.permute.xlu0 %713  ;;  %1083 = vrot.lane.b32.xlu1 %v1068_v55, %s1865_s14 }
  0xad   : > { %v716_v59 = vpop.permute.xlu1 %715 }
  0xaf   : > { %v656_v32 = vpop.permute.xlu0 %655 }
  0xb0   : > { %v1091_v34 = vsel %vm1085_vm8, %v1995_v45, %v656_v32 }
  0xb1   : > { %v1114_v40 = vsel %vm1110_vm9, %v1091_v34, %v704_v42  ;;  %v662_v60 = vpop.permute.xlu1 %661 }
  0xb2   : > { %v1100_v62 = vsel %vm1085_vm8, %v1998_v54, %v662_v60 }
  0xb3   : > { %v658_v61 = vpop.permute.xlu0 %657  ;;  %v1120_v46 = vsel %vm1110_vm9, %v1100_v62, %v710_v24 }
  0xb4   : > { %v1094_v56 = vsel %vm1085_vm8, %v2006_v2, %v658_v61 }
  0xb5   : > { %v1116_v63 = vsel %vm1110_vm9, %v1094_v56, %v706_v38  ;;  %v664_v50 = vpop.permute.xlu1 %663 }
  0xb6   : > { %v1103_v5 = vsel %vm1085_vm8, %v2015_v15, %v664_v50 }
  0xb7   : > { %v666_v4 = vpop.permute.xlu0 %665  ;;  %v1122_v57 = vsel %vm1110_vm9, %v1103_v5, %v712_v51 }
  0xb8   : > { %v1106_v45 = vsel %vm1085_vm8, %v2021_v21, %v666_v4 }
  0xb9   : > { %v1124_v54 = vsel %vm1110_vm9, %v1106_v45, %v714_v58  ;;  %v660_v6 = vpop.permute.xlu1 %659 }
  0xba   : > { %v1097_v2 = vsel %vm1085_vm8, %v2025_v33, %v660_v6 }
  0xbb   : > { %v742_v9 = vpop.permute.xlu0 %741  ;;  %v1118_v12 = vsel %vm1110_vm9, %v1097_v2, %v708_v3 }
  0xbc   : > { %v1129_v11 = vsel %vm1127_vm10, %v1112_v1, %v742_v9 }
  0xbd   : > { %v668_v13 = vpop.permute.xlu1 %667 }
  0xbe   : > { %v1109_v15 = vsel %vm1085_vm8, %v2035_v52, %v668_v13 }
  0xbf   : > { %v750_v16 = vpop.permute.xlu0 %749  ;;  %v1126_v17 = vsel %vm1110_vm9, %v1109_v15, %v716_v59 }
  0xc0   : > { %v2202_v21 = vsel %vm1127_vm10, %v1120_v46, %v750_v16 }
  0xc1   : > { %v744_v18 = vpop.permute.xlu1 %743 }
  0xc2   : > { %v1131_v22 = vsel %vm1127_vm10, %v1114_v40, %v744_v18 }
  0xc3   : > { %v746_v19 = vpop.permute.xlu0 %745 }
  0xc4   : > { %v2207_v33 = vsel %vm1127_vm10, %v1116_v63, %v746_v19 }
  0xc5   : > { %v752_v23 = vpop.permute.xlu1 %751 }
  0xc6   : > { %v1139_v25 = vsel %vm1127_vm10, %v1122_v57, %v752_v23 }
  0xc7   : > { %v754_v0 = vpop.permute.xlu0 %753 }
  0xc8   : > { %v2211_v26 = vsel %vm1127_vm10, %v1124_v54, %v754_v0 }
  0xc9   : > { %v748_v52 = vpop.permute.xlu1 %747 }
  0xca   : > { %v2214_v27 = vsel %vm1127_vm10, %v1118_v12, %v748_v52 }
  0xcb   : > { %v838_v8 = vpop.permute.xlu0 %837 }
  0xcc   : > { %v1146_v56 = vsel %vm1144_vm11, %v1129_v11, %v838_v8 }
  0xcd   : > { %v756_v28 = vpop.permute.xlu1 %755 }
  0xce   : > { %v2217_v31 = vsel %vm1127_vm10, %v1126_v17, %v756_v28 }
  0xcf   : > { %v846_v29 = vpop.permute.xlu0 %845 }
  0xd0   : > { %v1154_v9 = vsel %vm1144_vm11, %v2202_v21, %v846_v29 }
  0xd1   : > { %v840_v35 = vpop.permute.xlu1 %839 }
  0xd2   : > { %v1148_v46 = vsel %vm1144_vm11, %v1131_v22, %v840_v35 }
  0xd3   : > { %v842_v36 = vpop.permute.xlu0 %841 }
  0xd4   : > { %v1150_v0 = vsel %vm1144_vm11, %v2207_v33, %v842_v36 }
  0xd5   : > { %v848_v10 = vpop.permute.xlu1 %847 }
  0xd6   : > { %v1156_v2 = vsel %vm1144_vm11, %v1139_v25, %v848_v10 }
  0xd7   : > { %v2219_v37 = vpop.permute.xlu0 %849 }
  0xd9   : > { %v844_v39 = vpop.permute.xlu1 %843 }
  0xda   : > { %v1152_v25 = vsel %vm1144_vm11, %v2214_v27, %v844_v39  ;;  %v1158_v27 = vsel %vm1144_vm11, %v2211_v26, %v2219_v37 }
  0xdb   : > { %v886_v41 = vpop.permute.xlu0 %885 }
  0xdc   : > { %v1163_v63 = vsel %vm1161_vm12, %v1146_v56, %v886_v41 }
  0xdd   : > { %v2221_v42 = vpop.permute.xlu1 %851 }
  0xde   : > { %v1160_v39 = vsel %vm1144_vm11, %v2217_v31, %v2221_v42 }
  0xdf   : > { %v894_v14 = vpop.permute.xlu0 %893 }
  0xe0   : > { %v1171_v13 = vsel %vm1161_vm12, %v1154_v9, %v894_v14 }
  0xe1   : > { %v888_v43 = vpop.permute.xlu1 %887 }
  0xe2   : > { %v1165_v50 = vsel %vm1161_vm12, %v1148_v46, %v888_v43 }
  0xe3   : > { %v890_v44 = vpop.permute.xlu0 %889 }
  0xe4   : > { %v1167_v28 = vsel %vm1161_vm12, %v1150_v0, %v890_v44 }
  0xe5   : > { %v896_v1 = vpop.permute.xlu1 %895 }
  0xe6   : > { %v1173_v16 = vsel %vm1161_vm12, %v1156_v2, %v896_v1 }
  0xe7   : > { %v2223_v47 = vpop.permute.xlu0 %897 }
  0xe8   : > { %v1175_v1 = vsel %vm1161_vm12, %v1158_v27, %v2223_v47 }
  0xe9   : > { %v892_v24 = vpop.permute.xlu1 %891 }
  0xea   : > { %v1169_v29 = vsel %vm1161_vm12, %v1152_v25, %v892_v24 }
  0xeb   : > { %v926_v48 = vpop.permute.xlu0 %925 }
  0xec   : > { %v1180_v5 = vsel %vm1178_vm13, %v1163_v63, %v926_v48 }
  0xed   : > { %v2225_v7 = vpop.permute.xlu1 %899 }
  0xee   : > { %v1177_v24 = vsel %vm1161_vm12, %v1160_v39, %v2225_v7  ;;  %v1690_v7 = vld [vmem:[%s245_s21 + $0x8] sm:$0xff]  }
  0xef   : > { %v934_v30 = vpop.permute.xlu0 %933 }
  0xf0   : > { %v1188_v17 = vsel %vm1178_vm13, %v1171_v13, %v934_v30 }
  0xf1   : > { %v928_v49 = vpop.permute.xlu1 %927 }
  0xf2   : > { %v1182_v45 = vsel %vm1178_vm13, %v1165_v50, %v928_v49 }
  0xf3   : > { %v930_v51 = vpop.permute.xlu0 %929 }
  0xf4   : > { %v1184_v10 = vsel %vm1178_vm13, %v1167_v28, %v930_v51 }
  0xf5   : > { %v936_v20 = vpop.permute.xlu1 %935 }
  0xf6   : > { %v1190_v18 = vsel %vm1178_vm13, %v1173_v16, %v936_v20 }
  0xf7   : > { %v2227_v38 = vpop.permute.xlu0 %937 }
  0xf8   : > { %v1192_v26 = vsel %vm1178_vm13, %v1175_v1, %v2227_v38  ;;  %v1675_v38 = vld [vmem:[%s245_s21] sm:$0xff]  }
  0xf9   : > { %v932_v53 = vpop.permute.xlu1 %931  ;;  %v1677_v56 = vunpack.c.h.bf16 %v1675_v38 }
  0xfa   : > { %v1186_v41 = vsel %vm1178_vm13, %v1169_v29, %v932_v53  ;;  %v1655_v53 = vld [vmem:[%s2323_s2] ss:$0 sm:$0xff] }
  0xfb   : > { %v1022_v3 = vpop.permute.xlu0 %1021 }
  0xfc   : > { %v1197_v57 = vsel %vm1195_vm14, %v1180_v5, %v1022_v3  ;;  %v1680_v3 = vunpack.c.l.bf16 %v1690_v7 }
  0xfd   : > { %v940_v55 = vpop.permute.xlu1 %939 }
  0xfe   : > { %v1194_v37 = vsel %vm1178_vm13, %v1177_v24, %v940_v55 }
  0xff   : > { %v1030_v58 = vpop.permute.xlu0 %1029 }
 0x100   : > { %v1205_v19 = vsel %vm1195_vm14, %v1188_v17, %v1030_v58  ;;  %v1676_v58 = vunpack.c.l.bf16 %v1675_v38 }
 0x101   : > { %v1024_v59 = vpop.permute.xlu1 %1023 }
 0x102   : > { %v1199_v54 = vsel %vm1195_vm14, %v1182_v45, %v1024_v59  ;;  %v1692_v59 = vld [vmem:[%s245_s21 + $0x18] sm:$0xff]  }
 0x103   : > { %v1026_v32 = vpop.permute.xlu0 %1025 }
 0x104   : > { %v1201_v14 = vsel %vm1195_vm14, %v1184_v10, %v1026_v32 }
 0x105   : > { %v1032_v34 = vpop.permute.xlu1 %1031 }
 0x106   : > { %v1207_v22 = vsel %vm1195_vm14, %v1190_v18, %v1032_v34 }
 0x107   : > { %v1034_v40 = vpop.permute.xlu0 %1033 }
 0x108   : > { %v1209_v31 = vsel %vm1195_vm14, %v1192_v26, %v1034_v40  ;;  %v1681_v40 = vunpack.c.h.bf16 %v1690_v7 }
 0x109   : > { %v1028_v60 = vpop.permute.xlu1 %1027 }
 0x10a   : > { %v1203_v33 = vsel %vm1195_vm14, %v1186_v41, %v1028_v60  ;;  %v1691_v60 = vld [vmem:[%s245_s21 + $0x10] sm:$0xff]  }
 0x10b   : > { %v1070_v61 = vpop.permute.xlu0 %1069  ;;  %v1685_v18 = vunpack.c.h.bf16 %v1691_v60 }
 0x10c   : > { %v1214_v11 = vsel %vm1212_vm15, %v1197_v57, %v1070_v61 }
 0x10d   : > { %v1036_v62 = vpop.permute.xlu1 %1035 }
 0x10e   : > { %v1211_v42 = vsel %vm1195_vm14, %v1194_v37, %v1036_v62 }
 0x10f   : > { %v1078_v4 = vpop.permute.xlu0 %1077 }
 0x110   : > { %v1222_v52 = vsel %vm1212_vm15, %v1205_v19, %v1078_v4  ;;  %v1688_v4 = vunpack.c.l.bf16 %v1692_v59 }
 0x111   : > { %v1072_v6 = vpop.permute.xlu1 %1071 }
 0x112   : > { %v1216_v12 = vsel %vm1212_vm15, %v1199_v54, %v1072_v6  ;;  %v1684_v54 = vunpack.c.l.bf16 %v1691_v60 }
 0x113   : > { %v1656_v15 = vcombine.low %v1214_v11, %v1216_v12  ;;  %v1074_v23 = vpop.permute.xlu0 %1073  ;;  %v1689_v12 = vunpack.c.h.bf16 %v1692_v59 }
 0x114   : > { %v1218_v43 = vsel %vm1212_vm15, %v1201_v14, %v1074_v23 }
 0x115   : > { %v1080_v21 = vpop.permute.xlu1 %1079  ;;  %1712 = vmatprep.mubr.msk.bf16.mxu0 %vm1292_vm1, %v1656_v15 }
 0x116   : > { %v1224_v8 = vsel %vm1212_vm15, %v1207_v22, %v1080_v21 }
 0x117   : > { %v1658_v35 = vcombine.low %v1222_v52, %v1224_v8  ;;  %v1082_v30 = vpop.permute.xlu0 %1081 }
 0x118   : > { %v1226_v51 = vsel %vm1212_vm15, %v1209_v31, %v1082_v30 }
 0x119   : > { %v1076_v36 = vpop.permute.xlu1 %1075  ;;  %1716 = vmatprep.mubr.msk.bf16.mxu1 %vm1292_vm1, %v1658_v35 }
 0x11a   : > { %v1220_v44 = vsel %vm1212_vm15, %v1203_v33, %v1076_v36 }
 0x11b   : > { %v1657_v48 = vcombine.low %v1218_v43, %v1220_v44 }
 0x11d   : > { %v1084_v49 = vpop.permute.xlu1 %1083  ;;  %1713 = vmatmul.mubr.msk.bf16.vlgmr.msra.gmra.mrb[0].mxu0 %vm1292_vm1, %v1657_v48 }
 0x11e   : > { %v1228_v47 = vsel %vm1212_vm15, %v1211_v42, %v1084_v49 }
 0x11f   : > { %v1659_v20 = vcombine.low %v1226_v51, %v1228_v47 }
 0x121   : > { %1717 = vmatmul.mubr.msk.bf16.vlgmr.msra.gmra.mrb[0].mxu1 %vm1292_vm1, %v1659_v20 }
 0x1f0   : > { %v1714_v55 = vpop.f32.mrb[0].mxu0 }
 0x1f1   : > { %v1352_v32 = vadd.f32 %v1714_v55, %v1655_v53  ;;  %v1343_v34 = vpop.f32.mrb[1].mxu0 }
 0x1f2   : > { %v1344_v61 = vadd.f32 %v1655_v53, %v1343_v34  ;;  %v1715_v62 = vpop.f32.mrb[2].mxu0 }
 0x1f3   : > { %v1392_v46 = vadd.f32 %v1680_v3, %v1352_v32  ;;  %v1355_v63 = vadd.f32 %v1715_v62, %v1655_v53  ;;  %v1346_v50 = vpop.f32.mrb[3].mxu0 }
 0x1f4   : > { %v1390_v5 = vadd.f32 %v1676_v58, %v1344_v61  ;;  %v1347_v45 = vadd.f32 %v1655_v53, %v1346_v50  ;;  %v1718_v57 = vpop.f32.mrb[0].mxu1 }
 0x1f5   : > { %v1400_v6 = vmax.f32 %v1392_v46, 0.0  ;;  %v1393_v9 = vadd.f32 %v1681_v40, %v1355_v63  ;;  %v1368_v2 = vadd.f32 %v1718_v57, %v1655_v53  ;;  %v1359_v11 = vpop.f32.mrb[1].mxu1 }
 0x1f6   : > { %v1398_v13 = vmax.f32 %v1390_v5, 0.0  ;;  %v1391_v16 = vadd.f32 %v1677_v56, %v1347_v45  ;;  %v1360_v15 = vadd.f32 %v1655_v53, %v1359_v11  ;;  %v1719_v17 = vpop.f32.mrb[2].mxu1 }
 0x1f7   : > { %v1408_v19 = vpack.c.bf16 %v1400_v6, %v1400_v6  ;;  %v1401_v22 = vmax.f32 %v1393_v9, 0.0  ;;  %v1396_v21 = vadd.f32 %v1688_v4, %v1368_v2  ;;  %v1371_v23 = vadd.f32 %v1719_v17, %v1655_v53  ;;  %v1362_v0 = vpop.f32.mrb[3].mxu1 }
 0x1f8   : > { %v1406_v25 = vpack.c.bf16 %v1398_v13, %v1398_v13  ;;  %v1399_v52 = vmax.f32 %v1391_v16, 0.0  ;;  %v1394_v8 = vadd.f32 %v1684_v54, %v1360_v15  ;;  %v1363_v28 = vadd.f32 %v1655_v53, %v1362_v0 }
 0x1f9   : > { %1417 = vst.msk [vmem:[%s2294_s26 + $0x8] sm:$0xf] %vm262_vm0, %v1408_v19  ;;  %v1409_v29 = vpack.c.bf16 %v1401_v22, %v1401_v22  ;;  %v1404_v35 = vmax.f32 %v1396_v21, 0.0  ;;  %v1397_v10 = vadd.f32 %v1689_v12, %v1371_v23 }
 0x1fa   : > { %1415 = vst.msk [vmem:[%s2294_s26] sm:$0xf] %vm262_vm0, %v1406_v25  ;;  %v1407_v41 = vpack.c.bf16 %v1399_v52, %v1399_v52  ;;  %v1402_v14 = vmax.f32 %v1394_v8, 0.0  ;;  %v1395_v33 = vadd.f32 %v1685_v18, %v1363_v28 }
 0x1fb   : > { %1418 = vst.msk [vmem:[%s2294_s26 + $0xc] sm:$0xf] %vm262_vm0, %v1409_v29  ;;  %v1412_v36 = vpack.c.bf16 %v1404_v35, %v1404_v35  ;;  %v1405_v27 = vmax.f32 %v1397_v10, 0.0 }
 0x1fc   : > { %1416 = vst.msk [vmem:[%s2294_s26 + $0x4] sm:$0xf] %vm262_vm0, %v1407_v41  ;;  %v1410_v39 = vpack.c.bf16 %v1402_v14, %v1402_v14  ;;  %v1403_v43 = vmax.f32 %v1395_v33, 0.0 }
 0x1fd   : > { %1421 = vst.msk [vmem:[%s2294_s26 + $0x18] sm:$0xf] %vm262_vm0, %v1412_v36  ;;  %v1413_v44 = vpack.c.bf16 %v1405_v27, %v1405_v27 }
 0x1fe   : > { %1419 = vst.msk [vmem:[%s2294_s26 + $0x10] sm:$0xf] %vm262_vm0, %v1410_v39  ;;  %v1411_v1 = vpack.c.bf16 %v1403_v43, %v1403_v43 }
 0x1ff   : > { %1422 = vst.msk [vmem:[%s2294_s26 + $0x1c] sm:$0xf] %vm262_vm0, %v1413_v44 }
 0x200   : > { %1420 = vst.msk [vmem:[%s2294_s26 + $0x14] sm:$0xf] %vm262_vm0, %v1411_v1 }
 0x201 PF: > { %s14_s17 = sadd.s32 1, %s1855_s17   ;;  %s2332_s15 = smov %s1851_s16 }
 0x202   : > { %p11_p5 = scmp.ge.s32.totalorder %s14_s17, 4   ;;  %s2333_s16 = smov %s2335_s18 }
 0x204   :  { %13 = sbr.rel (!%p11_p5) target bundleno = 2 (0x2), region = 78 }

// kernel: tree_forward_pallas.7
= control target key start
LH: loop header
LB: loop body
LE: loop exit
PB: predicated region body
PF: predicated region fallthrough
CT: control target
= control target key end

     0   :  { %12 = vsyncpa [#allocation4], 0  ;;  %s3073_s0 = inlined_call_operand.vmem [shape: bf16[2,8,8,8], index: 0, kind: input, shape index: {}]   ;;  %s3074_s1 = inlined_call_operand.vmem [shape: bf16[72,8], index: 1, kind: input, shape index: {}]   ;;  %s3075_s2 = inlined_call_operand.vmem [shape: f32[1,8], index: 2, kind: input, shape index: {}]   ;;  %s3076_s3 = inlined_call_operand.vmem [shape: bf16[2,8,8,8], index: 3, kind: input, shape index: {}]   ;;  %s3077_s4 = inlined_call_operand.vmem [shape: bf16[2,8,8,4], index: 4, kind: input, shape index: {}]   ;;  %s3078_s5 = inlined_call_operand.vmem [shape: bf16[20,8], index: 5, kind: input, shape index: {}]   ;;  %s3079_s6 = inlined_call_operand.vmem [shape: f32[1,8], index: 6, kind: input, shape index: {}]   ;;  %s3080_s7 = inlined_call_operand.hbm [shape: bf16[2,8,8,8], index: 7, kind: output, shape index: {}]  }
   0x1   :  { %14 = vsyncpa [#allocation4 + $0x1], 0  ;;  %s2466_s24 = smov 0   ;;  %s2468_s25 = smov 0  }
   0x2   :  { %s2470_s26 = smov 0   ;;  %s2472_s27 = smov 0  }
   0x3   :  { %s2474_s28 = smov 0   ;;  %s2476_s29 = smov 0  }
   0x4 LB: > { %s1946_s30 = sadd.s32 4294967295, %s2413_s29   ;;  %s1947_s8 = sadd.s32 4294967294, %s2413_s29   ;;  %s2413_s29 = sphi %s2476_s29, %s20_s29   ;;  %s2409_s28 = sphi %s2474_s28, %s3093_s28   ;;  %s2405_s27 = sphi %s2472_s27, %s3092_s27   ;;  %s2401_s26 = sphi %s2470_s26, %s3091_s26   ;;  %s2397_s25 = sphi %s2468_s25, %s3090_s25   ;;  %s2393_s24 = sphi %s2466_s24, %s3089_s24  }
   0x5   : > { %s32_s9 = sadd.s32 1, %s2409_s28  ;;  %s207_s10 = sadd.s32 1, %s2401_s26 }
   0x6   : > { %p34_p0 = scmp.ge.s32.totalorder %s32_s9, 2  ;;  %p217_p1 = scmp.ne.s32.totalorder %s2401_s26, %s2397_s25 }
   0x7   : > { %p218_p2 = scmp.eq.s32.totalorder %s1946_s30, 1  ;;  %p223_p3 = scmp.ne.s32.totalorder %s2397_s25, %s2393_s24 }
   0x8   : > { %s3095_s9 = smov (%p34_p0, %s32_s9), 0  ;;  %p224_p5 = scmp.eq.s32.totalorder %s1947_s8, 1 }
   0x9   : > { %p2506_p4 = por %p218_p2, %p217_p1  ;;  %s202_s12 = ssub.s32 %s2409_s28, %s3095_s9 }
   0xa   : > { %p1950_p6 = scmp.ge.s32.totalorder %s2413_s29, 1  ;;  %p205_p7 = scmp.eq.s32.totalorder %s202_s12, 0 }
   0xb   : > { %p2513_p8 = por %p224_p5, %p223_p3  ;;  %p288_p9 = scmp.lt.s32.totalorder %s2413_s29, 3 }
   0xc   : > { %s2519_s14 = scalar_select %p205_p7, %s2401_s26, %s207_s10  }
   0xd   : > { %p289_p10 = pnand %p1950_p6, %p288_p9 }
   0xe   : > { %vm369_vm0 = vcmask (!%p289_p10), 60416   ;;  %vm371_vm1 = vcmask (!%p289_p10), 57344   ;;  %vm377_vm2 = vsmask.f32 (!%p289_p10), 256  ;;  %v2415_v0 = vmov (!%p289_p10), 0   ;;  %p338_p11 = scmp.lt.s32.totalorder (!%p289_p10), %s2405_s27, 1 }
   0xf   : > { %292 = sbr.rel (%p289_p10) target bundleno = 752 (0x2f0), region = 48  ;;  %370 = vst.msk [vmem:[#allocation2] sm:$0xf] (!%p289_p10), %vm369_vm0, %v2415_v0  ;;  %vm2522_vm3 = vmand (!%p289_p10), %vm371_vm1, %vm377_vm2  ;;  %vm409_vm4 = vsmask.f32 (!%p289_p10), 7938  ;;  %s2416_s20 = smov (!%p289_p10), 16  }
  0x10   : > { %372 = vst.msk [vmem:[#allocation2 + $0x4] sm:$0x1] (!%p289_p10), %vm371_vm1, %v2415_v0  ;;  %375 = vst.msk [vmem:[#allocation2 + $0x4c] sm:$0x1] (!%p289_p10), %vm371_vm1, %v2415_v0  ;;  %v385_v2 = vld [vmem:[#allocation2 + $0x10] sm:$0x1] (!%p289_p10) }
  0x11   : > { %374 = vst.msk [vmem:[#allocation2 + $0x48] sm:$0xf] (!%p289_p10), %vm369_vm0, %v2415_v0  ;;  %vm2529_vm5 = vmand (!%p289_p10), %vm371_vm1, %vm409_vm4  ;;  %v386_v4 = vsel (!%p289_p10), %vm2522_vm3, 0, %v385_v2  ;;  %v417_v5 = vld [vmem:[#allocation2 + $0x14] sm:$0x1] (!%p289_p10)  ;;  %s2417_s21 = smov (!%p289_p10), 24  }
  0x12   : > { %v382_v6 = vld [vmem:[#allocation2 + $0x8] sm:$0x1] (!%p289_p10)  ;;  %387 = vst [vmem:[#allocation2 + $0x10] sm:$0x1] (!%p289_p10), %v386_v4  ;;  %v418_v7 = vsel (!%p289_p10), %vm2529_vm5, 0, %v417_v5  ;;  %vm2568_vm6 = vmand (!%p289_p10), %vm369_vm0, %vm409_vm4  ;;  %s2418_s22 = smov (!%p289_p10), 8  }
  0x13   : > { %v383_v8 = vsel (!%p289_p10), %vm2522_vm3, 0, %v382_v6  ;;  %v414_v9 = vld [vmem:[#allocation2 + $0xc] sm:$0x1] (!%p289_p10)  ;;  %419 = vst [vmem:[#allocation2 + $0x14] sm:$0x1] (!%p289_p10), %v418_v7  ;;  %s2419_s23 = smov (!%p289_p10), 32  }
  0x14   : > { %384 = vst [vmem:[#allocation2 + $0x8] sm:$0x1] (!%p289_p10), %v383_v8  ;;  %v415_v10 = vsel (!%p289_p10), %vm2529_vm5, 0, %v414_v9  ;;  %v391_v11 = vld [vmem:[#allocation2 + $0x20] sm:$0x1] (!%p289_p10)  ;;  %s2420_s30 = smov (!%p289_p10), 40  }
  0x15   : > { %v423_v12 = vld [vmem:[#allocation2 + $0x24] sm:$0x1] (!%p289_p10)  ;;  %416 = vst [vmem:[#allocation2 + $0xc] sm:$0x1] (!%p289_p10), %v415_v10  ;;  %v392_v13 = vsel (!%p289_p10), %vm2522_vm3, 0, %v391_v11  ;;  %s2421_s12 = smov (!%p289_p10), 48  }
  0x16   : > { %s339_s15 = scalar_select %p338_p11, %s2405_s27, 1  ;;  %v424_v14 = vsel %vm2529_vm5, 0, %v423_v12  ;;  %v388_v15 = vld [vmem:[#allocation2 + $0x18] sm:$0x1]  ;;  %393 = vst [vmem:[#allocation2 + $0x20] sm:$0x1] %v392_v13 }
  0x17   : > { %425 = vst [vmem:[#allocation2 + $0x24] sm:$0x1] %v424_v14  ;;  %v389_v16 = vsel %vm2522_vm3, 0, %v388_v15  ;;  %v420_v17 = vld [vmem:[#allocation2 + $0x1c] sm:$0x1]  ;;  %s2422_s8 = smov 56  }
  0x18   : > { %s2542_s16 = sshll.u32 %s339_s15, 5  ;;  %390 = vst [vmem:[#allocation2 + $0x18] sm:$0x1] %v389_v16  ;;  %v411_v21 = vld [vmem:[#allocation2 + $0x4] sm:$0x1]  ;;  %v421_v37 = vsel %vm2529_vm5, 0, %v420_v17 }
  0x19   : > { %s2552_s19 = scalar_lea.vmem %s3073_s0, %s2542_s16  ;;  %v379_v22 = vld [vmem:[#allocation2] sm:$0x1]  ;;  %v394_v23 = vld [vmem:[#allocation2 + $0x28] sm:$0x1]  ;;  %v412_v24 = vsel %vm2529_vm5, 0, %v411_v21  ;;  %vm1420_vm7 = vcmask 1043456   ;;  %s2791_s15 = scalar_lea.vmem %s3077_s4, %s2542_s16 }
  0x1a   : > { %v442_v18 = vld [vmem:[%s2552_s19 + $0x4] sm:$0xf]  ;;  %v441_v19 = vld [vmem:[%s2552_s19] sm:$0xf]  ;;  %v444_v20 = vld [vmem:[%s2552_s19 + $0xc] sm:$0xf] }
  0x1b   : > { %v380_v25 = vsel %vm2522_vm3, 0, %v379_v22  ;;  %v458_v26 = vshrl.u32 %v442_v18, 16  ;;  %v461_v27 = vshll.u32 %v442_v18, 16  ;;  %v443_v28 = vld [vmem:[%s2552_s19 + $0x8] sm:$0xf]  ;;  %v450_v30 = vshrl.u32 %v441_v19, 16 }
  0x1c   : > { %413 = vst [vmem:[#allocation2 + $0x4] sm:$0x1] %v412_v24  ;;  %381 = vst [vmem:[#allocation2] sm:$0x1] %v380_v25  ;;  %v538_v29 = vld [vmem:[#allocation2 + $0x10] sm:$0xf] }
  0x1d   : > { %v453_v31 = vshll.u32 %v441_v19, 16  ;;  %v474_v32 = vshrl.u32 %v444_v20, 16  ;;  %v477_v33 = vshll.u32 %v444_v20, 16  ;;  %v460_v34 = vrot.slane %v458_v26, 7  ;;  %v541_v35 = vld [vmem:[#allocation2 + $0x14] sm:$0x1] }
  0x1e   : > { %v532_v36 = vld [vmem:[#allocation2 + $0x8] sm:$0xf]  ;;  %v452_v39 = vrot.slane %v450_v30, 7  ;;  %v535_v40 = vld [vmem:[#allocation2 + $0xc] sm:$0x1]  ;;  %v466_v42 = vshrl.u32 %v443_v28, 16 }
  0x1f   : > { %v476_v41 = vrot.slane %v474_v32, 7  ;;  %422 = vst [vmem:[#allocation2 + $0x1c] sm:$0x1] %v421_v37  ;;  %v469_v43 = vshll.u32 %v443_v28, 16  ;;  %v463_v44 = vor.u32 %v461_v27, %v460_v34  ;;  %v464_v45 = vrot.slane %v460_v34, 4  ;;  %s2424_s18 = smov [#allocation3]  }
  0x20   : > { %v550_v46 = vld [vmem:[#allocation2 + $0x20] sm:$0xf]  ;;  %v553_v47 = vld [vmem:[#allocation2 + $0x24] sm:$0x1]  ;;  %v395_v48 = vsel %vm2522_vm3, 0, %v394_v23  ;;  %v455_v49 = vor.u32 %v453_v31, %v452_v39  ;;  %v456_v50 = vrot.slane %v452_v39, 4 }
  0x21   : > { %v479_v51 = vor.u32 %v477_v33, %v476_v41  ;;  %v480_v52 = vrot.slane %v476_v41, 4  ;;  %396 = vst [vmem:[#allocation2 + $0x28] sm:$0x1] %v395_v48  ;;  %v426_v53 = vld [vmem:[#allocation2 + $0x2c] sm:$0x1]  ;;  %v539_v55 = vsel %vm2568_vm6, %v463_v44, %v538_v29  ;;  %v542_v56 = vsel %vm2522_vm3, %v464_v45, %v541_v35 }
  0x22   : > { %v600_v54 = vld [vmem:[#allocation2] sm:$0xe]  ;;  %v468_v57 = vrot.slane %v466_v42, 7  ;;  %v427_v58 = vsel %vm2529_vm5, 0, %v426_v53  ;;  %v445_v59 = vld [vmem:[%s2552_s19 + $0x10] sm:$0xf]  ;;  %v533_v60 = vsel %vm2568_vm6, %v455_v49, %v532_v36  ;;  %v536_v61 = vsel %vm2522_vm3, %v456_v50, %v535_v40 }
  0x23   : > { %540 = vst [vmem:[#allocation2 + $0x10] sm:$0xf] %v539_v55  ;;  %543 = vst [vmem:[#allocation2 + $0x14] sm:$0x1] %v542_v56  ;;  %v551_v62 = vsel %vm2568_vm6, %v479_v51, %v550_v46  ;;  %v554_v63 = vsel %vm2522_vm3, %v480_v52, %v553_v47  ;;  %v544_v0 = vld [vmem:[#allocation2 + $0x18] sm:$0xf] }
  0x24   : > { %428 = vst [vmem:[#allocation2 + $0x2c] sm:$0x1] %v427_v58  ;;  %v397_v2 = vld [vmem:[#allocation2 + $0x30] sm:$0x1]  ;;  %v429_v4 = vld [vmem:[#allocation2 + $0x34] sm:$0x1]  ;;  %v471_v7 = vor.u32 %v469_v43, %v468_v57 }
  0x25   : > { %v592_v5 = vld [vmem:[#allocation2 + $0x4] sm:$0x1]  ;;  %v584_v6 = vld [vmem:[#allocation2] sm:$0xf]  ;;  %534 = vst [vmem:[#allocation2 + $0x8] sm:$0xf] %v533_v60 }
  0x26   : > { %537 = vst [vmem:[#allocation2 + $0xc] sm:$0x1] %v536_v61  ;;  %552 = vst [vmem:[#allocation2 + $0x20] sm:$0xf] %v551_v62  ;;  %v472_v8 = vrot.slane %v468_v57, 4  ;;  %v482_v9 = vshrl.u32 %v445_v59, 16  ;;  %v2014_v10 = vcombine.low %v600_v54, %v592_v5  ;;  %v2589_v11 = vcombine.low %v584_v6, %v592_v5 }
  0x27   : > { %555 = vst [vmem:[#allocation2 + $0x24] sm:$0x1] %v554_v63  ;;  %v485_v12 = vshll.u32 %v445_v59, 16  ;;  %v398_v13 = vsel %vm2522_vm3, 0, %v397_v2  ;;  %v400_v14 = vld [vmem:[#allocation2 + $0x38] sm:$0x1]  ;;  %v545_v15 = vsel %vm2568_vm6, %v471_v7, %v544_v0 }
  0x28   : > { %v547_v16 = vld [vmem:[#allocation2 + $0x1c] sm:$0x1]  ;;  %v2595_v17 = vrot.slane %v482_v9, 7  ;;  %399 = vst [vmem:[#allocation2 + $0x30] sm:$0x1] %v398_v13  ;;  %v430_v18 = vsel %vm2529_vm5, 0, %v429_v4 }
  0x29   : > { %v432_v19 = vld [vmem:[#allocation2 + $0x3c] sm:$0x1]  ;;  %v800_v20 = vrot.slane %v2014_v10, 1  ;;  %546 = vst [vmem:[#allocation2 + $0x18] sm:$0xf] %v545_v15  ;;  %v548_v21 = vsel %vm2522_vm3, %v472_v8, %v547_v16  ;;  %v707_v24 = vshll.u32 %v2589_v11, 16 }
  0x2a   : > { %431 = vst [vmem:[#allocation2 + $0x34] sm:$0x1] %v430_v18  ;;  %549 = vst [vmem:[#allocation2 + $0x1c] sm:$0x1] %v548_v21  ;;  %v487_v22 = vor.u32 %v485_v12, %v2595_v17  ;;  %v556_v23 = vld [vmem:[#allocation2 + $0x28] sm:$0xf] }
  0x2b   : > { %808 = vrot.lane.b32.xlu0 %v800_v20, %s2416_s20  ;;  %v401_v25 = vsel %vm2522_vm3, 0, %v400_v14  ;;  %v433_v26 = vsel %vm2529_vm5, 0, %v432_v19  ;;  %v1959_v27 = vld [vmem:[#allocation2 + $0x10] sm:$0xf]  ;;  %v705_v40 = vshrl.u32 %v2589_v11, 16  ;;  %v709_v41 = vrot.slane %v707_v24, 1 }
  0x2c   : > { %v557_v28 = vsel %vm2568_vm6, %v487_v22, %v556_v23  ;;  %402 = vst [vmem:[#allocation2 + $0x38] sm:$0x1] %v401_v25  ;;  %434 = vst [vmem:[#allocation2 + $0x3c] sm:$0x1] %v433_v26  ;;  %v2023_v29 = vcombine.low %v1959_v27, %v1959_v27  ;;  %v1958_v30 = vld [vmem:[#allocation2 + $0x8] sm:$0xf] }
  0x2d   : > { %v1961_v31 = vld [vmem:[#allocation2 + $0x20] sm:$0xf]  ;;  %v2610_v32 = vld [vmem:[#allocation2 + $0x10] sm:$0xf]  ;;  %558 = vst [vmem:[#allocation2 + $0x28] sm:$0xf] %v557_v28  ;;  %v2022_v33 = vcombine.low %v1958_v30, %v1958_v30  ;;  %v710_v60 = vor.u32 %v709_v41, %v705_v40 }
  0x2e   : > { %v593_v34 = vld [vmem:[#allocation2 + $0xc] sm:$0x1]  ;;  %v601_v35 = vld [vmem:[#allocation2 + $0x8] sm:$0xe]  ;;  %850 = vrot.lane.b32.xlu1 %v2023_v29, %s2417_s21  ;;  %v2025_v36 = vcombine.low %v1961_v31, %v1961_v31  ;;  %v594_v42 = vld [vmem:[#allocation2 + $0x14] sm:$0x1] }
  0x2f   : > { %v2015_v37 = vcombine.low %v601_v35, %v593_v34  ;;  %v2613_v39 = vld [vmem:[#allocation2 + $0x8] sm:$0xf]  ;;  %848 = vrot.lane.b32.xlu0 %v2022_v33, %s2417_s21  ;;  %v2008_v47 = vcombine.low %v2610_v32, %v594_v42  ;;  %v2621_v48 = vld [vmem:[#allocation2 + $0xc] sm:$0x1]  ;;  %v602_v51 = vld [vmem:[#allocation2 + $0x10] sm:$0xe] }
  0x30   : > { %v1960_v43 = vld [vmem:[#allocation2 + $0x18] sm:$0xf]  ;;  %v2007_v44 = vcombine.low %v2613_v39, %v593_v34  ;;  %v446_v52 = vld [vmem:[%s2552_s19 + $0x14] sm:$0xf]  ;;  %v2030_v59 = vcombine.low %v1958_v30, %v2621_v48  ;;  %v2016_v61 = vcombine.low %v602_v51, %v594_v42  ;;  %v2635_v8 = vld [vmem:[#allocation2 + $0x24] sm:$0x1] }
  0x31   : > { %v2618_v45 = vld [vmem:[#allocation2 + $0x18] sm:$0xf]  ;;  %v2024_v49 = vcombine.low %v1960_v43, %v1960_v43  ;;  %v595_v50 = vld [vmem:[#allocation2 + $0x1c] sm:$0x1]  ;;  %v2624_v53 = vld [vmem:[#allocation2 + $0x14] sm:$0x1]  ;;  %v2033_v19 = vcombine.low %v1961_v31, %v2635_v8 }
  0x32   : > { %v603_v46 = vld [vmem:[#allocation2 + $0x18] sm:$0xe]  ;;  %854 = vrot.lane.b32.xlu1 %v2025_v36, %s2417_s21  ;;  %v2627_v54 = vld [vmem:[#allocation2 + $0x1c] sm:$0x1]  ;;  %v801_v55 = vrot.slane %v2015_v37, 1  ;;  %v2009_v56 = vcombine.low %v2618_v45, %v595_v50  ;;  %v721_v58 = vshll.u32 %v2008_v47, 16  ;;  %v2031_v63 = vcombine.low %v1959_v27, %v2624_v53 }
  0x33   : > { %v2017_v57 = vcombine.low %v603_v46, %v595_v50  ;;  %852 = vrot.lane.b32.xlu0 %v2024_v49, %s2417_s21  ;;  %v714_v62 = vshll.u32 %v2007_v44, 16  ;;  %v2032_v0 = vcombine.low %v1960_v43, %v2627_v54  ;;  %v490_v2 = vshrl.u32 %v446_v52, 16  ;;  %v559_v15 = vld [vmem:[#allocation2 + $0x2c] sm:$0x1]  ;;  %v447_v27 = vld [vmem:[%s2552_s19 + $0x18] sm:$0xf] }
  0x34   : > { %v719_v5 = vshrl.u32 %v2008_v47, 16  ;;  %v723_v6 = vrot.slane %v721_v58, 1  ;;  %v728_v7 = vshll.u32 %v2009_v56, 16  ;;  %v802_v9 = vrot.slane %v2016_v61, 1  ;;  %v562_v40 = vld [vmem:[#allocation2 + $0x30] sm:$0xf] }
  0x35   : > { %v803_v4 = vrot.slane %v2017_v57, 1  ;;  %v712_v10 = vshrl.u32 %v2007_v44, 16  ;;  %v716_v11 = vrot.slane %v714_v62, 1  ;;  %v891_v12 = vshll.u32 %v2030_v59, 16  ;;  %v1974_v41 = vld [vmem:[#allocation2 + $0x8] sm:$0xe] }
  0x36   : > { %810 = vrot.lane.b32.xlu1 %v801_v55, %s2416_s20  ;;  %v488_v13 = vrot.slane %v2595_v17, 4  ;;  %v898_v14 = vshll.u32 %v2031_v63, 16  ;;  %v492_v16 = vrot.slane %v490_v2, 7  ;;  %v493_v18 = vshll.u32 %v446_v52, 16  ;;  %v565_v42 = vld [vmem:[#allocation2 + $0x34] sm:$0x1] }
  0x37   : > { %760 = vrot.lane.b32.xlu0 %v710_v60, %s2418_s22  ;;  %v724_v20 = vor.u32 %v723_v6, %v719_v5  ;;  %v726_v21 = vshrl.u32 %v2009_v56, 16  ;;  %v730_v22 = vrot.slane %v728_v7, 1  ;;  %v717_v23 = vor.u32 %v716_v11, %v712_v10  ;;  %v403_v46 = vld [vmem:[#allocation2 + $0x40] sm:$0x1]  ;;  %v1975_v56 = vld [vmem:[#allocation2 + $0x10] sm:$0xe] }
  0x38   : > { %v889_v24 = vshrl.u32 %v2030_v59, 16  ;;  %v893_v25 = vrot.slane %v891_v12, 1  ;;  %v905_v26 = vshll.u32 %v2032_v0, 16  ;;  %v560_v17 = vsel %vm2522_vm3, %v488_v13, %v559_v15  ;;  %v571_v59 = vld [vmem:[#allocation2 + $0x3c] sm:$0x1] }
  0x39   : > { %v896_v28 = vshrl.u32 %v2031_v63, 16  ;;  %v900_v29 = vrot.slane %v898_v14, 1  ;;  %561 = vst [vmem:[#allocation2 + $0x2c] sm:$0x1] %v560_v17  ;;  %v731_v30 = vor.u32 %v730_v22, %v726_v21  ;;  %v912_v31 = vshll.u32 %v2033_v19, 16 }
  0x3a   : > { %814 = vrot.lane.b32.xlu1 %v803_v4, %s2416_s20  ;;  %v495_v33 = vor.u32 %v493_v18, %v492_v16  ;;  %v498_v34 = vshrl.u32 %v447_v27, 16  ;;  %v894_v35 = vor.u32 %v893_v25, %v889_v24  ;;  %v903_v36 = vshrl.u32 %v2032_v0, 16  ;;  %v1976_v60 = vld [vmem:[#allocation2 + $0x18] sm:$0xe]  ;;  %v435_v2 = vld [vmem:[#allocation2 + $0x44] sm:$0x1] }
  0x3b   : > { %812 = vrot.lane.b32.xlu0 %v802_v9, %s2416_s20  ;;  %v907_v37 = vrot.slane %v905_v26, 1  ;;  %v901_v43 = vor.u32 %v900_v29, %v896_v28  ;;  %v496_v44 = vrot.slane %v492_v16, 4  ;;  %v910_v47 = vshrl.u32 %v2033_v19, 16  ;;  %v568_v0 = vld [vmem:[#allocation2 + $0x38] sm:$0xf] }
  0x3c   : > { %v914_v49 = vrot.slane %v912_v31, 1  ;;  %v563_v50 = vsel %vm2568_vm6, %v495_v33, %v562_v40  ;;  %v500_v51 = vrot.slane %v498_v34, 7  ;;  %v2038_v55 = vcombine.low %v1974_v41, %v2621_v48  ;;  %v448_v6 = vld [vmem:[%s2552_s19 + $0x1c] sm:$0xf]  ;;  %v1977_v10 = vld [vmem:[#allocation2 + $0x20] sm:$0xe] }
  0x3d   : > { %v908_v52 = vor.u32 %v907_v37, %v903_v36  ;;  %564 = vst [vmem:[#allocation2 + $0x30] sm:$0xf] %v563_v50  ;;  %v566_v57 = vsel %vm2522_vm3, %v496_v44, %v565_v42  ;;  %v501_v58 = vshll.u32 %v447_v27, 16  ;;  %v404_v62 = vsel %vm2522_vm3, 0, %v403_v46  ;;  %v2663_v11 = vld [vmem:[#allocation2 + $0x14] sm:$0x1] }
  0x3e   : > { %764 = vrot.lane.b32.xlu1 %v724_v20, %s2418_s22  ;;  %567 = vst [vmem:[#allocation2 + $0x34] sm:$0x1] %v566_v57  ;;  %v504_v61 = vrot.slane %v500_v51, 4  ;;  %405 = vst [vmem:[#allocation2 + $0x40] sm:$0x1] %v404_v62  ;;  %v915_v48 = vor.u32 %v914_v49, %v910_v47  ;;  %v2039_v4 = vcombine.low %v1975_v56, %v2624_v53  ;;  %v984_v7 = vrot.slane %v2038_v55, 1 }
  0x3f   : > { %762 = vrot.lane.b32.xlu0 %v717_v23, %s2418_s22  ;;  %v503_v63 = vor.u32 %v501_v58, %v500_v51  ;;  %v2040_v9 = vcombine.low %v1976_v60, %v2627_v54  ;;  %v436_v13 = vsel %vm2529_vm5, 0, %v435_v2  ;;  %v506_v53 = vshrl.u32 %v448_v6, 16  ;;  %v1982_v54 = vld [vmem:[#allocation2 + $0x10] sm:$0xf]  ;;  %v2673_v20 = vld [vmem:[#allocation2 + $0x1c] sm:$0x1] }
  0x40   : > { %v572_v5 = vsel %vm2522_vm3, %v504_v61, %v571_v59  ;;  %437 = vst [vmem:[#allocation2 + $0x44] sm:$0x1] %v436_v13  ;;  %v509_v14 = vshll.u32 %v448_v6, 16  ;;  %v985_v15 = vrot.slane %v2039_v4, 1  ;;  %v2041_v16 = vcombine.low %v1977_v10, %v2635_v8  ;;  %v2675_v22 = vld [vmem:[#allocation2 + $0x24] sm:$0x1] }
  0x41   : > { %573 = vst [vmem:[#allocation2 + $0x3c] sm:$0x1] %v572_v5  ;;  %v569_v12 = vsel %vm2568_vm6, %v503_v63, %v568_v0  ;;  %v986_v18 = vrot.slane %v2040_v9, 1  ;;  %v2054_v19 = vcombine.low %v1982_v54, %v2663_v11  ;;  %v508_v21 = vrot.slane %v506_v53, 7  ;;  %v1983_v24 = vld [vmem:[#allocation2 + $0x18] sm:$0xf] }
  0x42   : > { %766 = vrot.lane.b32.xlu1 %v731_v30, %s2418_s22  ;;  %570 = vst [vmem:[#allocation2 + $0x38] sm:$0xf] %v569_v12  ;;  %v406_v26 = vld [vmem:[#allocation2 + $0x48] sm:$0x1]  ;;  %v987_v27 = vrot.slane %v2041_v16, 1  ;;  %v2055_v8 = vcombine.low %v1983_v24, %v2673_v20  ;;  %v2046_v29 = vcombine.low %v1982_v54, %v1982_v54  ;;  %v2311_v41 = vld [vmem:[%s3074_s1] sm:$0xff]   ;;  %v2047_v42 = vcombine.low %v1983_v24, %v1983_v24 }
  0x43   : > { %944 = vrot.lane.b32.xlu0 %v894_v35, %s2419_s23  ;;  %v511_v25 = vor.u32 %v509_v14, %v508_v21  ;;  %v1984_v17 = vld [vmem:[#allocation2 + $0x20] sm:$0xf]  ;;  %v512_v28 = vrot.slane %v508_v21, 4  ;;  %v2681_v31 = vld [vmem:[#allocation2 + $0x2c] sm:$0x1]  ;;  %v1075_v33 = vshll.u32 %v2054_v19, 16  ;;  %2151 = vmatprep.subr.bf16.mxu0 %v2311_v41 }
  0x44   : > { %v2056_v30 = vcombine.low %v1984_v17, %v2675_v22  ;;  %v1985_v35 = vld [vmem:[#allocation2 + $0x28] sm:$0xf]  ;;  %v407_v36 = vsel %vm2522_vm3, 0, %v406_v26  ;;  %v2687_v37 = vld [vmem:[#allocation2 + $0x20] sm:$0xf]  ;;  %v1082_v38 = vshll.u32 %v2055_v8, 16  ;;  %v2048_v49 = vcombine.low %v1984_v17, %v1984_v17  ;;  %2152 = vmatpush3.bf16.msra.mxu0 %v2311_v41 }
  0x45   : > { %v574_v23 = vld [vmem:[#allocation2 + $0x40] sm:$0xf]  ;;  %408 = vst [vmem:[#allocation2 + $0x48] sm:$0x1] %v407_v36  ;;  %v2694_v44 = vld [vmem:[#allocation2 + $0x24] sm:$0x1]  ;;  %v2049_v57 = vcombine.low %v1985_v35, %v1985_v35 }
  0x46   : > { %946 = vrot.lane.b32.xlu1 %v901_v43, %s2419_s23  ;;  %v575_v34 = vsel %vm2568_vm6, %v511_v25, %v574_v23  ;;  %v2057_v43 = vcombine.low %v1985_v35, %v2681_v31  ;;  %v438_v47 = vld [vmem:[#allocation2 + $0x4c] sm:$0x1]  ;;  %v1073_v50 = vshrl.u32 %v2054_v19, 16  ;;  %v1077_v51 = vrot.slane %v1075_v33, 1  ;;  %v1998_v61 = vld [vmem:[#allocation2 + $0x10] sm:$0xe] }
  0x47   : > { %948 = vrot.lane.b32.xlu0 %v908_v52, %s2419_s23  ;;  %576 = vst [vmem:[#allocation2 + $0x40] sm:$0xf] %v575_v34  ;;  %v577_v40 = vld [vmem:[#allocation2 + $0x44] sm:$0x1]  ;;  %v1089_v52 = vshll.u32 %v2056_v30, 16  ;;  %v2312_v55 = vld [vmem:[%s3074_s1 + $0x8] sm:$0xff]   ;;  %v2010_v56 = vcombine.low %v2687_v37, %v2694_v44  ;;  %v2062_v4 = vcombine.low %v1998_v61, %v2663_v11 }
  0x48   : > { %v578_v46 = vsel %vm2522_vm3, %v512_v28, %v577_v40  ;;  %v439_v1 = vsel %vm2529_vm5, 0, %v438_v47  ;;  %2153 = vmatprep.subr.bf16.mxu0 %v2312_v55  ;;  %v1080_v58 = vshrl.u32 %v2055_v8, 16  ;;  %v1084_v59 = vrot.slane %v1082_v38, 1  ;;  %v2313_v62 = vld [vmem:[%s3074_s1 + $0x10] sm:$0xff]   ;;  %v2711_v3 = vld [vmem:[#allocation2 + $0x28] sm:$0xf] }
  0x49   : > { %579 = vst [vmem:[#allocation2 + $0x44] sm:$0x1] %v578_v46  ;;  %v1096_v60 = vshll.u32 %v2057_v43, 16  ;;  %440 = vst [vmem:[#allocation2 + $0x4c] sm:$0x1] %v439_v1  ;;  %v1078_v63 = vor.u32 %v1077_v51, %v1073_v50  ;;  %v1087_v0 = vshrl.u32 %v2056_v30, 16  ;;  %2154 = vmatpush3.bf16.msra.mxu0 %v2312_v55 }
  0x4a   : > { %950 = vrot.lane.b32.xlu1 %v915_v48, %s2419_s23  ;;  %v1091_v2 = vrot.slane %v1089_v52, 1  ;;  %v2713_v48 = vld [vmem:[#allocation2 + $0x2c] sm:$0x1]  ;;  %v735_v5 = vshll.u32 %v2010_v56, 16  ;;  %2155 = vmatprep.subr.bf16.mxu0 %v2313_v62  ;;  %v1085_v6 = vor.u32 %v1084_v59, %v1080_v58  ;;  %v1999_v10 = vld [vmem:[#allocation2 + $0x18] sm:$0xe] }
  0x4b   : > { %992 = vrot.lane.b32.xlu0 %v984_v7, %s2420_s30  ;;  %v1094_v7 = vshrl.u32 %v2057_v43, 16  ;;  %v1098_v9 = vrot.slane %v1096_v60, 1  ;;  %v2011_v12 = vcombine.low %v2711_v3, %v2713_v48  ;;  %v2314_v53 = vld [vmem:[%s3074_s1 + $0x18] sm:$0xff]   ;;  %v2723_v11 = vld [vmem:[#allocation2 + $0x30] sm:$0xf]  ;;  %v2063_v16 = vcombine.low %v1999_v10, %v2673_v20  ;;  %s2423_s19 = smov 64  }
  0x4c   : > { %v1092_v13 = vor.u32 %v1091_v2, %v1087_v0  ;;  %v2725_v14 = vld [vmem:[#allocation2 + $0x34] sm:$0x1]  ;;  %v737_v19 = vrot.slane %v735_v5, 1  ;;  %v2732_v24 = vld [vmem:[#allocation2 + $0x38] sm:$0xf]  ;;  %vm1192_vm8 = vcmask 64512  }
  0x4d   : > { %2156 = vmatpush3.bf16.msra.mxu0 %v2313_v62  ;;  %v1099_v54 = vor.u32 %v1098_v9, %v1094_v7  ;;  %v742_v21 = vshll.u32 %v2011_v12, 16  ;;  %v2012_v23 = vcombine.low %v2723_v11, %v2725_v14  ;;  %v599_v25 = vld [vmem:[#allocation2 + $0x3c] sm:$0x1]  ;;  %v2315_v26 = vld [vmem:[%s3074_s1 + $0x20] ss:$0 sps:$4 sm:$0xff]   ;;  %v740_v8 = vshrl.u32 %v2011_v12, 16 }
  0x4e   : > { %994 = vrot.lane.b32.xlu1 %v985_v15, %s2420_s30  ;;  %v1168_v15 = vrot.slane %v2062_v4, 1  ;;  %2157 = vmatprep.subr.bf16.mxu0 %v2314_v53  ;;  %v2000_v20 = vld [vmem:[#allocation2 + $0x20] sm:$0xe]  ;;  %v2013_v28 = vcombine.low %v2732_v24, %v599_v25  ;;  %v2001_v33 = vld [vmem:[#allocation2 + $0x28] sm:$0xe]  ;;  %v1422_v35 = vsel %vm1420_vm7, %v2315_v26, 0 }
  0x4f   : > { %996 = vrot.lane.b32.xlu0 %v986_v18, %s2420_s30  ;;  %v733_v18 = vshrl.u32 %v2010_v56, 16  ;;  %v744_v17 = vrot.slane %v742_v21, 1  ;;  %v2064_v30 = vcombine.low %v2000_v20, %v2675_v22  ;;  %v749_v34 = vshll.u32 %v2012_v23, 16  ;;  %v604_v46 = vld [vmem:[#allocation2 + $0x20] sm:$0xe] }
  0x50   : > { %v2065_v40 = vcombine.low %v2001_v33, %v2681_v31  ;;  %v756_v41 = vshll.u32 %v2013_v28, 16  ;;  %v747_v43 = vshrl.u32 %v2012_v23, 16  ;;  %v754_v47 = vshrl.u32 %v2013_v28, 16  ;;  %v605_v52 = vld [vmem:[#allocation2 + $0x28] sm:$0xe] }
  0x51   : > { %2158 = vmatpush3.bf16.msra.mxu0 %v2314_v53  ;;  %v745_v36 = vor.u32 %v744_v17, %v740_v8  ;;  %v751_v38 = vrot.slane %v749_v34, 1  ;;  %v2018_v51 = vcombine.low %v604_v46, %v2694_v44  ;;  %v606_v55 = vld [vmem:[#allocation2 + $0x30] sm:$0xe]  ;;  %v2019_v56 = vcombine.low %v605_v52, %v2713_v48  ;;  %v607_v58 = vld [vmem:[#allocation2 + $0x38] sm:$0xe] }
  0x52   : > { %998 = vrot.lane.b32.xlu1 %v987_v27, %s2420_s30  ;;  %v1169_v27 = vrot.slane %v2063_v16, 1  ;;  %2181 = vmatprep.subr.msk.bf16.mxu0 %vm1420_vm7, %v2315_v26  ;;  %v1171_v22 = vrot.slane %v2065_v40, 1  ;;  %v1970_v59 = vld [vmem:[#allocation2 + $0x2c] sm:$0x1]  ;;  %v2021_v61 = vcombine.low %v607_v58, %v599_v25  ;;  %v1962_v62 = vld [vmem:[#allocation2 + $0x28] sm:$0xf] }
  0x53   : > { %1032 = vrot.lane.b32.xlu0 %v2046_v29, %s2421_s12  ;;  %v738_v29 = vor.u32 %v737_v19, %v733_v18  ;;  %v752_v50 = vor.u32 %v751_v38, %v747_v43  ;;  %v804_v1 = vrot.slane %v2018_v51, 1  ;;  %v805_v60 = vrot.slane %v2019_v56, 1  ;;  %v1971_v0 = vld [vmem:[#allocation2 + $0x34] sm:$0x1]  ;;  %v1972_v2 = vld [vmem:[#allocation2 + $0x3c] sm:$0x1] }
  0x54   : > { %v1963_v4 = vld [vmem:[#allocation2 + $0x30] sm:$0xf]  ;;  %v807_v48 = vrot.slane %v2021_v61, 1  ;;  %v2026_v7 = vcombine.low %v1962_v62, %v1962_v62  ;;  %v1973_v10 = vld [vmem:[#allocation2 + $0x44] sm:$0x1]  ;;  %vm1217_vm9 = vcmask 130048  }
  0x55   : > { %2160 = vmatpush3.bf16.msra.mxu0 %v1422_v35  ;;  %v2035_v5 = vcombine.low %v1963_v4, %v1971_v0  ;;  %v2027_v53 = vcombine.low %v1963_v4, %v1963_v4  ;;  %v1978_v17 = vld [vmem:[#allocation2 + $0x28] sm:$0xe]  ;;  %v1979_v35 = vld [vmem:[#allocation2 + $0x30] sm:$0xe]  ;;  %v1981_v38 = vld [vmem:[#allocation2 + $0x40] sm:$0xe] }
  0x56   : > { %1034 = vrot.lane.b32.xlu1 %v2047_v42, %s2421_s12  ;;  %v1170_v42 = vrot.slane %v2064_v30, 1  ;;  %v2042_v34 = vcombine.low %v1978_v17, %v1970_v59  ;;  %v1994_v46 = vld [vmem:[#allocation2 + $0x34] sm:$0x1]  ;;  %v1995_v52 = vld [vmem:[#allocation2 + $0x3c] sm:$0x1]  ;;  %vm1234_vm10 = vcmask 195584  }
  0x57   : > { %1036 = vrot.lane.b32.xlu0 %v2048_v49, %s2421_s12  ;;  %v758_v49 = vrot.slane %v756_v41, 1  ;;  %v924_v23 = vshrl.u32 %v2035_v5, 16  ;;  %v2043_v41 = vcombine.low %v1979_v35, %v1971_v0  ;;  %v2005_v17 = vld [vmem:[#allocation2 + $0x48] sm:$0xe]  ;;  %vm1251_vm11 = vcmask 261120  }
  0x58   : > { %vm1268_vm12 = vcmask 326656   ;;  %vm1285_vm13 = vcmask 392192   ;;  %vm1302_vm14 = vcmask 457728   ;;  %vm1319_vm15 = vcmask 523264  }
  0x59   : > { %v759_v31 = vor.u32 %v758_v49, %v754_v47  ;;  %v2045_v47 = vcombine.low %v1981_v38, %v1973_v10  ;;  %v1986_v49 = vld [vmem:[#allocation2 + $0x30] sm:$0xf]  ;;  %vm1407_vm1 = vcmask 588800   ;;  %vm1717_vm2 = vcmask 1041408  }
  0x5a   : > { %1038 = vrot.lane.b32.xlu1 %v2049_v57, %s2421_s12  ;;  %v2020_v57 = vcombine.low %v606_v55, %v2725_v14  ;;  %v2058_v51 = vcombine.low %v1986_v49, %v1994_v46  ;;  %v1996_v55 = vld [vmem:[#allocation2 + $0x44] sm:$0x1]  ;;  %v2050_v58 = vcombine.low %v1986_v49, %v1986_v49  ;;  %vm1704_vm3 = vcmask 162816  }
  0x5b   : > { %1128 = vrot.lane.b32.xlu0 %v1078_v63, %s2422_s8  ;;  %v2034_v63 = vcombine.low %v1962_v62, %v1970_v59  ;;  %v991_v56 = vrot.slane %v2045_v47, 1  ;;  %v1989_v62 = vld [vmem:[#allocation2 + $0x48] sm:$0xf] }
  0x5c   : > { %v806_v44 = vrot.slane %v2020_v57, 1  ;;  %v1988_v57 = vld [vmem:[#allocation2 + $0x40] sm:$0xf]  ;;  %v1103_v61 = vshll.u32 %v2058_v51, 16  ;;  %v1101_v4 = vshrl.u32 %v2058_v51, 16 }
  0x5d   : > { %v919_v12 = vshll.u32 %v2034_v63, 16  ;;  %v2060_v59 = vcombine.low %v1988_v57, %v1996_v55 }
  0x5e   : > { %1130 = vrot.lane.b32.xlu1 %v1085_v6, %s2422_s8  ;;  %v1964_v6 = vld [vmem:[#allocation2 + $0x38] sm:$0xf] }
  0x5f   : > { %1132 = vrot.lane.b32.xlu0 %v1092_v13, %s2422_s8  ;;  %v2036_v9 = vcombine.low %v1964_v6, %v1972_v2  ;;  %v1965_v13 = vld [vmem:[#allocation2 + $0x40] sm:$0xf]  ;;  %v2028_v16 = vcombine.low %v1964_v6, %v1964_v6  ;;  %v921_v18 = vrot.slane %v919_v12, 1  ;;  %v2053_v6 = vcombine.low %v1989_v62, %v1989_v62 }
  0x60   : > { %v2037_v14 = vcombine.low %v1965_v13, %v1973_v10  ;;  %v2029_v21 = vcombine.low %v1965_v13, %v1965_v13  ;;  %v1115_v13 = vshrl.u32 %v2060_v59, 16 }
  0x61   : > { %v933_v19 = vshll.u32 %v2036_v9, 16 }
  0x62   : > { %1134 = vrot.lane.b32.xlu1 %v1099_v54, %s2422_s8  ;;  %v917_v54 = vshrl.u32 %v2034_v63, 16  ;;  %v940_v26 = vshll.u32 %v2037_v14, 16 }
  0x63   : > { %1176 = vrot.lane.b32.xlu0 %v1168_v15, %s2423_s19  ;;  %v926_v15 = vshll.u32 %v2035_v5, 16  ;;  %v935_v8 = vrot.slane %v933_v19, 1  ;;  %v1117_v5 = vshll.u32 %v2060_v59, 16 }
  0x64   : > { %v922_v20 = vor.u32 %v921_v18, %v917_v54  ;;  %v942_v30 = vrot.slane %v940_v26, 1 }
  0x65   : > { %v928_v25 = vrot.slane %v926_v15, 1 }
  0x66   : > { %1178 = vrot.lane.b32.xlu1 %v1169_v27, %s2423_s19  ;;  %v931_v27 = vshrl.u32 %v2036_v9, 16 }
  0x67   : > { %768 = vrot.lane.b32.xlu0 %v738_v29, %s2418_s22  ;;  %v929_v28 = vor.u32 %v928_v25, %v924_v23  ;;  %v938_v29 = vshrl.u32 %v2037_v14, 16  ;;  %v2002_v14 = vld [vmem:[#allocation2 + $0x30] sm:$0xe]  ;;  %v2004_v25 = vld [vmem:[#allocation2 + $0x40] sm:$0xe] }
  0x68   : > { %v936_v33 = vor.u32 %v935_v8, %v931_v27  ;;  %v2066_v19 = vcombine.low %v2002_v14, %v1994_v46  ;;  %v2068_v8 = vcombine.low %v2004_v25, %v1996_v55  ;;  %v2329_v14 = vld [vmem:[%s2791_s15 + $0x14] ss:$0 sps:$4 sm:$0xff]  }
  0x69   : > { %v943_v40 = vor.u32 %v942_v30, %v938_v29 }
  0x6a   : > { %770 = vrot.lane.b32.xlu1 %v745_v36, %s2418_s22  ;;  %v1980_v36 = vld [vmem:[#allocation2 + $0x38] sm:$0xe]  ;;  %v1172_v27 = vrot.slane %v2066_v19, 1 }
  0x6b   : > { %1180 = vrot.lane.b32.xlu0 %v1170_v42, %s2423_s19  ;;  %v988_v42 = vrot.slane %v2042_v34, 1  ;;  %v2044_v43 = vcombine.low %v1980_v36, %v1972_v2  ;;  %v2052_v2 = vcombine.low %v1988_v57, %v1988_v57  ;;  %v1174_v34 = vrot.slane %v2068_v8, 1  ;;  %v2321_v57 = vld [vmem:[%s2791_s15 + $0x4] ss:$0 sps:$4 sm:$0xff]  }
  0x6e   : > { %1182 = vrot.lane.b32.xlu1 %v1171_v22, %s2423_s19  ;;  %v989_v22 = vrot.slane %v2043_v41, 1 }
  0x6f   : > { %772 = vrot.lane.b32.xlu0 %v752_v50, %s2418_s22  ;;  %v990_v50 = vrot.slane %v2044_v43, 1 }
  0x72   : > { %774 = vrot.lane.b32.xlu1 %v759_v31, %s2418_s22  ;;  %v1987_v31 = vld [vmem:[#allocation2 + $0x38] sm:$0xf] }
  0x73   : > { %816 = vrot.lane.b32.xlu0 %v804_v1, %s2416_s20  ;;  %v2059_v1 = vcombine.low %v1987_v31, %v1995_v52 }
  0x75   : > { %v1110_v0 = vshll.u32 %v2059_v1, 16 }
  0x76   : > { %818 = vrot.lane.b32.xlu1 %v805_v60, %s2416_s20  ;;  %v1997_v60 = vld [vmem:[#allocation2 + $0x4c] sm:$0x1] }
  0x77   : > { %820 = vrot.lane.b32.xlu0 %v806_v44, %s2416_s20  ;;  %v2051_v44 = vcombine.low %v1987_v31, %v1987_v31  ;;  %v2061_v63 = vcombine.low %v1989_v62, %v1997_v60  ;;  %v1112_v9 = vrot.slane %v1110_v0, 1  ;;  %v2320_v31 = vld [vmem:[%s2791_s15] ss:$0 sps:$4 sm:$0xff]   ;;  %v2323_v62 = vld [vmem:[%s2791_s15 + $0xc] ss:$0 sps:$4 sm:$0xff]  }
  0x79   : > { %v1124_v10 = vshll.u32 %v2061_v63, 16 }
  0x7a   : > { %822 = vrot.lane.b32.xlu1 %v807_v48, %s2416_s20  ;;  %v1105_v48 = vrot.slane %v1103_v61, 1 }
  0x7b   : > { %856 = vrot.lane.b32.xlu0 %v2026_v7, %s2417_s21  ;;  %v1108_v7 = vshrl.u32 %v2059_v1, 16  ;;  %v1126_v54 = vrot.slane %v1124_v10, 1 }
  0x7c   : > { %v1106_v12 = vor.u32 %v1105_v48, %v1101_v4 }
  0x7d   : > { %v1113_v15 = vor.u32 %v1112_v9, %v1108_v7 }
  0x7e   : > { %858 = vrot.lane.b32.xlu1 %v2027_v53, %s2417_s21  ;;  %v1119_v53 = vrot.slane %v1117_v5, 1 }
  0x7f   : > { %860 = vrot.lane.b32.xlu0 %v2028_v16, %s2417_s21  ;;  %v1122_v16 = vshrl.u32 %v2061_v63, 16 }
  0x80   : > { %v1120_v18 = vor.u32 %v1119_v53, %v1115_v13 }
  0x81   : > { %v1127_v26 = vor.u32 %v1126_v54, %v1122_v16 }
  0x82   : > { %862 = vrot.lane.b32.xlu1 %v2029_v21, %s2417_s21  ;;  %v2003_v21 = vld [vmem:[#allocation2 + $0x38] sm:$0xe]  ;;  %s335_s21 = sand.u32 1, %s2397_s25  }
  0x83   : > { %952 = vrot.lane.b32.xlu0 %v922_v20, %s2419_s23  ;;  %v2067_v20 = vcombine.low %v2003_v21, %v1995_v52 }
  0x85   : > { %v1173_v30 = vrot.slane %v2067_v20, 1  ;;  %v2334_v20 = vld [vmem:[#allocation2] sm:$0xf] }
  0x86   : > { %954 = vrot.lane.b32.xlu1 %v929_v28, %s2419_s23 }
  0x87   : > { %956 = vrot.lane.b32.xlu0 %v936_v33, %s2419_s23  ;;  %v2069_v33 = vcombine.low %v2005_v17, %v1997_v60 }
  0x89   : > { %v1175_v41 = vrot.slane %v2069_v33, 1 }
  0x8a   : > { %958 = vrot.lane.b32.xlu1 %v943_v40, %s2419_s23  ;;  %s2339_s23 = sshll.u32 %s2424_s18, 4  ;;  %s2340_s23 = int_to_ptr.vmem [resolvable:$false] %s2339_s23 }
  0x8b   : > { %1000 = vrot.lane.b32.xlu0 %v988_v42, %s2420_s30 }
  0x8e   : > { %1002 = vrot.lane.b32.xlu1 %v989_v22, %s2420_s30 }
  0x8f   : > { %1004 = vrot.lane.b32.xlu0 %v990_v50, %s2420_s30 }
  0x92   : > { %1006 = vrot.lane.b32.xlu1 %v991_v56, %s2420_s30  ;;  %s2785_s30 = scalar_lea.vmem %s3076_s3, %s2542_s16 }
  0x93   : > { %1040 = vrot.lane.b32.xlu0 %v2050_v58, %s2421_s12  ;;  %v2798_v36 = vld [vmem:[%s2785_s30] sm:$0xf]  ;;  %v2807_v43 = vld [vmem:[%s2785_s30 + $0x4] sm:$0xf]  ;;  %v2812_v46 = vld [vmem:[%s2785_s30 + $0x8] sm:$0xf] }
  0x94   : > { %v2092_v42 = vcombine.low %v2798_v36, %v2798_v36  ;;  %v2093_v47 = vcombine.low %v2807_v43, %v2807_v43  ;;  %v2094_v49 = vcombine.low %v2812_v46, %v2812_v46  ;;  %v2821_v50 = vld [vmem:[%s2785_s30 + $0xc] sm:$0xf]  ;;  %v2322_v58 = vld [vmem:[%s2791_s15 + $0x8] ss:$0 sps:$4 sm:$0xff]   ;;  %v2839_v60 = vld [vmem:[%s2785_s30 + $0x10] sm:$0xf] }
  0x95   : > { %v2095_v55 = vcombine.low %v2821_v50, %v2821_v50  ;;  %v2847_v63 = vld [vmem:[%s2785_s30 + $0x14] sm:$0xf] }
  0x96   : > { %1042 = vrot.lane.b32.xlu1 %v2051_v44, %s2421_s12  ;;  %v2096_v44 = vcombine.low %v2839_v60, %v2839_v60  ;;  %v2097_v48 = vcombine.low %v2847_v63, %v2847_v63 }
  0x97   : > { %1044 = vrot.lane.b32.xlu0 %v2052_v2, %s2421_s12  ;;  %v2850_v2 = vld [vmem:[%s2785_s30 + $0x18] sm:$0xf] }
  0x98   : > { %v2098_v5 = vcombine.low %v2850_v2, %v2850_v2 }
  0x9a   : > { %1046 = vrot.lane.b32.xlu1 %v2053_v6, %s2421_s12  ;;  %v2861_v6 = vld [vmem:[%s2785_s30 + $0x1c] sm:$0xf]  ;;  %s1951_s12 = sshll.u32 %s335_s21, 5  ;;  %s2341_s30 = scalar_lea.vmem %s2340_s23, 1024 }
  0x9b   : > { %1136 = vrot.lane.b32.xlu0 %v1106_v12, %s2422_s8  ;;  %v2099_v10 = vcombine.low %v2861_v6, %v2861_v6  ;;  %v2328_v12 = vld [vmem:[%s2791_s15 + $0x10] ss:$0 sps:$4 sm:$0xff]   ;;  %s337_s10 = scalar_lea.vmem [#allocation3], %s1951_s12 }
  0x9c   : > { %s1827_s16 = sshll.u32 %s337_s10, 4  ;;  %s3019_s16 = int_to_ptr.vmem [resolvable:$true] %s1827_s16 }
  0x9d   : > { %v2773_v23 = vpop.permute.xlu0 %808  ;;  %s2335_s17 = scalar_lea.vmem %s3019_s16, 512  ;;  %p2342_p1 = scmp.lt.s32.totalorder %s3019_s16, %s2340_s23 }
  0x9e   : > { %1138 = vrot.lane.b32.xlu1 %v1113_v15, %s2422_s8  ;;  %v2330_v15 = vld [vmem:[%s2791_s15 + $0x18] ss:$0 sps:$4 sm:$0xff]   ;;  %p2336_p12 = scmp.ne.s32.totalorder %s3019_s16, %s2335_s17  ;;  %p2343_p2 = scmp.lt.s32.totalorder %s2341_s30, %s2335_s17 }
  0x9f   : > { %1140 = vrot.lane.b32.xlu0 %v1120_v18, %s2422_s8  ;;  %v2331_v18 = vld [vmem:[%s2791_s15 + $0x1c] ss:$0 sps:$4 sm:$0xff]   ;;  %s2135_s15 = sshll.u32 %s2405_s27, 9  ;;  %s3025_s27 = scalar_lea.sflag [#allocation4], %s335_s21 }
  0xa0   : > { %v2777_v28 = vpop.permute.xlu1 %850  ;;  %p2337_p13 = pnand %p2336_p12, %p2506_p4  ;;  %p2344_p3 = por %p2343_p2, %p2342_p1 }
  0xa1   : > { %v2779_v29 = vpop.permute.xlu0 %848 }
  0xa2   : > { %1142 = vrot.lane.b32.xlu1 %v1127_v26, %s2422_s8  ;;  %s3016_s8 = scalar_lea.hbm %s3080_s7, %s2135_s15  ;;  %p2338_p0 = pneg %p2337_p13 }
  0xa3   : > { %1184 = vrot.lane.b32.xlu0 %v1172_v27, %s2423_s19 }
  0xa4   : > { %v2795_v35 = vpop.permute.xlu1 %854  ;;  %p2345_p5 = pnand %p2344_p3, %p2338_p0 }
  0xa5   : > { %v2800_v40 = vpop.permute.xlu0 %852 }
  0xa6   : > { %1186 = vrot.lane.b32.xlu1 %v1173_v30, %s2423_s19 }
  0xa7   : > { %1188 = vrot.lane.b32.xlu0 %v1174_v34, %s2423_s19 }
  0xa8   : > { %v2809_v38 = vpop.permute.xlu1 %810 }
  0xa9   : > { %v761_v22 = vpop.permute.xlu0 %760 }
  0xaa   : > { %1190 = vrot.lane.b32.xlu1 %v1175_v41, %s2423_s19  ;;  %v1195_v27 = vsel %vm1192_vm8, %v2334_v20, %v761_v22 }
  0xab   : > { %1569 = vrot.lane.b32.xlu0 %v2092_v42, %s2418_s22  ;;  %v1219_v30 = vsel %vm1217_vm9, %v1195_v27, %v2773_v23 }
  0xac   : > { %v2823_v51 = vpop.permute.xlu1 %814  ;;  %v1236_v41 = vsel %vm1234_vm10, %v1219_v30, %v2779_v29 }
  0xad   : > { %v2825_v52 = vpop.permute.xlu0 %812 }
  0xae   : > { %1571 = vrot.lane.b32.xlu1 %v2093_v47, %s2418_s22 }
  0xaf   : > { %1573 = vrot.lane.b32.xlu0 %v2094_v49, %s2418_s22 }
  0xb0   : > { %v2832_v56 = vpop.permute.xlu1 %764 }
  0xb1   : > { %v763_v1 = vpop.permute.xlu0 %762 }
  0xb2   : > { %1575 = vrot.lane.b32.xlu1 %v2095_v55, %s2418_s22  ;;  %v1198_v8 = vsel %vm1192_vm8, %v2613_v39, %v763_v1 }
  0xb3   : > { %1609 = vrot.lane.b32.xlu0 %v2320_v31, %s2416_s20  ;;  %v1221_v33 = vsel %vm1217_vm9, %v1198_v8, %v2809_v38  ;;  %v1201_v38 = vsel %vm1192_vm8, %v2610_v32, %v2832_v56 }
  0xb4   : > { %v767_v59 = vpop.permute.xlu1 %766  ;;  %v1238_v42 = vsel %vm1234_vm10, %v1221_v33, %v2777_v28  ;;  %v1223_v32 = vsel %vm1217_vm9, %v1201_v38, %v2825_v52 }
  0xb5   : > { %v945_v61 = vpop.permute.xlu0 %944  ;;  %v1204_v49 = vsel %vm1192_vm8, %v2618_v45, %v767_v59 }
  0xb6   : > { %1611 = vrot.lane.b32.xlu1 %v2321_v57, %s2416_s20  ;;  %v1253_v39 = vsel %vm1251_vm11, %v1236_v41, %v945_v61  ;;  %v1225_v45 = vsel %vm1217_vm9, %v1204_v49, %v2823_v51 }
  0xb7   : > { %1613 = vrot.lane.b32.xlu0 %v2322_v58, %s2416_s20 }
  0xb8   : > { %v947_v0 = vpop.permute.xlu1 %946 }
  0xb9   : > { %v2852_v4 = vpop.permute.xlu0 %948  ;;  %v1255_v47 = vsel %vm1251_vm11, %v1238_v42, %v947_v0  ;;  %v1242_v0 = vsel %vm1234_vm10, %v1225_v45, %v2795_v35 }
  0xba   : > { %1615 = vrot.lane.b32.xlu1 %v2323_v62, %s2416_s20 }
  0xbb   : > { %1577 = vrot.lane.b32.xlu0 %v2096_v44, %s2418_s22  ;;  %v1240_v44 = vsel %vm1234_vm10, %v1223_v32, %v2800_v40 }
  0xbc   : > { %v2863_v7 = vpop.permute.xlu1 %950  ;;  %v1257_v52 = vsel %vm1251_vm11, %v1240_v44, %v2852_v4 }
  0xbd   : > { %v993_v9 = vpop.permute.xlu0 %992  ;;  %v1259_v51 = vsel %vm1251_vm11, %v1242_v0, %v2863_v7 }
  0xbe   : > { %1579 = vrot.lane.b32.xlu1 %v2097_v48, %s2418_s22  ;;  %v1270_v29 = vsel %vm1268_vm12, %v1253_v39, %v993_v9 }
  0xbf   : > { %1581 = vrot.lane.b32.xlu0 %v2098_v5, %s2418_s22 }
  0xc0   : > { %v995_v13 = vpop.permute.xlu1 %994 }
  0xc1   : > { %v997_v53 = vpop.permute.xlu0 %996  ;;  %v1272_v28 = vsel %vm1268_vm12, %v1255_v47, %v995_v13 }
  0xc2   : > { %1583 = vrot.lane.b32.xlu1 %v2099_v10, %s2418_s22  ;;  %v1274_v9 = vsel %vm1268_vm12, %v1257_v52, %v997_v53 }
  0xc3   : > { %1617 = vrot.lane.b32.xlu0 %v2328_v12, %s2416_s20 }
  0xc4   : > { %v999_v16 = vpop.permute.xlu1 %998 }
  0xc5   : > { %v1033_v54 = vpop.permute.xlu0 %1032  ;;  %v1276_v10 = vsel %vm1268_vm12, %v1259_v51, %v999_v16 }
  0xc6   : > { %1619 = vrot.lane.b32.xlu1 %v2329_v14, %s2416_s20  ;;  %v1287_v55 = vsel %vm1285_vm13, %v1270_v29, %v1033_v54 }
  0xc7   : > { %1621 = vrot.lane.b32.xlu0 %v2330_v15, %s2416_s20 }
  0xc8   : > { %v1035_v19 = vpop.permute.xlu1 %1034 }
  0xc9   : > { %v1037_v21 = vpop.permute.xlu0 %1036  ;;  %v1289_v31 = vsel %vm1285_vm13, %v1272_v28, %v1035_v19 }
  0xca   : > { %1623 = vrot.lane.b32.xlu1 %v2331_v18, %s2416_s20  ;;  %v1291_v12 = vsel %vm1285_vm13, %v1274_v9, %v1037_v21 }
  0xcc   : > { %v1039_v25 = vpop.permute.xlu1 %1038 }
  0xcd   : > { %v1129_v26 = vpop.permute.xlu0 %1128  ;;  %v1293_v40 = vsel %vm1285_vm13, %v1276_v10, %v1039_v25 }
  0xce   : > { %v1304_v1 = vsel %vm1302_vm14, %v1287_v55, %v1129_v26 }
  0xd0   : > { %v1131_v17 = vpop.permute.xlu1 %1130 }
  0xd1   : > { %v1133_v34 = vpop.permute.xlu0 %1132  ;;  %v1306_v57 = vsel %vm1302_vm14, %v1289_v31, %v1131_v17 }
  0xd2   : > { %v1308_v35 = vsel %vm1302_vm14, %v1291_v12, %v1133_v34 }
  0xd4   : > { %v1135_v22 = vpop.permute.xlu1 %1134 }
  0xd5   : > { %v1177_v23 = vpop.permute.xlu0 %1176  ;;  %v1310_v13 = vsel %vm1302_vm14, %v1293_v40, %v1135_v22 }
  0xd6   : > { %v1321_v56 = vsel %vm1319_vm15, %v1304_v1, %v1177_v23 }
  0xd8   : > { %v1179_v58 = vpop.permute.xlu1 %1178 }
  0xd9   : > { %v1323_v59 = vsel %vm1319_vm15, %v1306_v57, %v1179_v58  ;;  %v769_v61 = vpop.permute.xlu0 %768 }
  0xda   : > { %v2071_v62 = vcombine.low %v1321_v56, %v1323_v59  ;;  %v1207_v55 = vsel %vm1192_vm8, %v2687_v37, %v769_v61 }
  0xdc   : > { %v771_v48 = vpop.permute.xlu1 %770  ;;  %2161 = vmatprep.mubr.msk.bf16.mxu0 %vm1407_vm1, %v2071_v62 }
  0xdd   : > { %v1181_v5 = vpop.permute.xlu0 %1180  ;;  %v1210_v31 = vsel %vm1192_vm8, %v2711_v3, %v771_v48 }
  0xde   : > { %v1325_v15 = vsel %vm1319_vm15, %v1308_v35, %v1181_v5 }
  0xe0   : > { %v1183_v14 = vpop.permute.xlu1 %1182 }
  0xe1   : > { %v1327_v4 = vsel %vm1319_vm15, %v1310_v13, %v1183_v14  ;;  %v773_v54 = vpop.permute.xlu0 %772 }
  0xe2   : > { %v2072_v7 = vcombine.low %v1325_v15, %v1327_v4  ;;  %v1213_v37 = vsel %vm1192_vm8, %v2723_v11, %v773_v54 }
  0xe4   : > { %v775_v18 = vpop.permute.xlu1 %774  ;;  %2162 = vmatmul.mubr.msk.bf16.vlgmr.msra.gmra.mrb[0].mxu0 %vm1407_vm1, %v2072_v7 }
  0xe5   : > { %v817_v53 = vpop.permute.xlu0 %816  ;;  %v1216_v3 = vsel %vm1192_vm8, %v2732_v24, %v775_v18 }
  0xe6   : > { %v1227_v1 = vsel %vm1217_vm9, %v1207_v55, %v817_v53 }
  0xe8   : > { %v819_v16 = vpop.permute.xlu1 %818 }
  0xe9   : > { %v821_v19 = vpop.permute.xlu0 %820  ;;  %v1229_v57 = vsel %vm1217_vm9, %v1210_v31, %v819_v16 }
  0xea   : > { %v1231_v0 = vsel %vm1217_vm9, %v1213_v37, %v821_v19 }
  0xec   : > { %v823_v21 = vpop.permute.xlu1 %822 }
  0xed   : > { %v857_v26 = vpop.permute.xlu0 %856  ;;  %v1233_v48 = vsel %vm1217_vm9, %v1216_v3, %v823_v21 }
  0xee   : > { %v1244_v58 = vsel %vm1234_vm10, %v1227_v1, %v857_v26 }
  0xf0   : > { %v859_v25 = vpop.permute.xlu1 %858 }
  0xf1   : > { %v861_v20 = vpop.permute.xlu0 %860  ;;  %v1246_v32 = vsel %vm1234_vm10, %v1229_v57, %v859_v25 }
  0xf2   : > { %v1248_v5 = vsel %vm1234_vm10, %v1231_v0, %v861_v20  ;;  %v2332_v20 = vld [vmem:[%s3078_s5] sm:$0xff]  }
  0xf3   : > { %2169 = vmatprep.subr.bf16.mxu1 %v2332_v20 }
  0xf4   : > { %v863_v27 = vpop.permute.xlu1 %862  ;;  %2170 = vmatpush3.bf16.msra.mxu1 %v2332_v20 }
  0xf5   : > { %v953_v8 = vpop.permute.xlu0 %952  ;;  %v1250_v9 = vsel %vm1234_vm10, %v1233_v48, %v863_v27  ;;  %v2333_v27 = vld [vmem:[%s3078_s5 + $0x8] ss:$0 sps:$4 sm:$0x33]  }
  0xf6   : > { %v1261_v56 = vsel %vm1251_vm11, %v1244_v58, %v953_v8  ;;  %2182 = vmatprep.subr.msk.bf16.mxu1 %vm1717_vm2, %v2333_v27  ;;  %v1719_v8 = vsel %vm1717_vm2, %v2333_v27, 0 }
  0xf8   : > { %v955_v17 = vpop.permute.xlu1 %954  ;;  %2172 = vmatpush3.bf16.msra.mxu1 %v1719_v8 }
  0xf9   : > { %v957_v30 = vpop.permute.xlu0 %956  ;;  %v1263_v59 = vsel %vm1251_vm11, %v1246_v32, %v955_v17 }
  0xfa   : > { %v1265_v12 = vsel %vm1251_vm11, %v1248_v5, %v957_v30 }
  0xfc   : > { %v959_v33 = vpop.permute.xlu1 %958 }
  0xfd   : > { %v1001_v34 = vpop.permute.xlu0 %1000  ;;  %v1267_v40 = vsel %vm1251_vm11, %v1250_v9, %v959_v33 }
  0xfe   : > { %v1278_v61 = vsel %vm1268_vm12, %v1261_v56, %v1001_v34 }
 0x100   : > { %v1003_v41 = vpop.permute.xlu1 %1002 }
 0x101   : > { %v1005_v42 = vpop.permute.xlu0 %1004  ;;  %v1280_v44 = vsel %vm1268_vm12, %v1263_v59, %v1003_v41  ;;  %v2070_v41 = vld [vmem:[%s3075_s2] ss:$0 sm:$0xff] }
 0x102   : > { %v1282_v14 = vsel %vm1268_vm12, %v1265_v12, %v1005_v42  ;;  %v1491_v42 = vunpack.c.l.bf16 %v2812_v46 }
 0x104   : > { %v1007_v22 = vpop.permute.xlu1 %1006 }
 0x105   : > { %v1041_v39 = vpop.permute.xlu0 %1040  ;;  %v1284_v15 = vsel %vm1268_vm12, %v1267_v40, %v1007_v22 }
 0x106   : > { %v1295_v52 = vsel %vm1285_vm13, %v1278_v61, %v1041_v39  ;;  %v1489_v39 = vunpack.c.l.bf16 %v2798_v36 }
 0x108   : > { %v1043_v47 = vpop.permute.xlu1 %1042 }
 0x109   : > { %v1045_v23 = vpop.permute.xlu0 %1044  ;;  %v1297_v51 = vsel %vm1285_vm13, %v1280_v44, %v1043_v47 }
 0x10a   : > { %v1299_v7 = vsel %vm1285_vm13, %v1282_v14, %v1045_v23 }
 0x10c   : > { %v1047_v38 = vpop.permute.xlu1 %1046 }
 0x10d   : > { %v1137_v49 = vpop.permute.xlu0 %1136  ;;  %v1301_v18 = vsel %vm1285_vm13, %v1284_v15, %v1047_v38  ;;  %v1492_v38 = vunpack.c.l.bf16 %v2821_v50 }
 0x10e   : > { %v1312_v11 = vsel %vm1302_vm14, %v1295_v52, %v1137_v49 }
 0x110   : > { %v1139_v29 = vpop.permute.xlu1 %1138 }
 0x111   : > { %v1141_v28 = vpop.permute.xlu0 %1140  ;;  %v1314_v24 = vsel %vm1302_vm14, %v1297_v51, %v1139_v29 }
 0x112   : > { %v1316_v53 = vsel %vm1302_vm14, %v1299_v7, %v1141_v28  ;;  %v1490_v28 = vunpack.c.l.bf16 %v2807_v43  ;;  %v1493_v7 = vunpack.c.l.bf16 %v2839_v60 }
 0x114   : > { %v1143_v45 = vpop.permute.xlu1 %1142 }
 0x115   : > { %v1185_v62 = vpop.permute.xlu0 %1184  ;;  %v1318_v16 = vsel %vm1302_vm14, %v1301_v18, %v1143_v45 }
 0x116   : > { %v1329_v35 = vsel %vm1319_vm15, %v1312_v11, %v1185_v62 }
 0x118   : > { %v1187_v10 = vpop.permute.xlu1 %1186 }
 0x119   : > { %v1331_v13 = vsel %vm1319_vm15, %v1314_v24, %v1187_v10  ;;  %v1189_v54 = vpop.permute.xlu0 %1188 }
 0x11a   : > { %v2073_v4 = vcombine.low %v1329_v35, %v1331_v13  ;;  %v1333_v21 = vsel %vm1319_vm15, %v1316_v53, %v1189_v54 }
 0x11c   : > { %v1191_v19 = vpop.permute.xlu1 %1190  ;;  %2165 = vmatprep.mubr.msk.bf16.mxu0 %vm1407_vm1, %v2073_v4  ;;  %v1495_v4 = vunpack.c.l.bf16 %v2850_v2 }
 0x11d   : > { %v1335_v26 = vsel %vm1319_vm15, %v1318_v16, %v1191_v19  ;;  %v1570_v17 = vpop.permute.xlu0 %1569  ;;  %v1496_v16 = vunpack.c.l.bf16 %v2861_v6 }
 0x11e   : > { %v2074_v25 = vcombine.low %v1333_v21, %v1335_v26  ;;  %v1494_v26 = vunpack.c.l.bf16 %v2847_v63 }
 0x120   : > { %2166 = vmatmul.mubr.msk.bf16.gmra.mrb[4].mxu0 %vm1407_vm1, %v2074_v25  ;;  %v1572_v30 = vpop.permute.xlu1 %1571 }
 0x121   : > { %v1574_v33 = vpop.permute.xlu0 %1573 }
 0x124   : > { %v1576_v34 = vpop.permute.xlu1 %1575 }
 0x125   : > { %v1610_v55 = vpop.permute.xlu0 %1609 }
 0x128   : > { %v1612_v58 = vpop.permute.xlu1 %1611 }
 0x129   : > { %v1614_v0 = vpop.permute.xlu0 %1613 }
 0x12c   : > { %v1616_v43 = vpop.permute.xlu1 %1615 }
 0x12d   : > { %v1578_v35 = vpop.permute.xlu0 %1577 }
 0x130   : > { %v1580_v13 = vpop.permute.xlu1 %1579 }
 0x131   : > { %v1582_v14 = vpop.permute.xlu0 %1581 }
 0x134   : > { %v1584_v15 = vpop.permute.xlu1 %1583 }
 0x135   : > { %v1618_v25 = vpop.permute.xlu0 %1617 }
 0x139   : > { %v1622_v63 = vpop.permute.xlu0 %1621 }
 0x1b7   : > { %v2163_v22 = vpop.f32.mrb[0].mxu0 }
 0x1b8   : > { %v1467_v47 = vadd.f32 %v2163_v22, %v2070_v41  ;;  %v1458_v23 = vpop.f32.mrb[1].mxu0 }
 0x1b9   : > { %v1459_v49 = vadd.f32 %v2070_v41, %v1458_v23  ;;  %v2164_v29 = vpop.f32.mrb[2].mxu0 }
 0x1ba   : > { %v1499_v31 = vadd.f32 %v1491_v42, %v1467_v47  ;;  %v1470_v1 = vadd.f32 %v2164_v29, %v2070_v41  ;;  %v1461_v57 = vpop.f32.mrb[3].mxu0 }
 0x1bb   : > { %v1497_v32 = vadd.f32 %v1489_v39, %v1459_v49  ;;  %v1462_v45 = vadd.f32 %v2070_v41, %v1461_v57 }
 0x1bc   : > { %v1507_v56 = vmax.f32 %v1499_v31, 0.0  ;;  %v1500_v46 = vadd.f32 %v1492_v38, %v1470_v1 }
 0x1bd   : > { %v1505_v59 = vmax.f32 %v1497_v32, 0.0  ;;  %v1498_v62 = vadd.f32 %v1490_v28, %v1462_v45 }
 0x1be   : > { %v2129_v36 = vpack.c.bf16 %v1507_v56, %v1507_v56  ;;  %v1508_v37 = vmax.f32 %v1500_v46, 0.0  ;;  %v2108_v56 = vld [vmem:[%s3079_s6] ss:$0 sm:$0xff] }
 0x1bf   : > { %v2127_v3 = vpack.c.bf16 %v1505_v59, %v1505_v59  ;;  %v1506_v61 = vmax.f32 %v1498_v62, 0.0 }
 0x1c0   : > { %v1633_v50 = vsel %vm1192_vm8, %v2129_v36, %v1574_v33  ;;  %v2130_v44 = vpack.c.bf16 %v1508_v37, %v1508_v37 }
 0x1c1   : > { %v2128_v48 = vpack.c.bf16 %v1506_v61, %v1506_v61  ;;  %v1627_v52 = vsel %vm1192_vm8, %v2127_v3, %v1570_v17  ;;  %v1654_v9 = vsel %vm1217_vm9, %v1633_v50, %v1614_v0  ;;  %v1620_v17 = vpop.permute.xlu1 %1619 }
 0x1c2   : > { %v1636_v51 = vsel %vm1192_vm8, %v2130_v44, %v1576_v34  ;;  %v1650_v24 = vsel %vm1217_vm9, %v1627_v52, %v1610_v55 }
 0x1c3   : > { %v1630_v5 = vsel %vm1192_vm8, %v2128_v48, %v1572_v30  ;;  %v1656_v11 = vsel %vm1217_vm9, %v1636_v51, %v1616_v43 }
 0x1c4   : > { %v1652_v10 = vsel %vm1217_vm9, %v1630_v5, %v1612_v58  ;;  %v2110_v12 = vcombine.low %v1654_v9, %v1656_v11 }
 0x1c5   : > { %v2109_v40 = vcombine.low %v1650_v24, %v1652_v10  ;;  %v1624_v49 = vpop.permute.xlu1 %1623 }
 0x1c7   : > { %2173 = vmatprep.mubr.msk.bf16.mxu1 %vm1704_vm3, %v2109_v40 }
 0x1c8   : > { %2174 = vmatmul.mubr.msk.bf16.vlgmr.msra.gmra.mrb[0].mxu1 %vm1704_vm3, %v2110_v12 }
 0x1f3   : > { %v2167_v54 = vpop.f32.mrb[4].mxu0 }
 0x1f4   : > { %v1483_v18 = vadd.f32 %v2167_v54, %v2070_v41  ;;  %v1474_v53 = vpop.f32.mrb[5].mxu0 }
 0x1f5   : > { %v1475_v19 = vadd.f32 %v2070_v41, %v1474_v53  ;;  %v2168_v21 = vpop.f32.mrb[6].mxu0 }
 0x1f6   : > { %v1503_v20 = vadd.f32 %v1495_v4, %v1483_v18  ;;  %v1486_v27 = vadd.f32 %v2168_v21, %v2070_v41  ;;  %v1477_v8 = vpop.f32.mrb[7].mxu0 }
 0x1f7   : > { %v1501_v30 = vadd.f32 %v1493_v7, %v1475_v19  ;;  %v1478_v33 = vadd.f32 %v2070_v41, %v1477_v8 }
 0x1f8   : > { %v1511_v34 = vmax.f32 %v1503_v20, 0.0  ;;  %v1504_v2 = vadd.f32 %v1496_v16, %v1486_v27 }
 0x1f9   : > { %v1509_v42 = vmax.f32 %v1501_v30, 0.0  ;;  %v1502_v22 = vadd.f32 %v1494_v26, %v1478_v33 }
 0x1fa   : > { %v2133_v60 = vpack.c.bf16 %v1511_v34, %v1511_v34  ;;  %v1512_v39 = vmax.f32 %v1504_v2, 0.0 }
 0x1fb   : > { %v2131_v47 = vpack.c.bf16 %v1509_v42, %v1509_v42  ;;  %v1510_v23 = vmax.f32 %v1502_v22, 0.0 }
 0x1fc   : > { %v1645_v6 = vsel %vm1192_vm8, %v2133_v60, %v1582_v14  ;;  %v2134_v38 = vpack.c.bf16 %v1512_v39, %v1512_v39 }
 0x1fd   : > { %v2132_v29 = vpack.c.bf16 %v1510_v23, %v1510_v23  ;;  %v1639_v28 = vsel %vm1192_vm8, %v2131_v47, %v1578_v35  ;;  %v1662_v31 = vsel %vm1217_vm9, %v1645_v6, %v1622_v63 }
 0x1fe   : > { %v1648_v41 = vsel %vm1192_vm8, %v2134_v38, %v1584_v15  ;;  %v1658_v57 = vsel %vm1217_vm9, %v1639_v28, %v1618_v25 }
 0x1ff   : > { %v1642_v55 = vsel %vm1192_vm8, %v2132_v29, %v1580_v13  ;;  %v1664_v1 = vsel %vm1217_vm9, %v1648_v41, %v1624_v49 }
 0x200   : > { %v1660_v58 = vsel %vm1217_vm9, %v1642_v55, %v1620_v17  ;;  %v2112_v32 = vcombine.low %v1662_v31, %v1664_v1 }
 0x201   : > { %v2111_v45 = vcombine.low %v1658_v57, %v1660_v58 }
 0x203   : > { %2177 = vmatprep.mubr.msk.bf16.mxu1 %vm1704_vm3, %v2111_v45 }
 0x204   : > { %2178 = vmatmul.mubr.msk.bf16.gmra.mrb[4].mxu1 %vm1704_vm3, %v2112_v32 }
 0x29b   : > { %v2175_v46 = vpop.f32.mrb[0].mxu1 }
 0x29c   : > { %v1764_v59 = vadd.f32 %v2175_v46, %v2108_v56  ;;  %v1755_v62 = vpop.f32.mrb[1].mxu1 }
 0x29d   : > { %v1756_v36 = vadd.f32 %v2108_v56, %v1755_v62  ;;  %v2176_v37 = vpop.f32.mrb[2].mxu1 }
 0x29e   : > { %v1788_v3 = vmax.f32 %v1764_v59, 0.0  ;;  %v1767_v61 = vadd.f32 %v2176_v37, %v2108_v56  ;;  %v1758_v50 = vpop.f32.mrb[3].mxu1 }
 0x29f   : > { %v1786_v44 = vmax.f32 %v1756_v36, 0.0  ;;  %v1759_v0 = vadd.f32 %v2108_v56, %v1758_v50 }
 0x2a0   : > { %v1796_v43 = vpack.c.bf16 %v1788_v3, %v1788_v3  ;;  %v1789_v48 = vmax.f32 %v1767_v61, 0.0 }
 0x2a1   : > { %v1794_v52 = vpack.c.bf16 %v1786_v44, %v1786_v44  ;;  %v1787_v51 = vmax.f32 %v1759_v0, 0.0 }
 0x2a2   : > { %1805 = vst.msk [vmem:[%s337_s10 + $0x8] sm:$0xf] %vm369_vm0, %v1796_v43  ;;  %v1797_v5 = vpack.c.bf16 %v1789_v48, %v1789_v48 }
 0x2a3   : > { %1803 = vst.msk [vmem:[%s337_s10] sm:$0xf] %vm369_vm0, %v1794_v52  ;;  %v1795_v9 = vpack.c.bf16 %v1787_v51, %v1787_v51 }
 0x2a4   : > { %1806 = vst.msk [vmem:[%s337_s10 + $0xc] sm:$0xf] %vm369_vm0, %v1797_v5 }
 0x2a5   : > { %1804 = vst.msk [vmem:[%s337_s10 + $0x4] sm:$0xf] %vm369_vm0, %v1795_v9 }
 0x2d7   : > { %v2179_v11 = vpop.f32.mrb[4].mxu1 }
 0x2d8   : > { %v1780_v24 = vadd.f32 %v2179_v11, %v2108_v56  ;;  %v1771_v10 = vpop.f32.mrb[5].mxu1 }
 0x2d9   : > { %v1772_v12 = vadd.f32 %v2108_v56, %v1771_v10  ;;  %v2180_v40 = vpop.f32.mrb[6].mxu1 }
 0x2da   : > { %v1792_v35 = vmax.f32 %v1780_v24, 0.0  ;;  %v1783_v13 = vadd.f32 %v2180_v40, %v2108_v56  ;;  %v1774_v14 = vpop.f32.mrb[7].mxu1 }
 0x2db   : > { %v1790_v15 = vmax.f32 %v1772_v12, 0.0  ;;  %v1775_v4 = vadd.f32 %v2108_v56, %v1774_v14 }
 0x2dc   : > { %v1800_v54 = vpack.c.bf16 %v1792_v35, %v1792_v35  ;;  %v1793_v7 = vmax.f32 %v1783_v13, 0.0 }
 0x2dd   : > { %v1798_v18 = vpack.c.bf16 %v1790_v15, %v1790_v15  ;;  %v1791_v53 = vmax.f32 %v1775_v4, 0.0 }
 0x2de   : > { %1809 = vst.msk [vmem:[%s337_s10 + $0x18] sm:$0xf] %vm369_vm0, %v1800_v54  ;;  %v1801_v16 = vpack.c.bf16 %v1793_v7, %v1793_v7 }
 0x2df   : > { %1807 = vst.msk [vmem:[%s337_s10 + $0x10] sm:$0xf] %vm369_vm0, %v1798_v18  ;;  %v1799_v19 = vpack.c.bf16 %v1791_v53, %v1791_v53 }
 0x2e0   : > { %1810 = vst.msk [vmem:[%s337_s10 + $0x1c] sm:$0xf] %vm369_vm0, %v1801_v16 }
 0x2e1   : > { %1808 = vst.msk [vmem:[%s337_s10 + $0x14] sm:$0xf] %vm369_vm0, %v1799_v19 }
 0x2e2   : > { %2348 = shalt.err (!%p2345_p5)
}
 0x2e3   : > { %s2349_s21 = scalar_lea.hbm %s3016_s8, 512  ;;  %s2353_s15 = scalar_lea.hbm %s3080_s7, 1024 }
 0x2e4   : > { %p2350_p6 = scmp.ne.s32.totalorder %s3016_s8, %s2349_s21  ;;  %p2354_p10 = scmp.lt.u32.totalorder %s3016_s8, %s3080_s7 }
 0x2e5   : > { %p2355_p11 = scmp.lt.u32.totalorder %s2353_s15, %s2349_s21  ;;  %p2357_p13 = scmp.lt.u32.totalorder %s2349_s21, %s3016_s8 }
 0x2e6   : > { %p2351_p7 = pnand %p2350_p6, %p2506_p4 }
 0x2e7   : > { %p2356_p12 = por %p2355_p11, %p2354_p10 }
 0x2e8   : > { %p2352_p9 = pneg %p2351_p7 }
 0x2e9   : > { %p2358_p0 = por %p2357_p13, %p2356_p12 }
 0x2eb   : > { %p2359_p1 = pnand %p2358_p0, %p2352_p9 }
 0x2ed   : > { %2362 = shalt.err (!%p2359_p1)
}
 0x2ee   : > { %s2425_s17 = smov 4  }
 0x2ef   : > { %2183 = dma.vmem_to_hbm [thread:$0]  (%p2506_p4), %s3019_s16, 512, %s3016_s8, %s3025_s27, %s2423_s19, %s2423_s19, %s2425_s17  }
 0x2f0 PF: > { %p2189_p2 = scmp.ge.s32.totalorder %s2413_s29, 2  ;;  %s1842_s18 = sand.u32 1, %s2393_s24  }
 0x2f1   : > { %s1843_s23 = scalar_lea.sflag [#allocation4], %s1842_s18 }
 0x2f2   : > { %p2186_p3 = pnand %p2189_p2, %p2513_p8 }
 0x2f4   : > { %2388 = dma.done.wait (!%p2186_p3), %s1843_s23, 512  }
 0x2f5   : > { %2390 = vsyncadd (!%p2186_p3), %s1843_s23, 4294966784  ;;  %s20_s29 = sadd.s32 1, %s2413_s29   ;;  %s3089_s24 = smov %s2397_s25 }
 0x2f6   : > { %p17_p5 = scmp.ge.s32.totalorder %s20_s29, 4   ;;  %s3090_s25 = smov %s2401_s26 }
 0x2f7   : > { %s3091_s26 = smov %s2519_s14  ;;  %s3092_s27 = smov %s2409_s28 }
 0x2f8   : > { %s3093_s28 = smov %s3095_s9  ;;  %19 = sbr.rel (!%p17_p5) target bundleno = 4 (0x4), region = 98 }
 0x2ff   :  { %1848 = vsyncpa [#allocation4], 1 }
 0x300   :  { %1850 = vsyncpa [#allocation4 + $0x1], 1 }

// kernel: tree_forward_pallas.4
= control target key start
LH: loop header
LB: loop body
LE: loop exit
PB: predicated region body
PF: predicated region fallthrough
CT: control target
= control target key end

     0   :  { %s2489_s24 = smov 0   ;;  %s2491_s25 = smov 0   ;;  %s3316_s0 = inlined_call_operand.vmem [shape: bf16[2,8,2,8,8], index: 0, kind: input, shape index: {}]   ;;  %s3317_s1 = inlined_call_operand.vmem [shape: bf16[64,8], index: 1, kind: input, shape index: {}]   ;;  %s3318_s2 = inlined_call_operand.vmem [shape: f32[1,8], index: 2, kind: input, shape index: {}]   ;;  %s3319_s3 = inlined_call_operand.vmem [shape: bf16[4,8], index: 3, kind: input, shape index: {}]   ;;  %s3320_s4 = inlined_call_operand.vmem [shape: f32[1,8], index: 4, kind: input, shape index: {}]   ;;  %s3321_s5 = inlined_call_operand.vmem [shape: bf16[2,8,8,4], index: 5, kind: output, shape index: {0}]   ;;  %s3322_s6 = inlined_call_operand.vmem [shape: bf16[2,8,8,8], index: 6, kind: output, shape index: {1}]   ;;  %s3323_s7 = inlined_call_operand.vmem [shape: bf16[2,8,8,8], index: 7, kind: output, shape index: {2}]  }
   0x1   :  { %s2493_s26 = smov 0  }
   0x2 LB: > { %s30_s27 = sadd.s32 1, %s2434_s25  ;;  %p2174_p0 = scmp.ge.s32.totalorder %s2438_s26, 1  ;;  %s2438_s26 = sphi %s2493_s26, %s18_s26   ;;  %s2434_s25 = sphi %s2491_s25, %s3390_s25   ;;  %s2430_s24 = sphi %s2489_s24, %s3389_s24  }
   0x3   : > { %p32_p1 = scmp.ge.s32.totalorder %s30_s27, 2  ;;  %p260_p2 = scmp.lt.s32.totalorder %s2438_s26, 3 }
   0x5   : > { %s3392_s27 = smov (%p32_p1, %s30_s27), 0  ;;  %p261_p3 = pnand %p2174_p0, %p260_p2 }
   0x7   : > { %264 = sbr.rel (%p261_p3) target bundleno = 557 (0x22d), region = 40 }
   0xe   : > { %p314_p4 = scmp.lt.s32.totalorder %s2430_s24, 1  ;;  %vm356_vm0 = vcmask 57344   ;;  %vm357_vm1 = vsmask.f32 256  ;;  %vm354_vm2 = vcmask 60416   ;;  %v2440_v9 = vmov 0  }
   0xf   : > { %vm2507_vm3 = vmand %vm356_vm0, %vm357_vm1  ;;  %v536_v1 = vld [vmem:[#allocation3 + $0x8] sm:$0x1]  ;;  %v365_v2 = vld [vmem:[#allocation2 + $0x8] sm:$0x1]  ;;  %355 = vst.msk [vmem:[#allocation2] sm:$0xf] %vm354_vm2, %v2440_v9 }
  0x10   : > { %s3394_s24 = smov (!%p314_p4, %s2430_s24), 1  ;;  %v537_v3 = vsel %vm2507_vm3, 0, %v536_v1  ;;  %v366_v4 = vsel %vm2507_vm3, 0, %v365_v2  ;;  %v539_v5 = vld [vmem:[#allocation3 + $0x10] sm:$0x1]  ;;  %s2441_s9 = smov 124  }
  0x11   : > { %538 = vst [vmem:[#allocation3 + $0x8] sm:$0x1] %v537_v3  ;;  %367 = vst [vmem:[#allocation2 + $0x8] sm:$0x1] %v366_v4  ;;  %v540_v6 = vsel %vm2507_vm3, 0, %v539_v5  ;;  %s2303_s28 = sshll.u32 %s3394_s24, 6 }
  0x12   : > { %v368_v7 = vld [vmem:[#allocation2 + $0x10] sm:$0x1]  ;;  %v374_v8 = vld [vmem:[#allocation2 + $0x20] sm:$0x1]  ;;  %529 = vst.msk [vmem:[#allocation3] sm:$0xf] %vm354_vm2, %v2440_v9  ;;  %s2529_s8 = scalar_lea.vmem %s3316_s0, %s2303_s28 }
  0x13   : > { %541 = vst [vmem:[#allocation3 + $0x10] sm:$0x1] %v540_v6  ;;  %v369_v10 = vsel %vm2507_vm3, 0, %v368_v7  ;;  %v375_v11 = vsel %vm2507_vm3, 0, %v374_v8  ;;  %v371_v12 = vld [vmem:[#allocation2 + $0x18] sm:$0x1] }
  0x14   : > { %vm479_vm4 = vsmask.f32 7938  ;;  %370 = vst [vmem:[#allocation2 + $0x10] sm:$0x1] %v369_v10  ;;  %376 = vst [vmem:[#allocation2 + $0x20] sm:$0x1] %v375_v11 }
  0x15   : > { %v372_v13 = vsel %vm2507_vm3, 0, %v371_v12  ;;  %v2183_v14 = vld [vmem:[%s2529_s8 + $0x4] sm:$0xf]  ;;  %v389_v15 = vld [vmem:[%s2529_s8] sm:$0xf]  ;;  %vm2543_vm5 = vmand %vm354_vm2, %vm479_vm4  ;;  %vm1115_vm6 = vcmask 1041408  }
  0x16   : > { %v2184_v16 = vld [vmem:[%s2529_s8 + $0xc] sm:$0xf]  ;;  %373 = vst [vmem:[#allocation2 + $0x18] sm:$0x1] %v372_v13  ;;  %v570_v17 = vshrl.u32 %v2183_v14, 16  ;;  %v573_v18 = vshll.u32 %v2183_v14, 16 }
  0x17   : > { %v398_v19 = vshrl.u32 %v389_v15, 16  ;;  %v401_v20 = vshll.u32 %v389_v15, 16  ;;  %v390_v21 = vld [vmem:[%s2529_s8 + $0x8] sm:$0xf]  ;;  %v578_v23 = vshrl.u32 %v2184_v16, 16  ;;  %v581_v24 = vshll.u32 %v2184_v16, 16 }
  0x18   : > { %v545_v22 = vld [vmem:[#allocation3 + $0x20] sm:$0x1]  ;;  %v406_v25 = vshrl.u32 %v390_v21, 16  ;;  %v409_v26 = vshll.u32 %v390_v21, 16  ;;  %v392_v27 = vld [vmem:[%s2529_s8 + $0x18] sm:$0xf] }
  0x19   : > { %v2538_v28 = vrot.slane %v570_v17, 7  ;;  %v400_v29 = vrot.slane %v398_v19, 7  ;;  %v422_v30 = vshrl.u32 %v392_v27, 16  ;;  %v425_v31 = vshll.u32 %v392_v27, 16  ;;  %v391_v32 = vld [vmem:[%s2529_s8 + $0x10] sm:$0xf] }
  0x1a   : > { %v650_v34 = vld [vmem:[#allocation3 + $0x8] sm:$0xf]  ;;  %v481_v35 = vld [vmem:[#allocation2 + $0x8] sm:$0xf]  ;;  %v580_v36 = vrot.slane %v578_v23, 7  ;;  %v408_v37 = vrot.slane %v406_v25, 7 }
  0x1b   : > { %v542_v38 = vld [vmem:[#allocation3 + $0x18] sm:$0x1]  ;;  %v575_v39 = vor.u32 %v573_v18, %v2538_v28  ;;  %v403_v40 = vor.u32 %v401_v20, %v400_v29  ;;  %v656_v41 = vld [vmem:[#allocation3 + $0x10] sm:$0xf]  ;;  %v2548_v42 = vrot.slane %v422_v30, 7  ;;  %v414_v43 = vshrl.u32 %v391_v32, 16 }
  0x1c   : > { %v2186_v44 = vld [vmem:[%s2529_s8 + $0x1c] sm:$0xf]  ;;  %v583_v45 = vor.u32 %v581_v24, %v580_v36  ;;  %v411_v46 = vor.u32 %v409_v26, %v408_v37  ;;  %v487_v47 = vld [vmem:[#allocation2 + $0x10] sm:$0xf]  ;;  %v499_v48 = vld [vmem:[#allocation2 + $0x20] sm:$0xf] }
  0x1d   : > { %v417_v49 = vshll.u32 %v391_v32, 16  ;;  %v546_v50 = vsel %vm2507_vm3, 0, %v545_v22  ;;  %v651_v51 = vsel %vm2543_vm5, %v575_v39, %v650_v34  ;;  %v482_v52 = vsel %vm2543_vm5, %v403_v40, %v481_v35  ;;  %v493_v55 = vld [vmem:[#allocation2 + $0x18] sm:$0xf]  ;;  %v2185_v56 = vld [vmem:[%s2529_s8 + $0x14] sm:$0xf] }
  0x1e   : > { %v427_v53 = vor.u32 %v425_v31, %v2548_v42  ;;  %v416_v54 = vrot.slane %v414_v43, 7  ;;  %547 = vst [vmem:[#allocation3 + $0x20] sm:$0x1] %v546_v50  ;;  %652 = vst [vmem:[#allocation3 + $0x8] sm:$0xf] %v651_v51  ;;  %v657_v57 = vsel %vm2543_vm5, %v583_v45, %v656_v41  ;;  %v488_v58 = vsel %vm2543_vm5, %v411_v46, %v487_v47  ;;  %s2442_s12 = smov 8  }
  0x1f   : > { %483 = vst [vmem:[#allocation2 + $0x8] sm:$0xf] %v482_v52  ;;  %v594_v59 = vshrl.u32 %v2186_v44, 16  ;;  %v597_v60 = vshll.u32 %v2186_v44, 16  ;;  %v490_v61 = vld [vmem:[#allocation2 + $0x14] sm:$0x1] }
  0x20   : > { %v484_v62 = vld [vmem:[#allocation2 + $0xc] sm:$0x1]  ;;  %658 = vst [vmem:[#allocation3 + $0x10] sm:$0xf] %v657_v57  ;;  %489 = vst [vmem:[#allocation2 + $0x10] sm:$0xf] %v488_v58  ;;  %v500_v63 = vsel %vm2543_vm5, %v427_v53, %v499_v48  ;;  %v419_v1 = vor.u32 %v417_v49, %v416_v54 }
  0x21   : > { %v543_v2 = vsel %vm2507_vm3, 0, %v542_v38  ;;  %v586_v3 = vshrl.u32 %v2185_v56, 16  ;;  %v659_v4 = vld [vmem:[#allocation3 + $0x14] sm:$0x1]  ;;  %v653_v5 = vld [vmem:[#allocation3 + $0xc] sm:$0x1] }
  0x22   : > { %501 = vst [vmem:[#allocation2 + $0x20] sm:$0xf] %v500_v63  ;;  %v596_v6 = vrot.slane %v594_v59, 7  ;;  %544 = vst [vmem:[#allocation3 + $0x18] sm:$0x1] %v543_v2  ;;  %v589_v7 = vshll.u32 %v2185_v56, 16  ;;  %v494_v11 = vsel %vm2543_vm5, %v419_v1, %v493_v55 }
  0x23   : > { %v412_v8 = vrot.slane %v408_v37, 4  ;;  %v404_v9 = vrot.slane %v400_v29, 4  ;;  %v502_v10 = vld [vmem:[#allocation2 + $0x24] sm:$0x1]  ;;  %v588_v12 = vrot.slane %v586_v3, 7  ;;  %v584_v13 = vrot.slane %v580_v36, 4 }
  0x24   : > { %v576_v14 = vrot.slane %v2538_v28, 4  ;;  %v496_v15 = vld [vmem:[#allocation2 + $0x1c] sm:$0x1]  ;;  %495 = vst [vmem:[#allocation2 + $0x18] sm:$0xf] %v494_v11  ;;  %v599_v16 = vor.u32 %v597_v60, %v596_v6  ;;  %v428_v19 = vrot.slane %v2548_v42, 4 }
  0x25   : > { %v491_v17 = vsel %vm2507_vm3, %v412_v8, %v490_v61  ;;  %v485_v18 = vsel %vm2507_vm3, %v404_v9, %v484_v62  ;;  %v671_v20 = vld [vmem:[#allocation3 + $0x24] sm:$0x1]  ;;  %v665_v21 = vld [vmem:[#allocation3 + $0x1c] sm:$0x1]  ;;  %v591_v22 = vor.u32 %v589_v7, %v588_v12  ;;  %v660_v23 = vsel %vm2507_vm3, %v584_v13, %v659_v4  ;;  %v380_v26 = vld [vmem:[#allocation2 + $0x30] sm:$0x1] }
  0x26   : > { %492 = vst [vmem:[#allocation2 + $0x14] sm:$0x1] %v491_v17  ;;  %486 = vst [vmem:[#allocation2 + $0xc] sm:$0x1] %v485_v18  ;;  %v654_v24 = vsel %vm2507_vm3, %v576_v14, %v653_v5  ;;  %v420_v25 = vrot.slane %v416_v54, 4  ;;  %v503_v29 = vsel %vm2507_vm3, %v428_v19, %v502_v10  ;;  %v600_v30 = vrot.slane %v596_v6, 4 }
  0x27   : > { %v394_v27 = vld [vmem:[%s2529_s8 + $0x28] sm:$0xf]  ;;  %661 = vst [vmem:[#allocation3 + $0x14] sm:$0x1] %v660_v23  ;;  %655 = vst [vmem:[#allocation3 + $0xc] sm:$0x1] %v654_v24 }
  0x28   : > { %v668_v28 = vld [vmem:[#allocation3 + $0x20] sm:$0xf]  ;;  %v592_v31 = vrot.slane %v588_v12, 4  ;;  %v381_v32 = vsel %vm2507_vm3, 0, %v380_v26  ;;  %v2584_v34 = vld [vmem:[#allocation3 + $0x8] sm:$0xf]  ;;  %v497_v37 = vsel %vm2507_vm3, %v420_v25, %v496_v15  ;;  %v672_v41 = vsel %vm2507_vm3, %v600_v30, %v671_v20 }
  0x29   : > { %v2586_v35 = vld [vmem:[#allocation2 + $0x8] sm:$0xf]  ;;  %v669_v36 = vsel %vm2543_vm5, %v599_v16, %v668_v28  ;;  %504 = vst [vmem:[#allocation2 + $0x24] sm:$0x1] %v503_v29  ;;  %382 = vst [vmem:[#allocation2 + $0x30] sm:$0x1] %v381_v32  ;;  %870 = vrot.lane.b32.xlu1 %v2584_v34, %s2441_s9 }
  0x2a   : > { %v438_v38 = vshrl.u32 %v394_v27, 16  ;;  %v441_v39 = vshll.u32 %v394_v27, 16  ;;  %790 = vrot.lane.b32.xlu0 %v2586_v35, %s2441_s9  ;;  %v2596_v40 = vld [vmem:[#allocation3 + $0x10] sm:$0xf]  ;;  %670 = vst [vmem:[#allocation3 + $0x20] sm:$0xf] %v669_v36  ;;  %v666_v42 = vsel %vm2507_vm3, %v592_v31, %v665_v21 }
  0x2b   : > { %498 = vst [vmem:[#allocation2 + $0x1c] sm:$0x1] %v497_v37  ;;  %v377_v43 = vld [vmem:[#allocation2 + $0x28] sm:$0x1]  ;;  %v2602_v44 = vld [vmem:[#allocation2 + $0x10] sm:$0xf] }
  0x2c   : > { %v662_v45 = vld [vmem:[#allocation3 + $0x18] sm:$0xf]  ;;  %673 = vst [vmem:[#allocation3 + $0x24] sm:$0x1] %v672_v41  ;;  %667 = vst [vmem:[#allocation3 + $0x1c] sm:$0x1] %v666_v42 }
  0x2d   : > { %v2604_v46 = vrot.slane %v438_v38, 7  ;;  %v378_v47 = vsel %vm2507_vm3, 0, %v377_v43  ;;  %v663_v48 = vsel %vm2543_vm5, %v591_v22, %v662_v45  ;;  %v393_v49 = vld [vmem:[%s2529_s8 + $0x20] sm:$0xf]  ;;  %v551_v50 = vld [vmem:[#allocation3 + $0x30] sm:$0x1]  ;;  %874 = vrot.lane.b32.xlu1 %v2596_v40, %s2441_s9 }
  0x2e   : > { %379 = vst [vmem:[#allocation2 + $0x28] sm:$0x1] %v378_v47  ;;  %v2188_v51 = vld [vmem:[%s2529_s8 + $0x2c] sm:$0xf]  ;;  %664 = vst [vmem:[#allocation3 + $0x18] sm:$0xf] %v663_v48  ;;  %794 = vrot.lane.b32.xlu0 %v2602_v44, %s2441_s9 }
  0x2f   : > { %v443_v52 = vor.u32 %v441_v39, %v2604_v46  ;;  %v430_v53 = vshrl.u32 %v393_v49, 16  ;;  %v552_v54 = vsel %vm2507_vm3, 0, %v551_v50  ;;  %v433_v55 = vshll.u32 %v393_v49, 16  ;;  %v2619_v57 = vld [vmem:[#allocation2 + $0x20] sm:$0xf]  ;;  %s2443_s13 = smov 16  }
  0x30   : > { %553 = vst [vmem:[#allocation3 + $0x30] sm:$0x1] %v552_v54  ;;  %v610_v56 = vshrl.u32 %v2188_v51, 16  ;;  %v2621_v58 = vld [vmem:[#allocation2 + $0x18] sm:$0xf]  ;;  %v613_v60 = vshll.u32 %v2188_v51, 16 }
  0x31   : > { %v2623_v59 = vrot.slane %v430_v53, 7  ;;  %v511_v61 = vld [vmem:[#allocation2 + $0x30] sm:$0xf]  ;;  %802 = vrot.lane.b32.xlu1 %v2619_v57, %s2441_s9  ;;  %v2634_v2 = vld [vmem:[#allocation3 + $0x20] sm:$0xf]  ;;  %v444_v23 = vrot.slane %v2604_v46, 4 }
  0x32   : > { %v2625_v62 = vrot.slane %v610_v56, 7  ;;  %v512_v63 = vsel %vm2543_vm5, %v443_v52, %v511_v61  ;;  %798 = vrot.lane.b32.xlu0 %v2621_v58, %s2441_s9  ;;  %v548_v5 = vld [vmem:[#allocation3 + $0x28] sm:$0x1]  ;;  %v2187_v9 = vld [vmem:[%s2529_s8 + $0x24] sm:$0xf]  ;;  %s2444_s14 = smov 24  }
  0x33   : > { %513 = vst [vmem:[#allocation2 + $0x30] sm:$0xf] %v512_v63  ;;  %v435_v1 = vor.u32 %v433_v55, %v2623_v59  ;;  %v549_v8 = vsel %vm2507_vm3, 0, %v548_v5  ;;  %v2644_v10 = vld [vmem:[#allocation2 + $0x14] sm:$0x1]  ;;  %v602_v13 = vshrl.u32 %v2187_v9, 16 }
  0x34   : > { %v615_v4 = vor.u32 %v613_v60, %v2625_v62  ;;  %v2646_v11 = vld [vmem:[#allocation2 + $0xc] sm:$0x1]  ;;  %550 = vst [vmem:[#allocation3 + $0x28] sm:$0x1] %v549_v8  ;;  %v605_v14 = vshll.u32 %v2187_v9, 16  ;;  %v436_v28 = vrot.slane %v2623_v59, 4 }
  0x35   : > { %v505_v3 = vld [vmem:[#allocation2 + $0x28] sm:$0xf]  ;;  %v2637_v6 = vld [vmem:[#allocation3 + $0x18] sm:$0xf]  ;;  %882 = vrot.lane.b32.xlu1 %v2634_v2, %s2441_s9  ;;  %v396_v17 = vld [vmem:[%s2529_s8 + $0x38] sm:$0xf] }
  0x36   : > { %3351 = vst [vmem:[#allocation4_spill] sm:$0xff] %v2637_v6  ;;  %v506_v7 = vsel %vm2543_vm5, %v435_v1, %v505_v3  ;;  %878 = vrot.lane.b32.xlu0 %v2637_v6, %s2441_s9  ;;  %v386_v16 = vld [vmem:[#allocation2 + $0x40] sm:$0x1]  ;;  %v383_v18 = vld [vmem:[#allocation2 + $0x38] sm:$0x1]  ;;  %v604_v19 = vrot.slane %v602_v13, 7 }
  0x37   : > { %507 = vst [vmem:[#allocation2 + $0x28] sm:$0xf] %v506_v7  ;;  %v680_v12 = vld [vmem:[#allocation3 + $0x30] sm:$0xf]  ;;  %v387_v20 = vsel %vm2507_vm3, 0, %v386_v16  ;;  %v454_v21 = vshrl.u32 %v396_v17, 16 }
  0x38   : > { %v681_v15 = vsel %vm2543_vm5, %v615_v4, %v680_v12  ;;  %v395_v22 = vld [vmem:[%s2529_s8 + $0x30] sm:$0xf]  ;;  %388 = vst [vmem:[#allocation2 + $0x40] sm:$0x1] %v387_v20  ;;  %v457_v24 = vshll.u32 %v396_v17, 16  ;;  %v384_v25 = vsel %vm2507_vm3, 0, %v383_v18  ;;  %v607_v31 = vor.u32 %v605_v14, %v604_v19 }
  0x39   : > { %682 = vst [vmem:[#allocation3 + $0x30] sm:$0xf] %v681_v15  ;;  %v446_v26 = vshrl.u32 %v395_v22, 16  ;;  %v557_v27 = vld [vmem:[#allocation3 + $0x40] sm:$0x1]  ;;  %v456_v32 = vrot.slane %v454_v21, 7  ;;  %796 = vrot.lane.b32.xlu1 %v2644_v10, %s2441_s9 }
  0x3a   : > { %v2662_v29 = vld [vmem:[#allocation3 + $0x14] sm:$0x1]  ;;  %v2664_v30 = vld [vmem:[#allocation3 + $0xc] sm:$0x1]  ;;  %385 = vst [vmem:[#allocation2 + $0x38] sm:$0x1] %v384_v25  ;;  %792 = vrot.lane.b32.xlu0 %v2646_v11, %s2441_s9 }
  0x3b   : > { %v449_v36 = vshll.u32 %v395_v22, 16  ;;  %v558_v37 = vsel %vm2507_vm3, 0, %v557_v27  ;;  %v2190_v38 = vld [vmem:[%s2529_s8 + $0x3c] sm:$0xf]  ;;  %v448_v39 = vrot.slane %v446_v26, 7  ;;  %v616_v45 = vrot.slane %v2625_v62, 4 }
  0x3c   : > { %559 = vst [vmem:[#allocation3 + $0x40] sm:$0x1] %v558_v37  ;;  %v626_v41 = vshrl.u32 %v2190_v38, 16  ;;  %v629_v42 = vshll.u32 %v2190_v38, 16  ;;  %v554_v43 = vld [vmem:[#allocation3 + $0x38] sm:$0x1]  ;;  %v459_v51 = vor.u32 %v457_v24, %v456_v32 }
  0x3d   : > { %v555_v46 = vsel %vm2507_vm3, 0, %v554_v43  ;;  %v2189_v47 = vld [vmem:[%s2529_s8 + $0x34] sm:$0xf]  ;;  %v608_v49 = vrot.slane %v604_v19, 4  ;;  %v674_v50 = vld [vmem:[#allocation3 + $0x28] sm:$0xf]  ;;  %v451_v59 = vor.u32 %v449_v36, %v448_v39  ;;  %876 = vrot.lane.b32.xlu1 %v2662_v29, %s2441_s9 }
  0x3e   : > { %v514_v48 = vld [vmem:[#allocation2 + $0x34] sm:$0x1]  ;;  %v628_v52 = vrot.slane %v626_v41, 7  ;;  %556 = vst [vmem:[#allocation3 + $0x38] sm:$0x1] %v555_v46  ;;  %v618_v53 = vshrl.u32 %v2189_v47, 16  ;;  %v675_v56 = vsel %vm2543_vm5, %v607_v31, %v674_v50  ;;  %872 = vrot.lane.b32.xlu0 %v2664_v30, %s2441_s9 }
  0x3f   : > { %v515_v54 = vsel %vm2507_vm3, %v444_v23, %v514_v48  ;;  %v2679_v55 = vld [vmem:[#allocation2 + $0x24] sm:$0x1]  ;;  %v621_v60 = vshll.u32 %v2189_v47, 16  ;;  %v508_v61 = vld [vmem:[#allocation2 + $0x2c] sm:$0x1]  ;;  %v460_v63 = vrot.slane %v456_v32, 4 }
  0x40   : > { %516 = vst [vmem:[#allocation2 + $0x34] sm:$0x1] %v515_v54  ;;  %v683_v62 = vld [vmem:[#allocation3 + $0x34] sm:$0x1]  ;;  %676 = vst [vmem:[#allocation3 + $0x28] sm:$0xf] %v675_v56  ;;  %v631_v3 = vor.u32 %v629_v42, %v628_v52  ;;  %v509_v5 = vsel %vm2507_vm3, %v436_v28, %v508_v61 }
  0x41   : > { %v2687_v1 = vld [vmem:[#allocation2 + $0x1c] sm:$0x1]  ;;  %v620_v4 = vrot.slane %v618_v53, 7  ;;  %v684_v7 = vsel %vm2507_vm3, %v616_v45, %v683_v62  ;;  %v677_v8 = vld [vmem:[#allocation3 + $0x2c] sm:$0x1]  ;;  %v452_v14 = vrot.slane %v448_v39, 4  ;;  %804 = vrot.lane.b32.xlu1 %v2679_v55, %s2441_s9 }
  0x42   : > { %v523_v9 = vld [vmem:[#allocation2 + $0x40] sm:$0xf]  ;;  %510 = vst [vmem:[#allocation2 + $0x2c] sm:$0x1] %v509_v5  ;;  %685 = vst [vmem:[#allocation3 + $0x34] sm:$0x1] %v684_v7  ;;  %v678_v12 = vsel %vm2507_vm3, %v608_v49, %v677_v8  ;;  %800 = vrot.lane.b32.xlu0 %v2687_v1, %s2441_s9 }
  0x43   : > { %v526_v13 = vld [vmem:[#allocation2 + $0x44] sm:$0x1]  ;;  %v632_v15 = vrot.slane %v628_v52, 4  ;;  %v524_v16 = vsel %vm2543_vm5, %v459_v51, %v523_v9  ;;  %v517_v17 = vld [vmem:[#allocation2 + $0x38] sm:$0xf]  ;;  %v623_v18 = vor.u32 %v621_v60, %v620_v4  ;;  %v624_v26 = vrot.slane %v620_v4, 4 }
  0x44   : > { %679 = vst [vmem:[#allocation3 + $0x2c] sm:$0x1] %v678_v12  ;;  %v527_v19 = vsel %vm2507_vm3, %v460_v63, %v526_v13  ;;  %v520_v20 = vld [vmem:[#allocation2 + $0x3c] sm:$0x1]  ;;  %v695_v21 = vld [vmem:[#allocation3 + $0x44] sm:$0x1]  ;;  %v518_v22 = vsel %vm2543_vm5, %v451_v59, %v517_v17 }
  0x45   : > { %525 = vst [vmem:[#allocation2 + $0x40] sm:$0xf] %v524_v16  ;;  %v692_v23 = vld [vmem:[#allocation3 + $0x40] sm:$0xf]  ;;  %528 = vst [vmem:[#allocation2 + $0x44] sm:$0x1] %v527_v19  ;;  %v521_v24 = vsel %vm2507_vm3, %v452_v14, %v520_v20  ;;  %v696_v25 = vsel %vm2507_vm3, %v632_v15, %v695_v21 }
  0x46   : > { %v689_v27 = vld [vmem:[#allocation3 + $0x3c] sm:$0x1]  ;;  %v2709_v28 = vld [vmem:[#allocation3 + $0x24] sm:$0x1]  ;;  %519 = vst [vmem:[#allocation2 + $0x38] sm:$0xf] %v518_v22  ;;  %v693_v32 = vsel %vm2543_vm5, %v631_v3, %v692_v23 }
  0x47   : > { %3352 = vst [vmem:[#allocation5_spill] sm:$0xff] %v2709_v28  ;;  %v2711_v31 = vld [vmem:[#allocation3 + $0x1c] sm:$0x1]  ;;  %522 = vst [vmem:[#allocation2 + $0x3c] sm:$0x1] %v521_v24  ;;  %v690_v38 = vsel %vm2507_vm3, %v624_v26, %v689_v27  ;;  %884 = vrot.lane.b32.xlu1 %v2709_v28, %s2441_s9  ;;  %s2445_s15 = smov 32  }
  0x48   : > { %3353 = vst [vmem:[#allocation6_spill] sm:$0xff] %v2711_v31  ;;  %697 = vst [vmem:[#allocation3 + $0x44] sm:$0x1] %v696_v25  ;;  %v530_v36 = vld [vmem:[#allocation3 + $0x4] sm:$0x1]  ;;  %880 = vrot.lane.b32.xlu0 %v2711_v31, %s2441_s9  ;;  %s2446_s16 = smov 40  }
  0x49   : > { %694 = vst [vmem:[#allocation3 + $0x40] sm:$0xf] %v693_v32  ;;  %v686_v37 = vld [vmem:[#allocation3 + $0x38] sm:$0xf]  ;;  %v531_v39 = vsel %vm2507_vm3, 0, %v530_v36  ;;  %vm1073_vm9 = vcmask 27648  }
  0x4a   : > { %v533_v41 = vld [vmem:[#allocation3] sm:$0x1]  ;;  %v687_v42 = vsel %vm2543_vm5, %v623_v18, %v686_v37  ;;  %691 = vst [vmem:[#allocation3 + $0x3c] sm:$0x1] %v690_v38  ;;  %532 = vst [vmem:[#allocation3 + $0x4] sm:$0x1] %v531_v39 }
  0x4b   : > { %v534_v43 = vsel %vm2507_vm3, 0, %v533_v41  ;;  %688 = vst [vmem:[#allocation3 + $0x38] sm:$0xf] %v687_v42  ;;  %v2727_v45 = vld [vmem:[#allocation2 + $0x30] sm:$0xf]  ;;  %vm1102_vm10 = vcmask 31744  }
  0x4c   : > { %535 = vst [vmem:[#allocation3] sm:$0x1] %v534_v43  ;;  %v2729_v46 = vld [vmem:[#allocation2 + $0x28] sm:$0xf]  ;;  %810 = vrot.lane.b32.xlu1 %v2727_v45, %s2441_s9  ;;  %v2735_v33 = vld [vmem:[#allocation3 + $0x30] sm:$0xf] }
  0x4d   : > { %806 = vrot.lane.b32.xlu0 %v2729_v46, %s2441_s9  ;;  %v2737_v47 = vld [vmem:[#allocation3 + $0x28] sm:$0xf]  ;;  %v2743_v48 = vld [vmem:[#allocation2 + $0x40] sm:$0xf]  ;;  %v2745_v49 = vld [vmem:[#allocation2 + $0x38] sm:$0xf] }
  0x4e   : > { %v359_v50 = vld [vmem:[#allocation2 + $0x4] sm:$0x1]  ;;  %v362_v52 = vld [vmem:[#allocation2] sm:$0x1]  ;;  %v2763_v59 = vld [vmem:[#allocation2 + $0x34] sm:$0x1] }
  0x4f   : > { %v360_v51 = vsel %vm2507_vm3, 0, %v359_v50  ;;  %v363_v53 = vsel %vm2507_vm3, 0, %v362_v52  ;;  %v2765_v0 = vld [vmem:[#allocation2 + $0x2c] sm:$0x1]  ;;  %v2771_v60 = vld [vmem:[#allocation3 + $0x34] sm:$0x1] }
  0x50   : > { %890 = vrot.lane.b32.xlu1 %v2735_v33, %s2441_s9  ;;  %361 = vst [vmem:[#allocation2 + $0x4] sm:$0x1] %v360_v51  ;;  %364 = vst [vmem:[#allocation2] sm:$0x1] %v363_v53  ;;  %v2755_v54 = vld [vmem:[#allocation3 + $0x40] sm:$0xf] }
  0x51   : > { %886 = vrot.lane.b32.xlu0 %v2737_v47, %s2441_s9  ;;  %3354 = vst [vmem:[#allocation7_spill] sm:$0xff] %v2755_v54  ;;  %v2773_v61 = vld [vmem:[#allocation3 + $0x2c] sm:$0x1]  ;;  %v2779_v62 = vld [vmem:[#allocation2 + $0x44] sm:$0x1]  ;;  %s2994_s17 = sshll.u32 %s3394_s24, 5 }
  0x52   : > { %v2757_v56 = vld [vmem:[#allocation3 + $0x38] sm:$0xf]  ;;  %3356 = vst [vmem:[#allocation9_spill] sm:$0xff] %v2773_v61  ;;  %v2781_v63 = vld [vmem:[#allocation2 + $0x3c] sm:$0x1]  ;;  %s3015_s22 = scalar_lea.vmem %s3321_s5, %s2994_s17  ;;  %s2447_s28 = smov 48  }
  0x53   : > { %3355 = vst [vmem:[#allocation8_spill] sm:$0xff] %v2757_v56  ;;  %v2787_v3 = vld [vmem:[#allocation3 + $0x8] sm:$0xf]  ;;  %v2789_v4 = vld [vmem:[#allocation3 + $0x44] sm:$0x1]  ;;  %s2448_s10 = smov 56   ;;  %s3289_s21 = scalar_lea.vmem %s3323_s7, %s2994_s17 }
  0x54   : > { %818 = vrot.lane.b32.xlu1 %v2743_v48, %s2441_s9  ;;  %3357 = vst [vmem:[#allocation10_spill] sm:$0xff] %v2789_v4  ;;  %v2791_v5 = vld [vmem:[#allocation3 + $0x3c] sm:$0x1]  ;;  %v2793_v7 = vld [vmem:[#allocation3] sm:$0xf]  ;;  %v2233_v12 = vcombine.low %v2787_v3, %v2787_v3  ;;  %vm1689_vm12 = vcmask 64512  }
  0x55   : > { %814 = vrot.lane.b32.xlu0 %v2745_v49, %s2441_s9  ;;  %3358 = vst [vmem:[#allocation11_spill] sm:$0xff] %v2791_v5  ;;  %v2795_v8 = vld [vmem:[#allocation3 + $0x20] sm:$0xf]  ;;  %v1082_v9 = vld [vmem:[%s3319_s3] sm:$0x3]  ;;  %v2232_v13 = vcombine.low %v2793_v7, %v2793_v7  ;;  %vm1714_vm13 = vcmask 130048  }
  0x56   : > { %v2808_v14 = vld [vmem:[#allocation3 + $0x28] sm:$0xf]  ;;  %v2810_v15 = vld [vmem:[#allocation2 + $0x8] sm:$0xf]  ;;  %v721_v16 = vld [vmem:[#allocation2 + $0xc] sm:$0x1]  ;;  %2354 = vmatprep.subr.msk.bf16.mxu0 %vm1115_vm6, %v1082_v9  ;;  %v2236_v20 = vcombine.low %v2795_v8, %v2795_v8 }
  0x57   : > { %3359 = vst [vmem:[#allocation12_spill] sm:$0xff] %v2810_v15  ;;  %v2812_v17 = vld [vmem:[#allocation2] sm:$0xf]  ;;  %v720_v18 = vld [vmem:[#allocation2 + $0x4] sm:$0x1]  ;;  %v1117_v19 = vsel %vm1115_vm6, %v1082_v9, 0  ;;  %v2237_v22 = vcombine.low %v2808_v14, %v2808_v14  ;;  %v2241_v24 = vcombine.low %v2810_v15, %v721_v16 }
  0x58   : > { %898 = vrot.lane.b32.xlu1 %v2755_v54, %s2441_s9  ;;  %3360 = vst [vmem:[#allocation13_spill] sm:$0xff] %v2812_v17  ;;  %v2816_v21 = vld [vmem:[#allocation2 + $0x20] sm:$0xf]  ;;  %2321 = vmatpush3.bf16.msra.mxu0 %v1117_v19  ;;  %v2240_v23 = vcombine.low %v2812_v17, %v720_v18  ;;  %v724_v25 = vld [vmem:[#allocation2 + $0x24] sm:$0x1]  ;;  %vm1731_vm14 = vcmask 195584  }
  0x59   : > { %894 = vrot.lane.b32.xlu0 %v2757_v56, %s2441_s9  ;;  %3361 = vst [vmem:[#allocation14_spill] sm:$0xff] %v2816_v21  ;;  %v2824_v26 = vld [vmem:[#allocation2 + $0x28] sm:$0xf]  ;;  %v725_v27 = vld [vmem:[#allocation2 + $0x2c] sm:$0x1]  ;;  %v2244_v39 = vcombine.low %v2816_v21, %v724_v25  ;;  %v1291_v51 = vshll.u32 %v2241_v24, 16 }
  0x5a   : > { %3362 = vst [vmem:[#allocation15_spill] sm:$0xff] %v2824_v26  ;;  %v2826_v32 = vld [vmem:[#allocation3 + $0x18] sm:$0xf]  ;;  %v2828_v36 = vld [vmem:[#allocation3 + $0x10] sm:$0xf]  ;;  %v2245_v41 = vcombine.low %v2824_v26, %v725_v27  ;;  %v1284_v50 = vshll.u32 %v2240_v23, 16 }
  0x5b   : > { %v2830_v37 = vld [vmem:[#allocation3 + $0x38] sm:$0xf]  ;;  %v2832_v38 = vld [vmem:[#allocation3 + $0x30] sm:$0xf]  ;;  %v2235_v42 = vcombine.low %v2826_v32, %v2826_v32  ;;  %v2234_v43 = vcombine.low %v2828_v36, %v2828_v36  ;;  %v2842_v52 = vld [vmem:[#allocation2 + $0x10] sm:$0xf] }
  0x5c   : > { %812 = vrot.lane.b32.xlu1 %v2763_v59, %s2441_s9  ;;  %3363 = vst [vmem:[#allocation16_spill] sm:$0xff] %v2842_v52  ;;  %v722_v53 = vld [vmem:[#allocation2 + $0x14] sm:$0x1]  ;;  %v2844_v9 = vld [vmem:[#allocation2 + $0x18] sm:$0xf]  ;;  %v2238_v16 = vcombine.low %v2832_v38, %v2832_v38  ;;  %v1289_v18 = vshrl.u32 %v2241_v24, 16 }
  0x5d   : > { %808 = vrot.lane.b32.xlu0 %v2765_v0, %s2441_s9  ;;  %3364 = vst [vmem:[#allocation17_spill] sm:$0xff] %v2844_v9  ;;  %v1312_v19 = vshll.u32 %v2244_v39, 16  ;;  %v2851_v25 = vld [vmem:[#allocation2 + $0x30] sm:$0xf]  ;;  %v1282_v27 = vshrl.u32 %v2240_v23, 16  ;;  %v1286_v21 = vrot.slane %v1284_v50, 1 }
  0x5e   : > { %3365 = vst [vmem:[#allocation18_spill] sm:$0xff] %v2851_v25  ;;  %v1293_v26 = vrot.slane %v1291_v51, 1  ;;  %v726_v15 = vld [vmem:[#allocation2 + $0x34] sm:$0x1]  ;;  %v1317_v31 = vshrl.u32 %v2245_v41, 16  ;;  %vm1748_vm15 = vcmask 261120  }
  0x5f   : > { %v729_v24 = vld [vmem:[#allocation3 + $0xc] sm:$0x1]  ;;  %v728_v28 = vld [vmem:[#allocation3 + $0x4] sm:$0x1]  ;;  %v1287_v23 = vor.u32 %v1286_v21, %v1282_v27  ;;  %vm950_vm7 = vsmask.f32 3328 }
  0x60   : > { %892 = vrot.lane.b32.xlu1 %v2771_v60, %s2441_s9  ;;  %vm951_vm8 = vsmask.f32 7440  ;;  %vm1765_vm0 = vcmask 326656   ;;  %vm1782_vm1 = vcmask 392192   ;;  %vm1799_vm3 = vcmask 457728  }
  0x61   : > { %888 = vrot.lane.b32.xlu0 %v2773_v61, %s2441_s9  ;;  %v1310_v61 = vshrl.u32 %v2244_v39, 16  ;;  %v2248_v39 = vcombine.low %v2793_v7, %v728_v28  ;;  %v731_v28 = vld [vmem:[#allocation3 + $0x1c] sm:$0x1]  ;;  %vm3007_vm11 = vmor %vm950_vm7, %vm951_vm8  ;;  %vm1875_vm4 = vcmask 523264  }
  0x62   : > { %v2251_v27 = vcombine.low %v2826_v32, %v731_v28 }
  0x64   : > { %820 = vrot.lane.b32.xlu1 %v2779_v62, %s2441_s9 }
  0x65   : > { %816 = vrot.lane.b32.xlu0 %v2781_v63, %s2441_s9 }
  0x68   : > { %900 = vrot.lane.b32.xlu1 %v2789_v4, %s2441_s9  ;;  %v727_v4 = vld [vmem:[#allocation2 + $0x3c] sm:$0x1] }
  0x69   : > { %896 = vrot.lane.b32.xlu0 %v2791_v5, %s2441_s9  ;;  %v2856_v5 = vld [vmem:[#allocation2 + $0x38] sm:$0xf] }
  0x6a   : > { %v2247_v51 = vcombine.low %v2856_v5, %v727_v4 }
  0x6c   : > { %1227 = vrot.lane.b32.xlu1 %v2233_v12, %s2442_s12  ;;  %v723_v12 = vld [vmem:[#allocation2 + $0x1c] sm:$0x1] }
  0x6d   : > { %1225 = vrot.lane.b32.xlu0 %v2232_v13, %s2442_s12  ;;  %v2239_v13 = vcombine.low %v2830_v37, %v2830_v37  ;;  %v2243_v17 = vcombine.low %v2844_v9, %v723_v12  ;;  %v2249_v12 = vcombine.low %v2787_v3, %v729_v24  ;;  %v733_v9 = vld [vmem:[#allocation3 + $0x2c] sm:$0x1] }
  0x6e   : > { %v2253_v4 = vcombine.low %v2808_v14, %v733_v9  ;;  %v1378_v9 = vshrl.u32 %v2248_v39, 16 }
  0x6f   : > { %v1305_v50 = vshll.u32 %v2243_v17, 16  ;;  %v1303_v6 = vshrl.u32 %v2243_v17, 16  ;;  %v1385_v24 = vshrl.u32 %v2249_v12, 16 }
  0x70   : > { %1235 = vrot.lane.b32.xlu1 %v2237_v22, %s2442_s12  ;;  %v2242_v22 = vcombine.low %v2842_v52, %v722_v53  ;;  %v1314_v53 = vrot.slane %v1312_v19, 1 }
  0x71   : > { %1233 = vrot.lane.b32.xlu0 %v2236_v20, %s2442_s12  ;;  %v1319_v20 = vshll.u32 %v2245_v41, 16  ;;  %v732_v41 = vld [vmem:[#allocation3 + $0x24] sm:$0x1]  ;;  %v1307_v21 = vrot.slane %v1305_v50, 1  ;;  %v1415_v50 = vshll.u32 %v2253_v4, 16 }
  0x72   : > { %v1298_v54 = vshll.u32 %v2242_v22, 16  ;;  %v1315_v19 = vor.u32 %v1314_v53, %v1310_v61  ;;  %v2252_v3 = vcombine.low %v2795_v8, %v732_v41  ;;  %v1380_v61 = vshll.u32 %v2248_v39, 16  ;;  %v735_v8 = vld [vmem:[#allocation3 + $0x3c] sm:$0x1] }
  0x73   : > { %v1321_v52 = vrot.slane %v1319_v20, 1  ;;  %v1296_v20 = vshrl.u32 %v2242_v22, 16  ;;  %v1308_v17 = vor.u32 %v1307_v21, %v1303_v6  ;;  %v1401_v21 = vshll.u32 %v2251_v27, 16 }
  0x74   : > { %1231 = vrot.lane.b32.xlu1 %v2235_v42, %s2442_s12  ;;  %v2246_v42 = vcombine.low %v2851_v25, %v726_v15  ;;  %v1300_v56 = vrot.slane %v1298_v54, 1  ;;  %v730_v54 = vld [vmem:[#allocation3 + $0x14] sm:$0x1]  ;;  %v1408_v53 = vshll.u32 %v2252_v3, 16  ;;  %v1406_v41 = vshrl.u32 %v2252_v3, 16 }
  0x75   : > { %1229 = vrot.lane.b32.xlu0 %v2234_v43, %s2442_s12  ;;  %v1294_v43 = vor.u32 %v1293_v26, %v1289_v18  ;;  %v1322_v15 = vor.u32 %v1321_v52, %v1317_v31  ;;  %v1387_v18 = vshll.u32 %v2249_v12, 16  ;;  %v1331_v31 = vshrl.u32 %v2247_v51, 16 }
  0x76   : > { %v1326_v26 = vshll.u32 %v2246_v42, 16  ;;  %v1301_v7 = vor.u32 %v1300_v56, %v1296_v20  ;;  %v2250_v14 = vcombine.low %v2828_v36, %v730_v54  ;;  %v1382_v56 = vrot.slane %v1380_v61, 1 }
  0x77   : > { %v1389_v6 = vrot.slane %v1387_v18, 1  ;;  %v1410_v36 = vrot.slane %v1408_v53, 1  ;;  %v1413_v20 = vshrl.u32 %v2253_v4, 16  ;;  %v2258_v53 = vcombine.low %v2621_v58, %v2621_v58 }
  0x78   : > { %1239 = vrot.lane.b32.xlu1 %v2239_v13, %s2442_s12  ;;  %v1333_v13 = vshll.u32 %v2247_v51, 16  ;;  %v1328_v22 = vrot.slane %v1326_v26, 1  ;;  %v2255_v51 = vcombine.low %v2830_v37, %v735_v8  ;;  %v1383_v12 = vor.u32 %v1382_v56, %v1378_v9 }
  0x79   : > { %1237 = vrot.lane.b32.xlu0 %v2238_v16, %s2442_s12  ;;  %v1324_v16 = vshrl.u32 %v2246_v42, 16  ;;  %v734_v42 = vld [vmem:[#allocation3 + $0x34] sm:$0x1]  ;;  %v1390_v39 = vor.u32 %v1389_v6, %v1385_v24  ;;  %v1411_v26 = vor.u32 %v1410_v36, %v1406_v41  ;;  %v2257_v24 = vcombine.low %v2602_v44, %v2602_v44 }
  0x7a   : > { %v1335_v52 = vrot.slane %v1333_v13, 1  ;;  %v2254_v32 = vcombine.low %v2832_v38, %v734_v42  ;;  %v1392_v13 = vshrl.u32 %v2250_v14, 16  ;;  %v1403_v38 = vrot.slane %v1401_v21, 1 }
  0x7b   : > { %v1427_v18 = vshrl.u32 %v2255_v51, 16  ;;  %v2261_v8 = vcombine.low %v2727_v45, %v2727_v45  ;;  %v2259_v42 = vcombine.low %v2619_v57, %v2619_v57 }
  0x7c   : > { %1339 = vrot.lane.b32.xlu1 %v1294_v43, %s2443_s13  ;;  %v1336_v43 = vor.u32 %v1335_v52, %v1331_v31  ;;  %v1422_v3 = vshll.u32 %v2254_v32, 16  ;;  %v1420_v61 = vshrl.u32 %v2254_v32, 16  ;;  %v2262_v32 = vcombine.low %v2745_v49, %v2745_v49 }
  0x7d   : > { %1337 = vrot.lane.b32.xlu0 %v1287_v23, %s2443_s13  ;;  %v1329_v23 = vor.u32 %v1328_v22, %v1324_v16  ;;  %v1429_v16 = vshll.u32 %v2255_v51, 16 }
  0x7e   : > { %v1424_v4 = vrot.slane %v1422_v3, 1 }
  0x7f   : > { %v1431_v22 = vrot.slane %v1429_v16, 1 }
  0x80   : > { %1347 = vrot.lane.b32.xlu1 %v1322_v15, %s2443_s13  ;;  %v1417_v15 = vrot.slane %v1415_v50, 1  ;;  %v1425_v31 = vor.u32 %v1424_v4, %v1420_v61  ;;  %v2900_v50 = vcombine.low %v2586_v35, %v2646_v11 }
  0x81   : > { %1345 = vrot.lane.b32.xlu0 %v1315_v19, %s2443_s13  ;;  %v1394_v19 = vshll.u32 %v2250_v14, 16  ;;  %v1432_v52 = vor.u32 %v1431_v22, %v1427_v18  ;;  %v2260_v14 = vcombine.low %v2729_v46, %v2729_v46 }
  0x82   : > { %v1418_v37 = vor.u32 %v1417_v15, %v1413_v20  ;;  %v2922_v20 = vcombine.low %v2619_v57, %v2679_v55 }
  0x83   : > { %v1396_v28 = vrot.slane %v1394_v19, 1  ;;  %v2263_v19 = vcombine.low %v2743_v48, %v2743_v48 }
  0x84   : > { %1343 = vrot.lane.b32.xlu1 %v1308_v17, %s2443_s13 }
  0x85   : > { %1341 = vrot.lane.b32.xlu0 %v1301_v7, %s2443_s13  ;;  %v1399_v7 = vshrl.u32 %v2251_v27, 16  ;;  %v1397_v54 = vor.u32 %v1396_v28, %v1392_v13  ;;  %v2256_v27 = vcombine.low %v2586_v35, %v2586_v35  ;;  %v2264_v13 = vcombine.low %v2584_v34, %v2584_v34 }
  0x87   : > { %v1404_v17 = vor.u32 %v1403_v38, %v1399_v7  ;;  %v1532_v7 = vshll.u32 %v2900_v50, 16  ;;  %v2265_v38 = vcombine.low %v2596_v40, %v2596_v40 }
  0x88   : > { %1351 = vrot.lane.b32.xlu1 %v1336_v43, %s2443_s13 }
  0x89   : > { %1349 = vrot.lane.b32.xlu0 %v1329_v23, %s2443_s13  ;;  %v2896_v23 = vcombine.low %v2602_v44, %v2644_v10 }
  0x8b   : > { %v1539_v28 = vshll.u32 %v2896_v23, 16 }
  0x8c   : > { %1435 = vrot.lane.b32.xlu1 %v1390_v39, %s2444_s14  ;;  %v2914_v39 = vcombine.low %v2596_v40, %v2662_v29 }
  0x8d   : > { %1433 = vrot.lane.b32.xlu0 %v1383_v12, %s2444_s14 }
  0x90   : > { %1443 = vrot.lane.b32.xlu1 %v1418_v37, %s2444_s14 }
  0x91   : > { %1441 = vrot.lane.b32.xlu0 %v1411_v26, %s2444_s14 }
  0x94   : > { %1439 = vrot.lane.b32.xlu1 %v1404_v17, %s2444_s14  ;;  %v2950_v17 = vcombine.low %v2743_v48, %v2779_v62 }
  0x95   : > { %1437 = vrot.lane.b32.xlu0 %v1397_v54, %s2444_s14  ;;  %v2946_v54 = vcombine.low %v2729_v46, %v2765_v0 }
  0x98   : > { %1447 = vrot.lane.b32.xlu1 %v1432_v52, %s2444_s14  ;;  %v2268_v52 = vcombine.low %v2737_v47, %v2737_v47 }
  0x99   : > { %1445 = vrot.lane.b32.xlu0 %v1425_v31, %s2444_s14 }
  0x9b   : > { %v871_v9 = vpop.permute.xlu1 %870 }
  0x9c   : > { %1467 = vrot.lane.b32.xlu1 %v2257_v24, %s2445_s15  ;;  %v791_v56 = vpop.permute.xlu0 %790  ;;  %v918_v51 = vmax.bf16 %v2584_v34, %v871_v9  ;;  %v2267_v24 = vcombine.low %v2634_v2, %v2634_v2 }
  0x9d   : > { %1465 = vrot.lane.b32.xlu0 %v2256_v27, %s2445_s15  ;;  %v838_v41 = vmax.bf16 %v2586_v35, %v791_v56  ;;  %v2918_v35 = vcombine.low %v2584_v34, %v2664_v30  ;;  %v2941_v34 = vcombine.low %v2727_v45, %v2763_v59  ;;  %v2269_v27 = vcombine.low %v2735_v33, %v2735_v33 }
  0x9f   : > { %v875_v43 = vpop.permute.xlu1 %874  ;;  %v934_v26 = vmax.bf16 %v918_v51, %v838_v41  ;;  %v1560_v41 = vshll.u32 %v2946_v54, 16 }
  0xa0   : > { %1475 = vrot.lane.b32.xlu1 %v2261_v8, %s2445_s15  ;;  %v795_v6 = vpop.permute.xlu0 %794  ;;  %v920_v12 = vmax.bf16 %v2596_v40, %v875_v43  ;;  %v2954_v40 = vcombine.low %v2745_v49, %v2781_v63  ;;  %v3366_v43 = vld [vmem:[#allocation4_spill] sm:$0xff] }
  0xa1   : > { %1473 = vrot.lane.b32.xlu0 %v2260_v14, %s2445_s15  ;;  %v840_v36 = vmax.bf16 %v2602_v44, %v795_v6  ;;  %v2926_v44 = vcombine.low %v2621_v58, %v2687_v1  ;;  %v954_v31 = vshrl.u32 %v934_v26, 16  ;;  %v957_v14 = vshll.u32 %v934_v26, 16 }
  0xa2   : > { %v2266_v51 = vcombine.low %v3366_v43, %v3366_v43 }
  0xa3   : > { %v803_v15 = vpop.permute.xlu1 %802  ;;  %v936_v37 = vmax.bf16 %v920_v12, %v840_v36  ;;  %v959_v16 = vrot.slane %v957_v14, 5  ;;  %v1541_v12 = vrot.slane %v1539_v28, 1  ;;  %v1558_v14 = vshrl.u32 %v2946_v54, 16 }
  0xa4   : > { %1471 = vrot.lane.b32.xlu1 %v2259_v42, %s2445_s15  ;;  %v799_v21 = vpop.permute.xlu0 %798  ;;  %v2968_v42 = vcombine.low %v2735_v33, %v2771_v60  ;;  %v844_v36 = vmax.bf16 %v2619_v57, %v803_v15 }
  0xa5   : > { %1469 = vrot.lane.b32.xlu0 %v2258_v53, %s2445_s15  ;;  %v968_v8 = vshrl.u32 %v936_v37, 16  ;;  %v971_v9 = vshll.u32 %v936_v37, 16  ;;  %v1567_v53 = vshll.u32 %v2941_v34, 16  ;;  %v842_v37 = vmax.bf16 %v2621_v58, %v799_v21 }
  0xa6   : > { %v1530_v58 = vshrl.u32 %v2900_v50, 16 }
  0xa7   : > { %v883_v4 = vpop.permute.xlu1 %882  ;;  %v970_v61 = vrot.slane %v968_v8, 4  ;;  %v973_v18 = vrot.slane %v971_v9, 5 }
  0xa8   : > { %1479 = vrot.lane.b32.xlu1 %v2263_v19, %s2445_s15  ;;  %v879_v22 = vpop.permute.xlu0 %878  ;;  %v924_v56 = vmax.bf16 %v2634_v2, %v883_v4 }
  0xa9   : > { %1477 = vrot.lane.b32.xlu0 %v2262_v32, %s2445_s15  ;;  %v922_v6 = vmax.bf16 %v3366_v43, %v879_v22  ;;  %v3368_v22 = vld [vmem:[#allocation7_spill] sm:$0xff]  ;;  %v1537_v32 = vshrl.u32 %v2896_v23, 16  ;;  %v974_v50 = vor.u32 %v973_v18, %v970_v61  ;;  %v1569_v18 = vrot.slane %v1567_v53, 1  ;;  %s337_s15 = scalar_lea.vmem %s3322_s6, %s2994_s17 }
  0xaa   : > { %v2271_v3 = vcombine.low %v3368_v22, %v3368_v22  ;;  %v940_v25 = vmax.bf16 %v924_v56, %v844_v36 }
  0xab   : > { %v797_v19 = vpop.permute.xlu1 %796  ;;  %v938_v57 = vmax.bf16 %v922_v6, %v842_v37 }
  0xac   : > { %1499 = vrot.lane.b32.xlu1 %v2265_v38, %s2446_s16  ;;  %v793_v26 = vpop.permute.xlu0 %792  ;;  %v3367_v38 = vld [vmem:[#allocation8_spill] sm:$0xff]  ;;  %v841_v8 = vmax.bf16 %v2644_v10, %v797_v19  ;;  %v996_v6 = vshrl.u32 %v940_v25, 16  ;;  %v999_v36 = vshll.u32 %v940_v25, 16  ;;  %v1542_v19 = vor.u32 %v1541_v12, %v1537_v32 }
  0xad   : > { %1497 = vrot.lane.b32.xlu0 %v2264_v13, %s2446_s16  ;;  %v956_v13 = vrot.slane %v954_v31, 4  ;;  %v2270_v4 = vcombine.low %v3367_v38, %v3367_v38  ;;  %v1534_v31 = vrot.slane %v1532_v7, 1  ;;  %v982_v23 = vshrl.u32 %v938_v57, 16 }
  0xae   : > { %v985_v28 = vshll.u32 %v938_v57, 16 }
  0xaf   : > { %v877_v15 = vpop.permute.xlu1 %876  ;;  %v960_v56 = vor.u32 %v959_v16, %v956_v13  ;;  %v1565_v16 = vshrl.u32 %v2941_v34, 16  ;;  %v1001_v13 = vrot.slane %v999_v36, 5  ;;  %v984_v32 = vrot.slane %v982_v23, 4 }
  0xb0   : > { %1507 = vrot.lane.b32.xlu1 %v2269_v27, %s2446_s16  ;;  %v873_v21 = vpop.permute.xlu0 %872  ;;  %v921_v27 = vmax.bf16 %v2662_v29, %v877_v15  ;;  %v1535_v29 = vor.u32 %v1534_v31, %v1530_v58  ;;  %v987_v12 = vrot.slane %v985_v28, 5  ;;  %v3371_v31 = vshll.u32 %v2926_v44, 16 }
  0xb1   : > { %1505 = vrot.lane.b32.xlu0 %v2268_v52, %s2446_s16  ;;  %v839_v52 = vmax.bf16 %v2646_v11, %v793_v26  ;;  %v919_v9 = vmax.bf16 %v2664_v30, %v873_v21  ;;  %v1562_v30 = vrot.slane %v1560_v41, 1  ;;  %v998_v26 = vrot.slane %v996_v6, 4 }
  0xb2   : > { %v937_v7 = vmax.bf16 %v921_v27, %v841_v8  ;;  %v961_v53 = vrot.slane %v960_v56, 4  ;;  %v975_v41 = vrot.slane %v974_v50, 4  ;;  %v1548_v8 = vrot.slane %v3371_v31, 1 }
  0xb3   : > { %v935_v10 = vmax.bf16 %v919_v9, %v839_v52  ;;  %v805_v54 = vpop.permute.xlu1 %804  ;;  %v1563_v21 = vor.u32 %v1562_v30, %v1558_v14  ;;  %v3372_v52 = vld [vmem:[#allocation5_spill] sm:$0xff]  ;;  %v3373_v9 = vld [vmem:[#allocation6_spill] sm:$0xff]  ;;  %v1570_v14 = vor.u32 %v1569_v18, %v1565_v16  ;;  %v1551_v6 = vshrl.u32 %v2922_v20, 16 }
  0xb4   : > { %1503 = vrot.lane.b32.xlu1 %v2267_v24, %s2446_s16  ;;  %v801_v11 = vpop.permute.xlu0 %800  ;;  %v977_v61 = vshll.u32 %v937_v7, 16  ;;  %v3001_v24 = vld [vmem:[%s3317_s1] sm:$0xff]   ;;  %v3374_v36 = vshll.u32 %v2922_v20, 16  ;;  %v1002_v28 = vor.u32 %v1001_v13, %v998_v26  ;;  %v988_v7 = vor.u32 %v987_v12, %v984_v32 }
  0xb5   : > { %1501 = vrot.lane.b32.xlu0 %v2266_v51, %s2446_s16  ;;  %v963_v25 = vshll.u32 %v935_v10, 16  ;;  %v1544_v51 = vshrl.u32 %v2926_v44, 16  ;;  %2330 = vmatprep.subr.bf16.mxu0 %v3001_v24  ;;  %v1572_v20 = vshrl.u32 %v2954_v40, 16  ;;  %v3060_v18 = vcombine.low %v3366_v43, %v3373_v9  ;;  %v3071_v43 = vld [vmem:[%s3317_s1 + $0x10] sm:$0xff]  }
  0xb6   : > { %v979_v37 = vrot.slane %v977_v61, 5  ;;  %2346 = vmatprep.subr.bf16.mxu1 %v3001_v24  ;;  %v1555_v23 = vrot.slane %v3374_v36, 1  ;;  %v3376_v61 = vshll.u32 %v2954_v40, 16  ;;  %v1579_v32 = vshrl.u32 %v2950_v17, 16  ;;  %v3380_v36 = vld [vmem:[#allocation10_spill] sm:$0xff] }
  0xb7   : > { %v965_v57 = vrot.slane %v963_v25, 5  ;;  %2350 = vmatpush3.bf16.msra.mxu1 %v3001_v24  ;;  %v3377_v40 = vshll.u32 %v2950_v17, 16  ;;  %v1618_v31 = vshrl.u32 %v2918_v35, 16  ;;  %v3378_v17 = vshll.u32 %v2918_v35, 16 }
  0xb8   : > { %1511 = vrot.lane.b32.xlu1 %v2271_v3, %s2446_s16  ;;  %v845_v3 = vmax.bf16 %v2679_v55, %v805_v54  ;;  %v980_v55 = vsel %vm3007_vm11, %v975_v41, %v979_v37  ;;  %v1576_v25 = vrot.slane %v3376_v61, 1  ;;  %v1556_v41 = vor.u32 %v1555_v23, %v1551_v6 }
  0xb9   : > { %1509 = vrot.lane.b32.xlu0 %v2270_v4, %s2446_s16  ;;  %v843_v4 = vmax.bf16 %v2687_v1, %v801_v11  ;;  %v885_v58 = vpop.permute.xlu1 %884  ;;  %v966_v50 = vsel %vm3007_vm11, %v961_v53, %v965_v57  ;;  %v3033_v1 = vld [vmem:[%s3317_s1 + $0x8] sm:$0xff]   ;;  %1075 = vst.msk [vmem:[%s3015_s22 + $0x4] sm:$0xf] %vm1073_vm9, %v980_v55  ;;  %v3047_v11 = vcombine.low %v2634_v2, %v3372_v52  ;;  %v1655_v2 = vshll.u32 %v2968_v42, 16 }
  0xba   : > { %v881_v15 = vpop.permute.xlu0 %880  ;;  %v925_v27 = vmax.bf16 %v3372_v52, %v885_v58  ;;  %1074 = vst.msk [vmem:[%s3015_s22] sm:$0xf] %vm1073_vm9, %v966_v50  ;;  %v2224_v44 = vcombine.low %v966_v50, %v980_v55  ;;  %2347 = vmatprep.subr.bf16.mxu1 %v3033_v1  ;;  %v1549_v53 = vor.u32 %v1548_v8, %v1544_v51  ;;  %v1583_v12 = vrot.slane %v3377_v40, 1  ;;  %v3087_v50 = vld [vmem:[%s3317_s1 + $0x18] sm:$0xff]  }
  0xbb   : > { %v923_v56 = vmax.bf16 %v3373_v9, %v881_v15  ;;  %2351 = vmatpush3.bf16.msra.mxu1 %v3033_v1  ;;  %v1003_v37 = vrot.slane %v1002_v28, 4  ;;  %v989_v57 = vrot.slane %v988_v7, 4  ;;  %v1622_v8 = vrot.slane %v3378_v17, 1 }
  0xbc   : > { %1587 = vrot.lane.b32.xlu1 %v1542_v19, %s2447_s28  ;;  %v941_v10 = vmax.bf16 %v925_v27, %v845_v3  ;;  %2322 = vmatprep.mubr.msk.bf16.mxu0 %vm1102_vm10, %v2224_v44  ;;  %v1584_v55 = vor.u32 %v1583_v12, %v1579_v32  ;;  %v3379_v44 = vshll.u32 %v2914_v39, 16  ;;  %v1634_v6 = vshll.u32 %v3060_v18, 16 }
  0xbd   : > { %1585 = vrot.lane.b32.xlu0 %v1535_v29, %s2447_s28  ;;  %v939_v54 = vmax.bf16 %v923_v56, %v843_v4  ;;  %v3375_v29 = vld [vmem:[#allocation9_spill] sm:$0xff]  ;;  %2348 = vmatprep.subr.bf16.mxu1 %v3071_v43  ;;  %v1625_v56 = vshrl.u32 %v2914_v39, 16  ;;  %v3102_v23 = vcombine.low %v3368_v22, %v3380_v36 }
  0xbe   : > { %v3051_v19 = vcombine.low %v2737_v47, %v3375_v29  ;;  %v811_v30 = vpop.permute.xlu1 %810  ;;  %v1005_v26 = vshll.u32 %v941_v10, 16  ;;  %v1636_v32 = vrot.slane %v1634_v6, 1 }
  0xbf   : > { %v807_v16 = vpop.permute.xlu0 %806  ;;  %v991_v13 = vshll.u32 %v939_v54, 16  ;;  %2352 = vmatpush3.bf16.msra.mxu1 %v3071_v43  ;;  %v848_v28 = vmax.bf16 %v2727_v45, %v811_v30  ;;  %v1653_v45 = vshrl.u32 %v2968_v42, 16  ;;  %v1657_v30 = vrot.slane %v1655_v2, 1 }
  0xc0   : > { %1595 = vrot.lane.b32.xlu1 %v1570_v14, %s2447_s28  ;;  %v1007_v3 = vrot.slane %v1005_v26, 5  ;;  %v1648_v58 = vshll.u32 %v3051_v19, 16  ;;  %v1629_v14 = vrot.slane %v3379_v44, 1  ;;  %2349 = vmatprep.subr.bf16.mxu1 %v3087_v50  ;;  %v846_v10 = vmax.bf16 %v2729_v46, %v807_v16 }
  0xc1   : > { %1593 = vrot.lane.b32.xlu0 %v1563_v21, %s2447_s28  ;;  %v993_v4 = vrot.slane %v991_v13, 5  ;;  %v1577_v21 = vor.u32 %v1576_v25, %v1572_v20  ;;  %v1646_v20 = vshrl.u32 %v3051_v19, 16  ;;  %v1641_v25 = vshll.u32 %v3047_v11, 16 }
  0xc2   : > { %v891_v51 = vpop.permute.xlu1 %890  ;;  %v1008_v52 = vsel %vm3007_vm11, %v1003_v37, %v1007_v3  ;;  %v1650_v61 = vrot.slane %v1648_v58, 1  ;;  %v1623_v46 = vor.u32 %v1622_v8, %v1618_v31  ;;  %v1630_v16 = vor.u32 %v1629_v14, %v1625_v56 }
  0xc3   : > { %v887_v15 = vpop.permute.xlu0 %886  ;;  %v994_v27 = vsel %vm3007_vm11, %v989_v57, %v993_v4  ;;  %v928_v9 = vmax.bf16 %v2735_v33, %v891_v51  ;;  %1077 = vst.msk [vmem:[%s3015_s22 + $0xc] sm:$0xf] %vm1073_vm9, %v1008_v52  ;;  %2353 = vmatpush3.bf16.msra.mxu1 %v3087_v50  ;;  %v1669_v19 = vshll.u32 %v3102_v23, 16  ;;  %v1658_v12 = vor.u32 %v1657_v30, %v1653_v45 }
  0xc4   : > { %1076 = vst.msk [vmem:[%s3015_s22 + $0x8] sm:$0xf] %vm1073_vm9, %v994_v27  ;;  %v926_v35 = vmax.bf16 %v2737_v47, %v887_v15  ;;  %1591 = vrot.lane.b32.xlu1 %v1556_v41, %s2447_s28  ;;  %v2225_v33 = vcombine.low %v994_v27, %v1008_v52  ;;  %v3381_v47 = vld [vmem:[#allocation11_spill] sm:$0xff]  ;;  %v1651_v2 = vor.u32 %v1650_v61, %v1646_v20  ;;  %v1639_v37 = vshrl.u32 %v3047_v11, 16 }
  0xc5   : > { %1589 = vrot.lane.b32.xlu0 %v1549_v53, %s2447_s28  ;;  %v3108_v7 = vcombine.low %v3367_v38, %v3381_v47  ;;  %v944_v26 = vmax.bf16 %v928_v9, %v848_v28  ;;  %v1643_v57 = vrot.slane %v1641_v25, 1  ;;  %v1667_v17 = vshrl.u32 %v3102_v23, 16 }
  0xc6   : > { %v819_v54 = vpop.permute.xlu1 %818  ;;  %2323 = vmatmul.mubr.msk.bf16.vlgmr.msra.gmra.mrb[0].mxu0 %vm1102_vm10, %v2225_v33  ;;  %v942_v13 = vmax.bf16 %v926_v35, %v846_v10  ;;  %v1671_v8 = vrot.slane %v1669_v19, 1 }
  0xc7   : > { %v815_v39 = vpop.permute.xlu0 %814  ;;  %2331 = vmatpush3.bf16.msra.mxu0 %v3001_v24  ;;  %v1662_v53 = vshll.u32 %v3108_v7, 16  ;;  %v1632_v24 = vshrl.u32 %v3060_v18, 16  ;;  %v1024_v40 = vshrl.u32 %v944_v26, 16  ;;  %v1027_v3 = vshll.u32 %v944_v26, 16 }
  0xc8   : > { %1599 = vrot.lane.b32.xlu1 %v1584_v55, %s2447_s28  ;;  %2332 = vmatprep.subr.bf16.mxu0 %v3033_v1  ;;  %v1010_v4 = vshrl.u32 %v942_v13, 16  ;;  %v1013_v58 = vshll.u32 %v942_v13, 16  ;;  %v1660_v15 = vshrl.u32 %v3108_v7, 16  ;;  %v852_v11 = vmax.bf16 %v2743_v48, %v819_v54 }
  0xc9   : > { %1597 = vrot.lane.b32.xlu0 %v1577_v21, %s2447_s28  ;;  %v1664_v31 = vrot.slane %v1662_v53, 1  ;;  %v850_v52 = vmax.bf16 %v2745_v49, %v815_v39  ;;  %v1637_v27 = vor.u32 %v1636_v32, %v1632_v24  ;;  %v1644_v9 = vor.u32 %v1643_v57, %v1639_v37 }
  0xca   : > { %v899_v41 = vpop.permute.xlu1 %898  ;;  %v1012_v56 = vrot.slane %v1010_v4, 4  ;;  %v1015_v35 = vrot.slane %v1013_v58, 5  ;;  %v1672_v6 = vor.u32 %v1671_v8, %v1667_v17 }
  0xcb   : > { %v895_v42 = vpop.permute.xlu0 %894  ;;  %2333 = vmatpush3.bf16.msra.mxu0 %v3033_v1  ;;  %v932_v51 = vmax.bf16 %v3368_v22, %v899_v41  ;;  %v1026_v22 = vrot.slane %v1024_v40, 4  ;;  %v1665_v14 = vor.u32 %v1664_v31, %v1660_v15 }
  0xcc   : > { %1675 = vrot.lane.b32.xlu1 %v1630_v16, %s2448_s10  ;;  %v930_v18 = vmax.bf16 %v3367_v38, %v895_v42  ;;  %2334 = vmatprep.subr.bf16.mxu0 %v3071_v43  ;;  %v1029_v38 = vrot.slane %v1027_v3, 5  ;;  %v1016_v10 = vor.u32 %v1015_v35, %v1012_v56  ;;  %v3382_v56 = vld [vmem:[#allocation12_spill] sm:$0xff] }
  0xcd   : > { %1673 = vrot.lane.b32.xlu0 %v1623_v46, %s2448_s10  ;;  %v948_v33 = vmax.bf16 %v932_v51, %v852_v11 }
  0xce   : > { %v813_v21 = vpop.permute.xlu1 %812  ;;  %v946_v48 = vmax.bf16 %v930_v18, %v850_v52  ;;  %v1030_v7 = vor.u32 %v1029_v38, %v1026_v22 }
  0xcf   : > { %v809_v1 = vpop.permute.xlu0 %808  ;;  %2335 = vmatpush3.bf16.msra.mxu0 %v3071_v43  ;;  %v849_v49 = vmax.bf16 %v2763_v59, %v813_v21  ;;  %v1052_v54 = vshrl.u32 %v948_v33, 16  ;;  %v1055_v39 = vshll.u32 %v948_v33, 16  ;;  %v3383_v33 = vld [vmem:[#allocation13_spill] sm:$0xff] }
  0xd0   : > { %1683 = vrot.lane.b32.xlu1 %v1658_v12, %s2448_s10  ;;  %2336 = vmatprep.subr.bf16.mxu0 %v3087_v50  ;;  %v847_v23 = vmax.bf16 %v2765_v0, %v809_v1  ;;  %v1038_v20 = vshrl.u32 %v946_v48, 16  ;;  %v1041_v61 = vshll.u32 %v946_v48, 16  ;;  %v1031_v30 = vrot.slane %v1030_v7, 4 }
  0xd1   : > { %1681 = vrot.lane.b32.xlu0 %v1651_v2, %s2448_s10  ;;  %v1054_v13 = vrot.slane %v1052_v54, 4 }
  0xd2   : > { %v893_v55 = vpop.permute.xlu1 %892  ;;  %v1040_v46 = vrot.slane %v1038_v20, 4  ;;  %v1043_v16 = vrot.slane %v1041_v61, 5  ;;  %v3387_v61 = vld [vmem:[#allocation16_spill] sm:$0xff] }
  0xd3   : > { %v889_v44 = vpop.permute.xlu0 %888  ;;  %v929_v43 = vmax.bf16 %v2771_v60, %v893_v55  ;;  %2337 = vmatpush3.bf16.msra.mxu0 %v3087_v50  ;;  %v1057_v50 = vrot.slane %v1055_v39, 5  ;;  %v3386_v39 = vld [vmem:[#allocation17_spill] sm:$0xff] }
  0xd4   : > { %v927_v28 = vmax.bf16 %v3375_v29, %v889_v44  ;;  %1679 = vrot.lane.b32.xlu1 %v1644_v9, %s2448_s10  ;;  %v1017_v29 = vrot.slane %v1016_v10, 4  ;;  %v1044_v3 = vor.u32 %v1043_v16, %v1040_v46 }
  0xd5   : > { %1677 = vrot.lane.b32.xlu0 %v1637_v27, %s2448_s10  ;;  %v945_v25 = vmax.bf16 %v929_v43, %v849_v49 }
  0xd6   : > { %v943_v59 = vmax.bf16 %v927_v28, %v847_v23  ;;  %v821_v26 = vpop.permute.xlu1 %820  ;;  %v1045_v11 = vrot.slane %v1044_v3, 4  ;;  %v3385_v23 = vld [vmem:[#allocation14_spill] sm:$0xff] }
  0xd7   : > { %v817_v0 = vpop.permute.xlu0 %816  ;;  %v1033_v45 = vshll.u32 %v945_v25, 16  ;;  %v853_v41 = vmax.bf16 %v2779_v62, %v821_v26  ;;  %v1058_v62 = vor.u32 %v1057_v50, %v1054_v13 }
  0xd8   : > { %v1019_v60 = vshll.u32 %v943_v59, 16  ;;  %1687 = vrot.lane.b32.xlu1 %v1672_v6, %s2448_s10  ;;  %v851_v42 = vmax.bf16 %v2781_v63, %v817_v0  ;;  %v3384_v6 = vld [vmem:[#allocation15_spill] sm:$0xff] }
  0xd9   : > { %1685 = vrot.lane.b32.xlu0 %v1665_v14, %s2448_s10  ;;  %v1035_v19 = vrot.slane %v1033_v45, 5 }
  0xda   : > { %v1021_v53 = vrot.slane %v1019_v60, 5  ;;  %v901_v2 = vpop.permute.xlu1 %900 }
  0xdb   : > { %v897_v24 = vpop.permute.xlu0 %896  ;;  %v1036_v32 = vsel %vm3007_vm11, %v1031_v30, %v1035_v19  ;;  %v933_v12 = vmax.bf16 %v3380_v36, %v901_v2  ;;  %v1059_v36 = vrot.slane %v1058_v62, 4  ;;  %v3388_v30 = vld [vmem:[#allocation18_spill] sm:$0xff] }
  0xdc   : > { %v1022_v40 = vsel %vm3007_vm11, %v1017_v29, %v1021_v53  ;;  %v931_v37 = vmax.bf16 %v3381_v47, %v897_v24  ;;  %1079 = vst.msk [vmem:[%s3015_s22 + $0x14] sm:$0xf] %vm1073_vm9, %v1036_v32 }
  0xdd   : > { %1078 = vst.msk [vmem:[%s3015_s22 + $0x10] sm:$0xf] %vm1073_vm9, %v1022_v40  ;;  %v2226_v57 = vcombine.low %v1022_v40, %v1036_v32  ;;  %v949_v63 = vmax.bf16 %v933_v12, %v853_v41 }
  0xde   : > { %v947_v4 = vmax.bf16 %v931_v37, %v851_v42  ;;  %v1228_v58 = vpop.permute.xlu1 %1227 }
  0xdf   : > { %2326 = vmatprep.mubr.msk.bf16.mxu0 %vm1102_vm10, %v2226_v57  ;;  %v1226_v51 = vpop.permute.xlu0 %1225  ;;  %v1061_v18 = vshll.u32 %v949_v63, 16  ;;  %v1695_v35 = vsel %vm1689_vm12, %v3382_v56, %v1228_v58 }
  0xe0   : > { %v1047_v15 = vshll.u32 %v947_v4, 16  ;;  %v1692_v34 = vsel %vm1689_vm12, %v3383_v33, %v1226_v51 }
  0xe1   : > { %v1063_v47 = vrot.slane %v1061_v18, 5 }
  0xe2   : > { %v1049_v21 = vrot.slane %v1047_v15, 5  ;;  %v1236_v1 = vpop.permute.xlu1 %1235 }
  0xe3   : > { %v1234_v31 = vpop.permute.xlu0 %1233  ;;  %v1064_v17 = vsel %vm3007_vm11, %v1059_v36, %v1063_v47  ;;  %v1707_v49 = vsel %vm1689_vm12, %v3384_v6, %v1236_v1 }
  0xe4   : > { %v1050_v8 = vsel %vm3007_vm11, %v1045_v11, %v1049_v21  ;;  %1081 = vst.msk [vmem:[%s3015_s22 + $0x1c] sm:$0xf] %vm1073_vm9, %v1064_v17  ;;  %v1704_v43 = vsel %vm1689_vm12, %v3385_v23, %v1234_v31 }
  0xe5   : > { %1080 = vst.msk [vmem:[%s3015_s22 + $0x18] sm:$0xf] %vm1073_vm9, %v1050_v8  ;;  %v2227_v22 = vcombine.low %v1050_v8, %v1064_v17 }
  0xe6   : > { %v1232_v52 = vpop.permute.xlu1 %1231 }
  0xe7   : > { %2327 = vmatmul.mubr.msk.bf16.gmra.mrb[4].mxu0 %vm1102_vm10, %v2227_v22  ;;  %v1230_v27 = vpop.permute.xlu0 %1229  ;;  %v1701_v20 = vsel %vm1689_vm12, %v3386_v39, %v1232_v52 }
  0xe8   : > { %v1698_v25 = vsel %vm1689_vm12, %v3387_v61, %v1230_v27 }
  0xea   : > { %v1240_v9 = vpop.permute.xlu1 %1239 }
  0xeb   : > { %v1238_v38 = vpop.permute.xlu0 %1237  ;;  %v1713_v60 = vsel %vm1689_vm12, %v2856_v5, %v1240_v9 }
  0xec   : > { %v1710_v29 = vsel %vm1689_vm12, %v3388_v30, %v1238_v38 }
  0xee   : > { %v1340_v55 = vpop.permute.xlu1 %1339 }
  0xef   : > { %v1338_v48 = vpop.permute.xlu0 %1337  ;;  %v1718_v14 = vsel %vm1714_vm13, %v1695_v35, %v1340_v55 }
  0xf0   : > { %v1716_v44 = vsel %vm1714_vm13, %v1692_v34, %v1338_v48 }
  0xf2   : > { %v1348_v7 = vpop.permute.xlu1 %1347 }
  0xf3   : > { %v1346_v28 = vpop.permute.xlu0 %1345  ;;  %v3183_v54 = vsel %vm1714_vm13, %v1707_v49, %v1348_v7 }
  0xf4   : > { %v3180_v10 = vsel %vm1714_vm13, %v1704_v43, %v1346_v28 }
  0xf6   : > { %v1344_v26 = vpop.permute.xlu1 %1343 }
  0xf7   : > { %v1342_v59 = vpop.permute.xlu0 %1341  ;;  %v3193_v45 = vsel %vm1714_vm13, %v1701_v20, %v1344_v26 }
  0xf8   : > { %v3190_v0 = vsel %vm1714_vm13, %v1698_v25, %v1342_v59 }
  0xfa   : > { %v1352_v50 = vpop.permute.xlu1 %1351 }
  0xfb   : > { %v1350_v13 = vpop.permute.xlu0 %1349  ;;  %v3203_v16 = vsel %vm1714_vm13, %v1713_v60, %v1352_v50 }
  0xfc   : > { %v3200_v46 = vsel %vm1714_vm13, %v1710_v29, %v1350_v13 }
  0xfe   : > { %v1436_v53 = vpop.permute.xlu1 %1435 }
  0xff   : > { %v1434_v19 = vpop.permute.xlu0 %1433  ;;  %v1735_v56 = vsel %vm1731_vm14, %v1718_v14, %v1436_v53 }
 0x100   : > { %v1733_v38 = vsel %vm1731_vm14, %v1716_v44, %v1434_v19 }
 0x102   : > { %v1444_v42 = vpop.permute.xlu1 %1443 }
 0x103   : > { %v1442_v41 = vpop.permute.xlu0 %1441  ;;  %v1743_v14 = vsel %vm1731_vm14, %v3183_v54, %v1444_v42 }
 0x104   : > { %v1741_v44 = vsel %vm1731_vm14, %v3180_v10, %v1442_v41 }
 0x106   : > { %v1440_v24 = vpop.permute.xlu1 %1439 }
 0x107   : > { %v1438_v2 = vpop.permute.xlu0 %1437  ;;  %v1739_v30 = vsel %vm1731_vm14, %v3193_v45, %v1440_v24 }
 0x108   : > { %v1737_v60 = vsel %vm1731_vm14, %v3190_v0, %v1438_v2 }
 0x10a   : > { %v3207_v5 = vpop.permute.xlu1 %1447 }
 0x10b   : > { %v3205_v32 = vpop.permute.xlu0 %1445 }
 0x10c   : > { %v1745_v24 = vsel %vm1731_vm14, %v3200_v46, %v3205_v32 }
 0x10e   : > { %v1468_v12 = vpop.permute.xlu1 %1467 }
 0x10f   : > { %v1466_v40 = vpop.permute.xlu0 %1465  ;;  %v1752_v33 = vsel %vm1748_vm15, %v1735_v56, %v1468_v12  ;;  %v1747_v12 = vsel %vm1731_vm14, %v3203_v16, %v3207_v5 }
 0x110   : > { %v1750_v35 = vsel %vm1748_vm15, %v1733_v38, %v1466_v40 }
 0x112   : > { %v1476_v57 = vpop.permute.xlu1 %1475 }
 0x113   : > { %v1474_v37 = vpop.permute.xlu0 %1473  ;;  %v1760_v39 = vsel %vm1748_vm15, %v1743_v14, %v1476_v57 }
 0x114   : > { %v1758_v7 = vsel %vm1748_vm15, %v1741_v44, %v1474_v37 }
 0x116   : > { %v1472_v3 = vpop.permute.xlu1 %1471 }
 0x117   : > { %v1470_v62 = vpop.permute.xlu0 %1469  ;;  %v1756_v19 = vsel %vm1748_vm15, %v1739_v30, %v1472_v3 }
 0x118   : > { %v1754_v50 = vsel %vm1748_vm15, %v1737_v60, %v1470_v62 }
 0x11a   : > { %v3211_v4 = vpop.permute.xlu1 %1479 }
 0x11b   : > { %v3209_v63 = vpop.permute.xlu0 %1477  ;;  %v1764_v3 = vsel %vm1748_vm15, %v1747_v12, %v3211_v4  ;;  %v2223_v4 = vld [vmem:[%s3320_s4] ss:$0 sm:$0xff] }
 0x11c   : > { %v1762_v62 = vsel %vm1748_vm15, %v1745_v24, %v3209_v63 }
 0x11e   : > { %v1500_v51 = vpop.permute.xlu1 %1499 }
 0x11f   : > { %v1498_v58 = vpop.permute.xlu0 %1497  ;;  %v1769_v48 = vsel %vm1765_vm0, %v1752_v33, %v1500_v51 }
 0x120   : > { %v1767_v34 = vsel %vm1765_vm0, %v1750_v35, %v1498_v58 }
 0x122   : > { %v1508_v15 = vpop.permute.xlu1 %1507 }
 0x123   : > { %v1506_v18 = vpop.permute.xlu0 %1505  ;;  %v1777_v25 = vsel %vm1765_vm0, %v1760_v39, %v1508_v15 }
 0x124   : > { %v1775_v61 = vsel %vm1765_vm0, %v1758_v7, %v1506_v18 }
 0x126   : > { %v1504_v11 = vpop.permute.xlu1 %1503 }
 0x127   : > { %v1502_v36 = vpop.permute.xlu0 %1501  ;;  %v1773_v42 = vsel %vm1765_vm0, %v1756_v19, %v1504_v11 }
 0x128   : > { %v1771_v41 = vsel %vm1765_vm0, %v1754_v50, %v1502_v36 }
 0x12a   : > { %v1512_v21 = vpop.permute.xlu1 %1511 }
 0x12b   : > { %v1510_v47 = vpop.permute.xlu0 %1509  ;;  %v1781_v46 = vsel %vm1765_vm0, %v1764_v3, %v1512_v21 }
 0x12c   : > { %v1779_v51 = vsel %vm1765_vm0, %v1762_v62, %v1510_v47 }
 0x12e   : > { %v1588_v31 = vpop.permute.xlu1 %1587 }
 0x12f   : > { %v1586_v1 = vpop.permute.xlu0 %1585  ;;  %v1786_v6 = vsel %vm1782_vm1, %v1769_v48, %v1588_v31 }
 0x130   : > { %v1784_v55 = vsel %vm1782_vm1, %v1767_v34, %v1586_v1 }
 0x132   : > { %v1596_v8 = vpop.permute.xlu1 %1595 }
 0x133   : > { %v1594_v17 = vpop.permute.xlu0 %1593  ;;  %v1794_v10 = vsel %vm1782_vm1, %v1777_v25, %v1596_v8 }
 0x134   : > { %v1792_v59 = vsel %vm1782_vm1, %v1775_v61, %v1594_v17 }
 0x136   : > { %v1592_v52 = vpop.permute.xlu1 %1591 }
 0x137   : > { %v1590_v22 = vpop.permute.xlu0 %1589  ;;  %v1790_v0 = vsel %vm1782_vm1, %v1773_v42, %v1592_v52 }
 0x138   : > { %v1788_v40 = vsel %vm1782_vm1, %v1771_v41, %v1590_v22 }
 0x13a   : > { %v1600_v9 = vpop.permute.xlu1 %1599 }
 0x13b   : > { %v1598_v27 = vpop.permute.xlu0 %1597  ;;  %v1798_v16 = vsel %vm1782_vm1, %v1781_v46, %v1600_v9 }
 0x13c   : > { %v1796_v32 = vsel %vm1782_vm1, %v1779_v51, %v1598_v27 }
 0x13e   : > { %v1676_v23 = vpop.permute.xlu1 %1675 }
 0x13f   : > { %v1674_v49 = vpop.permute.xlu0 %1673  ;;  %v1803_v28 = vsel %vm1799_vm3, %v1786_v6, %v1676_v23 }
 0x140   : > { %v1801_v43 = vsel %vm1799_vm3, %v1784_v55, %v1674_v49 }
 0x141   : > { %v2289_v20 = vcombine.low %v1801_v43, %v1803_v28  ;;  %v2288_v28 = vld [vmem:[%s3318_s2] ss:$0 sm:$0xff] }
 0x142   : > { %v1684_v54 = vpop.permute.xlu1 %1683 }
 0x143   : > { %v1682_v26 = vpop.permute.xlu0 %1681  ;;  %2338 = vmatprep.mubr.msk.bf16.mxu0 %vm1875_vm4, %v2289_v20  ;;  %v1811_v13 = vsel %vm1799_vm3, %v1794_v10, %v1684_v54 }
 0x144   : > { %v1809_v29 = vsel %vm1799_vm3, %v1792_v59, %v1682_v26 }
 0x145   : > { %v2291_v53 = vcombine.low %v1809_v29, %v1811_v13 }
 0x146   : > { %v1680_v45 = vpop.permute.xlu1 %1679 }
 0x147   : > { %v1678_v2 = vpop.permute.xlu0 %1677  ;;  %2342 = vmatprep.mubr.msk.bf16.mxu1 %vm1875_vm4, %v2291_v53  ;;  %v1807_v57 = vsel %vm1799_vm3, %v1790_v0, %v1680_v45 }
 0x148   : > { %v1805_v37 = vsel %vm1799_vm3, %v1788_v40, %v1678_v2 }
 0x149   : > { %v2290_v58 = vcombine.low %v1805_v37, %v1807_v57 }
 0x14a   : > { %v1688_v18 = vpop.permute.xlu1 %1687 }
 0x14b   : > { %v1686_v5 = vpop.permute.xlu0 %1685  ;;  %2339 = vmatmul.mubr.msk.bf16.vlgmr.msra.gmra.mrb[8].mxu0 %vm1875_vm4, %v2290_v58  ;;  %v1815_v63 = vsel %vm1799_vm3, %v1798_v16, %v1688_v18 }
 0x14c   : > { %v1813_v15 = vsel %vm1799_vm3, %v1796_v32, %v1686_v5 }
 0x14d   : > { %v2292_v36 = vcombine.low %v1813_v15, %v1815_v63 }
 0x14f   : > { %2343 = vmatmul.mubr.msk.bf16.vlgmr.msra.gmra.mrb[0].mxu1 %vm1875_vm4, %v2292_v36 }
 0x199   : > { %v2324_v11 = vpop.f32.mrb[0].mxu0 }
 0x19a   : > { %v1162_v47 = vadd.f32 %v2324_v11, %v2223_v4  ;;  %v1153_v21 = vpop.f32.mrb[1].mxu0 }
 0x19b   : > { %v1154_v1 = vadd.f32 %v2223_v4, %v1153_v21  ;;  %v2325_v31 = vpop.f32.mrb[2].mxu0 }
 0x19c   : > { %v1186_v17 = vpack.c.bf16 %v1162_v47, %v1162_v47  ;;  %v1165_v8 = vadd.f32 %v2325_v31, %v2223_v4  ;;  %v1156_v22 = vpop.f32.mrb[3].mxu0 }
 0x19d   : > { %v1184_v52 = vpack.c.bf16 %v1154_v1, %v1154_v1  ;;  %v1157_v27 = vadd.f32 %v2223_v4, %v1156_v22 }
 0x19e   : > { %1195 = vst.msk [vmem:[%s337_s15 + $0x8] sm:$0xf] %vm354_vm2, %v1186_v17  ;;  %v1187_v9 = vpack.c.bf16 %v1165_v8, %v1165_v8 }
 0x19f   : > { %1193 = vst.msk [vmem:[%s337_s15] sm:$0xf] %vm354_vm2, %v1184_v52  ;;  %v1185_v38 = vpack.c.bf16 %v1157_v27, %v1157_v27 }
 0x1a0   : > { %1196 = vst.msk [vmem:[%s337_s15 + $0xc] sm:$0xf] %vm354_vm2, %v1187_v9 }
 0x1a1   : > { %1194 = vst.msk [vmem:[%s337_s15 + $0x4] sm:$0xf] %vm354_vm2, %v1185_v38 }
 0x1ba   : > { %v2328_v56 = vpop.f32.mrb[4].mxu0 }
 0x1bb   : > { %v1178_v35 = vadd.f32 %v2328_v56, %v2223_v4  ;;  %v1169_v33 = vpop.f32.mrb[5].mxu0 }
 0x1bc   : > { %v1170_v34 = vadd.f32 %v2223_v4, %v1169_v33  ;;  %v2329_v48 = vpop.f32.mrb[6].mxu0 }
 0x1bd   : > { %v1190_v55 = vpack.c.bf16 %v1178_v35, %v1178_v35  ;;  %v1181_v6 = vadd.f32 %v2329_v48, %v2223_v4  ;;  %v1172_v49 = vpop.f32.mrb[7].mxu0 }
 0x1be   : > { %v1188_v23 = vpack.c.bf16 %v1170_v34, %v1170_v34  ;;  %v1173_v44 = vadd.f32 %v2223_v4, %v1172_v49 }
 0x1bf   : > { %1199 = vst.msk [vmem:[%s337_s15 + $0x18] sm:$0xf] %vm354_vm2, %v1190_v55  ;;  %v1191_v14 = vpack.c.bf16 %v1181_v6, %v1181_v6 }
 0x1c0   : > { %1197 = vst.msk [vmem:[%s337_s15 + $0x10] sm:$0xf] %vm354_vm2, %v1188_v23  ;;  %v1189_v43 = vpack.c.bf16 %v1173_v44, %v1173_v44 }
 0x1c1   : > { %1200 = vst.msk [vmem:[%s337_s15 + $0x1c] sm:$0xf] %vm354_vm2, %v1191_v14 }
 0x1c2   : > { %1198 = vst.msk [vmem:[%s337_s15 + $0x14] sm:$0xf] %vm354_vm2, %v1189_v43 }
 0x21e   : > { %v2340_v7 = vpop.f32.mrb[8].mxu0 }
 0x21f   : > { %v1931_v39 = vadd.f32 %v2340_v7, %v2288_v28  ;;  %v1922_v20 = vpop.f32.mrb[9].mxu0 }
 0x220   : > { %v1923_v61 = vadd.f32 %v2288_v28, %v1922_v20  ;;  %v2341_v25 = vpop.f32.mrb[10].mxu0 }
 0x221   : > { %v1955_v59 = vmax.f32 %v1931_v39, 0.0  ;;  %v1934_v10 = vadd.f32 %v2341_v25, %v2288_v28  ;;  %v1925_v26 = vpop.f32.mrb[11].mxu0 }
 0x222   : > { %v1953_v54 = vmax.f32 %v1923_v61, 0.0  ;;  %v1926_v60 = vadd.f32 %v2288_v28, %v1925_v26  ;;  %v2344_v30 = vpop.f32.mrb[0].mxu1 }
 0x223   : > { %v1963_v29 = vpack.c.bf16 %v1955_v59, %v1955_v59  ;;  %v1956_v13 = vmax.f32 %v1934_v10, 0.0  ;;  %v1947_v50 = vadd.f32 %v2344_v30, %v2288_v28  ;;  %v1938_v19 = vpop.f32.mrb[1].mxu1 }
 0x224   : > { %v1961_v53 = vpack.c.bf16 %v1953_v54, %v1953_v54  ;;  %v1954_v41 = vmax.f32 %v1926_v60, 0.0  ;;  %v1939_v42 = vadd.f32 %v2288_v28, %v1938_v19  ;;  %v2345_v40 = vpop.f32.mrb[2].mxu1 }
 0x225   : > { %1971 = vst.msk [vmem:[%s3289_s21 + $0x8] sm:$0xf] %vm354_vm2, %v1963_v29  ;;  %v1964_v0 = vpack.c.bf16 %v1956_v13, %v1956_v13  ;;  %v1959_v2 = vmax.f32 %v1947_v50, 0.0  ;;  %v1950_v45 = vadd.f32 %v2345_v40, %v2288_v28  ;;  %v1941_v24 = vpop.f32.mrb[3].mxu1 }
 0x226   : > { %1969 = vst.msk [vmem:[%s3289_s21] sm:$0xf] %vm354_vm2, %v1961_v53  ;;  %v1962_v12 = vpack.c.bf16 %v1954_v41, %v1954_v41  ;;  %v1957_v37 = vmax.f32 %v1939_v42, 0.0  ;;  %v1942_v57 = vadd.f32 %v2288_v28, %v1941_v24 }
 0x227   : > { %1972 = vst.msk [vmem:[%s3289_s21 + $0xc] sm:$0xf] %vm354_vm2, %v1964_v0  ;;  %v1967_v62 = vpack.c.bf16 %v1959_v2, %v1959_v2  ;;  %v1960_v3 = vmax.f32 %v1950_v45, 0.0 }
 0x228   : > { %1970 = vst.msk [vmem:[%s3289_s21 + $0x4] sm:$0xf] %vm354_vm2, %v1962_v12  ;;  %v1965_v58 = vpack.c.bf16 %v1957_v37, %v1957_v37  ;;  %v1958_v51 = vmax.f32 %v1942_v57, 0.0 }
 0x229   : > { %1975 = vst.msk [vmem:[%s3289_s21 + $0x18] sm:$0xf] %vm354_vm2, %v1967_v62  ;;  %v1968_v46 = vpack.c.bf16 %v1960_v3, %v1960_v3 }
 0x22a   : > { %1973 = vst.msk [vmem:[%s3289_s21 + $0x10] sm:$0xf] %vm354_vm2, %v1965_v58  ;;  %v1966_v32 = vpack.c.bf16 %v1958_v51, %v1958_v51 }
 0x22b   : > { %1976 = vst.msk [vmem:[%s3289_s21 + $0x1c] sm:$0xf] %vm354_vm2, %v1968_v46 }
 0x22c   : > { %1974 = vst.msk [vmem:[%s3289_s21 + $0x14] sm:$0xf] %vm354_vm2, %v1966_v32 }
 0x22d PF: > { %s18_s26 = sadd.s32 1, %s2438_s26   ;;  %s3389_s24 = smov %s2434_s25 }
 0x22e   : > { %p15_p5 = scmp.ge.s32.totalorder %s18_s26, 4   ;;  %s3390_s25 = smov %s3392_s27 }
 0x230   :  { %17 = sbr.rel (!%p15_p5) target bundleno = 2 (0x2), region = 105 }

</bundles_post_ra>
